<compile_context>
chip_gen: v6e
topology: v6e:2x2x1
jax: 0.10.0
libtpu: 0.0.40
codegen_flags: <defaults>
</compile_context>

<pallas_src>
import numpy as np
import jax
import jax.numpy as jnp
from jax import lax
from jax.experimental import pallas as pl
from jax.experimental.pallas import tpu as pltpu

# (C_in, C_out, num_groups) for each prepool conv1x1 + GroupNorm + ReLU
PREPOOL = [(4, 64, 8), (64, 64, 8), (64, 64, 8), (64, 128, 8), (128, 1024, 16)]
# (C_in, C_out, num_groups) for postpool Linear + GroupNorm + ReLU
POSTPOOL = [(1024, 512, 16), (512, 256, 16)]
GROUP_CONFIGS = [(64, 8), (128, 8), (1024, 16), (512, 16), (256, 16)]
GIDX = {cfg: i for i, cfg in enumerate(GROUP_CONFIGS)}
EPS = 1e-5        # torch.nn.GroupNorm default
OUT_PAD = 128     # lane-dense output width (final layer zero-padded to this)


def _group_mats(C, G, denom):
    """Lane-dense (G, C) group-indicator matrix; the scaled copy folds in 1/denom."""
    grp = np.arange(C) // (C // G)
    st = (np.arange(G)[:, None] == grp[None, :]).astype(np.float32)   # (G, C)
    return jnp.asarray(st / denom), jnp.asarray(st)


def init_params(key, weights_dim=(3,)):
    """Deterministic synthetic parameters matching the PyTorch module's shapes.

    Weights are stored pre-transposed as (C_in, C_out) in bfloat16 (MXU-native
    input dtype); biases and GroupNorm affine params stay float32.
    """
    out_dim = 2 + int(np.prod(weights_dim))
    layers = []
    dims = PREPOOL + POSTPOOL + [(256, out_dim, None)]
    for (cin, cout, g) in dims:
        key, k1, k2, k3, k4 = jax.random.split(key, 5)
        wt = (jax.random.normal(k1, (cin, cout), jnp.float32)
              / np.sqrt(cin)).astype(jnp.bfloat16)
        b = 0.1 * jax.random.normal(k2, (1, cout), jnp.float32)
        if g is not None:
            gamma = 1.0 + 0.1 * jax.random.normal(k3, (1, cout), jnp.float32)
            beta = 0.1 * jax.random.normal(k4, (1, cout), jnp.float32)
            layers.append((wt, b, gamma, beta))
        else:
            layers.append((wt, b))
    return layers, out_dim


def _choose_tb(B, N):
    """Batch elements folded per grid step.

    Aim for tb*N >= 256 rows (fills the 256-wide MXU on v6e/v7x), never pad past
    the real batch, and keep at least 2 grid steps when B >= 2 so the 'parallel'
    grid axis can shard across v7x's two TensorCores.
    """
    tb = max(1, min(B, pl.cdiv(256, N)))
    if B >= 2 and pl.cdiv(B, tb) < 2:
        tb = pl.cdiv(B, 2)
    return tb


def make_kernel(tb, n_points):
    tbn = tb * n_points

    def gn_scale_shift(ssum, ssq, sts_ref, st_ref, gamma_ref, beta_ref):
        """Per-(batch, channel) affine (scale, shift) implementing GroupNorm.

        ssum / ssq: (tb, C) f32 per-batch channel sums of x and x^2 over the
        normalization's spatial extent.  Group reduce/broadcast use tiny
        lane-dense (G, C) indicator dots at HIGHEST precision; 1/denominator is
        already folded into `sts`.
        """
        sts = sts_ref[...]                                  # (G, C) * (1/denom)
        st = st_ref[...]                                    # (G, C)
        dn = (((1,), (1,)), ((), ()))                       # contract channel dims
        hp = lax.Precision.HIGHEST
        gm = lax.dot_general(ssum, sts, dn, precision=hp,
                             preferred_element_type=jnp.float32)           # (tb, G)
        gms = lax.dot_general(ssq, sts, dn, precision=hp,
                              preferred_element_type=jnp.float32)          # (tb, G)
        mean = jnp.dot(gm, st, precision=hp,
                       preferred_element_type=jnp.float32)                 # (tb, C)
        meansq = jnp.dot(gms, st, precision=hp,
                         preferred_element_type=jnp.float32)               # (tb, C)
        # E[x^2]-E[x]^2 can go slightly negative from cancellation: clamp.
        var = jnp.maximum(meansq - mean * mean, 0.0)
        rstd = lax.rsqrt(var + EPS)
        scale = rstd * gamma_ref[...]                                       # (tb, C)
        shift = beta_ref[...] - mean * scale                                # (tb, C)
        return scale, shift

    def kernel(*refs):
        x_ref = refs[0]
        out_ref = refs[-1]
        p = refs[1:-1]
        pre = [p[4 * i:4 * i + 4] for i in range(len(PREPOOL))]
        off = 4 * len(PREPOOL)
        fc1 = p[off:off + 4]
        fc2 = p[off + 4:off + 8]
        fc3 = p[off + 8:off + 10]
        off += 10
        smats = [(p[off + 2 * i], p[off + 2 * i + 1])
                 for i in range(len(GROUP_CONFIGS))]

        def prepool_gn_relu(y2, cout, G, g_ref, bt_ref):
            # (tb*N, C) -> (tb, N, C) is a leading-dim split (N % 8 == 0), ~free.
            y3 = y2.reshape(tb, n_points, cout)
            ssum = jnp.sum(y3, axis=1)                       # (tb, C) XLU reduce
            ssq = jnp.sum(y3 * y3, axis=1)                   # (tb, C)
            sts_ref, st_ref = smats[GIDX[(cout, G)]]
            scale, shift = gn_scale_shift(ssum, ssq, sts_ref, st_ref, g_ref, bt_ref)
            # per-batch affine applied with a (tb, 1, C) broadcast (no matmul)
            return jnp.maximum(y3 * scale[:, None, :] + shift[:, None, :], 0.0)

        # ---- prepool layer 0: K=4 conv1x1 as 4 exact-f32 VPU broadcast-FMAs ----
        x2 = x_ref[...]                                      # (tb*N, 4) f32
        w0_ref, b0_ref, g0_ref, bt0_ref = pre[0]
        w0 = w0_ref[...].astype(jnp.float32)                 # (4, 64)
        y2 = x2[:, 0:1] * w0[0:1, :]
        for k in range(1, 4):
            y2 = y2 + x2[:, k:k + 1] * w0[k:k + 1, :]
        y2 = y2 + b0_ref[...]                                # (tb*N, 64) f32
        hf3 = prepool_gn_relu(y2, PREPOOL[0][1], PREPOOL[0][2], g0_ref, bt0_ref)
        h2 = hf3.reshape(tbn, PREPOOL[0][1]).astype(jnp.bfloat16)

        # ---- prepool layers 1..4: conv1x1 (MXU, bf16 x bf16 -> f32) + GN + ReLU ----
        for li in range(1, len(PREPOOL)):
            wt_ref, b_ref, g_ref, bt_ref = pre[li]
            _cin, cout, G = PREPOOL[li]
            y2 = jnp.dot(h2, wt_ref[...],
                         preferred_element_type=jnp.float32) + b_ref[...]  # (tb*N, C)
            hf3 = prepool_gn_relu(y2, cout, G, g_ref, bt_ref)
            if li + 1 < len(PREPOOL):
                h2 = hf3.reshape(tbn, cout).astype(jnp.bfloat16)

        # ---- AdaptiveMaxPool1d(1): one XLU reduction over the point axis ----
        pooled = jnp.max(hf3, axis=1)                        # (tb, 1024) f32

        # ---- postpool: 2 x (Linear -> GroupNorm -> ReLU), all tb rows at once ----
        hp = pooled
        for (wt_ref, b_ref, g_ref, bt_ref), (_cin, cout, G) in zip([fc1, fc2], POSTPOOL):
            y = jnp.dot(hp.astype(jnp.bfloat16), wt_ref[...],
                        preferred_element_type=jnp.float32) + b_ref[...]   # (tb, C)
            sts_ref, st_ref = smats[GIDX[(cout, G)]]
            scale, shift = gn_scale_shift(y, y * y, sts_ref, st_ref, g_ref, bt_ref)
            hp = jnp.maximum(y * scale + shift, 0.0)

        # ---- final Linear, padded to a lane-dense 128-wide output slab ----
        wt_ref, b_ref = fc3
        final = jnp.dot(hp.astype(jnp.bfloat16), wt_ref[...],
                        preferred_element_type=jnp.float32) + b_ref[...]   # (tb, 128)
        out_ref[0] = final

    return kernel


def parameter_prediction_forward(src, ref_pts, layers, out_dim):
    """src: (B, J, 3), ref_pts: (B, K, 3). Returns (beta, alpha), each (B,)."""
    B, J, _ = src.shape
    K = ref_pts.shape[1]
    N = J + K
    if N % 8 != 0:
        # TODO(synk): pad the point axis to a multiple of 8 and mask the padded
        # points out of the GroupNorm statistics and the max-pool.
        raise NotImplementedError("J + K must be a multiple of 8")

    # Glue: pad src with 0, ref with 1 (4th channel), concat along the point axis.
    src_p = jnp.pad(src, ((0, 0), (0, 0), (0, 1)), constant_values=0.0)
    ref_p = jnp.pad(ref_pts, ((0, 0), (0, 0), (0, 1)), constant_values=1.0)
    x = jnp.concatenate([src_p, ref_p], axis=1).astype(jnp.float32)   # (B, N, 4)

    # Fold tb batch elements into the matmul M dimension per grid step.
    tb = _choose_tb(B, N)
    b_pad = pl.cdiv(B, tb) * tb
    if b_pad != B:
        x = jnp.pad(x, ((0, b_pad - B), (0, 0), (0, 0)))
    n_steps = b_pad // tb
    x_flat = x.reshape(b_pad * N, 4)
    tbn = tb * N

    # Group-indicator matrices, lane-dense (G, C), with 1/denominator folded in.
    denoms = {}
    for (_, cout, G) in PREPOOL:
        denoms[(cout, G)] = float(N * (cout // G))
    for (_, cout, G) in POSTPOOL:
        denoms[(cout, G)] = float(cout // G)
    smats = [_group_mats(C, G, denoms[(C, G)]) for (C, G) in GROUP_CONFIGS]

    # Final layer padded to OUT_PAD lanes so the output store is lane-dense.
    param_arrays = []
    for layer in layers[:-1]:
        param_arrays.extend(layer)
    wt3, b3 = layers[-1]
    wt3p = jnp.zeros((wt3.shape[0], OUT_PAD), jnp.bfloat16).at[:, :out_dim].set(wt3)
    b3p = jnp.zeros((1, OUT_PAD), jnp.float32).at[:, :out_dim].set(b3)
    param_arrays.extend([wt3p, b3p])
    for (sts, st) in smats:
        param_arrays.extend([sts, st])

    in_specs = [pl.BlockSpec((tbn, 4), lambda g: (g, 0))]    # point-cloud slab
    # TODO(synk): the constant-parameter specs below could use
    # pipeline_mode=pl.Buffered(1) to skip double-buffering (~2 MiB VMEM saved);
    # kept at the default for compile portability across JAX versions.
    for a in param_arrays:
        in_specs.append(pl.BlockSpec(a.shape, lambda g: (0, 0)))
    # 3-D output so the (tb, OUT_PAD) block always equals the array's last two dims
    # (lane-dense, no (8,128) alignment constraint on tb).
    out_spec = pl.BlockSpec((1, tb, OUT_PAD), lambda g: (g, 0, 0))

    # VMEM budget: double-buffered params + ~6 live f32 copies of the widest
    # prepool activation slab, plus headroom.  Capped well under v7x's 64 MiB
    # physical VMEM (v5e/v6e have 128 MiB).
    # TODO(synk): for very large N, add an 'arbitrary' grid axis over point chunks
    # with running sum/sumsq/max accumulators instead of one monolithic block.
    param_bytes = sum(int(np.prod(a.shape)) * a.dtype.itemsize for a in param_arrays)
    act_bytes = tbn * 1024 * 4 * 6
    vmem_limit = int(min(max(2 * param_bytes + act_bytes + (8 << 20), 16 << 20),
                         40 << 20))

    raw3 = pl.pallas_call(
        make_kernel(tb, N),
        out_shape=jax.ShapeDtypeStruct((n_steps, tb, OUT_PAD), jnp.float32),
        grid_spec=pltpu.PrefetchScalarGridSpec(
            num_scalar_prefetch=0,
            grid=(n_steps,),
            in_specs=in_specs,
            out_specs=out_spec,
        ),
        compiler_params=pltpu.CompilerParams(
            dimension_semantics=("parallel",),
            vmem_limit_bytes=vmem_limit,
        ),
    )(x_flat, *param_arrays)

    raw = raw3.reshape(b_pad, OUT_PAD)
    beta = jax.nn.softplus(raw[:B, 0])
    alpha = jax.nn.softplus(raw[:B, 1])
    # TODO(synk): raw[:B, 2:out_dim] are the (unused) gating weights; the reference
    # forward only returns (beta, alpha), so we do the same.
    return beta, alpha


def reference_forward(src, ref_pts, layers, out_dim):
    """Pure-JAX f32 reference mirroring the PyTorch forward pass."""
    src_p = jnp.pad(src, ((0, 0), (0, 0), (0, 1)), constant_values=0.0)
    ref_p = jnp.pad(ref_pts, ((0, 0), (0, 0), (0, 1)), constant_values=1.0)
    h = jnp.concatenate([src_p, ref_p], axis=1)  # (B, N, 4)

    def gn3(y, gamma, beta, G):  # y: (B, N, C)
        B_, N_, C = y.shape
        yg = y.reshape(B_, N_, G, C // G)
        mean = yg.mean(axis=(1, 3), keepdims=True)
        var = yg.var(axis=(1, 3), keepdims=True)
        yn = ((yg - mean) / jnp.sqrt(var + EPS)).reshape(B_, N_, C)
        return yn * gamma + beta

    def gn2(y, gamma, beta, G):  # y: (B, C)
        B_, C = y.shape
        yg = y.reshape(B_, G, C // G)
        mean = yg.mean(axis=2, keepdims=True)
        var = yg.var(axis=2, keepdims=True)
        yn = ((yg - mean) / jnp.sqrt(var + EPS)).reshape(B_, C)
        return yn * gamma[0] + beta[0]

    li = 0
    for (_cin, _cout, G) in PREPOOL:
        wt, b, gamma, beta = layers[li]; li += 1
        y = jnp.einsum("bnc,cd->bnd", h, wt.astype(jnp.float32)) + b[None]
        h = jax.nn.relu(gn3(y, gamma[None], beta[None], G))
    h = jnp.max(h, axis=1)  # (B, 1024)
    for (_cin, _cout, G) in POSTPOOL:
        wt, b, gamma, beta = layers[li]; li += 1
        y = h @ wt.astype(jnp.float32) + b
        h = jax.nn.relu(gn2(y, gamma, beta, G))
    wt, b = layers[li]
    raw = h @ wt.astype(jnp.float32) + b
    return jax.nn.softplus(raw[:, 0]), jax.nn.softplus(raw[:, 1])


if __name__ == "__main__":
    key = jax.random.PRNGKey(0)
    k_src, k_ref, k_par = jax.random.split(key, 3)

    B, J, K = 2, 8, 8
    src = jax.random.normal(k_src, (B, J, 3), jnp.float32)
    ref_pts = jax.random.normal(k_ref, (B, K, 3), jnp.float32)

    layers, out_dim = init_params(k_par, weights_dim=(3,))

    beta, alpha = parameter_prediction_forward(src, ref_pts, layers, out_dim)
    jax.block_until_ready((beta, alpha))

    beta_ref, alpha_ref = reference_forward(src, ref_pts, layers, out_dim)
    assert beta.shape == (B,) and alpha.shape == (B,)
    # Kernel matmul operands are bf16 (f32 accumulation), reference is f32:
    # allow bf16-level differences.
    assert np.allclose(np.asarray(beta), np.asarray(beta_ref), atol=2e-2, rtol=2e-2)
    assert np.allclose(np.asarray(alpha), np.asarray(alpha_ref), atol=2e-2, rtol=2e-2)

    print("KERNEL_OK")
</pallas_src>

<mosaic_0001>
module attributes {stable_mosaic.version = 11 : i64} {
  func.func @kernel(%arg0: i32, %arg1: memref<16x4xf32, #tpu.memory_space<vmem>>, %arg2: memref<4x64xbf16, #tpu.memory_space<vmem>>, %arg3: memref<1x64xf32, #tpu.memory_space<vmem>>, %arg4: memref<1x64xf32, #tpu.memory_space<vmem>>, %arg5: memref<1x64xf32, #tpu.memory_space<vmem>>, %arg6: memref<64x64xbf16, #tpu.memory_space<vmem>>, %arg7: memref<1x64xf32, #tpu.memory_space<vmem>>, %arg8: memref<1x64xf32, #tpu.memory_space<vmem>>, %arg9: memref<1x64xf32, #tpu.memory_space<vmem>>, %arg10: memref<64x64xbf16, #tpu.memory_space<vmem>>, %arg11: memref<1x64xf32, #tpu.memory_space<vmem>>, %arg12: memref<1x64xf32, #tpu.memory_space<vmem>>, %arg13: memref<1x64xf32, #tpu.memory_space<vmem>>, %arg14: memref<64x128xbf16, #tpu.memory_space<vmem>>, %arg15: memref<1x128xf32, #tpu.memory_space<vmem>>, %arg16: memref<1x128xf32, #tpu.memory_space<vmem>>, %arg17: memref<1x128xf32, #tpu.memory_space<vmem>>, %arg18: memref<128x1024xbf16, #tpu.memory_space<vmem>>, %arg19: memref<1x1024xf32, #tpu.memory_space<vmem>>, %arg20: memref<1x1024xf32, #tpu.memory_space<vmem>>, %arg21: memref<1x1024xf32, #tpu.memory_space<vmem>>, %arg22: memref<1024x512xbf16, #tpu.memory_space<vmem>>, %arg23: memref<1x512xf32, #tpu.memory_space<vmem>>, %arg24: memref<1x512xf32, #tpu.memory_space<vmem>>, %arg25: memref<1x512xf32, #tpu.memory_space<vmem>>, %arg26: memref<512x256xbf16, #tpu.memory_space<vmem>>, %arg27: memref<1x256xf32, #tpu.memory_space<vmem>>, %arg28: memref<1x256xf32, #tpu.memory_space<vmem>>, %arg29: memref<1x256xf32, #tpu.memory_space<vmem>>, %arg30: memref<256x128xbf16, #tpu.memory_space<vmem>>, %arg31: memref<1x128xf32, #tpu.memory_space<vmem>>, %arg32: memref<8x64xf32, #tpu.memory_space<vmem>>, %arg33: memref<8x64xf32, #tpu.memory_space<vmem>>, %arg34: memref<8x128xf32, #tpu.memory_space<vmem>>, %arg35: memref<8x128xf32, #tpu.memory_space<vmem>>, %arg36: memref<16x1024xf32, #tpu.memory_space<vmem>>, %arg37: memref<16x1024xf32, #tpu.memory_space<vmem>>, %arg38: memref<16x512xf32, #tpu.memory_space<vmem>>, %arg39: memref<16x512xf32, #tpu.memory_space<vmem>>, %arg40: memref<16x256xf32, #tpu.memory_space<vmem>>, %arg41: memref<16x256xf32, #tpu.memory_space<vmem>>, %arg42: memref<1x1x128xf32, #tpu.memory_space<vmem>>) attributes {dimension_semantics = [#tpu.dimension_semantics<parallel>], iteration_bounds = array<i64: 2>, scalar_prefetch = 0 : i64, scratch_operands = 0 : i64, tpu.core_type = #tpu.core_type<tc>, window_params = [{transform_indices = @transform_0, window_bounds = array<i64: 16, 4>}, {pipeline_mode = #tpu.pipeline_mode<synchronous>, transform_indices = @transform_1, window_bounds = array<i64: 4, 64>}, {pipeline_mode = #tpu.pipeline_mode<synchronous>, transform_indices = @transform_2, window_bounds = array<i64: 1, 64>}, {pipeline_mode = #tpu.pipeline_mode<synchronous>, transform_indices = @transform_3, window_bounds = array<i64: 1, 64>}, {pipeline_mode = #tpu.pipeline_mode<synchronous>, transform_indices = @transform_4, window_bounds = array<i64: 1, 64>}, {pipeline_mode = #tpu.pipeline_mode<synchronous>, transform_indices = @transform_5, window_bounds = array<i64: 64, 64>}, {pipeline_mode = #tpu.pipeline_mode<synchronous>, transform_indices = @transform_6, window_bounds = array<i64: 1, 64>}, {pipeline_mode = #tpu.pipeline_mode<synchronous>, transform_indices = @transform_7, window_bounds = array<i64: 1, 64>}, {pipeline_mode = #tpu.pipeline_mode<synchronous>, transform_indices = @transform_8, window_bounds = array<i64: 1, 64>}, {pipeline_mode = #tpu.pipeline_mode<synchronous>, transform_indices = @transform_9, window_bounds = array<i64: 64, 64>}, {pipeline_mode = #tpu.pipeline_mode<synchronous>, transform_indices = @transform_10, window_bounds = array<i64: 1, 64>}, {pipeline_mode = #tpu.pipeline_mode<synchronous>, transform_indices = @transform_11, window_bounds = array<i64: 1, 64>}, {pipeline_mode = #tpu.pipeline_mode<synchronous>, transform_indices = @transform_12, window_bounds = array<i64: 1, 64>}, {pipeline_mode = #tpu.pipeline_mode<synchronous>, transform_indices = @transform_13, window_bounds = array<i64: 64, 128>}, {pipeline_mode = #tpu.pipeline_mode<synchronous>, transform_indices = @transform_14, window_bounds = array<i64: 1, 128>}, {pipeline_mode = #tpu.pipeline_mode<synchronous>, transform_indices = @transform_15, window_bounds = array<i64: 1, 128>}, {pipeline_mode = #tpu.pipeline_mode<synchronous>, transform_indices = @transform_16, window_bounds = array<i64: 1, 128>}, {pipeline_mode = #tpu.pipeline_mode<synchronous>, transform_indices = @transform_17, window_bounds = array<i64: 128, 1024>}, {pipeline_mode = #tpu.pipeline_mode<synchronous>, transform_indices = @transform_18, window_bounds = array<i64: 1, 1024>}, {pipeline_mode = #tpu.pipeline_mode<synchronous>, transform_indices = @transform_19, window_bounds = array<i64: 1, 1024>}, {pipeline_mode = #tpu.pipeline_mode<synchronous>, transform_indices = @transform_20, window_bounds = array<i64: 1, 1024>}, {pipeline_mode = #tpu.pipeline_mode<synchronous>, transform_indices = @transform_21, window_bounds = array<i64: 1024, 512>}, {pipeline_mode = #tpu.pipeline_mode<synchronous>, transform_indices = @transform_22, window_bounds = array<i64: 1, 512>}, {pipeline_mode = #tpu.pipeline_mode<synchronous>, transform_indices = @transform_23, window_bounds = array<i64: 1, 512>}, {pipeline_mode = #tpu.pipeline_mode<synchronous>, transform_indices = @transform_24, window_bounds = array<i64: 1, 512>}, {pipeline_mode = #tpu.pipeline_mode<synchronous>, transform_indices = @transform_25, window_bounds = array<i64: 512, 256>}, {pipeline_mode = #tpu.pipeline_mode<synchronous>, transform_indices = @transform_26, window_bounds = array<i64: 1, 256>}, {pipeline_mode = #tpu.pipeline_mode<synchronous>, transform_indices = @transform_27, window_bounds = array<i64: 1, 256>}, {pipeline_mode = #tpu.pipeline_mode<synchronous>, transform_indices = @transform_28, window_bounds = array<i64: 1, 256>}, {pipeline_mode = #tpu.pipeline_mode<synchronous>, transform_indices = @transform_29, window_bounds = array<i64: 256, 128>}, {pipeline_mode = #tpu.pipeline_mode<synchronous>, transform_indices = @transform_30, window_bounds = array<i64: 1, 128>}, {pipeline_mode = #tpu.pipeline_mode<synchronous>, transform_indices = @transform_31, window_bounds = array<i64: 8, 64>}, {pipeline_mode = #tpu.pipeline_mode<synchronous>, transform_indices = @transform_32, window_bounds = array<i64: 8, 64>}, {pipeline_mode = #tpu.pipeline_mode<synchronous>, transform_indices = @transform_33, window_bounds = array<i64: 8, 128>}, {pipeline_mode = #tpu.pipeline_mode<synchronous>, transform_indices = @transform_34, window_bounds = array<i64: 8, 128>}, {pipeline_mode = #tpu.pipeline_mode<synchronous>, transform_indices = @transform_35, window_bounds = array<i64: 16, 1024>}, {pipeline_mode = #tpu.pipeline_mode<synchronous>, transform_indices = @transform_36, window_bounds = array<i64: 16, 1024>}, {pipeline_mode = #tpu.pipeline_mode<synchronous>, transform_indices = @transform_37, window_bounds = array<i64: 16, 512>}, {pipeline_mode = #tpu.pipeline_mode<synchronous>, transform_indices = @transform_38, window_bounds = array<i64: 16, 512>}, {pipeline_mode = #tpu.pipeline_mode<synchronous>, transform_indices = @transform_39, window_bounds = array<i64: 16, 256>}, {pipeline_mode = #tpu.pipeline_mode<synchronous>, transform_indices = @transform_40, window_bounds = array<i64: 16, 256>}, {transform_indices = @transform_41, window_bounds = array<i64: 1, 1, 128>}]} {
    %c0 = arith.constant 0 : index
    %c0_0 = arith.constant 0 : index
    %0 = vector.load %arg1[%c0, %c0_0] : memref<16x4xf32, #tpu.memory_space<vmem>>, vector<16x4xf32>
    %c0_1 = arith.constant 0 : index
    %c0_2 = arith.constant 0 : index
    %1 = vector.load %arg2[%c0_1, %c0_2] : memref<4x64xbf16, #tpu.memory_space<vmem>>, vector<4x64xbf16>
    %2 = arith.extf %1 : vector<4x64xbf16> to vector<4x64xf32>
    %3 = vector.extract_strided_slice %0 {offsets = [0, 0], sizes = [16, 1], strides = [1, 1]} : vector<16x4xf32> to vector<16x1xf32>
    %4 = vector.extract_strided_slice %2 {offsets = [0, 0], sizes = [1, 64], strides = [1, 1]} : vector<4x64xf32> to vector<1x64xf32>
    %5 = vector.broadcast %3 : vector<16x1xf32> to vector<16x64xf32>
    %6 = vector.broadcast %4 : vector<1x64xf32> to vector<16x64xf32>
    %7 = arith.mulf %5, %6 : vector<16x64xf32>
    %8 = vector.extract_strided_slice %0 {offsets = [0, 1], sizes = [16, 1], strides = [1, 1]} : vector<16x4xf32> to vector<16x1xf32>
    %9 = vector.extract_strided_slice %2 {offsets = [1, 0], sizes = [1, 64], strides = [1, 1]} : vector<4x64xf32> to vector<1x64xf32>
    %10 = vector.broadcast %8 : vector<16x1xf32> to vector<16x64xf32>
    %11 = vector.broadcast %9 : vector<1x64xf32> to vector<16x64xf32>
    %12 = arith.mulf %10, %11 : vector<16x64xf32>
    %13 = arith.addf %7, %12 : vector<16x64xf32>
    %14 = vector.extract_strided_slice %0 {offsets = [0, 2], sizes = [16, 1], strides = [1, 1]} : vector<16x4xf32> to vector<16x1xf32>
    %15 = vector.extract_strided_slice %2 {offsets = [2, 0], sizes = [1, 64], strides = [1, 1]} : vector<4x64xf32> to vector<1x64xf32>
    %16 = vector.broadcast %14 : vector<16x1xf32> to vector<16x64xf32>
    %17 = vector.broadcast %15 : vector<1x64xf32> to vector<16x64xf32>
    %18 = arith.mulf %16, %17 : vector<16x64xf32>
    %19 = arith.addf %13, %18 : vector<16x64xf32>
    %20 = vector.extract_strided_slice %0 {offsets = [0, 3], sizes = [16, 1], strides = [1, 1]} : vector<16x4xf32> to vector<16x1xf32>
    %21 = vector.extract_strided_slice %2 {offsets = [3, 0], sizes = [1, 64], strides = [1, 1]} : vector<4x64xf32> to vector<1x64xf32>
    %22 = vector.broadcast %20 : vector<16x1xf32> to vector<16x64xf32>
    %23 = vector.broadcast %21 : vector<1x64xf32> to vector<16x64xf32>
    %24 = arith.mulf %22, %23 : vector<16x64xf32>
    %25 = arith.addf %19, %24 : vector<16x64xf32>
    %c0_3 = arith.constant 0 : index
    %c0_4 = arith.constant 0 : index
    %26 = vector.load %arg3[%c0_3, %c0_4] : memref<1x64xf32, #tpu.memory_space<vmem>>, vector<1x64xf32>
    %27 = vector.broadcast %26 : vector<1x64xf32> to vector<16x64xf32>
    %28 = arith.addf %25, %27 : vector<16x64xf32>
    %29 = vector.shape_cast %28 : vector<16x64xf32> to vector<1x16x64xf32>
    %cst = arith.constant dense<0.000000e+00> : vector<1x64xf32>
    %30 = vector.multi_reduction <add>, %29, %cst [1] : vector<1x16x64xf32> to vector<1x64xf32>
    %31 = arith.mulf %29, %29 : vector<1x16x64xf32>
    %cst_5 = arith.constant dense<0.000000e+00> : vector<1x64xf32>
    %32 = vector.multi_reduction <add>, %31, %cst_5 [1] : vector<1x16x64xf32> to vector<1x64xf32>
    %c0_6 = arith.constant 0 : index
    %c0_7 = arith.constant 0 : index
    %33 = vector.load %arg32[%c0_6, %c0_7] : memref<8x64xf32, #tpu.memory_space<vmem>>, vector<8x64xf32>
    %c0_8 = arith.constant 0 : index
    %c0_9 = arith.constant 0 : index
    %34 = vector.load %arg33[%c0_8, %c0_9] : memref<8x64xf32, #tpu.memory_space<vmem>>, vector<8x64xf32>
    %cst_10 = arith.constant dense<0.000000e+00> : vector<1x8xf32>
    %35 = tpu.matmul %30, %33, %cst_10 {dimension_numbers = #tpu.dot_dimension_numbers<[1], [1], [0], [0], [0, 0, 1, 0], [], []>, precision = #tpu.contract_precision<fp32>} : vector<1x64xf32>, vector<8x64xf32>, vector<1x8xf32> -> vector<1x8xf32>
    %cst_11 = arith.constant dense<0.000000e+00> : vector<1x8xf32>
    %36 = tpu.matmul %32, %33, %cst_11 {dimension_numbers = #tpu.dot_dimension_numbers<[1], [1], [0], [0], [0, 0, 1, 0], [], []>, precision = #tpu.contract_precision<fp32>} : vector<1x64xf32>, vector<8x64xf32>, vector<1x8xf32> -> vector<1x8xf32>
    %cst_12 = arith.constant dense<0.000000e+00> : vector<1x64xf32>
    %37 = tpu.matmul %35, %34, %cst_12 {dimension_numbers = #tpu.dot_dimension_numbers<[1], [0], [0], [1], [0, 0, 1, 1], [], []>, precision = #tpu.contract_precision<fp32>} : vector<1x8xf32>, vector<8x64xf32>, vector<1x64xf32> -> vector<1x64xf32>
    %cst_13 = arith.constant dense<0.000000e+00> : vector<1x64xf32>
    %38 = tpu.matmul %36, %34, %cst_13 {dimension_numbers = #tpu.dot_dimension_numbers<[1], [0], [0], [1], [0, 0, 1, 1], [], []>, precision = #tpu.contract_precision<fp32>} : vector<1x8xf32>, vector<8x64xf32>, vector<1x64xf32> -> vector<1x64xf32>
    %39 = arith.mulf %37, %37 : vector<1x64xf32>
    %40 = arith.subf %38, %39 : vector<1x64xf32>
    %cst_14 = arith.constant 0.000000e+00 : f32
    %41 = vector.broadcast %cst_14 : f32 to vector<1x64xf32>
    %42 = arith.maximumf %40, %41 : vector<1x64xf32>
    %cst_15 = arith.constant 9.99999974E-6 : f32
    %43 = vector.broadcast %cst_15 : f32 to vector<1x64xf32>
    %44 = arith.addf %42, %43 : vector<1x64xf32>
    %45 = math.rsqrt %44 : vector<1x64xf32>
    %c0_16 = arith.constant 0 : index
    %c0_17 = arith.constant 0 : index
    %46 = vector.load %arg4[%c0_16, %c0_17] : memref<1x64xf32, #tpu.memory_space<vmem>>, vector<1x64xf32>
    %47 = arith.mulf %45, %46 : vector<1x64xf32>
    %c0_18 = arith.constant 0 : index
    %c0_19 = arith.constant 0 : index
    %48 = vector.load %arg5[%c0_18, %c0_19] : memref<1x64xf32, #tpu.memory_space<vmem>>, vector<1x64xf32>
    %49 = arith.mulf %37, %47 : vector<1x64xf32>
    %50 = arith.subf %48, %49 : vector<1x64xf32>
    %51 = vector.shape_cast %47 : vector<1x64xf32> to vector<1x1x64xf32>
    %52 = vector.broadcast %51 : vector<1x1x64xf32> to vector<1x16x64xf32>
    %53 = arith.mulf %29, %52 : vector<1x16x64xf32>
    %54 = vector.shape_cast %50 : vector<1x64xf32> to vector<1x1x64xf32>
    %55 = vector.broadcast %54 : vector<1x1x64xf32> to vector<1x16x64xf32>
    %56 = arith.addf %53, %55 : vector<1x16x64xf32>
    %cst_20 = arith.constant 0.000000e+00 : f32
    %57 = vector.broadcast %cst_20 : f32 to vector<1x16x64xf32>
    %58 = arith.maximumf %56, %57 : vector<1x16x64xf32>
    %59 = vector.shape_cast %58 : vector<1x16x64xf32> to vector<16x64xf32>
    %60 = arith.truncf %59 : vector<16x64xf32> to vector<16x64xbf16>
    %c0_21 = arith.constant 0 : index
    %c0_22 = arith.constant 0 : index
    %61 = vector.load %arg6[%c0_21, %c0_22] : memref<64x64xbf16, #tpu.memory_space<vmem>>, vector<64x64xbf16>
    %cst_23 = arith.constant dense<0.000000e+00> : vector<16x64xf32>
    %62 = tpu.matmul %60, %61, %cst_23 {dimension_numbers = #tpu.dot_dimension_numbers<[1], [0], [0], [1], [0, 0, 1, 1], [], []>} : vector<16x64xbf16>, vector<64x64xbf16>, vector<16x64xf32> -> vector<16x64xf32>
    %c0_24 = arith.constant 0 : index
    %c0_25 = arith.constant 0 : index
    %63 = vector.load %arg7[%c0_24, %c0_25] : memref<1x64xf32, #tpu.memory_space<vmem>>, vector<1x64xf32>
    %64 = vector.broadcast %63 : vector<1x64xf32> to vector<16x64xf32>
    %65 = arith.addf %62, %64 : vector<16x64xf32>
    %66 = vector.shape_cast %65 : vector<16x64xf32> to vector<1x16x64xf32>
    %cst_26 = arith.constant dense<0.000000e+00> : vector<1x64xf32>
    %67 = vector.multi_reduction <add>, %66, %cst_26 [1] : vector<1x16x64xf32> to vector<1x64xf32>
    %68 = arith.mulf %66, %66 : vector<1x16x64xf32>
    %cst_27 = arith.constant dense<0.000000e+00> : vector<1x64xf32>
    %69 = vector.multi_reduction <add>, %68, %cst_27 [1] : vector<1x16x64xf32> to vector<1x64xf32>
    %c0_28 = arith.constant 0 : index
    %c0_29 = arith.constant 0 : index
    %70 = vector.load %arg32[%c0_28, %c0_29] : memref<8x64xf32, #tpu.memory_space<vmem>>, vector<8x64xf32>
    %c0_30 = arith.constant 0 : index
    %c0_31 = arith.constant 0 : index
    %71 = vector.load %arg33[%c0_30, %c0_31] : memref<8x64xf32, #tpu.memory_space<vmem>>, vector<8x64xf32>
    %cst_32 = arith.constant dense<0.000000e+00> : vector<1x8xf32>
    %72 = tpu.matmul %67, %70, %cst_32 {dimension_numbers = #tpu.dot_dimension_numbers<[1], [1], [0], [0], [0, 0, 1, 0], [], []>, precision = #tpu.contract_precision<fp32>} : vector<1x64xf32>, vector<8x64xf32>, vector<1x8xf32> -> vector<1x8xf32>
    %cst_33 = arith.constant dense<0.000000e+00> : vector<1x8xf32>
    %73 = tpu.matmul %69, %70, %cst_33 {dimension_numbers = #tpu.dot_dimension_numbers<[1], [1], [0], [0], [0, 0, 1, 0], [], []>, precision = #tpu.contract_precision<fp32>} : vector<1x64xf32>, vector<8x64xf32>, vector<1x8xf32> -> vector<1x8xf32>
    %cst_34 = arith.constant dense<0.000000e+00> : vector<1x64xf32>
    %74 = tpu.matmul %72, %71, %cst_34 {dimension_numbers = #tpu.dot_dimension_numbers<[1], [0], [0], [1], [0, 0, 1, 1], [], []>, precision = #tpu.contract_precision<fp32>} : vector<1x8xf32>, vector<8x64xf32>, vector<1x64xf32> -> vector<1x64xf32>
    %cst_35 = arith.constant dense<0.000000e+00> : vector<1x64xf32>
    %75 = tpu.matmul %73, %71, %cst_35 {dimension_numbers = #tpu.dot_dimension_numbers<[1], [0], [0], [1], [0, 0, 1, 1], [], []>, precision = #tpu.contract_precision<fp32>} : vector<1x8xf32>, vector<8x64xf32>, vector<1x64xf32> -> vector<1x64xf32>
    %76 = arith.mulf %74, %74 : vector<1x64xf32>
    %77 = arith.subf %75, %76 : vector<1x64xf32>
    %cst_36 = arith.constant 0.000000e+00 : f32
    %78 = vector.broadcast %cst_36 : f32 to vector<1x64xf32>
    %79 = arith.maximumf %77, %78 : vector<1x64xf32>
    %cst_37 = arith.constant 9.99999974E-6 : f32
    %80 = vector.broadcast %cst_37 : f32 to vector<1x64xf32>
    %81 = arith.addf %79, %80 : vector<1x64xf32>
    %82 = math.rsqrt %81 : vector<1x64xf32>
    %c0_38 = arith.constant 0 : index
    %c0_39 = arith.constant 0 : index
    %83 = vector.load %arg8[%c0_38, %c0_39] : memref<1x64xf32, #tpu.memory_space<vmem>>, vector<1x64xf32>
    %84 = arith.mulf %82, %83 : vector<1x64xf32>
    %c0_40 = arith.constant 0 : index
    %c0_41 = arith.constant 0 : index
    %85 = vector.load %arg9[%c0_40, %c0_41] : memref<1x64xf32, #tpu.memory_space<vmem>>, vector<1x64xf32>
    %86 = arith.mulf %74, %84 : vector<1x64xf32>
    %87 = arith.subf %85, %86 : vector<1x64xf32>
    %88 = vector.shape_cast %84 : vector<1x64xf32> to vector<1x1x64xf32>
    %89 = vector.broadcast %88 : vector<1x1x64xf32> to vector<1x16x64xf32>
    %90 = arith.mulf %66, %89 : vector<1x16x64xf32>
    %91 = vector.shape_cast %87 : vector<1x64xf32> to vector<1x1x64xf32>
    %92 = vector.broadcast %91 : vector<1x1x64xf32> to vector<1x16x64xf32>
    %93 = arith.addf %90, %92 : vector<1x16x64xf32>
    %cst_42 = arith.constant 0.000000e+00 : f32
    %94 = vector.broadcast %cst_42 : f32 to vector<1x16x64xf32>
    %95 = arith.maximumf %93, %94 : vector<1x16x64xf32>
    %96 = vector.shape_cast %95 : vector<1x16x64xf32> to vector<16x64xf32>
    %97 = arith.truncf %96 : vector<16x64xf32> to vector<16x64xbf16>
    %c0_43 = arith.constant 0 : index
    %c0_44 = arith.constant 0 : index
    %98 = vector.load %arg10[%c0_43, %c0_44] : memref<64x64xbf16, #tpu.memory_space<vmem>>, vector<64x64xbf16>
    %cst_45 = arith.constant dense<0.000000e+00> : vector<16x64xf32>
    %99 = tpu.matmul %97, %98, %cst_45 {dimension_numbers = #tpu.dot_dimension_numbers<[1], [0], [0], [1], [0, 0, 1, 1], [], []>} : vector<16x64xbf16>, vector<64x64xbf16>, vector<16x64xf32> -> vector<16x64xf32>
    %c0_46 = arith.constant 0 : index
    %c0_47 = arith.constant 0 : index
    %100 = vector.load %arg11[%c0_46, %c0_47] : memref<1x64xf32, #tpu.memory_space<vmem>>, vector<1x64xf32>
    %101 = vector.broadcast %100 : vector<1x64xf32> to vector<16x64xf32>
    %102 = arith.addf %99, %101 : vector<16x64xf32>
    %103 = vector.shape_cast %102 : vector<16x64xf32> to vector<1x16x64xf32>
    %cst_48 = arith.constant dense<0.000000e+00> : vector<1x64xf32>
    %104 = vector.multi_reduction <add>, %103, %cst_48 [1] : vector<1x16x64xf32> to vector<1x64xf32>
    %105 = arith.mulf %103, %103 : vector<1x16x64xf32>
    %cst_49 = arith.constant dense<0.000000e+00> : vector<1x64xf32>
    %106 = vector.multi_reduction <add>, %105, %cst_49 [1] : vector<1x16x64xf32> to vector<1x64xf32>
    %c0_50 = arith.constant 0 : index
    %c0_51 = arith.constant 0 : index
    %107 = vector.load %arg32[%c0_50, %c0_51] : memref<8x64xf32, #tpu.memory_space<vmem>>, vector<8x64xf32>
    %c0_52 = arith.constant 0 : index
    %c0_53 = arith.constant 0 : index
    %108 = vector.load %arg33[%c0_52, %c0_53] : memref<8x64xf32, #tpu.memory_space<vmem>>, vector<8x64xf32>
    %cst_54 = arith.constant dense<0.000000e+00> : vector<1x8xf32>
    %109 = tpu.matmul %104, %107, %cst_54 {dimension_numbers = #tpu.dot_dimension_numbers<[1], [1], [0], [0], [0, 0, 1, 0], [], []>, precision = #tpu.contract_precision<fp32>} : vector<1x64xf32>, vector<8x64xf32>, vector<1x8xf32> -> vector<1x8xf32>
    %cst_55 = arith.constant dense<0.000000e+00> : vector<1x8xf32>
    %110 = tpu.matmul %106, %107, %cst_55 {dimension_numbers = #tpu.dot_dimension_numbers<[1], [1], [0], [0], [0, 0, 1, 0], [], []>, precision = #tpu.contract_precision<fp32>} : vector<1x64xf32>, vector<8x64xf32>, vector<1x8xf32> -> vector<1x8xf32>
    %cst_56 = arith.constant dense<0.000000e+00> : vector<1x64xf32>
    %111 = tpu.matmul %109, %108, %cst_56 {dimension_numbers = #tpu.dot_dimension_numbers<[1], [0], [0], [1], [0, 0, 1, 1], [], []>, precision = #tpu.contract_precision<fp32>} : vector<1x8xf32>, vector<8x64xf32>, vector<1x64xf32> -> vector<1x64xf32>
    %cst_57 = arith.constant dense<0.000000e+00> : vector<1x64xf32>
    %112 = tpu.matmul %110, %108, %cst_57 {dimension_numbers = #tpu.dot_dimension_numbers<[1], [0], [0], [1], [0, 0, 1, 1], [], []>, precision = #tpu.contract_precision<fp32>} : vector<1x8xf32>, vector<8x64xf32>, vector<1x64xf32> -> vector<1x64xf32>
    %113 = arith.mulf %111, %111 : vector<1x64xf32>
    %114 = arith.subf %112, %113 : vector<1x64xf32>
    %cst_58 = arith.constant 0.000000e+00 : f32
    %115 = vector.broadcast %cst_58 : f32 to vector<1x64xf32>
    %116 = arith.maximumf %114, %115 : vector<1x64xf32>
    %cst_59 = arith.constant 9.99999974E-6 : f32
    %117 = vector.broadcast %cst_59 : f32 to vector<1x64xf32>
    %118 = arith.addf %116, %117 : vector<1x64xf32>
    %119 = math.rsqrt %118 : vector<1x64xf32>
    %c0_60 = arith.constant 0 : index
    %c0_61 = arith.constant 0 : index
    %120 = vector.load %arg12[%c0_60, %c0_61] : memref<1x64xf32, #tpu.memory_space<vmem>>, vector<1x64xf32>
    %121 = arith.mulf %119, %120 : vector<1x64xf32>
    %c0_62 = arith.constant 0 : index
    %c0_63 = arith.constant 0 : index
    %122 = vector.load %arg13[%c0_62, %c0_63] : memref<1x64xf32, #tpu.memory_space<vmem>>, vector<1x64xf32>
    %123 = arith.mulf %111, %121 : vector<1x64xf32>
    %124 = arith.subf %122, %123 : vector<1x64xf32>
    %125 = vector.shape_cast %121 : vector<1x64xf32> to vector<1x1x64xf32>
    %126 = vector.broadcast %125 : vector<1x1x64xf32> to vector<1x16x64xf32>
    %127 = arith.mulf %103, %126 : vector<1x16x64xf32>
    %128 = vector.shape_cast %124 : vector<1x64xf32> to vector<1x1x64xf32>
    %129 = vector.broadcast %128 : vector<1x1x64xf32> to vector<1x16x64xf32>
    %130 = arith.addf %127, %129 : vector<1x16x64xf32>
    %cst_64 = arith.constant 0.000000e+00 : f32
    %131 = vector.broadcast %cst_64 : f32 to vector<1x16x64xf32>
    %132 = arith.maximumf %130, %131 : vector<1x16x64xf32>
    %133 = vector.shape_cast %132 : vector<1x16x64xf32> to vector<16x64xf32>
    %134 = arith.truncf %133 : vector<16x64xf32> to vector<16x64xbf16>
    %c0_65 = arith.constant 0 : index
    %c0_66 = arith.constant 0 : index
    %135 = vector.load %arg14[%c0_65, %c0_66] : memref<64x128xbf16, #tpu.memory_space<vmem>>, vector<64x128xbf16>
    %cst_67 = arith.constant dense<0.000000e+00> : vector<16x128xf32>
    %136 = tpu.matmul %134, %135, %cst_67 {dimension_numbers = #tpu.dot_dimension_numbers<[1], [0], [0], [1], [0, 0, 1, 1], [], []>} : vector<16x64xbf16>, vector<64x128xbf16>, vector<16x128xf32> -> vector<16x128xf32>
    %c0_68 = arith.constant 0 : index
    %c0_69 = arith.constant 0 : index
    %137 = vector.load %arg15[%c0_68, %c0_69] : memref<1x128xf32, #tpu.memory_space<vmem>>, vector<1x128xf32>
    %138 = vector.broadcast %137 : vector<1x128xf32> to vector<16x128xf32>
    %139 = arith.addf %136, %138 : vector<16x128xf32>
    %140 = vector.shape_cast %139 : vector<16x128xf32> to vector<1x16x128xf32>
    %cst_70 = arith.constant dense<0.000000e+00> : vector<1x128xf32>
    %141 = vector.multi_reduction <add>, %140, %cst_70 [1] : vector<1x16x128xf32> to vector<1x128xf32>
    %142 = arith.mulf %140, %140 : vector<1x16x128xf32>
    %cst_71 = arith.constant dense<0.000000e+00> : vector<1x128xf32>
    %143 = vector.multi_reduction <add>, %142, %cst_71 [1] : vector<1x16x128xf32> to vector<1x128xf32>
    %c0_72 = arith.constant 0 : index
    %c0_73 = arith.constant 0 : index
    %144 = vector.load %arg34[%c0_72, %c0_73] : memref<8x128xf32, #tpu.memory_space<vmem>>, vector<8x128xf32>
    %c0_74 = arith.constant 0 : index
    %c0_75 = arith.constant 0 : index
    %145 = vector.load %arg35[%c0_74, %c0_75] : memref<8x128xf32, #tpu.memory_space<vmem>>, vector<8x128xf32>
    %cst_76 = arith.constant dense<0.000000e+00> : vector<1x8xf32>
    %146 = tpu.matmul %141, %144, %cst_76 {dimension_numbers = #tpu.dot_dimension_numbers<[1], [1], [0], [0], [0, 0, 1, 0], [], []>, precision = #tpu.contract_precision<fp32>} : vector<1x128xf32>, vector<8x128xf32>, vector<1x8xf32> -> vector<1x8xf32>
    %cst_77 = arith.constant dense<0.000000e+00> : vector<1x8xf32>
    %147 = tpu.matmul %143, %144, %cst_77 {dimension_numbers = #tpu.dot_dimension_numbers<[1], [1], [0], [0], [0, 0, 1, 0], [], []>, precision = #tpu.contract_precision<fp32>} : vector<1x128xf32>, vector<8x128xf32>, vector<1x8xf32> -> vector<1x8xf32>
    %cst_78 = arith.constant dense<0.000000e+00> : vector<1x128xf32>
    %148 = tpu.matmul %146, %145, %cst_78 {dimension_numbers = #tpu.dot_dimension_numbers<[1], [0], [0], [1], [0, 0, 1, 1], [], []>, precision = #tpu.contract_precision<fp32>} : vector<1x8xf32>, vector<8x128xf32>, vector<1x128xf32> -> vector<1x128xf32>
    %cst_79 = arith.constant dense<0.000000e+00> : vector<1x128xf32>
    %149 = tpu.matmul %147, %145, %cst_79 {dimension_numbers = #tpu.dot_dimension_numbers<[1], [0], [0], [1], [0, 0, 1, 1], [], []>, precision = #tpu.contract_precision<fp32>} : vector<1x8xf32>, vector<8x128xf32>, vector<1x128xf32> -> vector<1x128xf32>
    %150 = arith.mulf %148, %148 : vector<1x128xf32>
    %151 = arith.subf %149, %150 : vector<1x128xf32>
    %cst_80 = arith.constant 0.000000e+00 : f32
    %152 = vector.broadcast %cst_80 : f32 to vector<1x128xf32>
    %153 = arith.maximumf %151, %152 : vector<1x128xf32>
    %cst_81 = arith.constant 9.99999974E-6 : f32
    %154 = vector.broadcast %cst_81 : f32 to vector<1x128xf32>
    %155 = arith.addf %153, %154 : vector<1x128xf32>
    %156 = math.rsqrt %155 : vector<1x128xf32>
    %c0_82 = arith.constant 0 : index
    %c0_83 = arith.constant 0 : index
    %157 = vector.load %arg16[%c0_82, %c0_83] : memref<1x128xf32, #tpu.memory_space<vmem>>, vector<1x128xf32>
    %158 = arith.mulf %156, %157 : vector<1x128xf32>
    %c0_84 = arith.constant 0 : index
    %c0_85 = arith.constant 0 : index
    %159 = vector.load %arg17[%c0_84, %c0_85] : memref<1x128xf32, #tpu.memory_space<vmem>>, vector<1x128xf32>
    %160 = arith.mulf %148, %158 : vector<1x128xf32>
    %161 = arith.subf %159, %160 : vector<1x128xf32>
    %162 = vector.shape_cast %158 : vector<1x128xf32> to vector<1x1x128xf32>
    %163 = vector.broadcast %162 : vector<1x1x128xf32> to vector<1x16x128xf32>
    %164 = arith.mulf %140, %163 : vector<1x16x128xf32>
    %165 = vector.shape_cast %161 : vector<1x128xf32> to vector<1x1x128xf32>
    %166 = vector.broadcast %165 : vector<1x1x128xf32> to vector<1x16x128xf32>
    %167 = arith.addf %164, %166 : vector<1x16x128xf32>
    %cst_86 = arith.constant 0.000000e+00 : f32
    %168 = vector.broadcast %cst_86 : f32 to vector<1x16x128xf32>
    %169 = arith.maximumf %167, %168 : vector<1x16x128xf32>
    %170 = vector.shape_cast %169 : vector<1x16x128xf32> to vector<16x128xf32>
    %171 = arith.truncf %170 : vector<16x128xf32> to vector<16x128xbf16>
    %c0_87 = arith.constant 0 : index
    %c0_88 = arith.constant 0 : index
    %172 = vector.load %arg18[%c0_87, %c0_88] : memref<128x1024xbf16, #tpu.memory_space<vmem>>, vector<128x1024xbf16>
    %cst_89 = arith.constant dense<0.000000e+00> : vector<16x1024xf32>
    %173 = tpu.matmul %171, %172, %cst_89 {dimension_numbers = #tpu.dot_dimension_numbers<[1], [0], [0], [1], [0, 0, 1, 1], [], []>} : vector<16x128xbf16>, vector<128x1024xbf16>, vector<16x1024xf32> -> vector<16x1024xf32>
    %c0_90 = arith.constant 0 : index
    %c0_91 = arith.constant 0 : index
    %174 = vector.load %arg19[%c0_90, %c0_91] : memref<1x1024xf32, #tpu.memory_space<vmem>>, vector<1x1024xf32>
    %175 = vector.broadcast %174 : vector<1x1024xf32> to vector<16x1024xf32>
    %176 = arith.addf %173, %175 : vector<16x1024xf32>
    %177 = vector.shape_cast %176 : vector<16x1024xf32> to vector<1x16x1024xf32>
    %cst_92 = arith.constant dense<0.000000e+00> : vector<1x1024xf32>
    %178 = vector.multi_reduction <add>, %177, %cst_92 [1] : vector<1x16x1024xf32> to vector<1x1024xf32>
    %179 = arith.mulf %177, %177 : vector<1x16x1024xf32>
    %cst_93 = arith.constant dense<0.000000e+00> : vector<1x1024xf32>
    %180 = vector.multi_reduction <add>, %179, %cst_93 [1] : vector<1x16x1024xf32> to vector<1x1024xf32>
    %c0_94 = arith.constant 0 : index
    %c0_95 = arith.constant 0 : index
    %181 = vector.load %arg36[%c0_94, %c0_95] : memref<16x1024xf32, #tpu.memory_space<vmem>>, vector<16x1024xf32>
    %c0_96 = arith.constant 0 : index
    %c0_97 = arith.constant 0 : index
    %182 = vector.load %arg37[%c0_96, %c0_97] : memref<16x1024xf32, #tpu.memory_space<vmem>>, vector<16x1024xf32>
    %cst_98 = arith.constant dense<0.000000e+00> : vector<1x16xf32>
    %183 = tpu.matmul %178, %181, %cst_98 {dimension_numbers = #tpu.dot_dimension_numbers<[1], [1], [0], [0], [0, 0, 1, 0], [], []>, precision = #tpu.contract_precision<fp32>} : vector<1x1024xf32>, vector<16x1024xf32>, vector<1x16xf32> -> vector<1x16xf32>
    %cst_99 = arith.constant dense<0.000000e+00> : vector<1x16xf32>
    %184 = tpu.matmul %180, %181, %cst_99 {dimension_numbers = #tpu.dot_dimension_numbers<[1], [1], [0], [0], [0, 0, 1, 0], [], []>, precision = #tpu.contract_precision<fp32>} : vector<1x1024xf32>, vector<16x1024xf32>, vector<1x16xf32> -> vector<1x16xf32>
    %cst_100 = arith.constant dense<0.000000e+00> : vector<1x1024xf32>
    %185 = tpu.matmul %183, %182, %cst_100 {dimension_numbers = #tpu.dot_dimension_numbers<[1], [0], [0], [1], [0, 0, 1, 1], [], []>, precision = #tpu.contract_precision<fp32>} : vector<1x16xf32>, vector<16x1024xf32>, vector<1x1024xf32> -> vector<1x1024xf32>
    %cst_101 = arith.constant dense<0.000000e+00> : vector<1x1024xf32>
    %186 = tpu.matmul %184, %182, %cst_101 {dimension_numbers = #tpu.dot_dimension_numbers<[1], [0], [0], [1], [0, 0, 1, 1], [], []>, precision = #tpu.contract_precision<fp32>} : vector<1x16xf32>, vector<16x1024xf32>, vector<1x1024xf32> -> vector<1x1024xf32>
    %187 = arith.mulf %185, %185 : vector<1x1024xf32>
    %188 = arith.subf %186, %187 : vector<1x1024xf32>
    %cst_102 = arith.constant 0.000000e+00 : f32
    %189 = vector.broadcast %cst_102 : f32 to vector<1x1024xf32>
    %190 = arith.maximumf %188, %189 : vector<1x1024xf32>
    %cst_103 = arith.constant 9.99999974E-6 : f32
    %191 = vector.broadcast %cst_103 : f32 to vector<1x1024xf32>
    %192 = arith.addf %190, %191 : vector<1x1024xf32>
    %193 = math.rsqrt %192 : vector<1x1024xf32>
    %c0_104 = arith.constant 0 : index
    %c0_105 = arith.constant 0 : index
    %194 = vector.load %arg20[%c0_104, %c0_105] : memref<1x1024xf32, #tpu.memory_space<vmem>>, vector<1x1024xf32>
    %195 = arith.mulf %193, %194 : vector<1x1024xf32>
    %c0_106 = arith.constant 0 : index
    %c0_107 = arith.constant 0 : index
    %196 = vector.load %arg21[%c0_106, %c0_107] : memref<1x1024xf32, #tpu.memory_space<vmem>>, vector<1x1024xf32>
    %197 = arith.mulf %185, %195 : vector<1x1024xf32>
    %198 = arith.subf %196, %197 : vector<1x1024xf32>
    %199 = vector.shape_cast %195 : vector<1x1024xf32> to vector<1x1x1024xf32>
    %200 = vector.broadcast %199 : vector<1x1x1024xf32> to vector<1x16x1024xf32>
    %201 = arith.mulf %177, %200 : vector<1x16x1024xf32>
    %202 = vector.shape_cast %198 : vector<1x1024xf32> to vector<1x1x1024xf32>
    %203 = vector.broadcast %202 : vector<1x1x1024xf32> to vector<1x16x1024xf32>
    %204 = arith.addf %201, %203 : vector<1x16x1024xf32>
    %cst_108 = arith.constant 0.000000e+00 : f32
    %205 = vector.broadcast %cst_108 : f32 to vector<1x16x1024xf32>
    %206 = arith.maximumf %204, %205 : vector<1x16x1024xf32>
    %cst_109 = arith.constant dense<0xFF800000> : vector<1x1024xf32>
    %207 = vector.multi_reduction <maximumf>, %206, %cst_109 [1] : vector<1x16x1024xf32> to vector<1x1024xf32>
    %208 = arith.truncf %207 : vector<1x1024xf32> to vector<1x1024xbf16>
    %c0_110 = arith.constant 0 : index
    %c0_111 = arith.constant 0 : index
    %209 = vector.load %arg22[%c0_110, %c0_111] : memref<1024x512xbf16, #tpu.memory_space<vmem>>, vector<1024x512xbf16>
    %cst_112 = arith.constant dense<0.000000e+00> : vector<1x512xf32>
    %210 = tpu.matmul %208, %209, %cst_112 {dimension_numbers = #tpu.dot_dimension_numbers<[1], [0], [0], [1], [0, 0, 1, 1], [], []>} : vector<1x1024xbf16>, vector<1024x512xbf16>, vector<1x512xf32> -> vector<1x512xf32>
    %c0_113 = arith.constant 0 : index
    %c0_114 = arith.constant 0 : index
    %211 = vector.load %arg23[%c0_113, %c0_114] : memref<1x512xf32, #tpu.memory_space<vmem>>, vector<1x512xf32>
    %212 = arith.addf %210, %211 : vector<1x512xf32>
    %213 = arith.mulf %212, %212 : vector<1x512xf32>
    %c0_115 = arith.constant 0 : index
    %c0_116 = arith.constant 0 : index
    %214 = vector.load %arg38[%c0_115, %c0_116] : memref<16x512xf32, #tpu.memory_space<vmem>>, vector<16x512xf32>
    %c0_117 = arith.constant 0 : index
    %c0_118 = arith.constant 0 : index
    %215 = vector.load %arg39[%c0_117, %c0_118] : memref<16x512xf32, #tpu.memory_space<vmem>>, vector<16x512xf32>
    %cst_119 = arith.constant dense<0.000000e+00> : vector<1x16xf32>
    %216 = tpu.matmul %212, %214, %cst_119 {dimension_numbers = #tpu.dot_dimension_numbers<[1], [1], [0], [0], [0, 0, 1, 0], [], []>, precision = #tpu.contract_precision<fp32>} : vector<1x512xf32>, vector<16x512xf32>, vector<1x16xf32> -> vector<1x16xf32>
    %cst_120 = arith.constant dense<0.000000e+00> : vector<1x16xf32>
    %217 = tpu.matmul %213, %214, %cst_120 {dimension_numbers = #tpu.dot_dimension_numbers<[1], [1], [0], [0], [0, 0, 1, 0], [], []>, precision = #tpu.contract_precision<fp32>} : vector<1x512xf32>, vector<16x512xf32>, vector<1x16xf32> -> vector<1x16xf32>
    %cst_121 = arith.constant dense<0.000000e+00> : vector<1x512xf32>
    %218 = tpu.matmul %216, %215, %cst_121 {dimension_numbers = #tpu.dot_dimension_numbers<[1], [0], [0], [1], [0, 0, 1, 1], [], []>, precision = #tpu.contract_precision<fp32>} : vector<1x16xf32>, vector<16x512xf32>, vector<1x512xf32> -> vector<1x512xf32>
    %cst_122 = arith.constant dense<0.000000e+00> : vector<1x512xf32>
    %219 = tpu.matmul %217, %215, %cst_122 {dimension_numbers = #tpu.dot_dimension_numbers<[1], [0], [0], [1], [0, 0, 1, 1], [], []>, precision = #tpu.contract_precision<fp32>} : vector<1x16xf32>, vector<16x512xf32>, vector<1x512xf32> -> vector<1x512xf32>
    %220 = arith.mulf %218, %218 : vector<1x512xf32>
    %221 = arith.subf %219, %220 : vector<1x512xf32>
    %cst_123 = arith.constant 0.000000e+00 : f32
    %222 = vector.broadcast %cst_123 : f32 to vector<1x512xf32>
    %223 = arith.maximumf %221, %222 : vector<1x512xf32>
    %cst_124 = arith.constant 9.99999974E-6 : f32
    %224 = vector.broadcast %cst_124 : f32 to vector<1x512xf32>
    %225 = arith.addf %223, %224 : vector<1x512xf32>
    %226 = math.rsqrt %225 : vector<1x512xf32>
    %c0_125 = arith.constant 0 : index
    %c0_126 = arith.constant 0 : index
    %227 = vector.load %arg24[%c0_125, %c0_126] : memref<1x512xf32, #tpu.memory_space<vmem>>, vector<1x512xf32>
    %228 = arith.mulf %226, %227 : vector<1x512xf32>
    %c0_127 = arith.constant 0 : index
    %c0_128 = arith.constant 0 : index
    %229 = vector.load %arg25[%c0_127, %c0_128] : memref<1x512xf32, #tpu.memory_space<vmem>>, vector<1x512xf32>
    %230 = arith.mulf %218, %228 : vector<1x512xf32>
    %231 = arith.subf %229, %230 : vector<1x512xf32>
    %232 = arith.mulf %212, %228 : vector<1x512xf32>
    %233 = arith.addf %232, %231 : vector<1x512xf32>
    %cst_129 = arith.constant 0.000000e+00 : f32
    %234 = vector.broadcast %cst_129 : f32 to vector<1x512xf32>
    %235 = arith.maximumf %233, %234 : vector<1x512xf32>
    %236 = arith.truncf %235 : vector<1x512xf32> to vector<1x512xbf16>
    %c0_130 = arith.constant 0 : index
    %c0_131 = arith.constant 0 : index
    %237 = vector.load %arg26[%c0_130, %c0_131] : memref<512x256xbf16, #tpu.memory_space<vmem>>, vector<512x256xbf16>
    %cst_132 = arith.constant dense<0.000000e+00> : vector<1x256xf32>
    %238 = tpu.matmul %236, %237, %cst_132 {dimension_numbers = #tpu.dot_dimension_numbers<[1], [0], [0], [1], [0, 0, 1, 1], [], []>} : vector<1x512xbf16>, vector<512x256xbf16>, vector<1x256xf32> -> vector<1x256xf32>
    %c0_133 = arith.constant 0 : index
    %c0_134 = arith.constant 0 : index
    %239 = vector.load %arg27[%c0_133, %c0_134] : memref<1x256xf32, #tpu.memory_space<vmem>>, vector<1x256xf32>
    %240 = arith.addf %238, %239 : vector<1x256xf32>
    %241 = arith.mulf %240, %240 : vector<1x256xf32>
    %c0_135 = arith.constant 0 : index
    %c0_136 = arith.constant 0 : index
    %242 = vector.load %arg40[%c0_135, %c0_136] : memref<16x256xf32, #tpu.memory_space<vmem>>, vector<16x256xf32>
    %c0_137 = arith.constant 0 : index
    %c0_138 = arith.constant 0 : index
    %243 = vector.load %arg41[%c0_137, %c0_138] : memref<16x256xf32, #tpu.memory_space<vmem>>, vector<16x256xf32>
    %cst_139 = arith.constant dense<0.000000e+00> : vector<1x16xf32>
    %244 = tpu.matmul %240, %242, %cst_139 {dimension_numbers = #tpu.dot_dimension_numbers<[1], [1], [0], [0], [0, 0, 1, 0], [], []>, precision = #tpu.contract_precision<fp32>} : vector<1x256xf32>, vector<16x256xf32>, vector<1x16xf32> -> vector<1x16xf32>
    %cst_140 = arith.constant dense<0.000000e+00> : vector<1x16xf32>
    %245 = tpu.matmul %241, %242, %cst_140 {dimension_numbers = #tpu.dot_dimension_numbers<[1], [1], [0], [0], [0, 0, 1, 0], [], []>, precision = #tpu.contract_precision<fp32>} : vector<1x256xf32>, vector<16x256xf32>, vector<1x16xf32> -> vector<1x16xf32>
    %cst_141 = arith.constant dense<0.000000e+00> : vector<1x256xf32>
    %246 = tpu.matmul %244, %243, %cst_141 {dimension_numbers = #tpu.dot_dimension_numbers<[1], [0], [0], [1], [0, 0, 1, 1], [], []>, precision = #tpu.contract_precision<fp32>} : vector<1x16xf32>, vector<16x256xf32>, vector<1x256xf32> -> vector<1x256xf32>
    %cst_142 = arith.constant dense<0.000000e+00> : vector<1x256xf32>
    %247 = tpu.matmul %245, %243, %cst_142 {dimension_numbers = #tpu.dot_dimension_numbers<[1], [0], [0], [1], [0, 0, 1, 1], [], []>, precision = #tpu.contract_precision<fp32>} : vector<1x16xf32>, vector<16x256xf32>, vector<1x256xf32> -> vector<1x256xf32>
    %248 = arith.mulf %246, %246 : vector<1x256xf32>
    %249 = arith.subf %247, %248 : vector<1x256xf32>
    %cst_143 = arith.constant 0.000000e+00 : f32
    %250 = vector.broadcast %cst_143 : f32 to vector<1x256xf32>
    %251 = arith.maximumf %249, %250 : vector<1x256xf32>
    %cst_144 = arith.constant 9.99999974E-6 : f32
    %252 = vector.broadcast %cst_144 : f32 to vector<1x256xf32>
    %253 = arith.addf %251, %252 : vector<1x256xf32>
    %254 = math.rsqrt %253 : vector<1x256xf32>
    %c0_145 = arith.constant 0 : index
    %c0_146 = arith.constant 0 : index
    %255 = vector.load %arg28[%c0_145, %c0_146] : memref<1x256xf32, #tpu.memory_space<vmem>>, vector<1x256xf32>
    %256 = arith.mulf %254, %255 : vector<1x256xf32>
    %c0_147 = arith.constant 0 : index
    %c0_148 = arith.constant 0 : index
    %257 = vector.load %arg29[%c0_147, %c0_148] : memref<1x256xf32, #tpu.memory_space<vmem>>, vector<1x256xf32>
    %258 = arith.mulf %246, %256 : vector<1x256xf32>
    %259 = arith.subf %257, %258 : vector<1x256xf32>
    %260 = arith.mulf %240, %256 : vector<1x256xf32>
    %261 = arith.addf %260, %259 : vector<1x256xf32>
    %cst_149 = arith.constant 0.000000e+00 : f32
    %262 = vector.broadcast %cst_149 : f32 to vector<1x256xf32>
    %263 = arith.maximumf %261, %262 : vector<1x256xf32>
    %264 = arith.truncf %263 : vector<1x256xf32> to vector<1x256xbf16>
    %c0_150 = arith.constant 0 : index
    %c0_151 = arith.constant 0 : index
    %265 = vector.load %arg30[%c0_150, %c0_151] : memref<256x128xbf16, #tpu.memory_space<vmem>>, vector<256x128xbf16>
    %cst_152 = arith.constant dense<0.000000e+00> : vector<1x128xf32>
    %266 = tpu.matmul %264, %265, %cst_152 {dimension_numbers = #tpu.dot_dimension_numbers<[1], [0], [0], [1], [0, 0, 1, 1], [], []>} : vector<1x256xbf16>, vector<256x128xbf16>, vector<1x128xf32> -> vector<1x128xf32>
    %c0_153 = arith.constant 0 : index
    %c0_154 = arith.constant 0 : index
    %267 = vector.load %arg31[%c0_153, %c0_154] : memref<1x128xf32, #tpu.memory_space<vmem>>, vector<1x128xf32>
    %268 = arith.addf %266, %267 : vector<1x128xf32>
    %c0_155 = arith.constant 0 : index
    %c0_156 = arith.constant 0 : index
    %c0_157 = arith.constant 0 : index
    %269 = vector.load %arg42[%c0_155, %c0_156, %c0_157] : memref<1x1x128xf32, #tpu.memory_space<vmem>>, vector<1x1x128xf32>
    %270 = vector.shape_cast %269 : vector<1x1x128xf32> to vector<1x128xf32>
    %271 = vector.shape_cast %268 : vector<1x128xf32> to vector<1x1x128xf32>
    tpu.vector_store %arg42[%c0_155, %c0_156, %c0_157], %271 {strides = array<i32>} : memref<1x1x128xf32, #tpu.memory_space<vmem>>, vector<1x1x128xf32>,
    return
  }
  func.func @transform_0(%arg0: i32) -> (i32, i32) {
    %c0_i32 = arith.constant 0 : i32
    %c0_i32_0 = arith.constant 0 : i32
    return %arg0, %c0_i32 : i32, i32
  }
  func.func @transform_1(%arg0: i32) -> (i32, i32) {
    %c0_i32 = arith.constant 0 : i32
    %c0_i32_0 = arith.constant 0 : i32
    %c0_i32_1 = arith.constant 0 : i32
    return %c0_i32, %c0_i32_0 : i32, i32
  }
  func.func @transform_2(%arg0: i32) -> (i32, i32) {
    %c0_i32 = arith.constant 0 : i32
    %c0_i32_0 = arith.constant 0 : i32
    %c0_i32_1 = arith.constant 0 : i32
    return %c0_i32, %c0_i32_0 : i32, i32
  }
  func.func @transform_3(%arg0: i32) -> (i32, i32) {
    %c0_i32 = arith.constant 0 : i32
    %c0_i32_0 = arith.constant 0 : i32
    %c0_i32_1 = arith.constant 0 : i32
    return %c0_i32, %c0_i32_0 : i32, i32
  }
  func.func @transform_4(%arg0: i32) -> (i32, i32) {
    %c0_i32 = arith.constant 0 : i32
    %c0_i32_0 = arith.constant 0 : i32
    %c0_i32_1 = arith.constant 0 : i32
    return %c0_i32, %c0_i32_0 : i32, i32
  }
  func.func @transform_5(%arg0: i32) -> (i32, i32) {
    %c0_i32 = arith.constant 0 : i32
    %c0_i32_0 = arith.constant 0 : i32
    %c0_i32_1 = arith.constant 0 : i32
    return %c0_i32, %c0_i32_0 : i32, i32
  }
  func.func @transform_6(%arg0: i32) -> (i32, i32) {
    %c0_i32 = arith.constant 0 : i32
    %c0_i32_0 = arith.constant 0 : i32
    %c0_i32_1 = arith.constant 0 : i32
    return %c0_i32, %c0_i32_0 : i32, i32
  }
  func.func @transform_7(%arg0: i32) -> (i32, i32) {
    %c0_i32 = arith.constant 0 : i32
    %c0_i32_0 = arith.constant 0 : i32
    %c0_i32_1 = arith.constant 0 : i32
    return %c0_i32, %c0_i32_0 : i32, i32
  }
  func.func @transform_8(%arg0: i32) -> (i32, i32) {
    %c0_i32 = arith.constant 0 : i32
    %c0_i32_0 = arith.constant 0 : i32
    %c0_i32_1 = arith.constant 0 : i32
    return %c0_i32, %c0_i32_0 : i32, i32
  }
  func.func @transform_9(%arg0: i32) -> (i32, i32) {
    %c0_i32 = arith.constant 0 : i32
    %c0_i32_0 = arith.constant 0 : i32
    %c0_i32_1 = arith.constant 0 : i32
    return %c0_i32, %c0_i32_0 : i32, i32
  }
  func.func @transform_10(%arg0: i32) -> (i32, i32) {
    %c0_i32 = arith.constant 0 : i32
    %c0_i32_0 = arith.constant 0 : i32
    %c0_i32_1 = arith.constant 0 : i32
    return %c0_i32, %c0_i32_0 : i32, i32
  }
  func.func @transform_11(%arg0: i32) -> (i32, i32) {
    %c0_i32 = arith.constant 0 : i32
    %c0_i32_0 = arith.constant 0 : i32
    %c0_i32_1 = arith.constant 0 : i32
    return %c0_i32, %c0_i32_0 : i32, i32
  }
  func.func @transform_12(%arg0: i32) -> (i32, i32) {
    %c0_i32 = arith.constant 0 : i32
    %c0_i32_0 = arith.constant 0 : i32
    %c0_i32_1 = arith.constant 0 : i32
    return %c0_i32, %c0_i32_0 : i32, i32
  }
  func.func @transform_13(%arg0: i32) -> (i32, i32) {
    %c0_i32 = arith.constant 0 : i32
    %c0_i32_0 = arith.constant 0 : i32
    %c0_i32_1 = arith.constant 0 : i32
    return %c0_i32, %c0_i32_0 : i32, i32
  }
  func.func @transform_14(%arg0: i32) -> (i32, i32) {
    %c0_i32 = arith.constant 0 : i32
    %c0_i32_0 = arith.constant 0 : i32
    %c0_i32_1 = arith.constant 0 : i32
    return %c0_i32, %c0_i32_0 : i32, i32
  }
  func.func @transform_15(%arg0: i32) -> (i32, i32) {
    %c0_i32 = arith.constant 0 : i32
    %c0_i32_0 = arith.constant 0 : i32
    %c0_i32_1 = arith.constant 0 : i32
    return %c0_i32, %c0_i32_0 : i32, i32
  }
  func.func @transform_16(%arg0: i32) -> (i32, i32) {
    %c0_i32 = arith.constant 0 : i32
    %c0_i32_0 = arith.constant 0 : i32
    %c0_i32_1 = arith.constant 0 : i32
    return %c0_i32, %c0_i32_0 : i32, i32
  }
  func.func @transform_17(%arg0: i32) -> (i32, i32) {
    %c0_i32 = arith.constant 0 : i32
    %c0_i32_0 = arith.constant 0 : i32
    %c0_i32_1 = arith.constant 0 : i32
    return %c0_i32, %c0_i32_0 : i32, i32
  }
  func.func @transform_18(%arg0: i32) -> (i32, i32) {
    %c0_i32 = arith.constant 0 : i32
    %c0_i32_0 = arith.constant 0 : i32
    %c0_i32_1 = arith.constant 0 : i32
    return %c0_i32, %c0_i32_0 : i32, i32
  }
  func.func @transform_19(%arg0: i32) -> (i32, i32) {
    %c0_i32 = arith.constant 0 : i32
    %c0_i32_0 = arith.constant 0 : i32
    %c0_i32_1 = arith.constant 0 : i32
    return %c0_i32, %c0_i32_0 : i32, i32
  }
  func.func @transform_20(%arg0: i32) -> (i32, i32) {
    %c0_i32 = arith.constant 0 : i32
    %c0_i32_0 = arith.constant 0 : i32
    %c0_i32_1 = arith.constant 0 : i32
    return %c0_i32, %c0_i32_0 : i32, i32
  }
  func.func @transform_21(%arg0: i32) -> (i32, i32) {
    %c0_i32 = arith.constant 0 : i32
    %c0_i32_0 = arith.constant 0 : i32
    %c0_i32_1 = arith.constant 0 : i32
    return %c0_i32, %c0_i32_0 : i32, i32
  }
  func.func @transform_22(%arg0: i32) -> (i32, i32) {
    %c0_i32 = arith.constant 0 : i32
    %c0_i32_0 = arith.constant 0 : i32
    %c0_i32_1 = arith.constant 0 : i32
    return %c0_i32, %c0_i32_0 : i32, i32
  }
  func.func @transform_23(%arg0: i32) -> (i32, i32) {
    %c0_i32 = arith.constant 0 : i32
    %c0_i32_0 = arith.constant 0 : i32
    %c0_i32_1 = arith.constant 0 : i32
    return %c0_i32, %c0_i32_0 : i32, i32
  }
  func.func @transform_24(%arg0: i32) -> (i32, i32) {
    %c0_i32 = arith.constant 0 : i32
    %c0_i32_0 = arith.constant 0 : i32
    %c0_i32_1 = arith.constant 0 : i32
    return %c0_i32, %c0_i32_0 : i32, i32
  }
  func.func @transform_25(%arg0: i32) -> (i32, i32) {
    %c0_i32 = arith.constant 0 : i32
    %c0_i32_0 = arith.constant 0 : i32
    %c0_i32_1 = arith.constant 0 : i32
    return %c0_i32, %c0_i32_0 : i32, i32
  }
  func.func @transform_26(%arg0: i32) -> (i32, i32) {
    %c0_i32 = arith.constant 0 : i32
    %c0_i32_0 = arith.constant 0 : i32
    %c0_i32_1 = arith.constant 0 : i32
    return %c0_i32, %c0_i32_0 : i32, i32
  }
  func.func @transform_27(%arg0: i32) -> (i32, i32) {
    %c0_i32 = arith.constant 0 : i32
    %c0_i32_0 = arith.constant 0 : i32
    %c0_i32_1 = arith.constant 0 : i32
    return %c0_i32, %c0_i32_0 : i32, i32
  }
  func.func @transform_28(%arg0: i32) -> (i32, i32) {
    %c0_i32 = arith.constant 0 : i32
    %c0_i32_0 = arith.constant 0 : i32
    %c0_i32_1 = arith.constant 0 : i32
    return %c0_i32, %c0_i32_0 : i32, i32
  }
  func.func @transform_29(%arg0: i32) -> (i32, i32) {
    %c0_i32 = arith.constant 0 : i32
    %c0_i32_0 = arith.constant 0 : i32
    %c0_i32_1 = arith.constant 0 : i32
    return %c0_i32, %c0_i32_0 : i32, i32
  }
  func.func @transform_30(%arg0: i32) -> (i32, i32) {
    %c0_i32 = arith.constant 0 : i32
    %c0_i32_0 = arith.constant 0 : i32
    %c0_i32_1 = arith.constant 0 : i32
    return %c0_i32, %c0_i32_0 : i32, i32
  }
  func.func @transform_31(%arg0: i32) -> (i32, i32) {
    %c0_i32 = arith.constant 0 : i32
    %c0_i32_0 = arith.constant 0 : i32
    %c0_i32_1 = arith.constant 0 : i32
    return %c0_i32, %c0_i32_0 : i32, i32
  }
  func.func @transform_32(%arg0: i32) -> (i32, i32) {
    %c0_i32 = arith.constant 0 : i32
    %c0_i32_0 = arith.constant 0 : i32
    %c0_i32_1 = arith.constant 0 : i32
    return %c0_i32, %c0_i32_0 : i32, i32
  }
  func.func @transform_33(%arg0: i32) -> (i32, i32) {
    %c0_i32 = arith.constant 0 : i32
    %c0_i32_0 = arith.constant 0 : i32
    %c0_i32_1 = arith.constant 0 : i32
    return %c0_i32, %c0_i32_0 : i32, i32
  }
  func.func @transform_34(%arg0: i32) -> (i32, i32) {
    %c0_i32 = arith.constant 0 : i32
    %c0_i32_0 = arith.constant 0 : i32
    %c0_i32_1 = arith.constant 0 : i32
    return %c0_i32, %c0_i32_0 : i32, i32
  }
  func.func @transform_35(%arg0: i32) -> (i32, i32) {
    %c0_i32 = arith.constant 0 : i32
    %c0_i32_0 = arith.constant 0 : i32
    %c0_i32_1 = arith.constant 0 : i32
    return %c0_i32, %c0_i32_0 : i32, i32
  }
  func.func @transform_36(%arg0: i32) -> (i32, i32) {
    %c0_i32 = arith.constant 0 : i32
    %c0_i32_0 = arith.constant 0 : i32
    %c0_i32_1 = arith.constant 0 : i32
    return %c0_i32, %c0_i32_0 : i32, i32
  }
  func.func @transform_37(%arg0: i32) -> (i32, i32) {
    %c0_i32 = arith.constant 0 : i32
    %c0_i32_0 = arith.constant 0 : i32
    %c0_i32_1 = arith.constant 0 : i32
    return %c0_i32, %c0_i32_0 : i32, i32
  }
  func.func @transform_38(%arg0: i32) -> (i32, i32) {
    %c0_i32 = arith.constant 0 : i32
    %c0_i32_0 = arith.constant 0 : i32
    %c0_i32_1 = arith.constant 0 : i32
    return %c0_i32, %c0_i32_0 : i32, i32
  }
  func.func @transform_39(%arg0: i32) -> (i32, i32) {
    %c0_i32 = arith.constant 0 : i32
    %c0_i32_0 = arith.constant 0 : i32
    %c0_i32_1 = arith.constant 0 : i32
    return %c0_i32, %c0_i32_0 : i32, i32
  }
  func.func @transform_40(%arg0: i32) -> (i32, i32) {
    %c0_i32 = arith.constant 0 : i32
    %c0_i32_0 = arith.constant 0 : i32
    %c0_i32_1 = arith.constant 0 : i32
    return %c0_i32, %c0_i32_0 : i32, i32
  }
  func.func @transform_41(%arg0: i32) -> (i32, i32, i32) {
    %c0_i32 = arith.constant 0 : i32
    %c0_i32_0 = arith.constant 0 : i32
    %c0_i32_1 = arith.constant 0 : i32
    return %arg0, %c0_i32, %c0_i32_0 : i32, i32, i32
  }
}

</mosaic_0001>

<bundles_post_ra>
// kernel: tpu_custom_call.1
= control target key start
LH: loop header
LB: loop body
LE: loop exit
PB: predicated region body
PF: predicated region fallthrough
CT: control target
= control target key end

     0   :  { %s30661_s6 = smov 1   ;;  %s30662_s10 = smov 2   ;;  %s34069_s0 = inlined_call_operand.smem [shape: u32[42], index: -1, kind: input, shape index: {}] }
   0x1   :  { %s30762_s5 = sld [smem:[%s34069_s0]]   ;;  %s30663_s14 = smov 3  }
   0x2   :  { %s30767_s9 = sld [smem:[%s34069_s0 + %s30661_s6]]   ;;  %s30664_s18 = smov 4  }
   0x3   :  { %s30772_s13 = sld [smem:[%s34069_s0 + %s30662_s10]]   ;;  %s30665_s22 = smov 5  }
   0x4   :  { %s30777_s17 = sld [smem:[%s34069_s0 + %s30663_s14]]   ;;  %s30666_s26 = smov 6  }
   0x5   :  { %s30782_s21 = sld [smem:[%s34069_s0 + %s30664_s18]]   ;;  %s30667_s30 = smov 7  }
   0x6   :  { %s30787_s25 = sld [smem:[%s34069_s0 + %s30665_s22]]   ;;  %s30668_s4 = smov 8  }
   0x7   :  { %34178 = sst [smem:[#allocation76_spill]] %s30762_s5  ;;  %s30669_s10 = smov 9  }
   0x8   :  { %34179 = sst [smem:[#allocation77_spill]] %s30767_s9  ;;  %s30670_s15 = smov 10  }
   0x9   :  { %34180 = sst [smem:[#allocation78_spill]] %s30772_s13  ;;  %s30671_s20 = smov 11  }
   0xa   :  { %34181 = sst [smem:[#allocation79_spill]] %s30777_s17  ;;  %s30673_s1 = smov 13  }
   0xb   :  { %34182 = sst [smem:[#allocation80_spill]] %s30782_s21  ;;  %s30674_s7 = smov 14  }
   0xc   :  { %34183 = sst [smem:[#allocation81_spill]] %s30787_s25  ;;  %s30676_s22 = smov 16  }
   0xd   :  { %s30792_s29 = sld [smem:[%s34069_s0 + %s30666_s26]]   ;;  %s30672_s26 = smov 12  }
   0xe   :  { %s30797_s3 = sld [smem:[%s34069_s0 + %s30667_s30]]   ;;  %s30677_s28 = smov 17  }
   0xf   :  { %s30802_s8 = sld [smem:[%s34069_s0 + %s30668_s4]]  }
  0x10   :  { %s30807_s14 = sld [smem:[%s34069_s0 + %s30669_s10]]  }
  0x11   :  { %s30812_s19 = sld [smem:[%s34069_s0 + %s30670_s15]]   ;;  %s30675_s15 = smov 15  }
  0x12   :  { %s30817_s24 = sld [smem:[%s34069_s0 + %s30671_s20]]  }
  0x13   :  { %34184 = sst [smem:[#allocation82_spill]] %s30792_s29 }
  0x14   :  { %34185 = sst [smem:[#allocation83_spill]] %s30797_s3 }
  0x15   :  { %34186 = sst [smem:[#allocation84_spill]] %s30802_s8 }
  0x16   :  { %s30822_s30 = sld [smem:[%s34069_s0 + %s30672_s26]]  }
  0x17   :  { %34187 = sst [smem:[#allocation85_spill]] %s30812_s19 }
  0x18   :  { %s30827_s6 = sld [smem:[%s34069_s0 + %s30673_s1]]  }
  0x19   :  { %s30832_s12 = sld [smem:[%s34069_s0 + %s30674_s7]]   ;;  %s30678_s7 = smov 18  }
  0x1a   :  { %s30837_s20 = sld [smem:[%s34069_s0 + %s30675_s15]]   ;;  %s30679_s15 = smov 19  }
  0x1b   :  { %s30842_s27 = sld [smem:[%s34069_s0 + %s30676_s22]]   ;;  %s30680_s22 = smov 20  }
  0x1c   :  { %34188 = sst [smem:[#allocation86_spill]] %s30822_s30 }
  0x1d   :  { %s30847_s4 = sld [smem:[%s34069_s0 + %s30677_s28]]   ;;  %s30681_s28 = smov 21  }
  0x1e   :  { %34189 = sst [smem:[#allocation87_spill]] %s30827_s6 }
  0x1f   :  { %34190 = sst [smem:[#allocation88_spill]] %s30832_s12 }
  0x20   :  { %s30852_s25 = sld [smem:[%s34069_s0 + %s30678_s7]]   ;;  %s30682_s7 = smov 22  }
  0x21   :  { %34191 = sst [smem:[#allocation89_spill]] %s30842_s27 }
  0x22   :  { %s30857_s13 = sld [smem:[%s34069_s0 + %s30679_s15]]   ;;  %s30683_s15 = smov 23  }
  0x23   :  { %34192 = sst [smem:[#allocation90_spill]] %s30847_s4 }
  0x24   :  { %s30862_s9 = sld [smem:[%s34069_s0 + %s30680_s22]]   ;;  %s30684_s22 = smov 24  }
  0x25   :  { %s30867_s5 = sld [smem:[%s34069_s0 + %s30681_s28]]   ;;  %s30685_s28 = smov 25  }
  0x26   :  { %34193 = sst [smem:[#allocation91_spill]] %s30852_s25 }
  0x27   :  { %s30872_s25 = sld [smem:[%s34069_s0 + %s30682_s7]]   ;;  %s30686_s7 = smov 26  }
  0x28   :  { %s30877_s27 = sld [smem:[%s34069_s0 + %s30683_s15]]   ;;  %s30687_s15 = smov 27  }
  0x29   :  { %s30887_s12 = sld [smem:[%s34069_s0 + %s30685_s28]]   ;;  %s30689_s28 = smov 29  }
  0x2a   :  { %34194 = sst [smem:[#allocation92_spill]] %s30862_s9 }
  0x2b   :  { %34195 = sst [smem:[#allocation93_spill]] %s30867_s5 }
  0x2c   :  { %s30882_s9 = sld [smem:[%s34069_s0 + %s30684_s22]]   ;;  %s30688_s22 = smov 28  }
  0x2d   :  { %34196 = sst [smem:[#allocation94_spill]] %s30872_s25 }
  0x2e   :  { %34197 = sst [smem:[#allocation95_spill]] %s30877_s27 }
  0x2f   :  { %34198 = sst [smem:[#allocation96_spill]] %s30887_s12 }
  0x30   :  { %s30892_s25 = sld [smem:[%s34069_s0 + %s30686_s7]]   ;;  %s30690_s7 = smov 30  }
  0x31   :  { %s30897_s27 = sld [smem:[%s34069_s0 + %s30687_s15]]   ;;  %s30691_s15 = smov 31  }
  0x32   :  { %s30902_s30 = sld [smem:[%s34069_s0 + %s30688_s22]]   ;;  %s30692_s22 = smov 32  }
  0x33   :  { %s30907_s12 = sld [smem:[%s34069_s0 + %s30689_s28]]   ;;  %s30693_s28 = smov 33  }
  0x34   :  { %s30912_s19 = sld [smem:[%s34069_s0 + %s30690_s7]]   ;;  %s30694_s7 = smov 34  }
  0x35   :  { %s30922_s8 = sld [smem:[%s34069_s0 + %s30692_s22]]   ;;  %s30696_s22 = smov 36  }
  0x36   :  { %s30932_s29 = sld [smem:[%s34069_s0 + %s30694_s7]]   ;;  %s30698_s7 = smov 38  }
  0x37   :  { %34199 = sst [smem:[#allocation97_spill]] %s30897_s27 }
  0x38   :  { %s30917_s27 = sld [smem:[%s34069_s0 + %s30691_s15]]   ;;  %s30695_s15 = smov 35  }
  0x39   :  { %34200 = sst [smem:[#allocation98_spill]] %s30907_s12 }
  0x3a   :  { %s30927_s12 = sld [smem:[%s34069_s0 + %s30693_s28]]   ;;  %s30697_s28 = smov 37  }
  0x3b   :  { %s30942_s17 = sld [smem:[%s34069_s0 + %s30696_s22]]   ;;  %s30700_s22 = smov 40  }
  0x3c   :  { %34203 = sst [smem:[#allocation101_spill]] %s30932_s29 }
  0x3d   :  { %s30952_s29 = sld [smem:[%s34069_s0 + %s30698_s7]]  }
  0x3e   :  { %34201 = sst [smem:[#allocation99_spill]] %s30917_s27 }
  0x3f   :  { %s30937_s27 = sld [smem:[%s34069_s0 + %s30695_s15]]   ;;  %s30699_s15 = smov 39  }
  0x40   :  { %34202 = sst [smem:[#allocation100_spill]] %s30927_s12 }
  0x41   :  { %34205 = sst [smem:[#allocation103_spill]] %s30942_s17 }
  0x42   :  { %s30947_s12 = sld [smem:[%s34069_s0 + %s30697_s28]]   ;;  %s30701_s28 = smov 41  }
  0x43   :  { %s30962_s17 = sld [smem:[%s34069_s0 + %s30700_s22]]  }
  0x45   :  { %34204 = sst [smem:[#allocation102_spill]] %s30937_s27 }
  0x46   :  { %s30957_s27 = sld [smem:[%s34069_s0 + %s30699_s15]]  }
  0x48   :  { %34206 = sst [smem:[#allocation104_spill]] %s30947_s12 }
  0x49   :  { %s30967_s12 = sld [smem:[%s34069_s0 + %s30701_s28]]  }
  0x4a   :  { %88 = vsyncpa [#allocation3], 0 }
  0x4b   :  { %89 = vsyncpa [#allocation6], 0 }
  0x4c   :  { %90 = vsyncpa [#allocation9], 0 }
  0x4d   :  { %91 = vsyncpa [#allocation12], 0 }
  0x4e   :  { %92 = vsyncpa [#allocation15], 0 }
  0x4f   :  { %93 = vsyncpa [#allocation18], 0 }
  0x50   :  { %94 = vsyncpa [#allocation21], 0 }
  0x51   :  { %95 = vsyncpa [#allocation24], 0 }
  0x52   :  { %96 = vsyncpa [#allocation27], 0 }
  0x53   :  { %97 = vsyncpa [#allocation30], 0 }
  0x54   :  { %98 = vsyncpa [#allocation33], 0 }
  0x55   :  { %99 = vsyncpa [#allocation36], 0 }
  0x56   :  { %100 = vsyncpa [#allocation39], 0 }
  0x57   :  { %101 = vsyncpa [#allocation42], 0 }
  0x58   :  { %102 = vsyncpa [#allocation45], 0 }
  0x59   :  { %103 = vsyncpa [#allocation48], 0 }
  0x5a   :  { %104 = vsyncpa [#allocation51], 0 }
  0x5b   :  { %105 = vsyncpa [#allocation54], 0 }
  0x5c   :  { %106 = vsyncpa [#allocation4], 0 }
  0x5d   :  { %108 = vsyncpa [#allocation4 + $0x1], 0  ;;  %s30969_s0 = smov 0   ;;  %s30971_s7 = smov 0  }
  0x5e   :  { %s30973_s10 = smov 0   ;;  %s30975_s11 = smov 0  }
  0x5f LB: > { %34207 = sst [smem:[#allocation105_spill]] %s30655_s10  ;;  %s30990_s15 = sadd.s32 4294967295, %s30659_s11   ;;  %s30659_s11 = sphi %s30975_s11, %s34398_s11   ;;  %s30655_s10 = sphi %s30973_s10, %s34400_s10   ;;  %s30651_s7 = sphi %s30971_s7, %s34402_s7   ;;  %s30647_s0 = sphi %s30969_s0, %s34401_s0  }
  0x60   : > { %s27553_s16 = sadd.s32 4294967294, %s30659_s11   ;;  %s30994_s18 = sadd.s32 1, %s30659_s11  }
  0x61   : > { %34208 = sst [smem:[#allocation106_spill]] %s30994_s18  ;;  %s987_s22 = sadd.s32 1, %s30655_s10 }
  0x62   : > { %s984_s23 = ssub.s32 %s30659_s11, %s30994_s18  ;;  %p997_p0 = scmp.ne.s32.totalorder %s30655_s10, %s30651_s7 }
  0x63   : > { %p985_p1 = scmp.eq.s32.totalorder %s984_s23, 0  ;;  %p998_p2 = scmp.eq.s32.totalorder %s30990_s15, 1 }
  0x64   : > { %p1003_p3 = scmp.ne.s32.totalorder %s30651_s7, %s30647_s0  ;;  %p1004_p4 = scmp.eq.s32.totalorder %s27553_s16, 1 }
  0x65   : > { %s31005_s26 = scalar_select %p985_p1, %s30655_s10, %s987_s22  }
  0x66   : > { %p31007_p5 = por %p998_p2, %p997_p0  ;;  %p31011_p6 = por %p1004_p4, %p1003_p3 }
  0x67   : > { %34209 = sst [smem:[#allocation107_spill]] %s31005_s26  ;;  %p27554_p7 = scmp.ge.s32.totalorder %s30659_s11, 1 }
  0x68   : > { %s34210_s28 = scalar_select %p31007_p5, 1, 0 }
  0x69   : > { %s34211_s1 = scalar_select %p31011_p6, 1, 0 }
  0x6a   : > { %p1011_p8 = scmp.lt.s32.totalorder %s30659_s11, 3 }
  0x6b   : > { %34212 = sst [smem:[#allocation108_spill]] %s34211_s1 }
  0x6c   : > { %p31017_p9 = pnand %p27554_p7, %p1011_p8 }
  0x6d   : > { %p28942_p10 = scmp.eq.s32.totalorder (!%p31017_p9), %s30990_s15, 0  ;;  %s30702_s16 = smov (!%p31017_p9), [#allocation5]  }
  0x6e   : > { %s34213_s2 = scalar_select %p31017_p9, 1, 0 }
  0x6f   : > { %1015 = sbr.rel (%p31017_p9) target bundleno = 524 (0x20c), region = 12  ;;  %s1041_s22 = sshll.u32 (!%p31017_p9), %s30702_s16, 4  ;;  %s1042_s22 = int_to_ptr.vmem [resolvable:$true] %s1041_s22 }
  0x70   : > { %s30703_s23 = smov (!%p31017_p9), [#allocation8]   ;;  %s29697_s10 = scalar_lea.vmem (!%p31017_p9), %s1042_s22, 16 }
  0x71   : > { %s1066_s26 = sshll.u32 (!%p31017_p9), %s30703_s23, 4  ;;  %p29698_p11 = scmp.ne.s32.totalorder (!%p31017_p9), %s1042_s22, %s29697_s10  ;;  %s1067_s26 = int_to_ptr.vmem [resolvable:$true] %s1066_s26 }
  0x72   : > { %s29703_s18 = scalar_lea.vmem (!%p31017_p9), %s1042_s22, 32  ;;  %p29704_p0 = scmp.lt.s32.totalorder (!%p31017_p9), %s1042_s22, %s1042_s22 }
  0x73   : > { %p29699_p12 = pnand (!%p31017_p9), %p29698_p11, %p28942_p10  ;;  %p29705_p1 = scmp.lt.s32.totalorder (!%p31017_p9), %s29703_s18, %s29697_s10 }
  0x75   : > { %p29700_p13 = pneg %p29699_p12  ;;  %p29706_p2 = por %p29705_p1, %p29704_p0 }
  0x77   : > { %p29707_p3 = pnand %p29706_p2, %p29700_p13 }
  0x79   : > { %29710 = shalt.err (!%p29707_p3)
}
  0x7a   : > { %s34214_s21 = sld [smem:[#allocation80_spill]]  ;;  %s29721_s16 = scalar_lea.vmem %s1067_s26, 16 }
  0x7b   : > { %p29722_p4 = scmp.ne.s32.totalorder %s1067_s26, %s29721_s16  ;;  %s29727_s23 = scalar_lea.vmem %s1067_s26, 32 }
  0x7c   : > { %p29728_p11 = scmp.lt.s32.totalorder %s1067_s26, %s1067_s26  ;;  %p29729_p12 = scmp.lt.s32.totalorder %s29727_s23, %s29721_s16 }
  0x7d   : > { %p29723_p7 = pnand %p29722_p4, %p28942_p10 }
  0x7e   : > { %p29730_p6 = por %p29729_p12, %p29728_p11 }
  0x7f   : > { %p29724_p8 = pneg %p29723_p7 }
  0x80   : > { %28799 = dma.hbm_to_vmem [thread:$0]  (%p28942_p10), %s34214_s21, 16, %s1042_s22, [#allocation6]  }
  0x81   : > { %p29731_p5 = pnand %p29730_p6, %p29724_p8 }
  0x83   : > { %29734 = shalt.err (!%p29731_p5)
}
  0x84   : > { %s34215_s3 = sld [smem:[#allocation83_spill]]  ;;  %s30704_s10 = smov [#allocation11]  }
  0x85   : > { %s1087_s18 = sshll.u32 %s30704_s10, 4  ;;  %s1088_s18 = int_to_ptr.vmem [resolvable:$true] %s1087_s18 }
  0x86   : > { %s29745_s22 = scalar_lea.vmem %s1088_s18, 512  ;;  %p29752_p2 = scmp.lt.s32.totalorder %s1088_s18, %s1088_s18 }
  0x87   : > { %p29746_p13 = scmp.ne.s32.totalorder %s1088_s18, %s29745_s22  ;;  %p29753_p3 = scmp.lt.s32.totalorder %s29745_s22, %s29745_s22 }
  0x89   : > { %p29747_p0 = pnand %p29746_p13, %p28942_p10  ;;  %p29754_p4 = por %p29753_p3, %p29752_p2 }
  0x8a   : > { %28803 = dma.hbm_to_vmem [thread:$0]  (%p28942_p10), %s34215_s3, 16, %s1067_s26, [#allocation9]  }
  0x8b   : > { %p29748_p1 = pneg %p29747_p0 }
  0x8d   : > { %p29755_p7 = pnand %p29754_p4, %p29748_p1 }
  0x8f   : > { %29758 = shalt.err (!%p29755_p7)
}
  0x90   : > { %s34086_s16 = smov 64   ;;  %s34077_s23 = smov 4  }
  0x91   : > { %28807 = dma.hbm_to_vmem [thread:$0]  (%p28942_p10), %s30807_s14, 512, %s1088_s18, [#allocation12], %s34086_s16, %s34086_s16, %s34077_s23  }
  0x92   : > { %s30707_s26 = smov [#allocation14]   ;;  %s30708_s3 = smov [#allocation17]  }
  0x93   : > { %s1112_s10 = sshll.u32 %s30707_s26, 4  ;;  %s1133_s21 = sshll.u32 %s30708_s3, 4  ;;  %s1113_s10 = int_to_ptr.vmem [resolvable:$true] %s1112_s10  ;;  %s1134_s21 = int_to_ptr.vmem [resolvable:$true] %s1133_s21 }
  0x94   : > { %s29769_s22 = scalar_lea.vmem %s1113_s10, 16  ;;  %s29775_s1 = scalar_lea.vmem %s1113_s10, 32 }
  0x95   : > { %p29770_p5 = scmp.ne.s32.totalorder %s1113_s10, %s29769_s22  ;;  %p29776_p11 = scmp.lt.s32.totalorder %s1113_s10, %s1113_s10 }
  0x96   : > { %p29777_p12 = scmp.lt.s32.totalorder %s29775_s1, %s29769_s22 }
  0x97   : > { %p29771_p6 = pnand %p29770_p5, %p28942_p10 }
  0x98   : > { %p29778_p13 = por %p29777_p12, %p29776_p11 }
  0x99   : > { %p29772_p8 = pneg %p29771_p6 }
  0x9b   : > { %p29779_p0 = pnand %p29778_p13, %p29772_p8 }
  0x9d   : > { %29782 = shalt.err (!%p29779_p0)
}
  0x9e   : > { %28811 = dma.hbm_to_vmem [thread:$0]  (%p28942_p10), %s30817_s24, 16, %s1113_s10, [#allocation15]  }
  0x9f   : > { %s29793_s18 = scalar_lea.vmem %s1134_s21, 512  ;;  %p29800_p4 = scmp.lt.s32.totalorder %s1134_s21, %s1134_s21 }
  0xa0   : > { %p29794_p1 = scmp.ne.s32.totalorder %s1134_s21, %s29793_s18  ;;  %p29801_p7 = scmp.lt.s32.totalorder %s29793_s18, %s29793_s18 }
  0xa2   : > { %p29795_p2 = pnand %p29794_p1, %p28942_p10  ;;  %p29802_p5 = por %p29801_p7, %p29800_p4 }
  0xa4   : > { %p29796_p3 = pneg %p29795_p2 }
  0xa6   : > { %p29803_p6 = pnand %p29802_p5, %p29796_p3 }
  0xa8   : > { %29806 = shalt.err (!%p29803_p6)
}
  0xa9   : > { %s34216_s6 = sld [smem:[#allocation87_spill]]  ;;  %s30709_s3 = smov [#allocation20]  }
  0xaa   : > { %s1158_s1 = sshll.u32 %s30709_s3, 4  ;;  %s30710_s26 = smov [#allocation23]   ;;  %s1159_s1 = int_to_ptr.vmem [resolvable:$true] %s1158_s1 }
  0xab   : > { %s1179_s10 = sshll.u32 %s30710_s26, 4  ;;  %s29817_s22 = scalar_lea.vmem %s1159_s1, 16  ;;  %s1180_s10 = int_to_ptr.vmem [resolvable:$true] %s1179_s10 }
  0xac   : > { %p29818_p8 = scmp.ne.s32.totalorder %s1159_s1, %s29817_s22  ;;  %s29823_s18 = scalar_lea.vmem %s1159_s1, 32 }
  0xad   : > { %p29824_p13 = scmp.lt.s32.totalorder %s1159_s1, %s1159_s1  ;;  %p29825_p0 = scmp.lt.s32.totalorder %s29823_s18, %s29817_s22 }
  0xae   : > { %p29819_p11 = pnand %p29818_p8, %p28942_p10 }
  0xaf   : > { %28815 = dma.hbm_to_vmem [thread:$0]  (%p28942_p10), %s34216_s6, 512, %s1134_s21, [#allocation18], %s34086_s16, %s34086_s16, %s34077_s23  }
  0xb0   : > { %p29820_p12 = pneg %p29819_p11  ;;  %p29826_p1 = por %p29825_p0, %p29824_p13 }
  0xb2   : > { %p29827_p2 = pnand %p29826_p1, %p29820_p12 }
  0xb4   : > { %29830 = shalt.err (!%p29827_p2)
}
  0xb5   : > { %28819 = dma.hbm_to_vmem [thread:$0]  (%p28942_p10), %s30837_s20, 16, %s1159_s1, [#allocation21]  }
  0xb6   : > { %s29841_s21 = scalar_lea.vmem %s1180_s10, 8192  ;;  %p29848_p5 = scmp.lt.s32.totalorder %s1180_s10, %s1180_s10 }
  0xb7   : > { %p29842_p3 = scmp.ne.s32.totalorder %s1180_s10, %s29841_s21  ;;  %p29849_p6 = scmp.lt.s32.totalorder %s29841_s21, %s29841_s21 }
  0xb9   : > { %p29843_p4 = pnand %p29842_p3, %p28942_p10  ;;  %p29850_p8 = por %p29849_p6, %p29848_p5 }
  0xbb   : > { %p29844_p7 = pneg %p29843_p4 }
  0xbd   : > { %p29851_p11 = pnand %p29850_p8, %p29844_p7 }
  0xbf   : > { %29854 = shalt.err (!%p29851_p11)
}
  0xc0   : > { %s34079_s3 = smov 512   ;;  %s34217_s4 = sld [smem:[#allocation90_spill]] }
  0xc1   : > { %s34080_s26 = smov 32   ;;  %s30713_s1 = smov [#allocation26]  }
  0xc2   : > { %s1204_s22 = sshll.u32 %s30713_s1, 4  ;;  %s30714_s18 = smov [#allocation29]   ;;  %s1205_s22 = int_to_ptr.vmem [resolvable:$true] %s1204_s22 }
  0xc3   : > { %s1225_s23 = sshll.u32 %s30714_s18, 4  ;;  %s29865_s21 = scalar_lea.vmem %s1205_s22, 128  ;;  %s1226_s23 = int_to_ptr.vmem [resolvable:$true] %s1225_s23 }
  0xc4   : > { %p29866_p12 = scmp.ne.s32.totalorder %s1205_s22, %s29865_s21  ;;  %p29872_p1 = scmp.lt.s32.totalorder %s1205_s22, %s1205_s22 }
  0xc5   : > { %p29873_p2 = scmp.lt.s32.totalorder %s29865_s21, %s29865_s21 }
  0xc6   : > { %28823 = dma.hbm_to_vmem [thread:$0]  (%p28942_p10), %s34217_s4, 8192, %s1180_s10, [#allocation24], %s34079_s3, %s34079_s3, %s34080_s26  }
  0xc7   : > { %p29867_p13 = pnand %p29866_p12, %p28942_p10  ;;  %p29874_p3 = por %p29873_p2, %p29872_p1 }
  0xc9   : > { %p29868_p0 = pneg %p29867_p13 }
  0xcb   : > { %p29875_p4 = pnand %p29874_p3, %p29868_p0 }
  0xcd   : > { %29878 = shalt.err (!%p29875_p4)
}
  0xce   : > { %28827 = dma.hbm_to_vmem [thread:$0]  (%p28942_p10), %s30857_s13, 128, %s1205_s22, [#allocation27]  }
  0xcf   : > { %s29889_s10 = scalar_lea.vmem %s1226_s23, 32768  ;;  %p29896_p8 = scmp.lt.s32.totalorder %s1226_s23, %s1226_s23 }
  0xd0   : > { %p29890_p7 = scmp.ne.s32.totalorder %s1226_s23, %s29889_s10  ;;  %p29897_p11 = scmp.lt.s32.totalorder %s29889_s10, %s29889_s10 }
  0xd2   : > { %p29891_p5 = pnand %p29890_p7, %p28942_p10  ;;  %p29898_p9 = por %p29897_p11, %p29896_p8 }
  0xd4   : > { %p29892_p6 = pneg %p29891_p5 }
  0xd6   : > { %p29899_p12 = pnand %p29898_p9, %p29892_p6 }
  0xd8   : > { %29902 = shalt.err (!%p29899_p12)
}
  0xd9   : > { %s34081_s1 = smov 256   ;;  %s34218_s5 = sld [smem:[#allocation93_spill]] }
  0xda   : > { %s34083_s18 = smov 16   ;;  %s30717_s22 = smov [#allocation32]  }
  0xdb   : > { %s1253_s21 = sshll.u32 %s30717_s22, 4  ;;  %s30718_s3 = smov [#allocation35]   ;;  %s1254_s21 = int_to_ptr.vmem [resolvable:$true] %s1253_s21 }
  0xdc   : > { %s1277_s26 = sshll.u32 %s30718_s3, 4  ;;  %s29913_s10 = scalar_lea.vmem %s1254_s21, 64  ;;  %s1278_s26 = int_to_ptr.vmem [resolvable:$true] %s1277_s26 }
  0xdd   : > { %p29914_p13 = scmp.ne.s32.totalorder %s1254_s21, %s29913_s10  ;;  %p29920_p1 = scmp.lt.s32.totalorder %s1254_s21, %s1254_s21 }
  0xde   : > { %p29921_p2 = scmp.lt.s32.totalorder %s29913_s10, %s29913_s10 }
  0xdf   : > { %28831 = dma.hbm_to_vmem [thread:$0]  (%p28942_p10), %s34218_s5, 32768, %s1226_s23, [#allocation30], %s34081_s1, %s34081_s1, %s34083_s18  }
  0xe0   : > { %p29915_p9 = pnand %p29914_p13, %p28942_p10  ;;  %p29922_p3 = por %p29921_p2, %p29920_p1 }
  0xe2   : > { %p29916_p0 = pneg %p29915_p9 }
  0xe4   : > { %p29923_p4 = pnand %p29922_p3, %p29916_p0 }
  0xe6   : > { %29926 = shalt.err (!%p29923_p4)
}
  0xe7   : > { %28835 = dma.hbm_to_vmem [thread:$0]  (%p28942_p10), %s30882_s9, 64, %s1254_s21, [#allocation33]  }
  0xe8   : > { %s29937_s23 = scalar_lea.vmem %s1278_s26, 32  ;;  %p29944_p8 = scmp.lt.s32.totalorder %s1278_s26, %s1278_s26 }
  0xe9   : > { %p29938_p7 = scmp.ne.s32.totalorder %s1278_s26, %s29937_s23  ;;  %p29945_p11 = scmp.lt.s32.totalorder %s29937_s23, %s29937_s23 }
  0xeb   : > { %p29939_p5 = pnand %p29938_p7, %p28942_p10  ;;  %p29946_p12 = por %p29945_p11, %p29944_p8 }
  0xed   : > { %p29940_p6 = pneg %p29939_p5 }
  0xef   : > { %p29947_p13 = pnand %p29946_p12, %p29940_p6 }
  0xf1   : > { %29950 = shalt.err (!%p29947_p13)
}
  0xf2   : > { %28839 = dma.hbm_to_vmem [thread:$0]  (%p28942_p10), %s30892_s25, 32, %s1278_s26, [#allocation36]  }
  0xf3   : > { %s30719_s3 = smov [#allocation38]   ;;  %s30720_s10 = smov [#allocation41]  }
  0xf4   : > { %s1299_s22 = sshll.u32 %s30719_s3, 4  ;;  %s1323_s1 = sshll.u32 %s30720_s10, 4  ;;  %s1300_s22 = int_to_ptr.vmem [resolvable:$true] %s1299_s22  ;;  %s1324_s1 = int_to_ptr.vmem [resolvable:$true] %s1323_s1 }
  0xf5   : > { %s29961_s21 = scalar_lea.vmem %s1300_s22, 32  ;;  %p29968_p2 = scmp.lt.s32.totalorder %s1300_s22, %s1300_s22 }
  0xf6   : > { %p29962_p9 = scmp.ne.s32.totalorder %s1300_s22, %s29961_s21  ;;  %p29969_p3 = scmp.lt.s32.totalorder %s29961_s21, %s29961_s21 }
  0xf8   : > { %p29963_p0 = pnand %p29962_p9, %p28942_p10  ;;  %p29970_p4 = por %p29969_p3, %p29968_p2 }
  0xfa   : > { %p29964_p1 = pneg %p29963_p0 }
  0xfc   : > { %p29971_p7 = pnand %p29970_p4, %p29964_p1 }
  0xfe   : > { %29974 = shalt.err (!%p29971_p7)
}
  0xff   : > { %28843 = dma.hbm_to_vmem [thread:$0]  (%p28942_p10), %s30902_s30, 32, %s1300_s22, [#allocation39]  }
 0x100   : > { %s29985_s26 = scalar_lea.vmem %s1324_s1, 16  ;;  %s29991_s23 = scalar_lea.vmem %s1324_s1, 32 }
 0x101   : > { %p29986_p5 = scmp.ne.s32.totalorder %s1324_s1, %s29985_s26  ;;  %p29992_p11 = scmp.lt.s32.totalorder %s1324_s1, %s1324_s1 }
 0x102   : > { %p29993_p12 = scmp.lt.s32.totalorder %s29991_s23, %s29985_s26 }
 0x103   : > { %p29987_p6 = pnand %p29986_p5, %p28942_p10 }
 0x104   : > { %p29994_p13 = por %p29993_p12, %p29992_p11 }
 0x105   : > { %p29988_p8 = pneg %p29987_p6 }
 0x107   : > { %p29995_p9 = pnand %p29994_p13, %p29988_p8 }
 0x109   : > { %29998 = shalt.err (!%p29995_p9)
}
 0x10a   : > { %28847 = dma.hbm_to_vmem [thread:$0]  (%p28942_p10), %s30912_s19, 16, %s1324_s1, [#allocation42]  }
 0x10b   : > { %s30721_s3 = smov [#allocation44]   ;;  %s30722_s21 = smov [#allocation47]  }
 0x10c   : > { %s1345_s10 = sshll.u32 %s30721_s3, 4  ;;  %s1367_s22 = sshll.u32 %s30722_s21, 4  ;;  %s1346_s10 = int_to_ptr.vmem [resolvable:$true] %s1345_s10  ;;  %s1368_s22 = int_to_ptr.vmem [resolvable:$true] %s1367_s22 }
 0x10d   : > { %s30009_s18 = scalar_lea.vmem %s1346_s10, 128  ;;  %p30016_p3 = scmp.lt.s32.totalorder %s1346_s10, %s1346_s10 }
 0x10e   : > { %p30010_p0 = scmp.ne.s32.totalorder %s1346_s10, %s30009_s18  ;;  %p30017_p4 = scmp.lt.s32.totalorder %s30009_s18, %s30009_s18 }
 0x110   : > { %p30011_p1 = pnand %p30010_p0, %p28942_p10  ;;  %p30018_p7 = por %p30017_p4, %p30016_p3 }
 0x112   : > { %p30012_p2 = pneg %p30011_p1 }
 0x114   : > { %p30019_p5 = pnand %p30018_p7, %p30012_p2 }
 0x116   : > { %30022 = shalt.err (!%p30019_p5)
}
 0x117   : > { %28851 = dma.hbm_to_vmem [thread:$0]  (%p28942_p10), %s30922_s8, 128, %s1346_s10, [#allocation45]  }
 0x118   : > { %s30033_s1 = scalar_lea.vmem %s1368_s22, 128  ;;  %p30040_p12 = scmp.lt.s32.totalorder %s1368_s22, %s1368_s22 }
 0x119   : > { %p30034_p6 = scmp.ne.s32.totalorder %s1368_s22, %s30033_s1  ;;  %p30041_p13 = scmp.lt.s32.totalorder %s30033_s1, %s30033_s1 }
 0x11b   : > { %p30035_p8 = pnand %p30034_p6, %p28942_p10  ;;  %p30042_p9 = por %p30041_p13, %p30040_p12 }
 0x11d   : > { %p30036_p11 = pneg %p30035_p8 }
 0x11f   : > { %p30043_p0 = pnand %p30042_p9, %p30036_p11 }
 0x121   : > { %30046 = shalt.err (!%p30043_p0)
}
 0x122   : > { %s34219_s18 = sld [smem:[#allocation101_spill]]  ;;  %s30723_s26 = smov [#allocation50]  }
 0x123   : > { %s1390_s23 = sshll.u32 %s30723_s26, 4  ;;  %s30724_s3 = smov [#allocation53]   ;;  %s1391_s23 = int_to_ptr.vmem [resolvable:$true] %s1390_s23 }
 0x124   : > { %s1419_s10 = sshll.u32 %s30724_s3, 4  ;;  %s30057_s21 = scalar_lea.vmem %s1391_s23, 2048  ;;  %s1420_s10 = int_to_ptr.vmem [resolvable:$true] %s1419_s10 }
 0x125   : > { %p30058_p1 = scmp.ne.s32.totalorder %s1391_s23, %s30057_s21  ;;  %p30064_p4 = scmp.lt.s32.totalorder %s1391_s23, %s1391_s23 }
 0x126   : > { %p30065_p7 = scmp.lt.s32.totalorder %s30057_s21, %s30057_s21 }
 0x127   : > { %p30059_p2 = pnand %p30058_p1, %p28942_p10 }
 0x128   : > { %28855 = dma.hbm_to_vmem [thread:$0]  (%p28942_p10), %s34219_s18, 128, %s1368_s22, [#allocation48]  }
 0x129   : > { %p30060_p3 = pneg %p30059_p2  ;;  %p30066_p5 = por %p30065_p7, %p30064_p4 }
 0x12b   : > { %p30067_p6 = pnand %p30066_p5, %p30060_p3 }
 0x12d   : > { %30070 = shalt.err (!%p30067_p6)
}
 0x12e   : > { %s34085_s1 = smov 1024   ;;  %s34220_s22 = sld [smem:[#allocation103_spill]] }
 0x12f   : > { %s30081_s18 = scalar_lea.vmem %s1420_s10, 512  ;;  %p30088_p13 = scmp.lt.s32.totalorder %s1420_s10, %s1420_s10 }
 0x130   : > { %p30082_p8 = scmp.ne.s32.totalorder %s1420_s10, %s30081_s18  ;;  %p30089_p9 = scmp.lt.s32.totalorder %s30081_s18, %s30081_s18 }
 0x132   : > { %p30083_p11 = pnand %p30082_p8, %p28942_p10  ;;  %p30090_p0 = por %p30089_p9, %p30088_p13 }
 0x134   : > { %28859 = dma.hbm_to_vmem [thread:$0]  (%p28942_p10), %s34220_s22, 2048, %s1391_s23, [#allocation51], %s34085_s1, %s34085_s1, %s34086_s16  }
 0x135   : > { %p30084_p12 = pneg %p30083_p11 }
 0x137   : > { %p30091_p1 = pnand %p30090_p0, %p30084_p12 }
 0x139   : > { %30094 = shalt.err (!%p30091_p1)
}
 0x13a   : > { %s34221_s26 = smov 16   ;;  %s34222_s3 = smov 256  }
 0x13b   : > { %28863 = dma.hbm_to_vmem [thread:$0]  (%p28942_p10), %s30957_s27, 512, %s1420_s10, [#allocation54], %s34222_s3, %s34222_s3, %s34221_s26  }
 0x13c   : > { %s30726_s23 = smov [#allocation2]   ;;  %s30727_s22 = smov [#allocation7]  }
 0x13d   : > { %s1030_s21 = sshll.u32 %s30726_s23, 4  ;;  %s1055_s1 = sshll.u32 %s30727_s22, 4  ;;  %s1031_s21 = int_to_ptr.vmem [resolvable:$true] %s1030_s21  ;;  %s1056_s1 = int_to_ptr.vmem [resolvable:$true] %s1055_s1 }
 0x13e   : > { %s30105_s16 = scalar_lea.vmem %s1031_s21, 16  ;;  %s30111_s18 = scalar_lea.vmem %s1031_s21, 32 }
 0x13f   : > { %p30106_p2 = scmp.ne.s32.totalorder %s1031_s21, %s30105_s16  ;;  %p30112_p7 = scmp.lt.s32.totalorder %s1031_s21, %s1031_s21 }
 0x140   : > { %p30113_p5 = scmp.lt.s32.totalorder %s30111_s18, %s30105_s16 }
 0x141   : > { %p30107_p3 = pnand %p30106_p2, %p28942_p10 }
 0x142   : > { %p30114_p6 = por %p30113_p5, %p30112_p7 }
 0x143   : > { %p30108_p4 = pneg %p30107_p3 }
 0x145   : > { %p30115_p8 = pnand %p30114_p6, %p30108_p4 }
 0x147   : > { %30118 = shalt.err (!%p30115_p8)
}
 0x148   : > { %s34223_s10 = sld [smem:[#allocation79_spill]]  ;;  %s30129_s23 = scalar_lea.vmem %s1056_s1, 16 }
 0x149   : > { %p30130_p11 = scmp.ne.s32.totalorder %s1056_s1, %s30129_s23  ;;  %s30135_s22 = scalar_lea.vmem %s1056_s1, 32 }
 0x14a   : > { %p30136_p9 = scmp.lt.s32.totalorder %s1056_s1, %s1056_s1  ;;  %p30137_p0 = scmp.lt.s32.totalorder %s30135_s22, %s30129_s23 }
 0x14b   : > { %p30131_p12 = pnand %p30130_p11, %p28942_p10 }
 0x14c   : > { %p30138_p1 = por %p30137_p0, %p30136_p9 }
 0x14d   : > { %p30132_p13 = pneg %p30131_p12 }
 0x14e   : > { %28797 = dma.hbm_to_vmem [thread:$0]  (%p28942_p10), %s34223_s10, 16, %s1031_s21, [#allocation3]  }
 0x14f   : > { %p30139_p2 = pnand %p30138_p1, %p30132_p13 }
 0x151   : > { %30142 = shalt.err (!%p30139_p2)
}
 0x152   : > { %s34224_s16 = sld [smem:[#allocation82_spill]]  ;;  %s30728_s18 = smov [#allocation10]  }
 0x153   : > { %s1077_s4 = sshll.u32 %s30728_s18, 4  ;;  %s30729_s5 = smov [#allocation13]   ;;  %s1078_s4 = int_to_ptr.vmem [resolvable:$true] %s1077_s4 }
 0x154   : > { %s1101_s21 = sshll.u32 %s30729_s5, 4  ;;  %s30153_s10 = scalar_lea.vmem %s1078_s4, 16  ;;  %s1102_s21 = int_to_ptr.vmem [resolvable:$true] %s1101_s21 }
 0x155   : > { %p30154_p3 = scmp.ne.s32.totalorder %s1078_s4, %s30153_s10  ;;  %s30159_s23 = scalar_lea.vmem %s1078_s4, 32 }
 0x156   : > { %p30160_p5 = scmp.lt.s32.totalorder %s1078_s4, %s1078_s4  ;;  %p30161_p6 = scmp.lt.s32.totalorder %s30159_s23, %s30153_s10 }
 0x157   : > { %p30155_p4 = pnand %p30154_p3, %p28942_p10 }
 0x158   : > { %28801 = dma.hbm_to_vmem [thread:$0]  (%p28942_p10), %s34224_s16, 16, %s1056_s1, [#allocation6]  }
 0x159   : > { %p30156_p7 = pneg %p30155_p4  ;;  %p30162_p8 = por %p30161_p6, %p30160_p5 }
 0x15b   : > { %p30163_p11 = pnand %p30162_p8, %p30156_p7 }
 0x15d   : > { %30166 = shalt.err (!%p30163_p11)
}
 0x15e   : > { %s34225_s1 = sld [smem:[#allocation84_spill]]  ;;  %s30177_s22 = scalar_lea.vmem %s1102_s21, 16 }
 0x15f   : > { %p30178_p12 = scmp.ne.s32.totalorder %s1102_s21, %s30177_s22  ;;  %s30183_s5 = scalar_lea.vmem %s1102_s21, 32 }
 0x160   : > { %p30184_p0 = scmp.lt.s32.totalorder %s1102_s21, %s1102_s21  ;;  %p30185_p1 = scmp.lt.s32.totalorder %s30183_s5, %s30177_s22 }
 0x161   : > { %p30179_p13 = pnand %p30178_p12, %p28942_p10 }
 0x162   : > { %p30186_p2 = por %p30185_p1, %p30184_p0 }
 0x163   : > { %p30180_p9 = pneg %p30179_p13 }
 0x164   : > { %28805 = dma.hbm_to_vmem [thread:$0]  (%p28942_p10), %s34225_s1, 16, %s1078_s4, [#allocation9]  }
 0x165   : > { %p30187_p3 = pnand %p30186_p2, %p30180_p9 }
 0x167   : > { %30190 = shalt.err (!%p30187_p3)
}
 0x168   : > { %s34226_s16 = sld [smem:[#allocation85_spill]]  ;;  %s30730_s18 = smov [#allocation16]  }
 0x169   : > { %s1123_s10 = sshll.u32 %s30730_s18, 4  ;;  %s30731_s23 = smov [#allocation19]   ;;  %s1124_s10 = int_to_ptr.vmem [resolvable:$true] %s1123_s10 }
 0x16a   : > { %s1147_s4 = sshll.u32 %s30731_s23, 4  ;;  %s30201_s1 = scalar_lea.vmem %s1124_s10, 16  ;;  %s1148_s4 = int_to_ptr.vmem [resolvable:$true] %s1147_s4 }
 0x16b   : > { %p30202_p4 = scmp.ne.s32.totalorder %s1124_s10, %s30201_s1  ;;  %s30207_s22 = scalar_lea.vmem %s1124_s10, 32 }
 0x16c   : > { %p30208_p6 = scmp.lt.s32.totalorder %s1124_s10, %s1124_s10  ;;  %p30209_p8 = scmp.lt.s32.totalorder %s30207_s22, %s30201_s1 }
 0x16d   : > { %p30203_p7 = pnand %p30202_p4, %p28942_p10 }
 0x16e   : > { %28809 = dma.hbm_to_vmem [thread:$0]  (%p28942_p10), %s34226_s16, 16, %s1102_s21, [#allocation12]  }
 0x16f   : > { %p30204_p5 = pneg %p30203_p7  ;;  %p30210_p11 = por %p30209_p8, %p30208_p6 }
 0x171   : > { %p30211_p12 = pnand %p30210_p11, %p30204_p5 }
 0x173   : > { %30214 = shalt.err (!%p30211_p12)
}
 0x174   : > { %s34227_s21 = sld [smem:[#allocation86_spill]]  ;;  %s30225_s5 = scalar_lea.vmem %s1148_s4, 16 }
 0x175   : > { %p30226_p13 = scmp.ne.s32.totalorder %s1148_s4, %s30225_s5  ;;  %s30231_s16 = scalar_lea.vmem %s1148_s4, 32 }
 0x176   : > { %p30232_p1 = scmp.lt.s32.totalorder %s1148_s4, %s1148_s4  ;;  %p30233_p2 = scmp.lt.s32.totalorder %s30231_s16, %s30225_s5 }
 0x177   : > { %p30227_p9 = pnand %p30226_p13, %p28942_p10 }
 0x178   : > { %p30234_p3 = por %p30233_p2, %p30232_p1 }
 0x179   : > { %p30228_p0 = pneg %p30227_p9 }
 0x17a   : > { %28813 = dma.hbm_to_vmem [thread:$0]  (%p28942_p10), %s34227_s21, 16, %s1124_s10, [#allocation15]  }
 0x17b   : > { %p30235_p4 = pnand %p30234_p3, %p30228_p0 }
 0x17d   : > { %30238 = shalt.err (!%p30235_p4)
}
 0x17e   : > { %s34228_s18 = sld [smem:[#allocation88_spill]]  ;;  %s30732_s23 = smov [#allocation22]  }
 0x17f   : > { %s1169_s1 = sshll.u32 %s30732_s23, 4  ;;  %s30733_s22 = smov [#allocation25]   ;;  %s1170_s1 = int_to_ptr.vmem [resolvable:$true] %s1169_s1 }
 0x180   : > { %s1193_s10 = sshll.u32 %s30733_s22, 4  ;;  %s30249_s21 = scalar_lea.vmem %s1170_s1, 16  ;;  %s1194_s10 = int_to_ptr.vmem [resolvable:$true] %s1193_s10 }
 0x181   : > { %p30250_p7 = scmp.ne.s32.totalorder %s1170_s1, %s30249_s21  ;;  %s30255_s5 = scalar_lea.vmem %s1170_s1, 32 }
 0x182   : > { %p30256_p8 = scmp.lt.s32.totalorder %s1170_s1, %s1170_s1  ;;  %p30257_p11 = scmp.lt.s32.totalorder %s30255_s5, %s30249_s21 }
 0x183   : > { %p30251_p5 = pnand %p30250_p7, %p28942_p10 }
 0x184   : > { %28817 = dma.hbm_to_vmem [thread:$0]  (%p28942_p10), %s34228_s18, 16, %s1148_s4, [#allocation18]  }
 0x185   : > { %p30252_p6 = pneg %p30251_p5  ;;  %p30258_p12 = por %p30257_p11, %p30256_p8 }
 0x187   : > { %p30259_p13 = pnand %p30258_p12, %p30252_p6 }
 0x189   : > { %30262 = shalt.err (!%p30259_p13)
}
 0x18a   : > { %s34229_s4 = sld [smem:[#allocation89_spill]]  ;;  %s30273_s16 = scalar_lea.vmem %s1194_s10, 128 }
 0x18b   : > { %p30274_p9 = scmp.ne.s32.totalorder %s1194_s10, %s30273_s16  ;;  %p30280_p2 = scmp.lt.s32.totalorder %s1194_s10, %s1194_s10 }
 0x18c   : > { %p30281_p3 = scmp.lt.s32.totalorder %s30273_s16, %s30273_s16 }
 0x18d   : > { %p30275_p0 = pnand %p30274_p9, %p28942_p10 }
 0x18e   : > { %p30282_p4 = por %p30281_p3, %p30280_p2 }
 0x18f   : > { %p30276_p1 = pneg %p30275_p0 }
 0x190   : > { %28821 = dma.hbm_to_vmem [thread:$0]  (%p28942_p10), %s34229_s4, 16, %s1170_s1, [#allocation21]  }
 0x191   : > { %p30283_p7 = pnand %p30282_p4, %p30276_p1 }
 0x193   : > { %30286 = shalt.err (!%p30283_p7)
}
 0x194   : > { %s34230_s18 = sld [smem:[#allocation91_spill]]  ;;  %s30734_s23 = smov [#allocation28]  }
 0x195   : > { %s1215_s22 = sshll.u32 %s30734_s23, 4  ;;  %s30735_s21 = smov [#allocation31]   ;;  %s1216_s22 = int_to_ptr.vmem [resolvable:$true] %s1215_s22 }
 0x196   : > { %s1242_s5 = sshll.u32 %s30735_s21, 4  ;;  %s30297_s1 = scalar_lea.vmem %s1216_s22, 128  ;;  %s1243_s5 = int_to_ptr.vmem [resolvable:$true] %s1242_s5 }
 0x197   : > { %p30298_p5 = scmp.ne.s32.totalorder %s1216_s22, %s30297_s1  ;;  %p30304_p11 = scmp.lt.s32.totalorder %s1216_s22, %s1216_s22 }
 0x198   : > { %p30305_p12 = scmp.lt.s32.totalorder %s30297_s1, %s30297_s1 }
 0x199   : > { %p30299_p6 = pnand %p30298_p5, %p28942_p10 }
 0x19a   : > { %28825 = dma.hbm_to_vmem [thread:$0]  (%p28942_p10), %s34230_s18, 128, %s1194_s10, [#allocation24]  }
 0x19b   : > { %p30300_p8 = pneg %p30299_p6  ;;  %p30306_p13 = por %p30305_p12, %p30304_p11 }
 0x19d   : > { %p30307_p9 = pnand %p30306_p13, %p30300_p8 }
 0x19f   : > { %30310 = shalt.err (!%p30307_p9)
}
 0x1a0   : > { %s34231_s4 = sld [smem:[#allocation92_spill]]  ;;  %s30321_s10 = scalar_lea.vmem %s1243_s5, 64 }
 0x1a1   : > { %p30322_p0 = scmp.ne.s32.totalorder %s1243_s5, %s30321_s10  ;;  %p30328_p3 = scmp.lt.s32.totalorder %s1243_s5, %s1243_s5 }
 0x1a2   : > { %p30329_p4 = scmp.lt.s32.totalorder %s30321_s10, %s30321_s10 }
 0x1a3   : > { %p30323_p1 = pnand %p30322_p0, %p28942_p10 }
 0x1a4   : > { %p30330_p7 = por %p30329_p4, %p30328_p3 }
 0x1a5   : > { %p30324_p2 = pneg %p30323_p1 }
 0x1a6   : > { %28829 = dma.hbm_to_vmem [thread:$0]  (%p28942_p10), %s34231_s4, 128, %s1216_s22, [#allocation27]  }
 0x1a7   : > { %p30331_p5 = pnand %p30330_p7, %p30324_p2 }
 0x1a9   : > { %30334 = shalt.err (!%p30331_p5)
}
 0x1aa   : > { %s34232_s16 = sld [smem:[#allocation95_spill]]  ;;  %s30736_s18 = smov [#allocation34]  }
 0x1ab   : > { %s1263_s23 = sshll.u32 %s30736_s18, 4  ;;  %s1264_s23 = int_to_ptr.vmem [resolvable:$true] %s1263_s23 }
 0x1ac   : > { %s30345_s21 = scalar_lea.vmem %s1264_s23, 8192  ;;  %p30352_p12 = scmp.lt.s32.totalorder %s1264_s23, %s1264_s23 }
 0x1ad   : > { %p30346_p6 = scmp.ne.s32.totalorder %s1264_s23, %s30345_s21  ;;  %p30353_p13 = scmp.lt.s32.totalorder %s30345_s21, %s30345_s21 }
 0x1af   : > { %p30347_p8 = pnand %p30346_p6, %p28942_p10  ;;  %p30354_p9 = por %p30353_p13, %p30352_p12 }
 0x1b0   : > { %28833 = dma.hbm_to_vmem [thread:$0]  (%p28942_p10), %s34232_s16, 64, %s1243_s5, [#allocation30]  }
 0x1b1   : > { %p30348_p11 = pneg %p30347_p8 }
 0x1b3   : > { %p30355_p0 = pnand %p30354_p9, %p30348_p11 }
 0x1b5   : > { %30358 = shalt.err (!%p30355_p0)
}
 0x1b6   : > { %s30737_s22 = smov 128   ;;  %s34233_s1 = sld [smem:[#allocation96_spill]] }
 0x1b7   : > { %s30738_s4 = smov 8   ;;  %s30739_s5 = smov [#allocation37]  }
 0x1b8   : > { %s1288_s10 = sshll.u32 %s30739_s5, 4  ;;  %s30740_s16 = smov [#allocation40]   ;;  %s1289_s10 = int_to_ptr.vmem [resolvable:$true] %s1288_s10 }
 0x1b9   : > { %s1309_s18 = sshll.u32 %s30740_s16, 4  ;;  %s30369_s6 = scalar_lea.vmem %s1289_s10, 32  ;;  %s1310_s18 = int_to_ptr.vmem [resolvable:$true] %s1309_s18 }
 0x1ba   : > { %p30370_p1 = scmp.ne.s32.totalorder %s1289_s10, %s30369_s6  ;;  %p30376_p4 = scmp.lt.s32.totalorder %s1289_s10, %s1289_s10 }
 0x1bb   : > { %p30377_p7 = scmp.lt.s32.totalorder %s30369_s6, %s30369_s6 }
 0x1bc   : > { %28837 = dma.hbm_to_vmem [thread:$0]  (%p28942_p10), %s34233_s1, 8192, %s1264_s23, [#allocation33], %s30737_s22, %s30737_s22, %s30738_s4  }
 0x1bd   : > { %p30371_p2 = pnand %p30370_p1, %p28942_p10  ;;  %p30378_p5 = por %p30377_p7, %p30376_p4 }
 0x1bf   : > { %p30372_p3 = pneg %p30371_p2 }
 0x1c1   : > { %p30379_p6 = pnand %p30378_p5, %p30372_p3 }
 0x1c3   : > { %30382 = shalt.err (!%p30379_p6)
}
 0x1c4   : > { %s34234_s21 = sld [smem:[#allocation97_spill]]  ;;  %s30393_s23 = scalar_lea.vmem %s1310_s18, 2048 }
 0x1c5   : > { %p30394_p8 = scmp.ne.s32.totalorder %s1310_s18, %s30393_s23  ;;  %p30400_p13 = scmp.lt.s32.totalorder %s1310_s18, %s1310_s18 }
 0x1c6   : > { %p30401_p9 = scmp.lt.s32.totalorder %s30393_s23, %s30393_s23 }
 0x1c7   : > { %p30395_p11 = pnand %p30394_p8, %p28942_p10 }
 0x1c8   : > { %p30402_p0 = por %p30401_p9, %p30400_p13 }
 0x1c9   : > { %p30396_p12 = pneg %p30395_p11 }
 0x1ca   : > { %28841 = dma.hbm_to_vmem [thread:$0]  (%p28942_p10), %s34234_s21, 32, %s1289_s10, [#allocation36]  }
 0x1cb   : > { %p30403_p1 = pnand %p30402_p0, %p30396_p12 }
 0x1cd   : > { %30406 = shalt.err (!%p30403_p1)
}
 0x1ce   : > { %s34235_s6 = smov 4   ;;  %s34236_s22 = smov 64  }
 0x1cf   : > { %s34237_s1 = sld [smem:[#allocation98_spill]]  ;;  %s30741_s4 = smov [#allocation43]  }
 0x1d0   : > { %s1334_s5 = sshll.u32 %s30741_s4, 4  ;;  %s30742_s10 = smov [#allocation46]   ;;  %s1335_s5 = int_to_ptr.vmem [resolvable:$true] %s1334_s5 }
 0x1d1   : > { %s1356_s16 = sshll.u32 %s30742_s10, 4  ;;  %s30417_s21 = scalar_lea.vmem %s1335_s5, 128  ;;  %s1357_s16 = int_to_ptr.vmem [resolvable:$true] %s1356_s16 }
 0x1d2   : > { %p30418_p2 = scmp.ne.s32.totalorder %s1335_s5, %s30417_s21  ;;  %p30424_p7 = scmp.lt.s32.totalorder %s1335_s5, %s1335_s5 }
 0x1d3   : > { %p30425_p5 = scmp.lt.s32.totalorder %s30417_s21, %s30417_s21 }
 0x1d4   : > { %p30419_p3 = pnand %p30418_p2, %p28942_p10 }
 0x1d5   : > { %28845 = dma.hbm_to_vmem [thread:$0]  (%p28942_p10), %s34237_s1, 2048, %s1310_s18, [#allocation39], %s34236_s22, %s34236_s22, %s34235_s6  }
 0x1d6   : > { %p30420_p4 = pneg %p30419_p3  ;;  %p30426_p6 = por %p30425_p5, %p30424_p7 }
 0x1d8   : > { %p30427_p8 = pnand %p30426_p6, %p30420_p4 }
 0x1da   : > { %30430 = shalt.err (!%p30427_p8)
}
 0x1db   : > { %s34238_s23 = sld [smem:[#allocation99_spill]]  ;;  %s30441_s18 = scalar_lea.vmem %s1357_s16, 128 }
 0x1dc   : > { %p30442_p11 = scmp.ne.s32.totalorder %s1357_s16, %s30441_s18  ;;  %p30448_p9 = scmp.lt.s32.totalorder %s1357_s16, %s1357_s16 }
 0x1dd   : > { %p30449_p0 = scmp.lt.s32.totalorder %s30441_s18, %s30441_s18 }
 0x1de   : > { %p30443_p12 = pnand %p30442_p11, %p28942_p10 }
 0x1df   : > { %p30450_p1 = por %p30449_p0, %p30448_p9 }
 0x1e0   : > { %p30444_p13 = pneg %p30443_p12 }
 0x1e1   : > { %28849 = dma.hbm_to_vmem [thread:$0]  (%p28942_p10), %s34238_s23, 128, %s1335_s5, [#allocation42]  }
 0x1e2   : > { %p30451_p2 = pnand %p30450_p1, %p30444_p13 }
 0x1e4   : > { %30454 = shalt.err (!%p30451_p2)
}
 0x1e5   : > { %s34239_s6 = sld [smem:[#allocation100_spill]]  ;;  %s30743_s1 = smov [#allocation49]  }
 0x1e6   : > { %s1377_s4 = sshll.u32 %s30743_s1, 4  ;;  %s30744_s5 = smov [#allocation52]   ;;  %s1378_s4 = int_to_ptr.vmem [resolvable:$true] %s1377_s4 }
 0x1e7   : > { %s1406_s10 = sshll.u32 %s30744_s5, 4  ;;  %s30465_s21 = scalar_lea.vmem %s1378_s4, 2048  ;;  %s1407_s10 = int_to_ptr.vmem [resolvable:$true] %s1406_s10 }
 0x1e8   : > { %p30466_p3 = scmp.ne.s32.totalorder %s1378_s4, %s30465_s21  ;;  %p30472_p5 = scmp.lt.s32.totalorder %s1378_s4, %s1378_s4 }
 0x1e9   : > { %p30473_p6 = scmp.lt.s32.totalorder %s30465_s21, %s30465_s21 }
 0x1ea   : > { %p30467_p4 = pnand %p30466_p3, %p28942_p10 }
 0x1eb   : > { %28853 = dma.hbm_to_vmem [thread:$0]  (%p28942_p10), %s34239_s6, 128, %s1357_s16, [#allocation45]  }
 0x1ec   : > { %p30468_p7 = pneg %p30467_p4  ;;  %p30474_p8 = por %p30473_p6, %p30472_p5 }
 0x1ee   : > { %p30475_p11 = pnand %p30474_p8, %p30468_p7 }
 0x1f0   : > { %30478 = shalt.err (!%p30475_p11)
}
 0x1f1   : > { %s34240_s23 = smov 1024   ;;  %s34241_s16 = sld [smem:[#allocation102_spill]] }
 0x1f2   : > { %s30489_s18 = scalar_lea.vmem %s1407_s10, 1024  ;;  %p30496_p0 = scmp.lt.s32.totalorder %s1407_s10, %s1407_s10 }
 0x1f3   : > { %p30490_p12 = scmp.ne.s32.totalorder %s1407_s10, %s30489_s18  ;;  %p30497_p1 = scmp.lt.s32.totalorder %s30489_s18, %s30489_s18 }
 0x1f5   : > { %p30491_p13 = pnand %p30490_p12, %p28942_p10  ;;  %p30498_p2 = por %p30497_p1, %p30496_p0 }
 0x1f7   : > { %28857 = dma.hbm_to_vmem [thread:$0]  (%p28942_p10), %s34241_s16, 2048, %s1378_s4, [#allocation48], %s34240_s23, %s34240_s23, %s34236_s22  }
 0x1f8   : > { %p30492_p9 = pneg %p30491_p13 }
 0x1fa   : > { %p30499_p3 = pnand %p30498_p2, %p30492_p9 }
 0x1fc   : > { %30502 = shalt.err (!%p30499_p3)
}
 0x1fd   : > { %s34242_s6 = smov 32   ;;  %s34243_s1 = smov 512  }
 0x1fe   : > { %28861 = dma.hbm_to_vmem [thread:$0]  (%p28942_p10), %s30952_s29, 1024, %s1407_s10, [#allocation51], %s34243_s1, %s34243_s1, %s34242_s6  }
 0x1ff   : > { %s30745_s22 = smov [#allocation55]  }
 0x200   : > { %s1432_s4 = sshll.u32 %s30745_s22, 4  ;;  %s1433_s4 = int_to_ptr.vmem [resolvable:$true] %s1432_s4 }
 0x201   : > { %s30513_s5 = scalar_lea.vmem %s1433_s4, 512  ;;  %p30520_p6 = scmp.lt.s32.totalorder %s1433_s4, %s1433_s4 }
 0x202   : > { %p30514_p4 = scmp.ne.s32.totalorder %s1433_s4, %s30513_s5  ;;  %p30521_p8 = scmp.lt.s32.totalorder %s30513_s5, %s30513_s5 }
 0x204   : > { %p30515_p7 = pnand %p30514_p4, %p28942_p10  ;;  %p30522_p11 = por %p30521_p8, %p30520_p6 }
 0x206   : > { %p30516_p5 = pneg %p30515_p7 }
 0x208   : > { %p30523_p12 = pnand %p30522_p11, %p30516_p5 }
 0x20a   : > { %30526 = shalt.err (!%p30523_p12)
}
 0x20b   : > { %28865 = dma.hbm_to_vmem [thread:$0]  (%p28942_p10), %s30962_s17, 512, %s1433_s4, [#allocation54], %s34222_s3, %s34222_s3, %s34221_s26  }
 0x20c PF: > { %p34244_p13 = scmp.ne.s32.totalorder %s34213_s2, 0 }
 0x20e   : > { %1457 = sbr.rel (%p34244_p13) target bundleno = 6111 (0x17df), region = 184 }
 0x213   : > { %p28977_p9 = scmp.eq.s32.totalorder %s30990_s15, 0 }
 0x215   : > { %30570 = dma.done.wait (%p28977_p9), [#allocation3], 16  }
 0x216   : > { %30572 = vsyncadd (%p28977_p9), [#allocation3], 4294967280 }
 0x217   : > { %30574 = dma.done.wait (%p28977_p9), [#allocation6], 32  }
 0x218   : > { %30576 = vsyncadd (%p28977_p9), [#allocation6], 4294967264 }
 0x219   : > { %30578 = dma.done.wait (%p28977_p9), [#allocation9], 32  }
 0x21a   : > { %30580 = vsyncadd (%p28977_p9), [#allocation9], 4294967264 }
 0x21b   : > { %30582 = dma.done.wait (%p28977_p9), [#allocation12], 528  }
 0x21c   : > { %30584 = vsyncadd (%p28977_p9), [#allocation12], 4294966768 }
 0x21d   : > { %30586 = dma.done.wait (%p28977_p9), [#allocation15], 32  }
 0x21e   : > { %30588 = vsyncadd (%p28977_p9), [#allocation15], 4294967264 }
 0x21f   : > { %30590 = dma.done.wait (%p28977_p9), [#allocation18], 528  }
 0x220   : > { %30592 = vsyncadd (%p28977_p9), [#allocation18], 4294966768 }
 0x221   : > { %30594 = dma.done.wait (%p28977_p9), [#allocation21], 32  }
 0x222   : > { %30596 = vsyncadd (%p28977_p9), [#allocation21], 4294967264 }
 0x223   : > { %30598 = dma.done.wait (%p28977_p9), [#allocation24], 8320  }
 0x224   : > { %30600 = vsyncadd (%p28977_p9), [#allocation24], 4294958976 }
 0x225   : > { %30602 = dma.done.wait (%p28977_p9), [#allocation27], 256  }
 0x226   : > { %30604 = vsyncadd (%p28977_p9), [#allocation27], 4294967040 }
 0x227   : > { %30606 = dma.done.wait (%p28977_p9), [#allocation30], 32832  }
 0x228   : > { %30608 = vsyncadd (%p28977_p9), [#allocation30], 4294934464 }
 0x229   : > { %30610 = dma.done.wait (%p28977_p9), [#allocation33], 8256  }
 0x22a   : > { %30612 = vsyncadd (%p28977_p9), [#allocation33], 4294959040 }
 0x22b   : > { %30614 = dma.done.wait (%p28977_p9), [#allocation36], 64  }
 0x22c   : > { %30616 = vsyncadd (%p28977_p9), [#allocation36], 4294967232 }
 0x22d   : > { %30618 = dma.done.wait (%p28977_p9), [#allocation39], 2080  }
 0x22e   : > { %30620 = vsyncadd (%p28977_p9), [#allocation39], 4294965216 }
 0x22f   : > { %30622 = dma.done.wait (%p28977_p9), [#allocation42], 144  }
 0x230   : > { %30624 = vsyncadd (%p28977_p9), [#allocation42], 4294967152 }
 0x231   : > { %30626 = dma.done.wait (%p28977_p9), [#allocation45], 256  }
 0x232   : > { %30628 = vsyncadd (%p28977_p9), [#allocation45], 4294967040 }
 0x233   : > { %30630 = dma.done.wait (%p28977_p9), [#allocation48], 2176  }
 0x234   : > { %30632 = vsyncadd (%p28977_p9), [#allocation48], 4294965120 }
 0x235   : > { %30634 = dma.done.wait (%p28977_p9), [#allocation51], 3072  }
 0x236   : > { %30636 = vsyncadd (%p28977_p9), [#allocation51], 4294964224 }
 0x237   : > { %30638 = dma.done.wait (%p28977_p9), [#allocation54], 1024  }
 0x238   : > { %30640 = vsyncadd (%p28977_p9), [#allocation54], 4294966272  ;;  %s34245_s2 = sld [smem:[#allocation76_spill]]  ;;  %s27627_s26 = sshll.u32 %s30990_s15, 1  ;;  %v30746_v0 = vmov 1   ;;  %v30747_v1 = vmov 0   ;;  %v1713_v11 = vlaneseq }
 0x239   : > { %29138 = vset.pattern.permute.xlu1 %v30746_v0  ;;  %29137 = vset.pattern.permute.xlu0 %v30747_v1  ;;  %p1693_p10 = scmp.lt.s32.totalorder %s27627_s26, 3  ;;  %v30748_v4 = vmov 2   ;;  %v30749_v5 = vmov 3   ;;  %vm1776_vm0 = vcmask 523264   ;;  %v1797_v6 = vld [vmem:[#allocation43] sm:$0xff]  ;;  %v34088_v7 = vmov 0.0  }
 0x23a   : > { %28290 = vmatprep.subr.mxu0 %v34088_v7  ;;  %s34246_s21 = sld [smem:[#allocation77_spill]]  ;;  %v1803_v8 = vsel %vm1776_vm0, %v1797_v6, 0  ;;  %vm30751_vm1 = vmmov 0   ;;  %28280 = vmatprep.subr.mxu1 %v34088_v7  ;;  %v31323_v12 = vshrl.u32 %v1713_v11, 7  ;;  %vm2700_vm2 = vcmask 64512   ;;  %s1690_s1 = sand.u32 1, %s30651_s7  }
 0x23b   : > { %s34404_s26 = smov (!%p1693_p10, %s27627_s26), 3  ;;  %28292 = vmatprep.mubr.msk.f32.mxu0 %vm30751_vm1, %v34088_v7  ;;  %v31311_v9 = vand.u32 4294901760, %v1803_v8  ;;  %28282 = vmatprep.mubr.msk.f32.mxu1 %vm30751_vm1, %v34088_v7  ;;  %s34252_s23 = sld [smem:[#allocation78_spill]]  ;;  %vm14138_vm3 = vcmask 130048  }
 0x23c   : > { %s27628_s3 = sshll.u32 %s34404_s26, 3  ;;  %34247 = vst [vmem:[#allocation109_spill] sm:$0xff] %v31323_v12  ;;  %v31326_v13 = vsub.s32 0, %v31323_v12  ;;  %v31329_v14 = vsub.s32 1, %v31323_v12  ;;  %v31333_v19 = vsub.s32 2, %v31323_v12  ;;  %v31339_v25 = vsub.s32 3, %v31323_v12 }
 0x23d   : > { %v31317_v10 = vsub.f32 %v1803_v8, %v31311_v9  ;;  %28281 = vmatpush3.xpose.msra.mxu1 %v31311_v9  ;;  %s34253_s16 = sld [smem:[#allocation81_spill]]  ;;  %s28048_s22 = sshll.u32 %s30990_s15, 4 }
 0x23e   : > { %s1696_s10 = scalar_lea.vmem %s34245_s2, %s27628_s3  ;;  %28285 = vmatprep.subr.mxu1 %v34088_v7  ;;  %34248 = vst [vmem:[#allocation110_spill] sm:$0xff] %v31326_v13  ;;  %34249 = vst [vmem:[#allocation111_spill] sm:$0xff] %v31329_v14  ;;  %s34393_s18 = sld [smem:[#allocation104_spill]] }
 0x23f   : > { %v1699_v2 = vld [vmem:[%s1696_s10] sm:$0xff]  ;;  %v1700_v3 = vld [vmem:[%s1696_s10 + $0x8] sm:$0xff]  ;;  %28291 = vmatpush3.xpose.msra.mxu0 %v31317_v10  ;;  %34250 = vst [vmem:[#allocation112_spill] sm:$0xff] %v31333_v19  ;;  %34251 = vst [vmem:[#allocation113_spill] sm:$0xff] %v31339_v25  ;;  %v31359_v8 = vand.u32 4294901760, %v31317_v10  ;;  %s34394_s6 = sld [smem:[#allocation94_spill]]  ;;  %s34038_s2 = scalar_lea.hbm %s30967_s12, %s28048_s22 }
 0x240   : > { %1720 = vperm.xlu1 %29138, %v1699_v2   ;;  %1705 = vperm.xlu0 %29137, %v1699_v2   ;;  %v1701_v15 = vld [vmem:[%s34246_s21] sm:$0x3]  ;;  %s1691_s4 = scalar_lea.vmem [#allocation56], %s1690_s1  ;;  %s27110_s26 = scalar_lea.sflag [#allocation4], %s1690_s1 }
 0x241   : > { %28300 = vmatprep.subr.mxu0 %v34088_v7  ;;  %v1702_v18 = vunpack.c.l.bf16 %v1701_v15  ;;  %v27629_v43 = vld [vmem:[%s34252_s23] ss:$0 sm:$0xff]  ;;  %s27122_s5 = sshll.u32 %s1691_s4, 4  ;;  %p34395_p1 = scmp.ne.s32.totalorder %s34210_s28, 0  ;;  %s27123_s5 = int_to_ptr.vmem [resolvable:$true] %s27122_s5 }
 0x242   : > { %s30527_s3 = scalar_lea.vmem %s27123_s5, 16  ;;  %s30753_s10 = smov [#allocation56]  }
 0x243   : > { %v1730_v22 = vrot.slane %v1702_v18, %v31329_v14  ;;  %v1716_v23 = vrot.slane %v1702_v18, %v31326_v13  ;;  %v1746_v24 = vrot.slane %v1702_v18, %v31333_v19  ;;  %v1762_v34 = vrot.slane %v1702_v18, %v31339_v25  ;;  %p30528_p0 = scmp.ne.s32.totalorder %s27123_s5, %s30527_s3  ;;  %s30531_s21 = sshll.u32 %s30753_s10, 4  ;;  %s30532_s21 = int_to_ptr.vmem [resolvable:$false] %s30531_s21 }
 0x244   : > { %1724 = vperm.xlu1 %29138, %v1700_v3   ;;  %1710 = vperm.xlu0 %29137, %v1700_v3   ;;  %s30533_s15 = scalar_lea.vmem %s30532_s21, 32  ;;  %p30534_p4 = scmp.lt.s32.totalorder %s27123_s5, %s30532_s21 }
 0x245   : > { %p30529_p2 = pnand %p30528_p0, %p34395_p1  ;;  %p30535_p7 = scmp.lt.s32.totalorder %s30533_s15, %s30527_s3 }
 0x247   : > { %p30530_p3 = pneg %p30529_p2  ;;  %p30536_p5 = por %p30535_p7, %p30534_p4 }
 0x248   : > { %29140 = vset.pattern.permute.xlu1 %v30748_v4  ;;  %29139 = vset.pattern.permute.xlu0 %v30748_v4 }
 0x249   : > { %1740 = vperm.xlu1 %29140, %v1700_v3   ;;  %1736 = vperm.xlu0 %29139, %v1699_v2   ;;  %p30537_p6 = pnand %p30536_p5, %p30530_p3 }
 0x24d   : > { %29141 = vset.pattern.permute.xlu1 %v30749_v5  ;;  %29142 = vset.pattern.permute.xlu0 %v30749_v5 }
 0x24e   : > { %1752 = vperm.xlu1 %29141, %v1699_v2   ;;  %1756 = vperm.xlu0 %29142, %v1700_v3  }
 0x2bb   : > { %v1721_v16 = vpop.permute.xlu1 %1720  ;;  %v1706_v17 = vpop.permute.xlu0 %1705 }
 0x2bc   : > { %v1731_v26 = vmul.f32 %v1730_v22, %v1721_v16  ;;  %v1717_v27 = vmul.f32 %v1716_v23, %v1706_v17  ;;  %v1915_v17 = vsub.f32 %v31317_v10, %v31359_v8 }
 0x2be   : > { %v1733_v35 = vadd.f32 %v1731_v26, %v1717_v27 }
 0x2bf   : > { %v1725_v20 = vpop.permute.xlu1 %1724  ;;  %v1711_v21 = vpop.permute.xlu0 %1710 }
 0x2c0   : > { %v1732_v28 = vmul.f32 %v1730_v22, %v1725_v20  ;;  %v1718_v29 = vmul.f32 %v1716_v23, %v1711_v21  ;;  %v31368_v23 = vand.u32 4294901760, %v1915_v17 }
 0x2c2   : > { %v1734_v36 = vadd.f32 %v1732_v28, %v1718_v29  ;;  %v1798_v28 = vld [vmem:[#allocation44] sm:$0xff] }
 0x2c3   : > { %v31410_v29 = vand.u32 4294901760, %v1798_v28 }
 0x2c4   : > { %v1741_v30 = vpop.permute.xlu1 %1740  ;;  %v1737_v31 = vpop.permute.xlu0 %1736 }
 0x2c5   : > { %v1748_v32 = vmul.f32 %v1746_v24, %v1741_v30  ;;  %v1747_v33 = vmul.f32 %v1746_v24, %v1737_v31  ;;  %v31413_v30 = vsub.f32 %v1798_v28, %v31410_v29 }
 0x2c7   : > { %v1750_v39 = vadd.f32 %v1748_v32, %v1734_v36  ;;  %v1749_v40 = vadd.f32 %v1747_v33, %v1733_v35  ;;  %v31418_v31 = vand.u32 4294901760, %v31413_v30 }
 0x2c9   : > { %v1753_v37 = vpop.permute.xlu1 %1752  ;;  %v1757_v38 = vpop.permute.xlu0 %1756  ;;  %v2814_v32 = vsub.f32 %v31413_v30, %v31418_v31 }
 0x2ca   : > { %v1763_v41 = vmul.f32 %v1762_v34, %v1753_v37  ;;  %v1764_v42 = vmul.f32 %v1762_v34, %v1757_v38 }
 0x2cb   : > { %v31422_v33 = vand.u32 4294901760, %v2814_v32  ;;  %v29143_v32 = vld [vmem:[%s34253_s16 + $0x18] sm:$0xff]  }
 0x2cc   : > { %v1765_v44 = vadd.f32 %v1763_v41, %v1749_v40  ;;  %v1766_v45 = vadd.f32 %v1764_v42, %v1750_v39 }
 0x2ce   : > { %v31343_v46 = vadd.f32 %v27629_v43, %v1765_v44  ;;  %v31345_v47 = vadd.f32 %v27629_v43, %v1766_v45 }
 0x2d0   : > { %v1777_v48 = vsel %vm1776_vm0, %v31343_v46, 0.0  ;;  %v1786_v49 = vmul.f32 %v31343_v46, %v31343_v46  ;;  %v1778_v50 = vsel %vm1776_vm0, %v31345_v47, 0.0  ;;  %v1787_v51 = vmul.f32 %v31345_v47, %v31345_v47 }
 0x2d1   : > { %v1779_v52 = vadd.f32 %v1778_v50, %v1777_v48 }
 0x2d2   : > { %v1788_v53 = vsel %vm1776_vm0, %v1786_v49, 0.0  ;;  %v1789_v54 = vsel %vm1776_vm0, %v1787_v51, 0.0 }
 0x2d3   : > { %v1780_v55 = vrot.slane %v1779_v52, 4  ;;  %v1790_v56 = vadd.f32 %v1789_v54, %v1788_v53 }
 0x2d5   : > { %v1791_v57 = vrot.slane %v1790_v56, 4  ;;  %v1781_v58 = vadd.f32 %v1780_v55, %v1779_v52 }
 0x2d7   : > { %v1792_v59 = vadd.f32 %v1791_v57, %v1790_v56  ;;  %v1782_v60 = vrot.slane %v1781_v58, 2 }
 0x2d9   : > { %v1793_v61 = vrot.slane %v1792_v59, 2  ;;  %v1783_v62 = vadd.f32 %v1782_v60, %v1781_v58 }
 0x2db   : > { %v1794_v63 = vadd.f32 %v1793_v61, %v1792_v59  ;;  %v1784_v0 = vrot.slane %v1783_v62, 1 }
 0x2dd   : > { %v1785_v2 = vadd.f32 %v1784_v0, %v1783_v62  ;;  %v1795_v3 = vrot.slane %v1794_v63, 1 }
 0x2df   : > { %v1800_v4 = vsel %vm1776_vm0, %v1785_v2, 0  ;;  %v1796_v5 = vadd.f32 %v1795_v3, %v1794_v63 }
 0x2e0   : > { %v1871_v6 = vand.u32 4294901760, %v1800_v4 }
 0x2e1   : > { %v2252_v11 = vsel %vm1776_vm0, %v1796_v5, 0 }
 0x2e2   : > { %v1872_v15 = vsub.f32 %v1800_v4, %v1871_v6  ;;  %v2320_v16 = vand.u32 4294901760, %v2252_v11 }
 0x2e4   : > { %28293 = vmatmul.mubr.f32.vlgmr.msra.gmra.mxu0 %v1872_v15  ;;  %v1873_v18 = vand.u32 4294901760, %v1872_v15  ;;  %v2321_v20 = vsub.f32 %v2252_v11, %v2320_v16 }
 0x2e5   : > { %28301 = vmatpush3.xpose.msra.mxu0 %v31359_v8  ;;  %28302 = vmatprep.mubr.msk.f32.mxu0 %vm30751_vm1, %v34088_v7 }
 0x2e6   : > { %28310 = vmatprep.subr.mxu0 %v34088_v7  ;;  %v1874_v21 = vsub.f32 %v1872_v15, %v1873_v18  ;;  %v2322_v22 = vand.u32 4294901760, %v2321_v20 }
 0x2e8   : > { %28303 = vmatmul.mubr.f32.vlgmr.msra.gmra.mxu0 %v1871_v6  ;;  %v1875_v24 = vand.u32 4294901760, %v1874_v21  ;;  %v2323_v26 = vsub.f32 %v2321_v20, %v2322_v22 }
 0x2e9   : > { %28311 = vmatpush3.xpose.msra.mxu0 %v31311_v9  ;;  %28312 = vmatprep.mubr.msk.f32.mxu0 %vm30751_vm1, %v34088_v7 }
 0x2ea   : > { %28283 = vmatmul.mubr.f32.vlgmr.msra.gmra.mxu1 %v1875_v24  ;;  %v2324_v27 = vand.u32 4294901760, %v2323_v26  ;;  %28320 = vmatprep.subr.mxu0 %v34088_v7 }
 0x2eb   : > { %28286 = vmatpush3.xpose.msra.mxu1 %v31368_v23  ;;  %28287 = vmatprep.mubr.msk.f32.mxu1 %vm30751_vm1, %v34088_v7 }
 0x2ec   : > { %28313 = vmatmul.mubr.f32.vlgmr.msra.gmra.mxu0 %v2324_v27  ;;  %28295 = vmatprep.subr.mxu1 %v34088_v7 }
 0x2ed   : > { %28321 = vmatpush3.xpose.msra.mxu0 %v31317_v10  ;;  %28322 = vmatprep.mubr.msk.f32.mxu0 %vm30751_vm1, %v34088_v7 }
 0x2ee   : > { %28288 = vmatmul.mubr.f32.vlgmr.msra.gmra.mxu1 %v1871_v6  ;;  %28330 = vmatprep.subr.mxu0 %v34088_v7 }
 0x2ef   : > { %28296 = vmatpush3.xpose.msra.mxu1 %v31311_v9  ;;  %28297 = vmatprep.mubr.msk.f32.mxu1 %vm30751_vm1, %v34088_v7 }
 0x2f0   : > { %28323 = vmatmul.mubr.f32.vlgmr.msra.gmra.mxu0 %v2321_v20  ;;  %28305 = vmatprep.subr.mxu1 %v34088_v7 }
 0x2f1   : > { %28331 = vmatpush3.xpose.msra.mxu0 %v31359_v8  ;;  %28332 = vmatprep.mubr.msk.f32.mxu0 %vm30751_vm1, %v34088_v7 }
 0x2f2   : > { %28298 = vmatmul.mubr.f32.vlgmr.msra.gmra.mxu1 %v1873_v18  ;;  %28340 = vmatprep.subr.mxu0 %v34088_v7 }
 0x2f3   : > { %28306 = vmatpush3.xpose.msra.mxu1 %v31311_v9  ;;  %28307 = vmatprep.mubr.msk.f32.mxu1 %vm30751_vm1, %v34088_v7 }
 0x2f4   : > { %28333 = vmatmul.mubr.f32.vlgmr.msra.gmra.mxu0 %v2320_v16  ;;  %28315 = vmatprep.subr.mxu1 %v34088_v7 }
 0x2f5   : > { %28342 = vmatprep.mubr.msk.f32.mxu0 %vm30751_vm1, %v34088_v7  ;;  %28341 = vmatpush3.msra.mxu0 %v31410_v29 }
 0x2f6   : > { %28308 = vmatmul.mubr.f32.vlgmr.msra.gmra.mxu1 %v1871_v6  ;;  %28350 = vmatprep.subr.mxu0 %v34088_v7 }
 0x2f7   : > { %28316 = vmatpush3.xpose.msra.mxu1 %v31368_v23  ;;  %28317 = vmatprep.mubr.msk.f32.mxu1 %vm30751_vm1, %v34088_v7 }
 0x2f8   : > { %28325 = vmatprep.subr.mxu1 %v34088_v7 }
 0x2fa   : > { %28318 = vmatmul.mubr.f32.vlgmr.msra.gmra.mxu1 %v2320_v16 }
 0x2fb   : > { %28326 = vmatpush3.xpose.msra.mxu1 %v31311_v9  ;;  %28327 = vmatprep.mubr.msk.f32.mxu1 %vm30751_vm1, %v34088_v7 }
 0x2fc   : > { %28335 = vmatprep.subr.mxu1 %v34088_v7 }
 0x2fe   : > { %28328 = vmatmul.mubr.f32.vlgmr.msra.gmra.mxu1 %v2322_v22 }
 0x2ff   : > { %28336 = vmatpush3.xpose.msra.mxu1 %v31311_v9  ;;  %28337 = vmatprep.mubr.msk.f32.mxu1 %vm30751_vm1, %v34088_v7 }
 0x300   : > { %28345 = vmatprep.subr.mxu1 %v34088_v7 }
 0x302   : > { %28338 = vmatmul.mubr.f32.vlgmr.msra.gmra.mxu1 %v2320_v16 }
 0x303   : > { %28347 = vmatprep.mubr.msk.f32.mxu1 %vm30751_vm1, %v34088_v7  ;;  %28346 = vmatpush3.msra.mxu1 %v31422_v33 }
 0x304   : > { %28355 = vmatprep.subr.mxu1 %v34088_v7 }
 0x3a4   : > { %v2027_v34 = vpop.f32.mrf.mxu0 }
 0x3a6   : > { %v28294_v35 = vpop.f32.mrf.mxu0 }
 0x3a7   : > { %v29145_v35 = vld [vmem:[%s34253_s16 + $0x8] sm:$0xff]  }
 0x3a8   : > { %v2175_v36 = vpop.f32.mrf.mxu0 }
 0x3aa   : > { %v1877_v37 = vpop.f32.mrf.mxu1  ;;  %v28304_v38 = vpop.f32.mrf.mxu0 }
 0x3ac   : > { %v28284_v39 = vpop.f32.mrf.mxu1  ;;  %v2326_v40 = vpop.f32.mrf.mxu0 }
 0x3ae   : > { %v1953_v41 = vpop.f32.mrf.mxu1  ;;  %v28314_v42 = vpop.f32.mrf.mxu0 }
 0x3af   : > { %v1954_v43 = vadd.f32 %v1953_v41, %v1877_v37 }
 0x3b0   : > { %v28289_v44 = vpop.f32.mrf.mxu1  ;;  %v2476_v45 = vpop.f32.mrf.mxu0 }
 0x3b1   : > { %v2028_v48 = vadd.f32 %v2027_v34, %v1954_v43  ;;  %v29144_v34 = vld [vmem:[%s34253_s16 + $0x10] sm:$0xff]  }
 0x3b2   : > { %v2101_v49 = vpop.f32.mrf.mxu1  ;;  %v28324_v50 = vpop.f32.mrf.mxu0 }
 0x3b3   : > { %v2102_v51 = vadd.f32 %v2101_v49, %v2028_v48 }
 0x3b4   : > { %v28299_v52 = vpop.f32.mrf.mxu1  ;;  %v2624_v53 = vpop.f32.mrf.mxu0 }
 0x3b5   : > { %v2176_v54 = vadd.f32 %v2175_v36, %v2102_v51  ;;  %v29146_v36 = vld [vmem:[%s34253_s16] sm:$0xff]  }
 0x3b6   : > { %v2247_v55 = vpop.f32.mrf.mxu1  ;;  %v28334_v56 = vpop.f32.mrf.mxu0 }
 0x3b7   : > { %v2248_v57 = vadd.f32 %v2247_v55, %v2176_v54 }
 0x3b8   : > { %v28309_v58 = vpop.f32.mrf.mxu1 }
 0x3b9   : > { %v2702_v59 = vsel %vm2700_vm2, %v2248_v57, 0 }
 0x3ba   : > { %v2770_v60 = vand.u32 4294901760, %v2702_v59  ;;  %v2402_v61 = vpop.f32.mrf.mxu1 }
 0x3bb   : > { %v2403_v62 = vadd.f32 %v2402_v61, %v2326_v40 }
 0x3bc   : > { %v2771_v63 = vsub.f32 %v2702_v59, %v2770_v60  ;;  %v28319_v0 = vpop.f32.mrf.mxu1  ;;  %28348 = vmatmul.mubr.f32.vlgmr.msra.gmra.mxu1 %v2770_v60 }
 0x3bd   : > { %v2477_v2 = vadd.f32 %v2476_v45, %v2403_v62  ;;  %28356 = vmatpush3.msra.mxu1 %v31410_v29  ;;  %28357 = vmatprep.mubr.msk.f32.mxu1 %vm30751_vm1, %v34088_v7 }
 0x3be   : > { %v2550_v3 = vpop.f32.mrf.mxu1  ;;  %v2772_v4 = vand.u32 4294901760, %v2771_v63  ;;  %28365 = vmatprep.subr.mxu1 %v34088_v7 }
 0x3bf   : > { %v2551_v5 = vadd.f32 %v2550_v3, %v2477_v2 }
 0x3c0   : > { %v28329_v6 = vpop.f32.mrf.mxu1  ;;  %28358 = vmatmul.mubr.f32.vlgmr.msra.gmra.mxu1 %v2772_v4  ;;  %v2773_v11 = vsub.f32 %v2771_v63, %v2772_v4 }
 0x3c1   : > { %v2625_v15 = vadd.f32 %v2624_v53, %v2551_v5  ;;  %28366 = vmatpush3.msra.mxu1 %v31410_v29  ;;  %28367 = vmatprep.mubr.msk.f32.mxu1 %vm30751_vm1, %v34088_v7 }
 0x3c2   : > { %v2696_v16 = vpop.f32.mrf.mxu1  ;;  %v2774_v17 = vand.u32 4294901760, %v2773_v11  ;;  %28375 = vmatprep.subr.mxu1 %v34088_v7 }
 0x3c3   : > { %v2697_v18 = vadd.f32 %v2696_v16, %v2625_v15 }
 0x3c4   : > { %v28339_v20 = vpop.f32.mrf.mxu1  ;;  %28343 = vmatmul.mubr.f32.vlgmr.msra.gmra.mxu0 %v2774_v17  ;;  %28368 = vmatmul.mubr.f32.vlgmr.msra.gmra.mxu1 %v2770_v60 }
 0x3c5   : > { %v3151_v21 = vsel %vm2700_vm2, %v2697_v18, 0  ;;  %28351 = vmatpush3.msra.mxu0 %v31413_v30  ;;  %28352 = vmatprep.mubr.msk.f32.mxu0 %vm30751_vm1, %v34088_v7 }
 0x3c6   : > { %v3219_v22 = vand.u32 4294901760, %v3151_v21  ;;  %28360 = vmatprep.subr.mxu0 %v34088_v7  ;;  %28376 = vmatpush3.msra.mxu1 %v31422_v33 }
 0x3c7   : > { %28377 = vmatprep.mubr.msk.f32.mxu1 %vm30751_vm1, %v34088_v7  ;;  %28385 = vmatprep.subr.mxu1 %v34088_v7 }
 0x3c8   : > { %v3220_v24 = vsub.f32 %v3151_v21, %v3219_v22  ;;  %28353 = vmatmul.mubr.f32.vlgmr.msra.gmra.mxu0 %v2771_v63  ;;  %28378 = vmatmul.mubr.f32.vlgmr.msra.gmra.mxu1 %v3219_v22 }
 0x3c9   : > { %28361 = vmatpush3.msra.mxu0 %v31418_v31  ;;  %28362 = vmatprep.mubr.msk.f32.mxu0 %vm30751_vm1, %v34088_v7 }
 0x3ca   : > { %28370 = vmatprep.subr.mxu0 %v34088_v7  ;;  %28386 = vmatpush3.msra.mxu1 %v31410_v29  ;;  %v3221_v26 = vand.u32 4294901760, %v3220_v24 }
 0x3cb   : > { %28387 = vmatprep.mubr.msk.f32.mxu1 %vm30751_vm1, %v34088_v7  ;;  %28395 = vmatprep.subr.mxu1 %v34088_v7 }
 0x3cc   : > { %28363 = vmatmul.mubr.f32.vlgmr.msra.gmra.mxu0 %v2770_v60  ;;  %28388 = vmatmul.mubr.f32.vlgmr.msra.gmra.mxu1 %v3221_v26  ;;  %v3222_v27 = vsub.f32 %v3220_v24, %v3221_v26 }
 0x3cd   : > { %28371 = vmatpush3.msra.mxu0 %v31410_v29  ;;  %28372 = vmatprep.mubr.msk.f32.mxu0 %vm30751_vm1, %v34088_v7 }
 0x3ce   : > { %28380 = vmatprep.subr.mxu0 %v34088_v7  ;;  %28396 = vmatpush3.msra.mxu1 %v31410_v29  ;;  %v3223_v28 = vand.u32 4294901760, %v3222_v27  ;;  %v3606_v27 = vld [vmem:[#allocation5] sm:$0x1] }
 0x3cf   : > { %28397 = vmatprep.mubr.msk.f32.mxu1 %vm30751_vm1, %v34088_v7  ;;  %28412 = vmatprep.subr.mxu1 %v34088_v7 }
 0x3d0   : > { %28373 = vmatmul.mubr.f32.vlgmr.msra.gmra.mxu0 %v3223_v28  ;;  %28398 = vmatmul.mubr.f32.vlgmr.msra.gmra.mxu1 %v3219_v22 }
 0x3d1   : > { %28381 = vmatpush3.msra.mxu0 %v31413_v30  ;;  %28382 = vmatprep.mubr.msk.f32.mxu0 %vm30751_vm1, %v34088_v7 }
 0x3d2   : > { %28390 = vmatprep.subr.mxu0 %v34088_v7  ;;  %28413 = vmatpush3.xpose.msra.mxu1 %v31311_v9 }
 0x3d3   : > { %28414 = vmatprep.mubr.msk.f32.mxu1 %vm30751_vm1, %v34088_v7  ;;  %28417 = vmatprep.subr.mxu1 %v34088_v7 }
 0x3d4   : > { %28383 = vmatmul.mubr.f32.vlgmr.msra.gmra.mxu0 %v3220_v24 }
 0x3d5   : > { %28391 = vmatpush3.msra.mxu0 %v31418_v31  ;;  %28392 = vmatprep.mubr.msk.f32.mxu0 %vm30751_vm1, %v34088_v7 }
 0x3d6   : > { %28400 = vmatprep.subr.bf16.mxu0 %v34088_v7 }
 0x3d8   : > { %28393 = vmatmul.mubr.f32.vlgmr.msra.gmra.mxu0 %v3219_v22  ;;  %v3604_v22 = vld [vmem:[#allocation2] sm:$0x1] }
 0x3d9   : > { %28408 = vmatprep.mubr.msk.bf16.mxu0 %vm30751_vm1, %v34088_v7  ;;  %28401 = vmatpush3.bf16.msra.mxu0 %v29143_v32 }
 0x3da   : > { %28402 = vmatprep.subr.bf16.mxu0 %v34088_v7 }
 0x3dd   : > { %28403 = vmatpush3.bf16.msra.mxu0 %v29144_v34 }
 0x3de   : > { %28404 = vmatprep.subr.bf16.mxu0 %v34088_v7 }
 0x3e1   : > { %28405 = vmatpush3.bf16.msra.mxu0 %v29145_v35 }
 0x3e2   : > { %28406 = vmatprep.subr.bf16.mxu0 %v34088_v7 }
 0x3e5   : > { %28407 = vmatpush3.bf16.msra.mxu0 %v29146_v36 }
 0x3e6   : > { %28437 = vmatprep.subr.mxu0 %v34088_v7 }
 0x47c   : > { %v2852_v37 = vpop.f32.mrf.mxu1 }
 0x47e   : > { %v28349_v38 = vpop.f32.mrf.mxu1 }
 0x480   : > { %v3000_v39 = vpop.f32.mrf.mxu1 }
 0x482   : > { %v28359_v40 = vpop.f32.mrf.mxu1 }
 0x484   : > { %v2776_v41 = vpop.f32.mrf.mxu0  ;;  %v3146_v42 = vpop.f32.mrf.mxu1 }
 0x485   : > { %v2853_v49 = vadd.f32 %v2852_v37, %v2776_v41 }
 0x486   : > { %v28344_v43 = vpop.f32.mrf.mxu0  ;;  %v28369_v44 = vpop.f32.mrf.mxu1 }
 0x487   : > { %v27630_v43 = vld [vmem:[#allocation7] ss:$0 sm:$0xff] }
 0x488   : > { %v2926_v45 = vpop.f32.mrf.mxu0  ;;  %v3301_v48 = vpop.f32.mrf.mxu1 }
 0x489   : > { %v2927_v52 = vadd.f32 %v2926_v45, %v2853_v49 }
 0x48a   : > { %v28354_v50 = vpop.f32.mrf.mxu0  ;;  %v28379_v51 = vpop.f32.mrf.mxu1 }
 0x48b   : > { %v3001_v57 = vadd.f32 %v3000_v39, %v2927_v52 }
 0x48c   : > { %v3074_v53 = vpop.f32.mrf.mxu0  ;;  %v3449_v54 = vpop.f32.mrf.mxu1 }
 0x48d   : > { %v3075_v62 = vadd.f32 %v3074_v53, %v3001_v57 }
 0x48e   : > { %v28364_v55 = vpop.f32.mrf.mxu0  ;;  %v28389_v56 = vpop.f32.mrf.mxu1 }
 0x48f   : > { %v3147_v4 = vadd.f32 %v3146_v42, %v3075_v62 }
 0x490   : > { %v3225_v58 = vpop.f32.mrf.mxu0  ;;  %v3595_v59 = vpop.f32.mrf.mxu1 }
 0x491   : > { %v3302_v63 = vadd.f32 %v3301_v48, %v3225_v58  ;;  %v3599_v16 = vmul.f32 %v3147_v4, %v3147_v4 }
 0x492   : > { %v28374_v60 = vpop.f32.mrf.mxu0  ;;  %v28399_v61 = vpop.f32.mrf.mxu1 }
 0x494   : > { %v3375_v0 = vpop.f32.mrf.mxu0 }
 0x495   : > { %v3376_v2 = vadd.f32 %v3375_v0, %v3302_v63 }
 0x496   : > { %v28384_v3 = vpop.f32.mrf.mxu0 }
 0x497   : > { %v3450_v5 = vadd.f32 %v3449_v54, %v3376_v2 }
 0x498   : > { %v3523_v6 = vpop.f32.mrf.mxu0 }
 0x499   : > { %v3524_v11 = vadd.f32 %v3523_v6, %v3450_v5 }
 0x49a   : > { %v28394_v15 = vpop.f32.mrf.mxu0 }
 0x49b   : > { %v3596_v17 = vadd.f32 %v3595_v59, %v3524_v11 }
 0x49d   : > { %v3600_v18 = vsub.f32 %v3596_v17, %v3599_v16 }
 0x49f   : > { %v3601_v20 = vmax.f32 %v3600_v18, 0.0 }
 0x4a1   : > { %v3602_v21 = vadd.f32 1e-05, %v3601_v20 }
 0x4a3   : > { %29651 = vrsqrt.f32 %v3602_v21 }
 0x4b0   : > { %v29652_v24 = vpop.eup %29651 }
 0x4b1   : > { %v3605_v26 = vmul.f32 %v29652_v24, %v3604_v22 }
 0x4b3   : > { %v3607_v28 = vmul.f32 %v3605_v26, %v3147_v4  ;;  %v3612_v32 = vrot.slane %v3605_v26, %v31326_v13 }
 0x4b5   : > { %v3608_v34 = vsub.f32 %v3606_v27, %v3607_v28  ;;  %v3613_v35 = vmul.f32 %v3612_v32, %v31343_v46  ;;  %v3614_v36 = vmul.f32 %v3612_v32, %v31345_v47 }
 0x4b7   : > { %v3619_v37 = vrot.slane %v3608_v34, %v31326_v13 }
 0x4b9   : > { %v3621_v38 = vadd.f32 %v3619_v37, %v3613_v35  ;;  %v3622_v39 = vadd.f32 %v3619_v37, %v3614_v36 }
 0x4bb   : > { %v3623_v40 = vmax.f32 %v3621_v38, 0.0  ;;  %v3624_v41 = vmax.f32 %v3622_v39, 0.0 }
 0x4bd   : > { %v3625_v42 = vpack.c.bf16 %v3624_v41, %v3623_v40 }
 0x4bf   : > { %28409 = vmatmul.mubr.msk.bf16.vlgmr.msra.gmra.mxu0 %vm1776_vm0, %v3625_v42 }
 0x4c0   : > { %28438 = vmatpush3.xpose.msra.mxu0 %v31311_v9  ;;  %28439 = vmatprep.mubr.msk.f32.mxu0 %vm30751_vm1, %v34088_v7 }
 0x4c1   : > { %28447 = vmatprep.subr.mxu0 %v34088_v7 }
 0x57f   : > { %v3702_v46 = vpop.f32.mrf.mxu0 }
 0x580   : > { %v31491_v44 = vadd.f32 %v27630_v43, %v3702_v46 }
 0x581   : > { %v28410_v47 = vpop.f32.mrf.mxu0 }
 0x582   : > { %v3718_v48 = vmul.f32 %v31491_v44, %v31491_v44  ;;  %v3709_v51 = vsel %vm1776_vm0, %v31491_v44, 0.0 }
 0x583   : > { %v3705_v45 = vpop.f32.mrf.mxu0 }
 0x584   : > { %v31495_v49 = vadd.f32 %v27630_v43, %v3705_v45  ;;  %v3720_v55 = vsel %vm1776_vm0, %v3718_v48, 0.0 }
 0x585   : > { %v28411_v50 = vpop.f32.mrf.mxu0 }
 0x586   : > { %v3710_v52 = vsel %vm1776_vm0, %v31495_v49, 0.0  ;;  %v3719_v53 = vmul.f32 %v31495_v49, %v31495_v49 }
 0x587   : > { %v3711_v54 = vadd.f32 %v3710_v52, %v3709_v51 }
 0x588   : > { %v3721_v56 = vsel %vm1776_vm0, %v3719_v53, 0.0 }
 0x589   : > { %v3712_v57 = vrot.slane %v3711_v54, 4  ;;  %v3722_v58 = vadd.f32 %v3721_v56, %v3720_v55 }
 0x58b   : > { %v3713_v59 = vadd.f32 %v3712_v57, %v3711_v54  ;;  %v3723_v60 = vrot.slane %v3722_v58, 4 }
 0x58d   : > { %v3714_v61 = vrot.slane %v3713_v59, 2  ;;  %v3724_v62 = vadd.f32 %v3723_v60, %v3722_v58 }
 0x58f   : > { %v3715_v63 = vadd.f32 %v3714_v61, %v3713_v59  ;;  %v3725_v0 = vrot.slane %v3724_v62, 2 }
 0x591   : > { %v3716_v2 = vrot.slane %v3715_v63, 1  ;;  %v3726_v3 = vadd.f32 %v3725_v0, %v3724_v62 }
 0x593   : > { %v3717_v4 = vadd.f32 %v3716_v2, %v3715_v63  ;;  %v3727_v5 = vrot.slane %v3726_v3, 1 }
 0x595   : > { %v3730_v6 = vsel %vm1776_vm0, %v3717_v4, 0  ;;  %v3728_v11 = vadd.f32 %v3727_v5, %v3726_v3 }
 0x596   : > { %v3798_v15 = vand.u32 4294901760, %v3730_v6 }
 0x597   : > { %v4179_v16 = vsel %vm1776_vm0, %v3728_v11, 0 }
 0x598   : > { %v3799_v17 = vsub.f32 %v3730_v6, %v3798_v15  ;;  %28440 = vmatmul.mubr.f32.vlgmr.msra.gmra.mxu0 %v3798_v15  ;;  %v4247_v18 = vand.u32 4294901760, %v4179_v16 }
 0x599   : > { %28448 = vmatpush3.xpose.msra.mxu0 %v31368_v23  ;;  %28449 = vmatprep.mubr.msk.f32.mxu0 %vm30751_vm1, %v34088_v7 }
 0x59a   : > { %v4248_v20 = vsub.f32 %v4179_v16, %v4247_v18  ;;  %28457 = vmatprep.subr.mxu0 %v34088_v7  ;;  %v3800_v21 = vand.u32 4294901760, %v3799_v17 }
 0x59c   : > { %28450 = vmatmul.mubr.f32.vlgmr.msra.gmra.mxu0 %v4247_v18  ;;  %v3801_v22 = vsub.f32 %v3799_v17, %v3800_v21  ;;  %v4249_v26 = vand.u32 4294901760, %v4248_v20 }
 0x59d   : > { %28458 = vmatpush3.xpose.msra.mxu0 %v31311_v9  ;;  %28459 = vmatprep.mubr.msk.f32.mxu0 %vm30751_vm1, %v34088_v7 }
 0x59e   : > { %v3802_v24 = vand.u32 4294901760, %v3801_v22  ;;  %28467 = vmatprep.subr.mxu0 %v34088_v7  ;;  %v4250_v27 = vsub.f32 %v4248_v20, %v4249_v26 }
 0x5a0   : > { %28415 = vmatmul.mubr.f32.vlgmr.msra.gmra.mxu1 %v3802_v24  ;;  %28460 = vmatmul.mubr.f32.vlgmr.msra.gmra.mxu0 %v4249_v26  ;;  %v4251_v28 = vand.u32 4294901760, %v4250_v27 }
 0x5a1   : > { %28418 = vmatpush3.xpose.msra.mxu1 %v31368_v23  ;;  %28468 = vmatpush3.xpose.msra.mxu0 %v31311_v9 }
 0x5a2   : > { %28419 = vmatprep.mubr.msk.f32.mxu1 %vm30751_vm1, %v34088_v7  ;;  %28422 = vmatprep.subr.mxu1 %v34088_v7 }
 0x5a3   : > { %28469 = vmatprep.mubr.msk.f32.mxu0 %vm30751_vm1, %v34088_v7  ;;  %28477 = vmatprep.subr.mxu0 %v34088_v7 }
 0x5a4   : > { %28420 = vmatmul.mubr.f32.vlgmr.msra.gmra.mxu1 %v3798_v15  ;;  %28470 = vmatmul.mubr.f32.vlgmr.msra.gmra.mxu0 %v4247_v18 }
 0x5a5   : > { %28423 = vmatpush3.xpose.msra.mxu1 %v31317_v10  ;;  %28424 = vmatprep.mubr.msk.f32.mxu1 %vm30751_vm1, %v34088_v7 }
 0x5a6   : > { %28427 = vmatprep.subr.mxu1 %v34088_v7  ;;  %28478 = vmatpush3.msra.mxu0 %v31422_v33 }
 0x5a7   : > { %28479 = vmatprep.mubr.msk.f32.mxu0 %vm30751_vm1, %v34088_v7  ;;  %28487 = vmatprep.subr.mxu0 %v34088_v7 }
 0x5a8   : > { %28425 = vmatmul.mubr.f32.vlgmr.msra.gmra.mxu1 %v3799_v17 }
 0x5a9   : > { %28428 = vmatpush3.xpose.msra.mxu1 %v31311_v9  ;;  %28429 = vmatprep.mubr.msk.f32.mxu1 %vm30751_vm1, %v34088_v7 }
 0x5aa   : > { %28432 = vmatprep.subr.mxu1 %v34088_v7 }
 0x5ac   : > { %28430 = vmatmul.mubr.f32.vlgmr.msra.gmra.mxu1 %v3800_v21 }
 0x5ad   : > { %28433 = vmatpush3.xpose.msra.mxu1 %v31359_v8  ;;  %28434 = vmatprep.mubr.msk.f32.mxu1 %vm30751_vm1, %v34088_v7 }
 0x5ae   : > { %28442 = vmatprep.subr.mxu1 %v34088_v7 }
 0x5b0   : > { %28435 = vmatmul.mubr.f32.vlgmr.msra.gmra.mxu1 %v3798_v15 }
 0x5b1   : > { %28443 = vmatpush3.xpose.msra.mxu1 %v31311_v9  ;;  %28444 = vmatprep.mubr.msk.f32.mxu1 %vm30751_vm1, %v34088_v7 }
 0x5b2   : > { %28452 = vmatprep.subr.mxu1 %v34088_v7 }
 0x5b4   : > { %28445 = vmatmul.mubr.f32.vlgmr.msra.gmra.mxu1 %v4251_v28  ;;  %v29147_v28 = vld [vmem:[#allocation11 + $0x18] sm:$0xff]  }
 0x5b5   : > { %28453 = vmatpush3.xpose.msra.mxu1 %v31317_v10  ;;  %28454 = vmatprep.mubr.msk.f32.mxu1 %vm30751_vm1, %v34088_v7 }
 0x5b6   : > { %28462 = vmatprep.subr.mxu1 %v34088_v7 }
 0x5b8   : > { %28455 = vmatmul.mubr.f32.vlgmr.msra.gmra.mxu1 %v4248_v20 }
 0x5b9   : > { %28463 = vmatpush3.xpose.msra.mxu1 %v31359_v8  ;;  %28464 = vmatprep.mubr.msk.f32.mxu1 %vm30751_vm1, %v34088_v7 }
 0x5ba   : > { %28472 = vmatprep.subr.mxu1 %v34088_v7 }
 0x5bc   : > { %28465 = vmatmul.mubr.f32.vlgmr.msra.gmra.mxu1 %v4247_v18 }
 0x5bd   : > { %28473 = vmatpush3.msra.mxu1 %v31410_v29  ;;  %28474 = vmatprep.mubr.msk.f32.mxu1 %vm30751_vm1, %v34088_v7 }
 0x5be   : > { %28482 = vmatprep.subr.mxu1 %v34088_v7 }
 0x658   : > { %v4174_v32 = vpop.f32.mrf.mxu0 }
 0x65a   : > { %v28441_v34 = vpop.f32.mrf.mxu0 }
 0x65b   : > { %v29149_v34 = vld [vmem:[#allocation11 + $0x8] sm:$0xff]  }
 0x65c   : > { %v4329_v35 = vpop.f32.mrf.mxu0 }
 0x65e   : > { %v28451_v36 = vpop.f32.mrf.mxu0 }
 0x660   : > { %v3804_v37 = vpop.f32.mrf.mxu1  ;;  %v4477_v38 = vpop.f32.mrf.mxu0 }
 0x662   : > { %v28416_v39 = vpop.f32.mrf.mxu1  ;;  %v28461_v40 = vpop.f32.mrf.mxu0 }
 0x664   : > { %v3880_v41 = vpop.f32.mrf.mxu1  ;;  %v4623_v42 = vpop.f32.mrf.mxu0 }
 0x665   : > { %v3881_v48 = vadd.f32 %v3880_v41, %v3804_v37 }
 0x666   : > { %v28421_v43 = vpop.f32.mrf.mxu1  ;;  %v28471_v46 = vpop.f32.mrf.mxu0 }
 0x668   : > { %v3954_v47 = vpop.f32.mrf.mxu1 }
 0x669   : > { %v3955_v51 = vadd.f32 %v3954_v47, %v3881_v48 }
 0x66a   : > { %v28426_v45 = vpop.f32.mrf.mxu1 }
 0x66c   : > { %v4028_v50 = vpop.f32.mrf.mxu1 }
 0x66d   : > { %v4029_v53 = vadd.f32 %v4028_v50, %v3955_v51 }
 0x66e   : > { %v28431_v52 = vpop.f32.mrf.mxu1 }
 0x670   : > { %v4102_v54 = vpop.f32.mrf.mxu1 }
 0x671   : > { %v4103_v55 = vadd.f32 %v4102_v54, %v4029_v53 }
 0x672   : > { %v28436_v56 = vpop.f32.mrf.mxu1 }
 0x673   : > { %v4175_v57 = vadd.f32 %v4174_v32, %v4103_v55  ;;  %v29148_v32 = vld [vmem:[#allocation11 + $0x10] sm:$0xff]  }
 0x674   : > { %v4253_v58 = vpop.f32.mrf.mxu1 }
 0x675   : > { %v4628_v59 = vsel %vm2700_vm2, %v4175_v57, 0  ;;  %v4330_v62 = vadd.f32 %v4329_v35, %v4253_v58  ;;  %v29150_v35 = vld [vmem:[#allocation11] sm:$0xff]  }
 0x676   : > { %v4696_v60 = vand.u32 4294901760, %v4628_v59  ;;  %v28446_v61 = vpop.f32.mrf.mxu1 }
 0x678   : > { %v4697_v63 = vsub.f32 %v4628_v59, %v4696_v60  ;;  %v4403_v0 = vpop.f32.mrf.mxu1  ;;  %28480 = vmatmul.mubr.f32.vlgmr.msra.gmra.mxu0 %v4696_v60 }
 0x679   : > { %v4404_v2 = vadd.f32 %v4403_v0, %v4330_v62  ;;  %28488 = vmatpush3.msra.mxu0 %v31410_v29  ;;  %28489 = vmatprep.mubr.msk.f32.mxu0 %vm30751_vm1, %v34088_v7 }
 0x67a   : > { %v28456_v3 = vpop.f32.mrf.mxu1  ;;  %v4698_v4 = vand.u32 4294901760, %v4697_v63  ;;  %28497 = vmatprep.subr.mxu0 %v34088_v7 }
 0x67b   : > { %v4478_v5 = vadd.f32 %v4477_v38, %v4404_v2 }
 0x67c   : > { %v4551_v6 = vpop.f32.mrf.mxu1  ;;  %28490 = vmatmul.mubr.f32.vlgmr.msra.gmra.mxu0 %v4698_v4  ;;  %v4699_v11 = vsub.f32 %v4697_v63, %v4698_v4 }
 0x67d   : > { %v4552_v15 = vadd.f32 %v4551_v6, %v4478_v5  ;;  %28498 = vmatpush3.msra.mxu0 %v31410_v29  ;;  %28499 = vmatprep.mubr.msk.f32.mxu0 %vm30751_vm1, %v34088_v7 }
 0x67e   : > { %v28466_v16 = vpop.f32.mrf.mxu1  ;;  %v4700_v17 = vand.u32 4294901760, %v4699_v11  ;;  %28507 = vmatprep.subr.mxu0 %v34088_v7 }
 0x67f   : > { %v4624_v18 = vadd.f32 %v4623_v42, %v4552_v15 }
 0x680   : > { %28475 = vmatmul.mubr.f32.vlgmr.msra.gmra.mxu1 %v4700_v17  ;;  %28500 = vmatmul.mubr.f32.vlgmr.msra.gmra.mxu0 %v4696_v60 }
 0x681   : > { %v5077_v20 = vsel %vm2700_vm2, %v4624_v18, 0  ;;  %28483 = vmatpush3.msra.mxu1 %v31413_v30  ;;  %28484 = vmatprep.mubr.msk.f32.mxu1 %vm30751_vm1, %v34088_v7 }
 0x682   : > { %v5145_v21 = vand.u32 4294901760, %v5077_v20  ;;  %28492 = vmatprep.subr.mxu1 %v34088_v7  ;;  %28508 = vmatpush3.msra.mxu0 %v31422_v33 }
 0x683   : > { %28509 = vmatprep.mubr.msk.f32.mxu0 %vm30751_vm1, %v34088_v7  ;;  %28517 = vmatprep.subr.mxu0 %v34088_v7 }
 0x684   : > { %v5146_v22 = vsub.f32 %v5077_v20, %v5145_v21  ;;  %28485 = vmatmul.mubr.f32.vlgmr.msra.gmra.mxu1 %v4697_v63  ;;  %28510 = vmatmul.mubr.f32.vlgmr.msra.gmra.mxu0 %v5145_v21 }
 0x685   : > { %28493 = vmatpush3.msra.mxu1 %v31418_v31  ;;  %28494 = vmatprep.mubr.msk.f32.mxu1 %vm30751_vm1, %v34088_v7 }
 0x686   : > { %28502 = vmatprep.subr.mxu1 %v34088_v7  ;;  %28518 = vmatpush3.msra.mxu0 %v31410_v29  ;;  %v5147_v24 = vand.u32 4294901760, %v5146_v22 }
 0x687   : > { %28519 = vmatprep.mubr.msk.f32.mxu0 %vm30751_vm1, %v34088_v7  ;;  %28527 = vmatprep.subr.mxu0 %v34088_v7 }
 0x688   : > { %28495 = vmatmul.mubr.f32.vlgmr.msra.gmra.mxu1 %v4696_v60  ;;  %28520 = vmatmul.mubr.f32.vlgmr.msra.gmra.mxu0 %v5147_v24  ;;  %v5148_v26 = vsub.f32 %v5146_v22, %v5147_v24 }
 0x689   : > { %28503 = vmatpush3.msra.mxu1 %v31410_v29  ;;  %28504 = vmatprep.mubr.msk.f32.mxu1 %vm30751_vm1, %v34088_v7 }
 0x68a   : > { %28512 = vmatprep.subr.mxu1 %v34088_v7  ;;  %28528 = vmatpush3.msra.mxu0 %v31410_v29  ;;  %v5149_v27 = vand.u32 4294901760, %v5148_v26  ;;  %v5532_v26 = vld [vmem:[#allocation10] sm:$0x1] }
 0x68b   : > { %28529 = vmatprep.mubr.msk.f32.mxu0 %vm30751_vm1, %v34088_v7  ;;  %28532 = vmatprep.subr.bf16.mxu0 %v34088_v7 }
 0x68c   : > { %28505 = vmatmul.mubr.f32.vlgmr.msra.gmra.mxu1 %v5149_v27  ;;  %28530 = vmatmul.mubr.f32.vlgmr.msra.gmra.mxu0 %v5145_v21 }
 0x68d   : > { %28513 = vmatpush3.msra.mxu1 %v31413_v30  ;;  %28514 = vmatprep.mubr.msk.f32.mxu1 %vm30751_vm1, %v34088_v7 }
 0x68e   : > { %28522 = vmatprep.subr.mxu1 %v34088_v7  ;;  %28540 = vmatprep.mubr.msk.bf16.mxu0 %vm30751_vm1, %v34088_v7 }
 0x68f   : > { %28533 = vmatpush3.bf16.msra.mxu0 %v29147_v28 }
 0x690   : > { %28515 = vmatmul.mubr.f32.vlgmr.msra.gmra.mxu1 %v5146_v22  ;;  %28534 = vmatprep.subr.bf16.mxu0 %v34088_v7 }
 0x691   : > { %28523 = vmatpush3.msra.mxu1 %v31418_v31  ;;  %28524 = vmatprep.mubr.msk.f32.mxu1 %vm30751_vm1, %v34088_v7 }
 0x692   : > { %28569 = vmatprep.subr.mxu1 %v34088_v7 }
 0x693   : > { %28535 = vmatpush3.bf16.msra.mxu0 %v29148_v32 }
 0x694   : > { %28525 = vmatmul.mubr.f32.vlgmr.msra.gmra.mxu1 %v5145_v21  ;;  %28536 = vmatprep.subr.bf16.mxu0 %v34088_v7  ;;  %v5530_v21 = vld [vmem:[#allocation8] sm:$0x1] }
 0x695   : > { %28570 = vmatpush3.xpose.msra.mxu1 %v31311_v9  ;;  %28571 = vmatprep.mubr.msk.f32.mxu1 %vm30751_vm1, %v34088_v7 }
 0x696   : > { %28579 = vmatprep.subr.mxu1 %v34088_v7 }
 0x697   : > { %28537 = vmatpush3.bf16.msra.mxu0 %v29149_v34 }
 0x698   : > { %28538 = vmatprep.subr.bf16.mxu0 %v34088_v7 }
 0x69b   : > { %28539 = vmatpush3.bf16.msra.mxu0 %v29150_v35 }
 0x69c   : > { %28544 = vmatprep.subr.mxu0 %v34088_v7 }
 0x738   : > { %v4778_v36 = vpop.f32.mrf.mxu0 }
 0x73a   : > { %v28481_v37 = vpop.f32.mrf.mxu0 }
 0x73c   : > { %v4926_v38 = vpop.f32.mrf.mxu0 }
 0x73e   : > { %v28491_v39 = vpop.f32.mrf.mxu0 }
 0x740   : > { %v4702_v40 = vpop.f32.mrf.mxu1  ;;  %v5072_v41 = vpop.f32.mrf.mxu0 }
 0x741   : > { %v4779_v45 = vadd.f32 %v4778_v36, %v4702_v40 }
 0x742   : > { %v28476_v42 = vpop.f32.mrf.mxu1  ;;  %v28501_v43 = vpop.f32.mrf.mxu0 }
 0x743   : > { %v27636_v42 = vld [vmem:[#allocation13] ss:$0 sm:$0xff] }
 0x744   : > { %v4852_v46 = vpop.f32.mrf.mxu1  ;;  %v5227_v47 = vpop.f32.mrf.mxu0 }
 0x745   : > { %v4853_v51 = vadd.f32 %v4852_v46, %v4779_v45 }
 0x746   : > { %v28486_v48 = vpop.f32.mrf.mxu1  ;;  %v28511_v50 = vpop.f32.mrf.mxu0 }
 0x747   : > { %v4927_v56 = vadd.f32 %v4926_v38, %v4853_v51 }
 0x748   : > { %v5000_v52 = vpop.f32.mrf.mxu1  ;;  %v5375_v53 = vpop.f32.mrf.mxu0 }
 0x749   : > { %v5001_v61 = vadd.f32 %v5000_v52, %v4927_v56 }
 0x74a   : > { %v28496_v54 = vpop.f32.mrf.mxu1  ;;  %v28521_v55 = vpop.f32.mrf.mxu0 }
 0x74b   : > { %v5073_v3 = vadd.f32 %v5072_v41, %v5001_v61 }
 0x74c   : > { %v5151_v57 = vpop.f32.mrf.mxu1  ;;  %v5521_v58 = vpop.f32.mrf.mxu0 }
 0x74d   : > { %v5228_v62 = vadd.f32 %v5227_v47, %v5151_v57  ;;  %v5525_v15 = vmul.f32 %v5073_v3, %v5073_v3 }
 0x74e   : > { %v28506_v59 = vpop.f32.mrf.mxu1  ;;  %v28531_v60 = vpop.f32.mrf.mxu0 }
 0x750   : > { %v5301_v63 = vpop.f32.mrf.mxu1 }
 0x751   : > { %v5302_v0 = vadd.f32 %v5301_v63, %v5228_v62 }
 0x752   : > { %v28516_v2 = vpop.f32.mrf.mxu1 }
 0x753   : > { %v5376_v4 = vadd.f32 %v5375_v53, %v5302_v0 }
 0x754   : > { %v5449_v5 = vpop.f32.mrf.mxu1 }
 0x755   : > { %v5450_v6 = vadd.f32 %v5449_v5, %v5376_v4 }
 0x756   : > { %v28526_v11 = vpop.f32.mrf.mxu1 }
 0x757   : > { %v5522_v16 = vadd.f32 %v5521_v58, %v5450_v6 }
 0x759   : > { %v5526_v17 = vsub.f32 %v5522_v16, %v5525_v15 }
 0x75b   : > { %v5527_v18 = vmax.f32 %v5526_v17, 0.0 }
 0x75d   : > { %v5528_v20 = vadd.f32 1e-05, %v5527_v18 }
 0x75f   : > { %29653 = vrsqrt.f32 %v5528_v20 }
 0x76c   : > { %v29654_v22 = vpop.eup %29653 }
 0x76d   : > { %v5531_v24 = vmul.f32 %v29654_v22, %v5530_v21 }
 0x76f   : > { %v5533_v27 = vmul.f32 %v5531_v24, %v5073_v3  ;;  %v5538_v28 = vrot.slane %v5531_v24, %v31326_v13 }
 0x771   : > { %v5534_v32 = vsub.f32 %v5532_v26, %v5533_v27  ;;  %v5539_v34 = vmul.f32 %v5538_v28, %v31491_v44  ;;  %v5540_v35 = vmul.f32 %v5538_v28, %v31495_v49 }
 0x773   : > { %v5545_v36 = vrot.slane %v5534_v32, %v31326_v13 }
 0x775   : > { %v5547_v37 = vadd.f32 %v5545_v36, %v5539_v34  ;;  %v5548_v38 = vadd.f32 %v5545_v36, %v5540_v35 }
 0x777   : > { %v5549_v39 = vmax.f32 %v5547_v37, 0.0  ;;  %v5550_v40 = vmax.f32 %v5548_v38, 0.0 }
 0x779   : > { %v5551_v41 = vpack.c.bf16 %v5550_v40, %v5549_v39 }
 0x77b   : > { %28541 = vmatmul.mubr.msk.bf16.vlgmr.msra.gmra.mxu0 %vm1776_vm0, %v5551_v41 }
 0x77c   : > { %28545 = vmatpush3.xpose.msra.mxu0 %v31311_v9  ;;  %28546 = vmatprep.mubr.msk.f32.mxu0 %vm30751_vm1, %v34088_v7 }
 0x77d   : > { %28549 = vmatprep.subr.mxu0 %v34088_v7 }
 0x83b   : > { %v5628_v44 = vpop.f32.mrf.mxu0 }
 0x83c   : > { %v31616_v43 = vadd.f32 %v27636_v42, %v5628_v44 }
 0x83d   : > { %v28542_v49 = vpop.f32.mrf.mxu0 }
 0x83e   : > { %v5644_v47 = vmul.f32 %v31616_v43, %v31616_v43  ;;  %v5635_v50 = vsel %vm1776_vm0, %v31616_v43, 0.0 }
 0x83f   : > { %v5631_v46 = vpop.f32.mrf.mxu0 }
 0x840   : > { %v31620_v45 = vadd.f32 %v27636_v42, %v5631_v46  ;;  %v5646_v54 = vsel %vm1776_vm0, %v5644_v47, 0.0 }
 0x841   : > { %v28543_v48 = vpop.f32.mrf.mxu0 }
 0x842   : > { %v5636_v51 = vsel %vm1776_vm0, %v31620_v45, 0.0  ;;  %v5645_v52 = vmul.f32 %v31620_v45, %v31620_v45 }
 0x843   : > { %v5637_v53 = vadd.f32 %v5636_v51, %v5635_v50 }
 0x844   : > { %v5647_v55 = vsel %vm1776_vm0, %v5645_v52, 0.0 }
 0x845   : > { %v5638_v56 = vrot.slane %v5637_v53, 4  ;;  %v5648_v57 = vadd.f32 %v5647_v55, %v5646_v54 }
 0x847   : > { %v5639_v58 = vadd.f32 %v5638_v56, %v5637_v53  ;;  %v5649_v59 = vrot.slane %v5648_v57, 4 }
 0x849   : > { %v5640_v60 = vrot.slane %v5639_v58, 2  ;;  %v5650_v61 = vadd.f32 %v5649_v59, %v5648_v57 }
 0x84b   : > { %v5641_v62 = vadd.f32 %v5640_v60, %v5639_v58  ;;  %v5651_v63 = vrot.slane %v5650_v61, 2 }
 0x84d   : > { %v5642_v0 = vrot.slane %v5641_v62, 1  ;;  %v5652_v2 = vadd.f32 %v5651_v63, %v5650_v61 }
 0x84f   : > { %v5643_v3 = vadd.f32 %v5642_v0, %v5641_v62  ;;  %v5653_v4 = vrot.slane %v5652_v2, 1 }
 0x851   : > { %v5656_v5 = vsel %vm1776_vm0, %v5643_v3, 0  ;;  %v5654_v6 = vadd.f32 %v5653_v4, %v5652_v2 }
 0x852   : > { %v5724_v11 = vand.u32 4294901760, %v5656_v5 }
 0x853   : > { %v6105_v15 = vsel %vm1776_vm0, %v5654_v6, 0 }
 0x854   : > { %v5725_v16 = vsub.f32 %v5656_v5, %v5724_v11  ;;  %28572 = vmatmul.mubr.f32.vlgmr.msra.gmra.mxu1 %v5724_v11  ;;  %v6173_v17 = vand.u32 4294901760, %v6105_v15 }
 0x855   : > { %28580 = vmatpush3.xpose.msra.mxu1 %v31368_v23  ;;  %28581 = vmatprep.mubr.msk.f32.mxu1 %vm30751_vm1, %v34088_v7 }
 0x856   : > { %v6174_v18 = vsub.f32 %v6105_v15, %v6173_v17  ;;  %28589 = vmatprep.subr.mxu1 %v34088_v7  ;;  %v5726_v20 = vand.u32 4294901760, %v5725_v16 }
 0x858   : > { %28582 = vmatmul.mubr.f32.vlgmr.msra.gmra.mxu1 %v6173_v17  ;;  %v5727_v21 = vsub.f32 %v5725_v16, %v5726_v20  ;;  %v6175_v24 = vand.u32 4294901760, %v6174_v18 }
 0x859   : > { %28590 = vmatpush3.xpose.msra.mxu1 %v31311_v9  ;;  %28591 = vmatprep.mubr.msk.f32.mxu1 %vm30751_vm1, %v34088_v7 }
 0x85a   : > { %v5728_v22 = vand.u32 4294901760, %v5727_v21  ;;  %28599 = vmatprep.subr.mxu1 %v34088_v7 }
 0x85c   : > { %28547 = vmatmul.mubr.f32.vlgmr.msra.gmra.mxu0 %v5728_v22  ;;  %28592 = vmatmul.mubr.f32.vlgmr.msra.gmra.mxu1 %v6175_v24 }
 0x85d   : > { %28550 = vmatpush3.xpose.msra.mxu0 %v31368_v23  ;;  %28600 = vmatpush3.xpose.msra.mxu1 %v31311_v9  ;;  %v6176_v23 = vsub.f32 %v6174_v18, %v6175_v24 }
 0x85e   : > { %28551 = vmatprep.mubr.msk.f32.mxu0 %vm30751_vm1, %v34088_v7  ;;  %28554 = vmatprep.subr.mxu0 %v34088_v7 }
 0x85f   : > { %28601 = vmatprep.mubr.msk.f32.mxu1 %vm30751_vm1, %v34088_v7  ;;  %28609 = vmatprep.subr.mxu1 %v34088_v7  ;;  %v6177_v26 = vand.u32 4294901760, %v6176_v23 }
 0x860   : > { %28552 = vmatmul.mubr.f32.vlgmr.msra.gmra.mxu0 %v5724_v11  ;;  %28602 = vmatmul.mubr.f32.vlgmr.msra.gmra.mxu1 %v6173_v17 }
 0x861   : > { %28555 = vmatpush3.xpose.msra.mxu0 %v31317_v10  ;;  %28556 = vmatprep.mubr.msk.f32.mxu0 %vm30751_vm1, %v34088_v7 }
 0x862   : > { %28559 = vmatprep.subr.mxu0 %v34088_v7  ;;  %28610 = vmatpush3.msra.mxu1 %v31422_v33 }
 0x863   : > { %28611 = vmatprep.mubr.msk.f32.mxu1 %vm30751_vm1, %v34088_v7  ;;  %28619 = vmatprep.subr.mxu1 %v34088_v7 }
 0x864   : > { %28557 = vmatmul.mubr.f32.vlgmr.msra.gmra.mxu0 %v5725_v16 }
 0x865   : > { %28560 = vmatpush3.xpose.msra.mxu0 %v31311_v9  ;;  %28561 = vmatprep.mubr.msk.f32.mxu0 %vm30751_vm1, %v34088_v7 }
 0x866   : > { %28564 = vmatprep.subr.mxu0 %v34088_v7 }
 0x868   : > { %28562 = vmatmul.mubr.f32.vlgmr.msra.gmra.mxu0 %v5726_v20  ;;  %v29153_v20 = vld [vmem:[#allocation17 + $0x8] sm:$0xff]  }
 0x869   : > { %28565 = vmatpush3.xpose.msra.mxu0 %v31359_v8  ;;  %28566 = vmatprep.mubr.msk.f32.mxu0 %vm30751_vm1, %v34088_v7 }
 0x86a   : > { %28574 = vmatprep.subr.mxu0 %v34088_v7 }
 0x86c   : > { %28567 = vmatmul.mubr.f32.vlgmr.msra.gmra.mxu0 %v5724_v11 }
 0x86d   : > { %28575 = vmatpush3.xpose.msra.mxu0 %v31311_v9  ;;  %28576 = vmatprep.mubr.msk.f32.mxu0 %vm30751_vm1, %v34088_v7 }
 0x86e   : > { %28584 = vmatprep.subr.mxu0 %v34088_v7 }
 0x870   : > { %28577 = vmatmul.mubr.f32.vlgmr.msra.gmra.mxu0 %v6177_v26 }
 0x871   : > { %28585 = vmatpush3.xpose.msra.mxu0 %v31317_v10  ;;  %28586 = vmatprep.mubr.msk.f32.mxu0 %vm30751_vm1, %v34088_v7 }
 0x872   : > { %28594 = vmatprep.subr.mxu0 %v34088_v7 }
 0x874   : > { %28587 = vmatmul.mubr.f32.vlgmr.msra.gmra.mxu0 %v6174_v18 }
 0x875   : > { %28595 = vmatpush3.xpose.msra.mxu0 %v31359_v8  ;;  %28596 = vmatprep.mubr.msk.f32.mxu0 %vm30751_vm1, %v34088_v7 }
 0x876   : > { %28604 = vmatprep.subr.mxu0 %v34088_v7 }
 0x878   : > { %28597 = vmatmul.mubr.f32.vlgmr.msra.gmra.mxu0 %v6173_v17 }
 0x879   : > { %28605 = vmatpush3.msra.mxu0 %v31410_v29  ;;  %28606 = vmatprep.mubr.msk.f32.mxu0 %vm30751_vm1, %v34088_v7 }
 0x87a   : > { %28614 = vmatprep.subr.mxu0 %v34088_v7 }
 0x914   : > { %v6100_v9 = vpop.f32.mrf.mxu1 }
 0x916   : > { %v28573_v10 = vpop.f32.mrf.mxu1 }
 0x918   : > { %v6255_v27 = vpop.f32.mrf.mxu1 }
 0x91a   : > { %v28583_v28 = vpop.f32.mrf.mxu1 }
 0x91c   : > { %v5730_v32 = vpop.f32.mrf.mxu0  ;;  %v6403_v34 = vpop.f32.mrf.mxu1 }
 0x91e   : > { %v28548_v8 = vpop.f32.mrf.mxu0  ;;  %v28593_v35 = vpop.f32.mrf.mxu1 }
 0x920   : > { %v5806_v36 = vpop.f32.mrf.mxu0  ;;  %v6549_v37 = vpop.f32.mrf.mxu1 }
 0x921   : > { %v5807_v42 = vadd.f32 %v5806_v36, %v5730_v32 }
 0x922   : > { %v28553_v38 = vpop.f32.mrf.mxu0  ;;  %v28603_v39 = vpop.f32.mrf.mxu1 }
 0x924   : > { %v5880_v40 = vpop.f32.mrf.mxu0 }
 0x925   : > { %v5881_v49 = vadd.f32 %v5880_v40, %v5807_v42 }
 0x926   : > { %v28558_v41 = vpop.f32.mrf.mxu0 }
 0x928   : > { %v5954_v44 = vpop.f32.mrf.mxu0 }
 0x929   : > { %v5955_v47 = vadd.f32 %v5954_v44, %v5881_v49 }
 0x92a   : > { %v28563_v46 = vpop.f32.mrf.mxu0 }
 0x92c   : > { %v6028_v48 = vpop.f32.mrf.mxu0 }
 0x92d   : > { %v6029_v50 = vadd.f32 %v6028_v48, %v5955_v47 }
 0x92e   : > { %v28568_v51 = vpop.f32.mrf.mxu0 }
 0x92f   : > { %v6101_v52 = vadd.f32 %v6100_v9, %v6029_v50 }
 0x930   : > { %v6179_v53 = vpop.f32.mrf.mxu0 }
 0x931   : > { %v6554_v54 = vsel %vm2700_vm2, %v6101_v52, 0  ;;  %v6256_v57 = vadd.f32 %v6255_v27, %v6179_v53 }
 0x932   : > { %v6622_v55 = vand.u32 4294901760, %v6554_v54  ;;  %v28578_v56 = vpop.f32.mrf.mxu0 }
 0x934   : > { %v6623_v58 = vsub.f32 %v6554_v54, %v6622_v55  ;;  %v6329_v59 = vpop.f32.mrf.mxu0  ;;  %28612 = vmatmul.mubr.f32.vlgmr.msra.gmra.mxu1 %v6622_v55 }
 0x935   : > { %v6330_v60 = vadd.f32 %v6329_v59, %v6256_v57  ;;  %28620 = vmatpush3.msra.mxu1 %v31410_v29  ;;  %28621 = vmatprep.mubr.msk.f32.mxu1 %vm30751_vm1, %v34088_v7 }
 0x936   : > { %v28588_v61 = vpop.f32.mrf.mxu0  ;;  %v6624_v62 = vand.u32 4294901760, %v6623_v58  ;;  %28629 = vmatprep.subr.mxu1 %v34088_v7 }
 0x937   : > { %v6404_v63 = vadd.f32 %v6403_v34, %v6330_v60 }
 0x938   : > { %v6477_v0 = vpop.f32.mrf.mxu0  ;;  %28622 = vmatmul.mubr.f32.vlgmr.msra.gmra.mxu1 %v6624_v62  ;;  %v6625_v2 = vsub.f32 %v6623_v58, %v6624_v62 }
 0x939   : > { %v6478_v3 = vadd.f32 %v6477_v0, %v6404_v63  ;;  %28630 = vmatpush3.msra.mxu1 %v31410_v29  ;;  %28631 = vmatprep.mubr.msk.f32.mxu1 %vm30751_vm1, %v34088_v7  ;;  %v7456_v63 = vld [vmem:[#allocation14] sm:$0x1] }
 0x93a   : > { %v28598_v4 = vpop.f32.mrf.mxu0  ;;  %v6626_v5 = vand.u32 4294901760, %v6625_v2  ;;  %28639 = vmatprep.subr.mxu1 %v34088_v7 }
 0x93b   : > { %v6550_v6 = vadd.f32 %v6549_v37, %v6478_v3  ;;  %v7458_v3 = vld [vmem:[#allocation16] sm:$0x1] }
 0x93c   : > { %28607 = vmatmul.mubr.f32.vlgmr.msra.gmra.mxu0 %v6626_v5  ;;  %28632 = vmatmul.mubr.f32.vlgmr.msra.gmra.mxu1 %v6622_v55 }
 0x93d   : > { %v7003_v11 = vsel %vm2700_vm2, %v6550_v6, 0  ;;  %28615 = vmatpush3.msra.mxu0 %v31413_v30  ;;  %28616 = vmatprep.mubr.msk.f32.mxu0 %vm30751_vm1, %v34088_v7 }
 0x93e   : > { %v7071_v15 = vand.u32 4294901760, %v7003_v11  ;;  %28624 = vmatprep.subr.mxu0 %v34088_v7  ;;  %28640 = vmatpush3.msra.mxu1 %v31422_v33 }
 0x93f   : > { %28641 = vmatprep.mubr.msk.f32.mxu1 %vm30751_vm1, %v34088_v7  ;;  %28649 = vmatprep.subr.mxu1 %v34088_v7 }
 0x940   : > { %v7072_v16 = vsub.f32 %v7003_v11, %v7071_v15  ;;  %28617 = vmatmul.mubr.f32.vlgmr.msra.gmra.mxu0 %v6623_v58  ;;  %28642 = vmatmul.mubr.f32.vlgmr.msra.gmra.mxu1 %v7071_v15 }
 0x941   : > { %28625 = vmatpush3.msra.mxu0 %v31418_v31  ;;  %28626 = vmatprep.mubr.msk.f32.mxu0 %vm30751_vm1, %v34088_v7 }
 0x942   : > { %28634 = vmatprep.subr.mxu0 %v34088_v7  ;;  %28650 = vmatpush3.msra.mxu1 %v31410_v29  ;;  %v7073_v17 = vand.u32 4294901760, %v7072_v16 }
 0x943   : > { %28651 = vmatprep.mubr.msk.f32.mxu1 %vm30751_vm1, %v34088_v7  ;;  %28659 = vmatprep.subr.mxu1 %v34088_v7 }
 0x944   : > { %28627 = vmatmul.mubr.f32.vlgmr.msra.gmra.mxu0 %v6622_v55  ;;  %28652 = vmatmul.mubr.f32.vlgmr.msra.gmra.mxu1 %v7073_v17  ;;  %v7074_v33 = vsub.f32 %v7072_v16, %v7073_v17 }
 0x945   : > { %28635 = vmatpush3.msra.mxu0 %v31410_v29  ;;  %28636 = vmatprep.mubr.msk.f32.mxu0 %vm30751_vm1, %v34088_v7 }
 0x946   : > { %28644 = vmatprep.subr.mxu0 %v34088_v7  ;;  %28660 = vmatpush3.msra.mxu1 %v31410_v29  ;;  %v7075_v18 = vand.u32 4294901760, %v7074_v33  ;;  %v29151_v29 = vld [vmem:[#allocation17 + $0x18] sm:$0xff]  }
 0x947   : > { %28661 = vmatprep.mubr.msk.f32.mxu1 %vm30751_vm1, %v34088_v7  ;;  %28676 = vmatprep.subr.mxu1 %v34088_v7 }
 0x948   : > { %28637 = vmatmul.mubr.f32.vlgmr.msra.gmra.mxu0 %v7075_v18  ;;  %28662 = vmatmul.mubr.f32.vlgmr.msra.gmra.mxu1 %v7071_v15 }
 0x949   : > { %28645 = vmatpush3.msra.mxu0 %v31413_v30  ;;  %28646 = vmatprep.mubr.msk.f32.mxu0 %vm30751_vm1, %v34088_v7  ;;  %v29152_v30 = vld [vmem:[#allocation17 + $0x10] sm:$0xff]  }
 0x94a   : > { %28654 = vmatprep.subr.mxu0 %v34088_v7  ;;  %28678 = vmatprep.mubr.msk.f32.mxu1 %vm30751_vm1, %v34088_v7 }
 0x94c   : > { %28647 = vmatmul.mubr.f32.vlgmr.msra.gmra.mxu0 %v7072_v16 }
 0x94d   : > { %28655 = vmatpush3.msra.mxu0 %v31418_v31  ;;  %28656 = vmatprep.mubr.msk.f32.mxu0 %vm30751_vm1, %v34088_v7  ;;  %v29154_v31 = vld [vmem:[#allocation17] sm:$0xff]  }
 0x94e   : > { %28664 = vmatprep.subr.bf16.mxu0 %v34088_v7 }
 0x950   : > { %28657 = vmatmul.mubr.f32.vlgmr.msra.gmra.mxu0 %v7071_v15 }
 0x951   : > { %28672 = vmatprep.mubr.msk.bf16.mxu0 %vm30751_vm1, %v34088_v7  ;;  %28665 = vmatpush3.bf16.msra.mxu0 %v29151_v29 }
 0x952   : > { %28666 = vmatprep.subr.bf16.mxu0 %v34088_v7 }
 0x955   : > { %28667 = vmatpush3.bf16.msra.mxu0 %v29152_v30 }
 0x956   : > { %28668 = vmatprep.subr.bf16.mxu0 %v34088_v7 }
 0x959   : > { %28669 = vmatpush3.bf16.msra.mxu0 %v29153_v20  ;;  %v7577_v20 = vld [vmem:[#allocation46] sm:$0xff] }
 0x95a   : > { %28670 = vmatprep.subr.bf16.mxu0 %v34088_v7 }
 0x95d   : > { %28671 = vmatpush3.bf16.msra.mxu0 %v29154_v31  ;;  %v31737_v31 = vand.u32 4294901760, %v7577_v20 }
 0x95e   : > { %28701 = vmatprep.subr.mxu0 %v34088_v7 }
 0x95f   : > { %28677 = vmatpush3.xpose.msra.mxu1 %v31737_v31 }
 0x960   : > { %28681 = vmatprep.subr.mxu1 %v34088_v7 }
 0x9f4   : > { %v6704_v21 = vpop.f32.mrf.mxu1 }
 0x9f6   : > { %v28613_v22 = vpop.f32.mrf.mxu1 }
 0x9f8   : > { %v6852_v24 = vpop.f32.mrf.mxu1 }
 0x9fa   : > { %v28623_v23 = vpop.f32.mrf.mxu1 }
 0x9fc   : > { %v6628_v26 = vpop.f32.mrf.mxu0  ;;  %v6998_v9 = vpop.f32.mrf.mxu1 }
 0x9fd   : > { %v6705_v34 = vadd.f32 %v6704_v21, %v6628_v26 }
 0x9fe   : > { %v28608_v10 = vpop.f32.mrf.mxu0  ;;  %v28633_v27 = vpop.f32.mrf.mxu1 }
 0xa00   : > { %v6778_v28 = vpop.f32.mrf.mxu0  ;;  %v7153_v32 = vpop.f32.mrf.mxu1 }
 0xa01   : > { %v6779_v36 = vadd.f32 %v6778_v28, %v6705_v34  ;;  %v7687_v28 = vsub.f32 %v7577_v20, %v31737_v31 }
 0xa02   : > { %v28618_v8 = vpop.f32.mrf.mxu0  ;;  %v28643_v35 = vpop.f32.mrf.mxu1 }
 0xa03   : > { %v6853_v41 = vadd.f32 %v6852_v24, %v6779_v36  ;;  %v7688_v36 = vand.u32 4294901760, %v7687_v28 }
 0xa04   : > { %v6926_v37 = vpop.f32.mrf.mxu0  ;;  %v7301_v38 = vpop.f32.mrf.mxu1 }
 0xa05   : > { %v6927_v47 = vadd.f32 %v6926_v37, %v6853_v41  ;;  %v7689_v41 = vsub.f32 %v7687_v28, %v7688_v36 }
 0xa06   : > { %v28628_v39 = vpop.f32.mrf.mxu0  ;;  %v28653_v40 = vpop.f32.mrf.mxu1 }
 0xa07   : > { %v6999_v53 = vadd.f32 %v6998_v9, %v6927_v47  ;;  %v7690_v47 = vand.u32 4294901760, %v7689_v41 }
 0xa08   : > { %v7077_v42 = vpop.f32.mrf.mxu0  ;;  %v7447_v44 = vpop.f32.mrf.mxu1 }
 0xa09   : > { %v7154_v48 = vadd.f32 %v7153_v32, %v7077_v42  ;;  %v7451_v58 = vmul.f32 %v6999_v53, %v6999_v53 }
 0xa0a   : > { %v28638_v49 = vpop.f32.mrf.mxu0  ;;  %v28663_v46 = vpop.f32.mrf.mxu1 }
 0xa0c   : > { %v7227_v50 = vpop.f32.mrf.mxu0 }
 0xa0d   : > { %v7228_v51 = vadd.f32 %v7227_v50, %v7154_v48 }
 0xa0e   : > { %v28648_v52 = vpop.f32.mrf.mxu0 }
 0xa0f   : > { %v7302_v54 = vadd.f32 %v7301_v38, %v7228_v51 }
 0xa10   : > { %v7375_v55 = vpop.f32.mrf.mxu0 }
 0xa11   : > { %v7376_v56 = vadd.f32 %v7375_v55, %v7302_v54 }
 0xa12   : > { %v28658_v57 = vpop.f32.mrf.mxu0 }
 0xa13   : > { %v7448_v59 = vadd.f32 %v7447_v44, %v7376_v56 }
 0xa15   : > { %v7452_v60 = vsub.f32 %v7448_v59, %v7451_v58 }
 0xa17   : > { %v7453_v61 = vmax.f32 %v7452_v60, 0.0  ;;  %v7578_v60 = vld [vmem:[#allocation47] sm:$0xff] }
 0xa19   : > { %v7454_v62 = vadd.f32 1e-05, %v7453_v61  ;;  %v31792_v61 = vand.u32 4294901760, %v7578_v60 }
 0xa1b   : > { %29655 = vrsqrt.f32 %v7454_v62  ;;  %v31795_v62 = vsub.f32 %v7578_v60, %v31792_v61 }
 0xa28   : > { %v29656_v0 = vpop.eup %29655 }
 0xa29   : > { %v7457_v2 = vmul.f32 %v29656_v0, %v7456_v63  ;;  %v31800_v63 = vand.u32 4294901760, %v31795_v62 }
 0xa2b   : > { %v7459_v4 = vmul.f32 %v7457_v2, %v6999_v53  ;;  %v7464_v5 = vrot.slane %v7457_v2, %v31326_v13  ;;  %v8584_v0 = vsub.f32 %v31795_v62, %v31800_v63 }
 0xa2d   : > { %v7460_v6 = vsub.f32 %v7458_v3, %v7459_v4  ;;  %v7465_v11 = vmul.f32 %v7464_v5, %v31616_v43  ;;  %v7466_v15 = vmul.f32 %v7464_v5, %v31620_v45  ;;  %v27642_v43 = vld [vmem:[#allocation19] ss:$0 sm:$0xff]  ;;  %v8585_v2 = vand.u32 4294901760, %v8584_v0 }
 0xa2f   : > { %v7471_v16 = vrot.slane %v7460_v6, %v31326_v13 }
 0xa31   : > { %v7473_v17 = vadd.f32 %v7471_v16, %v7465_v11  ;;  %v7474_v33 = vadd.f32 %v7471_v16, %v7466_v15 }
 0xa33   : > { %v7475_v18 = vmax.f32 %v7473_v17, 0.0  ;;  %v7476_v29 = vmax.f32 %v7474_v33, 0.0 }
 0xa35   : > { %v7477_v30 = vpack.c.bf16 %v7476_v29, %v7475_v18 }
 0xa37   : > { %28673 = vmatmul.mubr.msk.bf16.vlgmr.msra.gmra.mxu0 %vm1776_vm0, %v7477_v30 }
 0xa38   : > { %28703 = vmatprep.mubr.msk.f32.mxu0 %vm30751_vm1, %v34088_v7  ;;  %28702 = vmatpush3.xpose.msra.mxu0 %v31737_v31 }
 0xa39   : > { %28711 = vmatprep.subr.mxu0 %v34088_v7 }
 0xaf7   : > { %v7554_v45 = vpop.f32.mrf.mxu0 }
 0xaf8   : > { %v31743_v22 = vadd.f32 %v27642_v43, %v7554_v45 }
 0xaf9   : > { %v28674_v21 = vpop.f32.mrf.mxu0 }
 0xafa   : > { %v7568_v9 = vmul.f32 %v31743_v22, %v31743_v22 }
 0xafb   : > { %v7557_v24 = vpop.f32.mrf.mxu0 }
 0xafc   : > { %v31745_v23 = vadd.f32 %v27642_v43, %v7557_v24 }
 0xafd   : > { %v28675_v26 = vpop.f32.mrf.mxu0 }
 0xafe   : > { %v7561_v10 = vadd.f32 %v31745_v23, %v31743_v22  ;;  %v7569_v27 = vmul.f32 %v31745_v23, %v31745_v23 }
 0xb00   : > { %v7562_v32 = vrot.slane %v7561_v10, 4  ;;  %v7570_v34 = vadd.f32 %v7569_v27, %v7568_v9 }
 0xb02   : > { %v7563_v8 = vadd.f32 %v7562_v32, %v7561_v10  ;;  %v7571_v35 = vrot.slane %v7570_v34, 4 }
 0xb04   : > { %v7564_v37 = vrot.slane %v7563_v8, 2  ;;  %v7572_v38 = vadd.f32 %v7571_v35, %v7570_v34 }
 0xb06   : > { %v7565_v39 = vadd.f32 %v7564_v37, %v7563_v8  ;;  %v7573_v40 = vrot.slane %v7572_v38, 2 }
 0xb08   : > { %v7566_v42 = vrot.slane %v7565_v39, 1  ;;  %v7574_v44 = vadd.f32 %v7573_v40, %v7572_v38 }
 0xb0a   : > { %v7567_v49 = vadd.f32 %v7566_v42, %v7565_v39  ;;  %v7575_v46 = vrot.slane %v7574_v44, 1 }
 0xb0c   : > { %v7645_v48 = vand.u32 4294901760, %v7567_v49  ;;  %v7576_v50 = vadd.f32 %v7575_v46, %v7574_v44 }
 0xb0e   : > { %v7646_v51 = vsub.f32 %v7567_v49, %v7645_v48  ;;  %28704 = vmatmul.mubr.f32.vlgmr.msra.gmra.mxu0 %v7645_v48  ;;  %v8091_v52 = vand.u32 4294901760, %v7576_v50 }
 0xb0f   : > { %28712 = vmatpush3.xpose.msra.mxu0 %v7690_v47  ;;  %28713 = vmatprep.mubr.msk.f32.mxu0 %vm30751_vm1, %v34088_v7 }
 0xb10   : > { %v8092_v53 = vsub.f32 %v7576_v50, %v8091_v52  ;;  %28721 = vmatprep.subr.mxu0 %v34088_v7  ;;  %v7647_v54 = vand.u32 4294901760, %v7646_v51 }
 0xb12   : > { %28714 = vmatmul.mubr.f32.vlgmr.msra.gmra.mxu0 %v8091_v52  ;;  %v7648_v55 = vsub.f32 %v7646_v51, %v7647_v54  ;;  %v8093_v57 = vand.u32 4294901760, %v8092_v53 }
 0xb13   : > { %28722 = vmatpush3.xpose.msra.mxu0 %v31737_v31  ;;  %28723 = vmatprep.mubr.msk.f32.mxu0 %vm30751_vm1, %v34088_v7 }
 0xb14   : > { %v7649_v56 = vand.u32 4294901760, %v7648_v55  ;;  %28731 = vmatprep.subr.mxu0 %v34088_v7  ;;  %v8094_v58 = vsub.f32 %v8092_v53, %v8093_v57 }
 0xb16   : > { %28679 = vmatmul.mubr.f32.vlgmr.msra.gmra.mxu1 %v7649_v56  ;;  %28724 = vmatmul.mubr.f32.vlgmr.msra.gmra.mxu0 %v8093_v57  ;;  %v8095_v59 = vand.u32 4294901760, %v8094_v58  ;;  %v9452_v57 = vld [vmem:[#allocation23 + $0x1c0] sm:$0xff] }
 0xb17   : > { %28682 = vmatpush3.xpose.msra.mxu1 %v7690_v47  ;;  %28732 = vmatpush3.xpose.msra.mxu0 %v31737_v31  ;;  %v9456_v58 = vld [vmem:[#allocation23 + $0x1e0] sm:$0xff] }
 0xb18   : > { %28683 = vmatprep.mubr.msk.f32.mxu1 %vm30751_vm1, %v34088_v7  ;;  %28686 = vmatprep.subr.mxu1 %v34088_v7  ;;  %v27705_v60 = vcombine.high %v9452_v57, %v9456_v58 }
 0xb19   : > { %28733 = vmatprep.mubr.msk.f32.mxu0 %vm30751_vm1, %v34088_v7  ;;  %28741 = vmatprep.subr.mxu0 %v34088_v7 }
 0xb1a   : > { %28684 = vmatmul.mubr.f32.vlgmr.msra.gmra.mxu1 %v7645_v48  ;;  %28734 = vmatmul.mubr.f32.vlgmr.msra.gmra.mxu0 %v8091_v52 }
 0xb1b   : > { %28687 = vmatpush3.xpose.msra.mxu1 %v7687_v28  ;;  %28688 = vmatprep.mubr.msk.f32.mxu1 %vm30751_vm1, %v34088_v7 }
 0xb1c   : > { %28691 = vmatprep.subr.mxu1 %v34088_v7  ;;  %28743 = vmatprep.mubr.msk.f32.mxu0 %vm30751_vm1, %v34088_v7 }
 0xb1d   : > { %28742 = vmatpush3.msra.mxu0 %v8585_v2 }
 0xb1e   : > { %28689 = vmatmul.mubr.f32.vlgmr.msra.gmra.mxu1 %v7646_v51  ;;  %28751 = vmatprep.subr.mxu0 %v34088_v7 }
 0xb1f   : > { %28692 = vmatpush3.xpose.msra.mxu1 %v31737_v31  ;;  %28693 = vmatprep.mubr.msk.f32.mxu1 %vm30751_vm1, %v34088_v7 }
 0xb20   : > { %28696 = vmatprep.subr.mxu1 %v34088_v7 }
 0xb22   : > { %28694 = vmatmul.mubr.f32.vlgmr.msra.gmra.mxu1 %v7647_v54 }
 0xb23   : > { %28697 = vmatpush3.xpose.msra.mxu1 %v7688_v36  ;;  %28698 = vmatprep.mubr.msk.f32.mxu1 %vm30751_vm1, %v34088_v7 }
 0xb24   : > { %28706 = vmatprep.subr.mxu1 %v34088_v7 }
 0xb26   : > { %28699 = vmatmul.mubr.f32.vlgmr.msra.gmra.mxu1 %v7645_v48 }
 0xb27   : > { %28707 = vmatpush3.xpose.msra.mxu1 %v31737_v31  ;;  %28708 = vmatprep.mubr.msk.f32.mxu1 %vm30751_vm1, %v34088_v7 }
 0xb28   : > { %28716 = vmatprep.subr.mxu1 %v34088_v7 }
 0xb2a   : > { %28709 = vmatmul.mubr.f32.vlgmr.msra.gmra.mxu1 %v8095_v59  ;;  %v9453_v59 = vld [vmem:[#allocation23 + $0x1c8] sm:$0xff] }
 0xb2b   : > { %28717 = vmatpush3.xpose.msra.mxu1 %v7687_v28  ;;  %28718 = vmatprep.mubr.msk.f32.mxu1 %vm30751_vm1, %v34088_v7 }
 0xb2c   : > { %28726 = vmatprep.subr.mxu1 %v34088_v7 }
 0xb2e   : > { %28719 = vmatmul.mubr.f32.vlgmr.msra.gmra.mxu1 %v8092_v53 }
 0xb2f   : > { %28727 = vmatpush3.xpose.msra.mxu1 %v7688_v36  ;;  %28728 = vmatprep.mubr.msk.f32.mxu1 %vm30751_vm1, %v34088_v7 }
 0xb30   : > { %28736 = vmatprep.subr.mxu1 %v34088_v7 }
 0xb32   : > { %28729 = vmatmul.mubr.f32.vlgmr.msra.gmra.mxu1 %v8091_v52 }
 0xb33   : > { %28738 = vmatprep.mubr.msk.f32.mxu1 %vm30751_vm1, %v34088_v7  ;;  %28737 = vmatpush3.msra.mxu1 %v31792_v61 }
 0xb34   : > { %28746 = vmatprep.subr.mxu1 %v34088_v7 }
 0xbce   : > { %v8021_v3 = vpop.f32.mrf.mxu0 }
 0xbd0   : > { %v28705_v4 = vpop.f32.mrf.mxu0 }
 0xbd1   : > { %v9448_v4 = vld [vmem:[#allocation23 + $0x1a0] sm:$0xff] }
 0xbd2   : > { %v8173_v5 = vpop.f32.mrf.mxu0 }
 0xbd4   : > { %v28715_v6 = vpop.f32.mrf.mxu0 }
 0xbd5   : > { %v9449_v6 = vld [vmem:[#allocation23 + $0x1a8] sm:$0xff] }
 0xbd6   : > { %v7651_v11 = vpop.f32.mrf.mxu1  ;;  %v8321_v15 = vpop.f32.mrf.mxu0 }
 0xbd8   : > { %v28680_v16 = vpop.f32.mrf.mxu1  ;;  %v28725_v17 = vpop.f32.mrf.mxu0 }
 0xbd9   : > { %v9436_v17 = vld [vmem:[#allocation23 + $0x140] sm:$0xff] }
 0xbda   : > { %v7727_v33 = vpop.f32.mrf.mxu1  ;;  %v8467_v18 = vpop.f32.mrf.mxu0 }
 0xbdb   : > { %v7728_v43 = vadd.f32 %v7727_v33, %v7651_v11  ;;  %v9440_v33 = vld [vmem:[#allocation23 + $0x160] sm:$0xff] }
 0xbdc   : > { %v28685_v29 = vpop.f32.mrf.mxu1  ;;  %v28735_v30 = vpop.f32.mrf.mxu0 }
 0xbdd   : > { %v27688_v29 = vcombine.low %v9436_v17, %v9440_v33  ;;  %v27689_v30 = vcombine.high %v9436_v17, %v9440_v33 }
 0xbde   : > { %v7801_v20 = vpop.f32.mrf.mxu1 }
 0xbdf   : > { %v7802_v21 = vadd.f32 %v7801_v20, %v7728_v43  ;;  %v9441_v20 = vld [vmem:[#allocation23 + $0x168] sm:$0xff]  ;;  %v9432_v43 = vld [vmem:[#allocation23 + $0x120] sm:$0xff] }
 0xbe0   : > { %v28690_v31 = vpop.f32.mrf.mxu1 }
 0xbe1   : > { %v9428_v31 = vld [vmem:[#allocation23 + $0x100] sm:$0xff] }
 0xbe2   : > { %v7875_v45 = vpop.f32.mrf.mxu1 }
 0xbe3   : > { %v7876_v26 = vadd.f32 %v7875_v45, %v7802_v21 }
 0xbe4   : > { %v28695_v24 = vpop.f32.mrf.mxu1 }
 0xbe5   : > { %v27681_v24 = vcombine.high %v9428_v31, %v9432_v43 }
 0xbe6   : > { %v7949_v9 = vpop.f32.mrf.mxu1 }
 0xbe7   : > { %v7950_v10 = vadd.f32 %v7949_v9, %v7876_v26  ;;  %v9429_v26 = vld [vmem:[#allocation23 + $0x108] sm:$0xff] }
 0xbe8   : > { %v28700_v27 = vpop.f32.mrf.mxu1  ;;  %v9433_v9 = vld [vmem:[#allocation23 + $0x128] sm:$0xff] }
 0xbe9   : > { %v8022_v28 = vadd.f32 %v8021_v3, %v7950_v10  ;;  %v9444_v3 = vld [vmem:[#allocation23 + $0x180] sm:$0xff]  ;;  %v27683_v27 = vcombine.high %v9429_v26, %v9433_v9 }
 0xbea   : > { %v8097_v32 = vpop.f32.mrf.mxu1  ;;  %v27696_v11 = vcombine.low %v9444_v3, %v9448_v4  ;;  %v9420_v10 = vld [vmem:[#allocation23 + $0xc0] sm:$0xff] }
 0xbeb   : > { %v8472_v34 = vsel %vm2700_vm2, %v8022_v28, 0  ;;  %v8174_v36 = vadd.f32 %v8173_v5, %v8097_v32  ;;  %v27697_v5 = vcombine.high %v9444_v3, %v9448_v4  ;;  %v9424_v28 = vld [vmem:[#allocation23 + $0xe0] sm:$0xff]  ;;  %v9421_v32 = vld [vmem:[#allocation23 + $0xc8] sm:$0xff] }
 0xbec   : > { %v8540_v8 = vand.u32 4294901760, %v8472_v34  ;;  %v28710_v35 = vpop.f32.mrf.mxu1  ;;  %v9401_v3 = vld [vmem:[#allocation23 + $0x28] sm:$0xff] }
 0xbed   : > { %v27682_v35 = vcombine.low %v9429_v26, %v9433_v9 }
 0xbee   : > { %v8541_v37 = vsub.f32 %v8472_v34, %v8540_v8  ;;  %v8247_v38 = vpop.f32.mrf.mxu1  ;;  %28744 = vmatmul.mubr.f32.vlgmr.msra.gmra.mxu0 %v8540_v8  ;;  %v9425_v34 = vld [vmem:[#allocation23 + $0xe8] sm:$0xff] }
 0xbef   : > { %v8248_v39 = vadd.f32 %v8247_v38, %v8174_v36  ;;  %28752 = vmatpush3.msra.mxu0 %v31792_v61  ;;  %28753 = vmatprep.mubr.msk.f32.mxu0 %vm30751_vm1, %v34088_v7  ;;  %v27673_v36 = vcombine.high %v9420_v10, %v9424_v28  ;;  %v9412_v38 = vld [vmem:[#allocation23 + $0x80] sm:$0xff] }
 0xbf0   : > { %v28720_v40 = vpop.f32.mrf.mxu1  ;;  %v8542_v41 = vand.u32 4294901760, %v8541_v37  ;;  %28761 = vmatprep.subr.mxu0 %v34088_v7 }
 0xbf1   : > { %v8322_v42 = vadd.f32 %v8321_v15, %v8248_v39  ;;  %v9416_v39 = vld [vmem:[#allocation23 + $0xa0] sm:$0xff]  ;;  %v9413_v40 = vld [vmem:[#allocation23 + $0x88] sm:$0xff] }
 0xbf2   : > { %v8395_v44 = vpop.f32.mrf.mxu1  ;;  %28754 = vmatmul.mubr.f32.vlgmr.msra.gmra.mxu0 %v8542_v41  ;;  %v8543_v49 = vsub.f32 %v8541_v37, %v8542_v41  ;;  %v9417_v41 = vld [vmem:[#allocation23 + $0xa8] sm:$0xff] }
 0xbf3   : > { %v8396_v46 = vadd.f32 %v8395_v44, %v8322_v42  ;;  %28762 = vmatpush3.msra.mxu0 %v31792_v61  ;;  %28763 = vmatprep.mubr.msk.f32.mxu0 %vm30751_vm1, %v34088_v7  ;;  %v27672_v42 = vcombine.low %v9420_v10, %v9424_v28  ;;  %v31846_v44 = vld [vmem:[#allocation23 + $0x1d0] sm:$0xff] }
 0xbf4   : > { %v28730_v47 = vpop.f32.mrf.mxu1  ;;  %v8544_v48 = vand.u32 4294901760, %v8543_v49  ;;  %28771 = vmatprep.subr.mxu0 %v34088_v7  ;;  %v31848_v49 = vld [vmem:[#allocation23 + $0x1f0] sm:$0xff] }
 0xbf5   : > { %v8468_v50 = vadd.f32 %v8467_v18, %v8396_v46  ;;  %v9437_v18 = vld [vmem:[#allocation23 + $0x148] sm:$0xff]  ;;  %v31850_v46 = vld [vmem:[#allocation23 + $0x1d8] sm:$0xff]  ;;  %v27674_v47 = vcombine.low %v9421_v32, %v9425_v34 }
 0xbf6   : > { %28739 = vmatmul.mubr.f32.vlgmr.msra.gmra.mxu1 %v8544_v48  ;;  %28764 = vmatmul.mubr.f32.vlgmr.msra.gmra.mxu0 %v8540_v8  ;;  %v27690_v45 = vcombine.low %v9437_v18, %v9441_v20  ;;  %v27691_v21 = vcombine.high %v9437_v18, %v9441_v20  ;;  %v27665_v48 = vcombine.high %v9412_v38, %v9416_v39 }
 0xbf7   : > { %v8921_v51 = vsel %vm2700_vm2, %v8468_v50, 0  ;;  %28747 = vmatpush3.msra.mxu1 %v31795_v62  ;;  %28748 = vmatprep.mubr.msk.f32.mxu1 %vm30751_vm1, %v34088_v7  ;;  %v27708_v50 = vcombine.low %v31846_v44, %v31848_v49 }
 0xbf8   : > { %v8989_v52 = vand.u32 4294901760, %v8921_v51  ;;  %28756 = vmatprep.subr.mxu1 %v34088_v7  ;;  %28772 = vmatpush3.msra.mxu0 %v8585_v2 }
 0xbf9   : > { %28773 = vmatprep.mubr.msk.f32.mxu0 %vm30751_vm1, %v34088_v7  ;;  %28781 = vmatprep.subr.mxu0 %v34088_v7 }
 0xbfa   : > { %v8990_v53 = vsub.f32 %v8921_v51, %v8989_v52  ;;  %28749 = vmatmul.mubr.f32.vlgmr.msra.gmra.mxu1 %v8541_v37  ;;  %28774 = vmatmul.mubr.f32.vlgmr.msra.gmra.mxu0 %v8989_v52  ;;  %v27675_v37 = vcombine.high %v9421_v32, %v9425_v34  ;;  %v31854_v51 = vld [vmem:[#allocation23 + $0x1f8] sm:$0xff] }
 0xbfb   : > { %28757 = vmatpush3.msra.mxu1 %v31800_v63  ;;  %28758 = vmatprep.mubr.msk.f32.mxu1 %vm30751_vm1, %v34088_v7  ;;  %v27711_v17 = vcombine.high %v31850_v46, %v31854_v51 }
 0xbfc   : > { %28766 = vmatprep.subr.mxu1 %v34088_v7  ;;  %28782 = vmatpush3.msra.mxu0 %v31792_v61  ;;  %v8991_v54 = vand.u32 4294901760, %v8990_v53 }
 0xbfd   : > { %28783 = vmatprep.mubr.msk.f32.mxu0 %vm30751_vm1, %v34088_v7  ;;  %28791 = vmatprep.subr.mxu0 %v34088_v7 }
 0xbfe   : > { %28759 = vmatmul.mubr.f32.vlgmr.msra.gmra.mxu1 %v8540_v8  ;;  %28784 = vmatmul.mubr.f32.vlgmr.msra.gmra.mxu0 %v8991_v54  ;;  %v8992_v55 = vsub.f32 %v8990_v53, %v8991_v54  ;;  %v27680_v8 = vcombine.low %v9428_v31, %v9432_v43  ;;  %v9408_v54 = vld [vmem:[#allocation23 + $0x60] sm:$0xff] }
 0xbff   : > { %28767 = vmatpush3.msra.mxu1 %v31792_v61  ;;  %28768 = vmatprep.mubr.msk.f32.mxu1 %vm30751_vm1, %v34088_v7 }
 0xc00   : > { %28776 = vmatprep.subr.mxu1 %v34088_v7  ;;  %28792 = vmatpush3.msra.mxu0 %v31792_v61  ;;  %v8993_v56 = vand.u32 4294901760, %v8992_v55  ;;  %v9457_v61 = vld [vmem:[#allocation23 + $0x1e8] sm:$0xff]  ;;  %v27710_v55 = vcombine.low %v31850_v46, %v31854_v51  ;;  %v9422_v51 = vld [vmem:[#allocation23 + $0xd0] sm:$0xff] }
 0xc01   : > { %28793 = vmatprep.mubr.msk.f32.mxu0 %vm30751_vm1, %v34088_v7  ;;  %v27706_v0 = vcombine.low %v9453_v59, %v9457_v61  ;;  %v27707_v2 = vcombine.high %v9453_v59, %v9457_v61  ;;  %v27666_v59 = vcombine.low %v9413_v40, %v9417_v41 }
 0xc02   : > { %28769 = vmatmul.mubr.f32.vlgmr.msra.gmra.mxu1 %v8993_v56  ;;  %28794 = vmatmul.mubr.f32.vlgmr.msra.gmra.mxu0 %v8989_v52  ;;  %v9405_v56 = vld [vmem:[#allocation23 + $0x48] sm:$0xff] }
 0xc03   : > { %28777 = vmatpush3.msra.mxu1 %v31795_v62  ;;  %28778 = vmatprep.mubr.msk.f32.mxu1 %vm30751_vm1, %v34088_v7  ;;  %v27704_v62 = vcombine.low %v9452_v57, %v9456_v58  ;;  %v9409_v57 = vld [vmem:[#allocation23 + $0x68] sm:$0xff]  ;;  %v27664_v58 = vcombine.low %v9412_v38, %v9416_v39 }
 0xc04   : > { %28786 = vmatprep.subr.mxu1 %v34088_v7  ;;  %9897 = vmatprep.mubr.bf16.mxu0 %v30747_v1  ;;  %v27659_v61 = vcombine.high %v9405_v56, %v9409_v57 }
 0xc05   : > { %9865 = vmatprep.subr.bf16.mxu0 %v27707_v2  ;;  %v9397_v2 = vld [vmem:[#allocation23 + $0x8] sm:$0xff] }
 0xc06   : > { %28779 = vmatmul.mubr.f32.vlgmr.msra.gmra.mxu1 %v8990_v53  ;;  %9866 = vmatpush1.bf16.msra.mxu0 %v27706_v0  ;;  %v9404_v53 = vld [vmem:[#allocation23 + $0x40] sm:$0xff] }
 0xc07   : > { %28787 = vmatpush3.msra.mxu1 %v31800_v63  ;;  %28788 = vmatprep.mubr.msk.f32.mxu1 %vm30751_vm1, %v34088_v7  ;;  %v9445_v63 = vld [vmem:[#allocation23 + $0x188] sm:$0xff]  ;;  %v9400_v0 = vld [vmem:[#allocation23 + $0x20] sm:$0xff]  ;;  %v27656_v4 = vcombine.low %v9404_v53, %v9408_v54 }
 0xc08   : > { %9822 = vmatprep.subr.bf16.mxu1 %v27705_v60  ;;  %v27698_v15 = vcombine.low %v9445_v63, %v9449_v6  ;;  %v27699_v16 = vcombine.high %v9445_v63, %v9449_v6  ;;  %v27657_v60 = vcombine.high %v9404_v53, %v9408_v54  ;;  %v27658_v63 = vcombine.low %v9405_v56, %v9409_v57 }
 0xc09   : > { %v27651_v6 = vcombine.high %v9397_v2, %v9401_v3 }
 0xc0a   : > { %28789 = vmatmul.mubr.f32.vlgmr.msra.gmra.mxu1 %v8989_v52  ;;  %9867 = vmatprep.subr.bf16.mxu0 %v27699_v16  ;;  %v27667_v52 = vcombine.high %v9413_v40, %v9417_v41  ;;  %v27709_v16 = vcombine.high %v31846_v44, %v31848_v49 }
 0xc0b   : > { %9854 = vmatprep.mubr.bf16.mxu1 %v30747_v1  ;;  %9823 = vmatpush1.bf16.msra.mxu1 %v27704_v62  ;;  %v9396_v62 = vld [vmem:[#allocation23] sm:$0xff] }
 0xc0c   : > { %9824 = vmatprep.subr.bf16.mxu1 %v27697_v5  ;;  %9868 = vmatpush1.bf16.msra.mxu0 %v27698_v15  ;;  %v27649_v5 = vcombine.high %v9396_v62, %v9400_v0  ;;  %v27650_v15 = vcombine.low %v9397_v2, %v9401_v3 }
 0xc0d   : > { %9869 = vmatprep.subr.bf16.mxu0 %v27691_v21 }
 0xc0f   : > { %9825 = vmatpush1.bf16.msra.mxu1 %v27696_v11  ;;  %v27648_v11 = vcombine.low %v9396_v62, %v9400_v0  ;;  %v9374_v0 = vld [vmem:[#allocation20] sm:$0x1] }
 0xc10   : > { %9826 = vmatprep.subr.bf16.mxu1 %v27689_v30  ;;  %9870 = vmatpush1.bf16.msra.mxu0 %v27690_v45 }
 0xc11   : > { %9871 = vmatprep.subr.bf16.mxu0 %v27683_v27 }
 0xc13   : > { %9827 = vmatpush1.bf16.msra.mxu1 %v27688_v29 }
 0xc14   : > { %9828 = vmatprep.subr.bf16.mxu1 %v27681_v24  ;;  %9872 = vmatpush1.bf16.msra.mxu0 %v27682_v35 }
 0xc15   : > { %9873 = vmatprep.subr.bf16.mxu0 %v27675_v37 }
 0xc17   : > { %9829 = vmatpush1.bf16.msra.mxu1 %v27680_v8 }
 0xc18   : > { %9830 = vmatprep.subr.bf16.mxu1 %v27673_v36  ;;  %9874 = vmatpush1.bf16.msra.mxu0 %v27674_v47 }
 0xc19   : > { %9875 = vmatprep.subr.bf16.mxu0 %v27667_v52 }
 0xc1b   : > { %9831 = vmatpush1.bf16.msra.mxu1 %v27672_v42 }
 0xc1c   : > { %9832 = vmatprep.subr.bf16.mxu1 %v27665_v48  ;;  %9876 = vmatpush1.bf16.msra.mxu0 %v27666_v59 }
 0xc1d   : > { %9877 = vmatprep.subr.bf16.mxu0 %v27659_v61 }
 0xc1f   : > { %9833 = vmatpush1.bf16.msra.mxu1 %v27664_v58 }
 0xc20   : > { %9834 = vmatprep.subr.bf16.mxu1 %v27657_v60  ;;  %9878 = vmatpush1.bf16.msra.mxu0 %v27658_v63 }
 0xc21   : > { %9879 = vmatprep.subr.bf16.mxu0 %v27651_v6 }
 0xc23   : > { %9835 = vmatpush1.bf16.msra.mxu1 %v27656_v4  ;;  %v9376_v4 = vld [vmem:[#allocation22] sm:$0x1] }
 0xc24   : > { %9836 = vmatprep.subr.bf16.mxu1 %v27649_v5  ;;  %9880 = vmatpush1.bf16.msra.mxu0 %v27650_v15 }
 0xc25   : > { %9951 = vmatprep.subr.bf16.mxu0 %v27711_v17 }
 0xc27   : > { %9837 = vmatpush1.bf16.msra.mxu1 %v27648_v11 }
 0xc28   : > { %9908 = vmatprep.subr.bf16.mxu1 %v27709_v16 }
 0xcae   : > { %v8622_v33 = vpop.f32.mrf.mxu0 }
 0xcb0   : > { %v28745_v18 = vpop.f32.mrf.mxu0 }
 0xcb1   : > { %v9446_v18 = vld [vmem:[#allocation23 + $0x190] sm:$0xff] }
 0xcb2   : > { %v8770_v29 = vpop.f32.mrf.mxu0 }
 0xcb4   : > { %v28755_v30 = vpop.f32.mrf.mxu0 }
 0xcb5   : > { %v9447_v30 = vld [vmem:[#allocation23 + $0x198] sm:$0xff] }
 0xcb6   : > { %v8546_v20 = vpop.f32.mrf.mxu1  ;;  %v8916_v31 = vpop.f32.mrf.mxu0 }
 0xcb7   : > { %v8623_v26 = vadd.f32 %v8622_v33, %v8546_v20  ;;  %v9451_v20 = vld [vmem:[#allocation23 + $0x1b8] sm:$0xff] }
 0xcb8   : > { %v28740_v43 = vpop.f32.mrf.mxu1  ;;  %v28765_v45 = vpop.f32.mrf.mxu0 }
 0xcba   : > { %v8696_v21 = vpop.f32.mrf.mxu1  ;;  %v9071_v24 = vpop.f32.mrf.mxu0 }
 0xcbb   : > { %v8697_v27 = vadd.f32 %v8696_v21, %v8623_v26  ;;  %v9438_v26 = vld [vmem:[#allocation23 + $0x150] sm:$0xff] }
 0xcbc   : > { %v28750_v9 = vpop.f32.mrf.mxu1  ;;  %v28775_v10 = vpop.f32.mrf.mxu0 }
 0xcbd   : > { %v8771_v35 = vadd.f32 %v8770_v29, %v8697_v27  ;;  %v9450_v29 = vld [vmem:[#allocation23 + $0x1b0] sm:$0xff]  ;;  %v9439_v10 = vld [vmem:[#allocation23 + $0x158] sm:$0xff]  ;;  %v27702_v27 = vcombine.low %v9447_v30, %v9451_v20 }
 0xcbe   : > { %v8844_v28 = vpop.f32.mrf.mxu1  ;;  %v9219_v32 = vpop.f32.mrf.mxu0  ;;  %v27701_v21 = vcombine.high %v9446_v18, %v9450_v29  ;;  %v9442_v9 = vld [vmem:[#allocation23 + $0x170] sm:$0xff] }
 0xcbf   : > { %v8845_v40 = vadd.f32 %v8844_v28, %v8771_v35  ;;  %v27693_v28 = vcombine.high %v9438_v26, %v9442_v9  ;;  %v9431_v35 = vld [vmem:[#allocation23 + $0x118] sm:$0xff]  ;;  %v27692_v44 = vcombine.low %v9438_v26, %v9442_v9  ;;  %v10122_v9 = vld [vmem:[#allocation49] sm:$0xff] }
 0xcc0   : > { %v28760_v34 = vpop.f32.mrf.mxu1  ;;  %v28785_v8 = vpop.f32.mrf.mxu0 }
 0xcc1   : > { %v8917_v52 = vadd.f32 %v8916_v31, %v8845_v40  ;;  %v9430_v34 = vld [vmem:[#allocation23 + $0x110] sm:$0xff] }
 0xcc2   : > { %v8995_v36 = vpop.f32.mrf.mxu1  ;;  %v9365_v37 = vpop.f32.mrf.mxu0  ;;  %v9434_v8 = vld [vmem:[#allocation23 + $0x130] sm:$0xff] }
 0xcc3   : > { %v9072_v41 = vadd.f32 %v9071_v24, %v8995_v36  ;;  %v9369_v58 = vmul.f32 %v8917_v52, %v8917_v52  ;;  %v27703_v24 = vcombine.high %v9447_v30, %v9451_v20  ;;  %v9435_v36 = vld [vmem:[#allocation23 + $0x138] sm:$0xff]  ;;  %v27685_v46 = vcombine.high %v9430_v34, %v9434_v8  ;;  %v10130_v20 = vld [vmem:[#allocation49 + $0x40] sm:$0xff] }
 0xcc4   : > { %v28770_v38 = vpop.f32.mrf.mxu1  ;;  %v28795_v39 = vpop.f32.mrf.mxu0  ;;  %v27686_v40 = vcombine.low %v9431_v35, %v9435_v36 }
 0xcc5   : > { %v9427_v38 = vld [vmem:[#allocation23 + $0xf8] sm:$0xff]  ;;  %v27684_v39 = vcombine.low %v9430_v34, %v9434_v8 }
 0xcc6   : > { %v9145_v42 = vpop.f32.mrf.mxu1 }
 0xcc7   : > { %v9146_v47 = vadd.f32 %v9145_v42, %v9072_v41  ;;  %v9414_v42 = vld [vmem:[#allocation23 + $0x90] sm:$0xff] }
 0xcc8   : > { %v28780_v48 = vpop.f32.mrf.mxu1 }
 0xcc9   : > { %v9220_v53 = vadd.f32 %v9219_v32, %v9146_v47  ;;  %v9418_v47 = vld [vmem:[#allocation23 + $0xb0] sm:$0xff]  ;;  %v9415_v48 = vld [vmem:[#allocation23 + $0x98] sm:$0xff] }
 0xcca   : > { %v9293_v54 = vpop.f32.mrf.mxu1 }
 0xccb   : > { %v9294_v56 = vadd.f32 %v9293_v54, %v9220_v53 }
 0xccc   : > { %v28790_v57 = vpop.f32.mrf.mxu1 }
 0xccd   : > { %v9366_v59 = vadd.f32 %v9365_v37, %v9294_v56  ;;  %v9423_v37 = vld [vmem:[#allocation23 + $0xd8] sm:$0xff]  ;;  %v27669_v56 = vcombine.high %v9414_v42, %v9418_v47 }
 0xcce   : > { %v27678_v54 = vcombine.low %v9423_v37, %v9427_v38 }
 0xccf   : > { %v9370_v60 = vsub.f32 %v9366_v59, %v9369_v58  ;;  %v9406_v58 = vld [vmem:[#allocation23 + $0x50] sm:$0xff] }
 0xcd0   : > { %v9410_v59 = vld [vmem:[#allocation23 + $0x70] sm:$0xff] }
 0xcd1   : > { %v9371_v61 = vmax.f32 %v9370_v60, 0.0  ;;  %v9407_v60 = vld [vmem:[#allocation23 + $0x58] sm:$0xff] }
 0xcd3   : > { %v9372_v62 = vadd.f32 1e-05, %v9371_v61  ;;  %v9411_v61 = vld [vmem:[#allocation23 + $0x78] sm:$0xff] }
 0xcd5   : > { %29657 = vrsqrt.f32 %v9372_v62  ;;  %v27668_v62 = vcombine.low %v9414_v42, %v9418_v47 }
 0xce2   : > { %v29658_v2 = vpop.eup %29657 }
 0xce3   : > { %v9375_v3 = vmul.f32 %v29658_v2, %v9374_v0  ;;  %v27661_v2 = vcombine.high %v9406_v58, %v9410_v59 }
 0xce5   : > { %v9377_v63 = vmul.f32 %v9375_v3, %v8917_v52  ;;  %v9382_v5 = vrot.slane %v9375_v3, %v31326_v13  ;;  %v9419_v52 = vld [vmem:[#allocation23 + $0xb8] sm:$0xff]  ;;  %v27663_v3 = vcombine.high %v9407_v60, %v9411_v61 }
 0xce6   : > { %v27671_v57 = vcombine.high %v9415_v48, %v9419_v52  ;;  %v27670_v0 = vcombine.low %v9415_v48, %v9419_v52 }
 0xce7   : > { %v9378_v6 = vsub.f32 %v9376_v4, %v9377_v63  ;;  %v9383_v11 = vmul.f32 %v9382_v5, %v31743_v22  ;;  %v9384_v15 = vmul.f32 %v9382_v5, %v31745_v23  ;;  %v9443_v22 = vld [vmem:[#allocation23 + $0x178] sm:$0xff]  ;;  %v27700_v23 = vcombine.low %v9446_v18, %v9450_v29  ;;  %v9398_v4 = vld [vmem:[#allocation23 + $0x10] sm:$0xff] }
 0xce8   : > { %v27695_v32 = vcombine.high %v9439_v10, %v9443_v22  ;;  %v27694_v49 = vcombine.low %v9439_v10, %v9443_v22  ;;  %v9402_v63 = vld [vmem:[#allocation23 + $0x30] sm:$0xff]  ;;  %v9399_v5 = vld [vmem:[#allocation23 + $0x18] sm:$0xff]  ;;  %v31900_v22 = vand.u32 4294901760, %v10122_v9 }
 0xce9   : > { %v9389_v16 = vrot.slane %v9378_v6, %v31326_v13  ;;  %v9403_v6 = vld [vmem:[#allocation23 + $0x38] sm:$0xff]  ;;  %v10131_v29 = vld [vmem:[#allocation49 + $0x48] sm:$0xff] }
 0xcea   : > { %v27654_v18 = vcombine.low %v9399_v5, %v9403_v6  ;;  %v31880_v30 = vand.u32 4294901760, %v10131_v29 }
 0xceb   : > { %v9391_v17 = vadd.f32 %v9389_v16, %v9383_v11  ;;  %v9392_v33 = vadd.f32 %v9389_v16, %v9384_v15  ;;  %v27660_v11 = vcombine.low %v9406_v58, %v9410_v59  ;;  %v27662_v15 = vcombine.low %v9407_v60, %v9411_v61 }
 0xcec   : > { %v27653_v16 = vcombine.high %v9398_v4, %v9402_v63 }
 0xced   : > { %v9393_v31 = vmax.f32 %v9391_v17, 0.0  ;;  %v9394_v43 = vmax.f32 %v9392_v33, 0.0  ;;  %v27655_v17 = vcombine.high %v9399_v5, %v9403_v6  ;;  %v27652_v33 = vcombine.low %v9398_v4, %v9402_v63 }
 0xcef   : > { %v31866_v45 = vpack.c.bf16 %v9394_v43, %v9393_v31  ;;  %v31882_v31 = vand.u32 4294901760, %v10130_v20  ;;  %v31885_v43 = vsub.f32 %v10131_v29, %v31880_v30 }
 0xcf1   : > { %9855 = vmatmul.mubr.bf16.vlgmr.msra.gmra.mxu1 %v31866_v45  ;;  %9898 = vmatmul.mubr.bf16.vlgmr.msra.gmra.mxu0 %v31866_v45  ;;  %v31893_v26 = vand.u32 4294901760, %v31885_v43 }
 0xcf2   : > { %9909 = vmatpush1.bf16.msra.mxu1 %v27708_v50  ;;  %9952 = vmatpush1.bf16.msra.mxu0 %v27710_v55  ;;  %v27687_v50 = vcombine.high %v9431_v35, %v9435_v36  ;;  %v9426_v55 = vld [vmem:[#allocation23 + $0xf0] sm:$0xff] }
 0xcf3   : > { %9910 = vmatprep.subr.bf16.mxu1 %v27701_v21  ;;  %9953 = vmatprep.subr.bf16.mxu0 %v27703_v24  ;;  %v27677_v41 = vcombine.high %v9422_v51, %v9426_v55  ;;  %v27676_v53 = vcombine.low %v9422_v51, %v9426_v55  ;;  %v31889_v21 = vsub.f32 %v10130_v20, %v31882_v31  ;;  %v10123_v24 = vld [vmem:[#allocation49 + $0x8] sm:$0xff]  ;;  %v31938_v51 = vld [vmem:[#allocation25] sm:$0xff] }
 0xcf4   : > { %9940 = vmatprep.mubr.bf16.mxu1 %v30747_v1  ;;  %9983 = vmatprep.mubr.bf16.mxu0 %v30747_v1  ;;  %v27679_v1 = vcombine.high %v9423_v37, %v9427_v38  ;;  %34255 = vst [vmem:[#allocation115_spill] sm:$0xff] %v31893_v26  ;;  %v9465_v38 = vrot.slane %v31938_v51, %v31326_v13 }
 0xcf5   : > { %34254 = vst [vmem:[#allocation114_spill] sm:$0xff] %v31889_v21  ;;  %v31898_v10 = vand.u32 4294901760, %v31889_v21 }
 0xcf6   : > { %9911 = vmatpush1.bf16.msra.mxu1 %v27700_v23  ;;  %9954 = vmatpush1.bf16.msra.mxu0 %v27702_v27  ;;  %v10269_v23 = vsub.f32 %v31885_v43, %v31893_v26 }
 0xcf7   : > { %9912 = vmatprep.subr.bf16.mxu1 %v27693_v28  ;;  %9955 = vmatprep.subr.bf16.mxu0 %v27695_v32  ;;  %34256 = vst [vmem:[#allocation116_spill] sm:$0xff] %v31898_v10  ;;  %v10275_v28 = vsub.f32 %v31889_v21, %v31898_v10  ;;  %v31911_v32 = vsub.f32 %v10122_v9, %v31900_v22  ;;  %v10133_v9 = vld [vmem:[#allocation49 + $0x58] sm:$0xff] }
 0xcf8   : > { %v31914_v34 = vand.u32 4294901760, %v10269_v23 }
 0xcf9   : > { %34258 = vst [vmem:[#allocation118_spill] sm:$0xff] %v31911_v32  ;;  %v31920_v35 = vand.u32 4294901760, %v10275_v28  ;;  %v31923_v36 = vand.u32 4294901760, %v31911_v32 }
 0xcfa   : > { %9913 = vmatpush1.bf16.msra.mxu1 %v27692_v44  ;;  %9956 = vmatpush1.bf16.msra.mxu0 %v27694_v49 }
 0xcfb   : > { %9914 = vmatprep.subr.bf16.mxu1 %v27685_v46  ;;  %9957 = vmatprep.subr.bf16.mxu0 %v27687_v50  ;;  %34260 = vst [vmem:[#allocation120_spill] sm:$0xff] %v31923_v36  ;;  %v10287_v49 = vsub.f32 %v31911_v32, %v31923_v36 }
 0xcfd   : > { %v31933_v50 = vand.u32 4294901760, %v10287_v49 }
 0xcfe   : > { %9915 = vmatpush1.bf16.msra.mxu1 %v27684_v39  ;;  %9958 = vmatpush1.bf16.msra.mxu0 %v27686_v40 }
 0xcff   : > { %9916 = vmatprep.subr.bf16.mxu1 %v27677_v41  ;;  %9959 = vmatprep.subr.bf16.mxu0 %v27679_v1  ;;  %v9469_v41 = vrot.slane %v31938_v51, %v31329_v14  ;;  %v9477_v1 = vrot.slane %v31938_v51, %v31339_v25 }
 0xd02   : > { %9917 = vmatpush1.bf16.msra.mxu1 %v27676_v53  ;;  %9960 = vmatpush1.bf16.msra.mxu0 %v27678_v54 }
 0xd03   : > { %9918 = vmatprep.subr.bf16.mxu1 %v27669_v56  ;;  %9961 = vmatprep.subr.bf16.mxu0 %v27671_v57  ;;  %v9473_v56 = vrot.slane %v31938_v51, %v31333_v19 }
 0xd06   : > { %9919 = vmatpush1.bf16.msra.mxu1 %v27668_v62  ;;  %9962 = vmatpush1.bf16.msra.mxu0 %v27670_v0 }
 0xd07   : > { %9920 = vmatprep.subr.bf16.mxu1 %v27661_v2  ;;  %9963 = vmatprep.subr.bf16.mxu0 %v27663_v3 }
 0xd0a   : > { %9921 = vmatpush1.bf16.msra.mxu1 %v27660_v11  ;;  %9964 = vmatpush1.bf16.msra.mxu0 %v27662_v15 }
 0xd0b   : > { %9922 = vmatprep.subr.bf16.mxu1 %v27653_v16  ;;  %9965 = vmatprep.subr.bf16.mxu0 %v27655_v17 }
 0xd0e   : > { %9923 = vmatpush1.bf16.msra.mxu1 %v27652_v33  ;;  %9966 = vmatpush1.bf16.msra.mxu0 %v27654_v18 }
 0xd0f   : > { %10183 = vmatprep.subr.mxu1 %v31880_v30  ;;  %10271 = vmatprep.subr.mxu0 %v31914_v34 }
 0xd11   : > { %9941 = vmatmul.mubr.bf16.vlgmr.msra.gmra.mxu1 %v31866_v45  ;;  %9984 = vmatmul.mubr.bf16.vlgmr.msra.gmra.mxu0 %v31866_v45  ;;  %v31895_v45 = vand.u32 4294901760, %v10123_v24 }
 0xd12   : > { %10185 = vmatpush1.xpose.msra.mxu1 %v31882_v31  ;;  %10277 = vmatpush1.xpose.msra.mxu0 %v31920_v35 }
 0xd13   : > { %v31905_v27 = vsub.f32 %v10123_v24, %v31895_v45  ;;  %10187 = vmatprep.subr.mxu1 %v31895_v45 }
 0xd15   : > { %34257 = vst [vmem:[#allocation117_spill] sm:$0xff] %v31905_v27  ;;  %v31917_v8 = vand.u32 4294901760, %v31905_v27 }
 0xd16   : > { %10189 = vmatpush1.xpose.msra.mxu1 %v31900_v22 }
 0xd17   : > { %34259 = vst [vmem:[#allocation119_spill] sm:$0xff] %v31917_v8  ;;  %10360 = vmatprep.subr.mxu1 %v31885_v43  ;;  %v10281_v44 = vsub.f32 %v31905_v27, %v31917_v8 }
 0xd19   : > { %v31931_v46 = vand.u32 4294901760, %v10281_v44 }
 0xd1b   : > { %10283 = vmatprep.subr.mxu0 %v31931_v46 }
 0xd1c   : > { %10289 = vmatpush1.xpose.msra.mxu0 %v31933_v50 }
 0xd1d   : > { %10441 = vmatprep.subr.mxu0 %v31880_v30 }
 0xdb1   : > { %v9856_v55 = vpop.f32.mrf.mxu1  ;;  %v9899_v37 = vpop.f32.mrf.mxu0 }
 0xdb2   : > { %v31946_v48 = vadd.f32 %v9856_v55, %v9465_v38  ;;  %v31968_v63 = vadd.f32 %v9899_v37, %v9473_v56  ;;  %v31974_v55 = vand.u32 4294901760, %v10133_v9  ;;  %v10132_v37 = vld [vmem:[#allocation49 + $0x50] sm:$0xff] }
 0xdb3   : > { %v9858_v39 = vpop.f32.mrf.mxu1  ;;  %v9901_v40 = vpop.f32.mrf.mxu0 }
 0xdb4   : > { %34261 = vst [vmem:[#allocation121_spill] sm:$0xff] %v31946_v48  ;;  %v31954_v58 = vadd.f32 %v9858_v39, %v9469_v41  ;;  %v31956_v59 = vadd.f32 %v9901_v40, %v9477_v1  ;;  %34268 = vst [vmem:[#allocation128_spill] sm:$0xff] %v31968_v63 }
 0xdb5   : > { %v9860_v42 = vpop.f32.mrf.mxu1  ;;  %v9903_v47 = vpop.f32.mrf.mxu0 }
 0xdb6   : > { %v31948_v52 = vadd.f32 %v9860_v42, %v9465_v38  ;;  %34263 = vst [vmem:[#allocation123_spill] sm:$0xff] %v31954_v58  ;;  %34264 = vst [vmem:[#allocation124_spill] sm:$0xff] %v31956_v59  ;;  %v31962_v0 = vadd.f32 %v9903_v47, %v9473_v56  ;;  %v31981_v47 = vand.u32 4294901760, %v10132_v37 }
 0xdb7   : > { %v9862_v53 = vpop.f32.mrf.mxu1  ;;  %v9905_v54 = vpop.f32.mrf.mxu0 }
 0xdb8   : > { %34262 = vst [vmem:[#allocation122_spill] sm:$0xff] %v31948_v52  ;;  %v9994_v57 = vadd.f32 %v31948_v52, %v31946_v48  ;;  %v31958_v60 = vadd.f32 %v9862_v53, %v9469_v41  ;;  %v31960_v61 = vadd.f32 %v9905_v54, %v9477_v1  ;;  %34267 = vst [vmem:[#allocation127_spill] sm:$0xff] %v31962_v0  ;;  %v10125_v1 = vld [vmem:[#allocation49 + $0x18] sm:$0xff]  ;;  %v10124_v54 = vld [vmem:[#allocation49 + $0x10] sm:$0xff] }
 0xdb9   : > { %v10008_v15 = vadd.f32 %v31962_v0, %v31968_v63  ;;  %v31984_v53 = vsub.f32 %v10133_v9, %v31974_v55 }
 0xdba   : > { %34265 = vst [vmem:[#allocation125_spill] sm:$0xff] %v31958_v60  ;;  %34266 = vst [vmem:[#allocation126_spill] sm:$0xff] %v31960_v61  ;;  %v9995_v62 = vrot.slane %v9994_v57, 4  ;;  %v10001_v2 = vadd.f32 %v31958_v60, %v31954_v58  ;;  %v10015_v3 = vadd.f32 %v31960_v61, %v31956_v59 }
 0xdbb   : > { %v10009_v20 = vrot.slane %v10008_v15, 4  ;;  %34269 = vst [vmem:[#allocation129_spill] sm:$0xff] %v31984_v53 }
 0xdbc   : > { %v9996_v4 = vadd.f32 %v9995_v62, %v9994_v57  ;;  %v10002_v5 = vrot.slane %v10001_v2, 4  ;;  %v10016_v6 = vrot.slane %v10015_v3, 4 }
 0xdbd   : > { %v10010_v38 = vadd.f32 %v10009_v20, %v10008_v15  ;;  %v32003_v15 = vand.u32 4294901760, %v31984_v53 }
 0xdbe   : > { %v9997_v11 = vrot.slane %v9996_v4, 2  ;;  %v10003_v16 = vadd.f32 %v10002_v5, %v10001_v2  ;;  %v10017_v33 = vadd.f32 %v10016_v6, %v10015_v3  ;;  %v31989_v2 = vand.u32 4294901760, %v10125_v1 }
 0xdbf   : > { %v10011_v56 = vrot.slane %v10010_v38, 2  ;;  %v31994_v5 = vsub.f32 %v10132_v37, %v31981_v47  ;;  %v31996_v6 = vand.u32 4294901760, %v10124_v54  ;;  %34272 = vst [vmem:[#allocation132_spill] sm:$0xff] %v32003_v15  ;;  %v10767_v37 = vsub.f32 %v31984_v53, %v32003_v15 }
 0xdc0   : > { %v9998_v17 = vadd.f32 %v9997_v11, %v9996_v4  ;;  %v10004_v18 = vrot.slane %v10003_v16, 2  ;;  %v10018_v23 = vrot.slane %v10017_v33, 2  ;;  %v32000_v11 = vsub.s32 4, %v31323_v12 }
 0xdc1   : > { %34270 = vst [vmem:[#allocation130_spill] sm:$0xff] %v31994_v5  ;;  %v32045_v7 = vand.u32 4294901760, %v10767_v37 }
 0xdc2   : > { %v9999_v29 = vrot.slane %v9998_v17, 1  ;;  %v10005_v24 = vadd.f32 %v10004_v18, %v10003_v16  ;;  %v10019_v40 = vadd.f32 %v10018_v23, %v10017_v33  ;;  %34271 = vst [vmem:[#allocation131_spill] sm:$0xff] %v32000_v11  ;;  %v10012_v16 = vadd.f32 %v10011_v56, %v10010_v38 }
 0xdc3   : > { %v32007_v18 = vsub.f32 %v10125_v1, %v31989_v2  ;;  %v32014_v23 = vand.u32 4294901760, %v31994_v5  ;;  %34281 = vst [vmem:[#allocation141_spill] sm:$0xff] %v32045_v7 }
 0xdc4   : > { %v10000_v28 = vadd.f32 %v9999_v29, %v9998_v17  ;;  %v10006_v44 = vrot.slane %v10005_v24, 1  ;;  %v10020_v3 = vrot.slane %v10019_v40, 1  ;;  %v32010_v29 = vsub.s32 5, %v31323_v12 }
 0xdc5   : > { %34273 = vst [vmem:[#allocation133_spill] sm:$0xff] %v32007_v18  ;;  %34275 = vst [vmem:[#allocation135_spill] sm:$0xff] %v32014_v23  ;;  %v10013_v38 = vrot.slane %v10012_v16, 1  ;;  %v32025_v1 = vand.u32 4294901760, %v32007_v18 }
 0xdc6   : > { %v31972_v49 = vand.u32 4294901760, %v10000_v28  ;;  %v10007_v39 = vadd.f32 %v10006_v44, %v10005_v24  ;;  %34274 = vst [vmem:[#allocation134_spill] sm:$0xff] %v32010_v29  ;;  %v10021_v20 = vadd.f32 %v10020_v3, %v10019_v40  ;;  %v9481_v44 = vrot.slane %v31938_v51, %v32000_v11 }
 0xdc7   : > { %34277 = vst [vmem:[#allocation137_spill] sm:$0xff] %v32025_v1  ;;  %v9485_v56 = vrot.slane %v31938_v51, %v32010_v29  ;;  %v10779_v29 = vsub.f32 %v32007_v18, %v32025_v1 }
 0xdc8   : > { %v31977_v41 = vsub.f32 %v10000_v28, %v31972_v49  ;;  %v31979_v42 = vand.u32 4294901760, %v10007_v39  ;;  %v32017_v28 = vsub.f32 %v10124_v54, %v31996_v6  ;;  %v32029_v54 = vand.u32 4294901760, %v10021_v20 }
 0xdca   : > { %10323 = vmatprep.mubr.f32.mxu0 %v31979_v42  ;;  %v10223_v57 = vsub.f32 %v10007_v39, %v31979_v42  ;;  %v10230_v62 = vand.u32 4294901760, %v31977_v41  ;;  %34276 = vst [vmem:[#allocation136_spill] sm:$0xff] %v32017_v28 }
 0xdcb   : > { %10325 = vmatmul.mubr.f32.vlgmr.msra.gmra.mxu0 %v31972_v49 }
 0xdcc   : > { %10443 = vmatpush1.xpose.msra.mxu0 %v31882_v31  ;;  %v10224_v4 = vand.u32 4294901760, %v10223_v57  ;;  %v10231_v33 = vsub.f32 %v31977_v41, %v10230_v62 }
 0xdcd   : > { %10445 = vmatprep.subr.mxu0 %v31895_v45 }
 0xdce   : > { %10483 = vmatprep.mubr.f32.mxu0 %v10224_v4  ;;  %v10225_v17 = vsub.f32 %v10223_v57, %v10224_v4  ;;  %v10232_v40 = vand.u32 4294901760, %v10231_v33  ;;  %v32037_v33 = vand.u32 4294901760, %v32017_v28 }
 0xdd0   : > { %10447 = vmatpush1.xpose.msra.mxu0 %v31900_v22  ;;  %v10226_v9 = vand.u32 4294901760, %v10225_v17  ;;  %v10773_v17 = vsub.f32 %v31994_v5, %v32014_v23  ;;  %34278 = vst [vmem:[#allocation138_spill] sm:$0xff] %v32037_v33  ;;  %v10785_v37 = vsub.f32 %v32017_v28, %v32037_v33 }
 0xdd1   : > { %v9942_v24 = vpop.f32.mrf.mxu1  ;;  %10605 = vmatprep.subr.mxu0 %v31880_v30  ;;  %v32031_v3 = vpop.f32.mrf.mxu0 }
 0xdd2   : > { %10227 = vmatprep.mubr.f32.mxu1 %v10226_v9  ;;  %v32039_v9 = vadd.f32 %v9942_v24, %v9481_v44  ;;  %v32078_v13 = vand.u32 4294901760, %v10785_v37 }
 0xdd3   : > { %v9944_v39 = vpop.f32.mrf.mxu1  ;;  %10487 = vmatmul.mubr.f32.vlgmr.msra.gmra.mxu0 %v10230_v62  ;;  %10233 = vmatmul.mubr.f32.vlgmr.msra.gmra.mxu1 %v10232_v40  ;;  %v10014_v40 = vadd.f32 %v10013_v38, %v10012_v16  ;;  %v9987_v16 = vpop.f32.mrf.mxu0 }
 0xdd4   : > { %10607 = vmatpush1.xpose.msra.mxu0 %v31882_v31  ;;  %34279 = vst [vmem:[#allocation139_spill] sm:$0xff] %v32039_v9  ;;  %10363 = vmatpush1.xpose.msra.mxu1 %v31889_v21  ;;  %v32050_v25 = vadd.f32 %v9944_v39, %v9485_v56  ;;  %v10135_v39 = vld [vmem:[#allocation49 + $0x68] sm:$0xff]  ;;  %34286 = vst [vmem:[#allocation146_spill] sm:$0xff] %v32078_v13 }
 0xdd5   : > { %v9946_v4 = vpop.f32.mrf.mxu1  ;;  %10645 = vmatprep.mubr.f32.mxu0 %v31979_v42  ;;  %10404 = vmatprep.mubr.f32.mxu1 %v10223_v57  ;;  %v32061_v57 = vand.u32 4294901760, %v10773_v17  ;;  %v9989_v14 = vpop.f32.mrf.mxu0 }
 0xdd6   : > { %v32043_v62 = vadd.f32 %v9946_v4, %v9481_v44  ;;  %10366 = vmatprep.subr.mxu1 %v31905_v27  ;;  %34282 = vst [vmem:[#allocation142_spill] sm:$0xff] %v32050_v25  ;;  %10609 = vmatprep.subr.mxu0 %v31895_v45  ;;  %v32058_v44 = vsub.f32 %v10021_v20, %v32029_v54  ;;  %v32070_v20 = vand.u32 4294901760, %v10014_v40  ;;  %v32073_v4 = vand.u32 4294901760, %v10779_v29  ;;  %v10134_v29 = vld [vmem:[#allocation49 + $0x60] sm:$0xff] }
 0xdd7   : > { %v9948_v11 = vpop.f32.mrf.mxu1  ;;  %34284 = vst [vmem:[#allocation144_spill] sm:$0xff] %v32061_v57 }
 0xdd8   : > { %34280 = vst [vmem:[#allocation140_spill] sm:$0xff] %v32043_v62  ;;  %v10022_v24 = vadd.f32 %v32043_v62, %v32039_v9  ;;  %v32054_v19 = vadd.f32 %v9948_v11, %v9485_v56  ;;  %10611 = vmatpush1.xpose.msra.mxu0 %v31900_v22  ;;  %10369 = vmatpush1.xpose.msra.mxu1 %v31911_v32  ;;  %34285 = vst [vmem:[#allocation145_spill] sm:$0xff] %v32073_v4  ;;  %v10722_v17 = vand.u32 4294901760, %v32058_v44 }
 0xdd9   : > { %10769 = vmatprep.subr.mxu0 %v32045_v7  ;;  %10523 = vmatprep.subr.mxu1 %v31893_v26  ;;  %v32081_v7 = vsub.s32 7, %v31323_v12  ;;  %v32085_v32 = vand.u32 4294901760, %v10135_v39 }
 0xdda   : > { %34283 = vst [vmem:[#allocation143_spill] sm:$0xff] %v32054_v19  ;;  %v10029_v38 = vadd.f32 %v32054_v19, %v32050_v25  ;;  %v10023_v11 = vrot.slane %v10022_v24, 4 }
 0xddb   : > { %10647 = vmatmul.mubr.f32.vlgmr.msra.gmra.mxu0 %v31972_v49  ;;  %10407 = vmatmul.mubr.f32.vlgmr.msra.gmra.mxu1 %v31977_v41  ;;  %34287 = vst [vmem:[#allocation147_spill] sm:$0xff] %v32081_v7  ;;  %v32090_v41 = vsub.f32 %v10014_v40, %v32070_v20  ;;  %v32102_v40 = vsub.f32 %v10135_v39, %v32085_v32 }
 0xddc   : > { %v10030_v56 = vrot.slane %v10029_v38, 4  ;;  %10775 = vmatpush1.xpose.msra.mxu0 %v32061_v57  ;;  %10527 = vmatpush1.xpose.msra.mxu1 %v31898_v10  ;;  %v10024_v27 = vadd.f32 %v10023_v11, %v10022_v24  ;;  %v10127_v10 = vld [vmem:[#allocation49 + $0x28] sm:$0xff]  ;;  %v9493_v24 = vrot.slane %v31938_v51, %v32081_v7 }
 0xddd   : > { %10569 = vmatprep.mubr.f32.mxu1 %v31979_v42  ;;  %10821 = vmatprep.mubr.f32.mxu0 %v32029_v54  ;;  %v32095_v42 = vand.u32 4294901760, %v10134_v29  ;;  %34289 = vst [vmem:[#allocation149_spill] sm:$0xff] %v32102_v40 }
 0xdde   : > { %v10031_v26 = vadd.f32 %v10030_v56, %v10029_v38  ;;  %10531 = vmatprep.subr.mxu1 %v31917_v8  ;;  %10781 = vmatprep.subr.mxu0 %v32073_v4  ;;  %v10723_v38 = vsub.f32 %v32058_v44, %v10722_v17  ;;  %v9991_v56 = vpop.f32.mrf.mxu0  ;;  %v10126_v4 = vld [vmem:[#allocation49 + $0x20] sm:$0xff]  ;;  %v10025_v8 = vrot.slane %v10024_v27, 2 }
 0xddf   : > { %34288 = vst [vmem:[#allocation148_spill] sm:$0xff] %v32095_v42  ;;  %v32106_v57 = vadd.f32 %v9991_v56, %v9493_v24  ;;  %v32117_v39 = vsub.f32 %v10134_v29, %v32095_v42  ;;  %v32121_v56 = vadd.f32 %v9987_v16, %v9493_v24 }
 0xde0   : > { %v10032_v37 = vrot.slane %v10031_v26, 2  ;;  %10787 = vmatpush1.xpose.msra.mxu0 %v32078_v13  ;;  %10535 = vmatpush1.xpose.msra.mxu1 %v31923_v36  ;;  %v10728_v13 = vand.u32 4294901760, %v32090_v41  ;;  %v10724_v21 = vand.u32 4294901760, %v10723_v38  ;;  %v32119_v36 = vand.u32 4294901760, %v10126_v4 }
 0xde1   : > { %10939 = vmatprep.subr.mxu0 %v31974_v55  ;;  %10681 = vmatprep.subr.mxu1 %v31974_v55  ;;  %34290 = vst [vmem:[#allocation150_spill] sm:$0xff] %v32106_v57  ;;  %34292 = vst [vmem:[#allocation152_spill] sm:$0xff] %v32117_v39  ;;  %v32125_v38 = vand.u32 4294901760, %v32102_v40  ;;  %v10026_v9 = vadd.f32 %v10025_v8, %v10024_v27  ;;  %v10043_v29 = vadd.f32 %v32106_v57, %v32121_v56 }
 0xde2   : > { %v10033_v11 = vadd.f32 %v10032_v37, %v10031_v26  ;;  %v32109_v26 = vand.u32 4294901760, %v10127_v10  ;;  %v32112_v37 = vsub.s32 6, %v31323_v12  ;;  %34293 = vst [vmem:[#allocation153_spill] sm:$0xff] %v32121_v56  ;;  %v32139_v27 = vand.u32 4294901760, %v32117_v39 }
 0xde3   : > { %10823 = vmatmul.mubr.f32.vlgmr.msra.gmra.mxu0 %v32070_v20  ;;  %10571 = vmatmul.mubr.f32.vlgmr.msra.gmra.mxu1 %v31972_v49  ;;  %v10729_v49 = vsub.f32 %v32090_v41, %v10728_v13  ;;  %v32142_v8 = vsub.f32 %v10126_v4, %v32119_v36 }
 0xde4   : > { %v10034_v7 = vrot.slane %v10033_v11, 1  ;;  %34291 = vst [vmem:[#allocation151_spill] sm:$0xff] %v32112_v37  ;;  %10941 = vmatpush1.xpose.msra.mxu0 %v31981_v47  ;;  %10683 = vmatpush1.xpose.msra.mxu1 %v31981_v47  ;;  %v32133_v16 = vsub.f32 %v10127_v10, %v32109_v26  ;;  %v10027_v10 = vrot.slane %v10026_v9, 1 }
 0xde5   : > { %10725 = vmatprep.mubr.f32.mxu1 %v10724_v21  ;;  %10981 = vmatprep.mubr.f32.mxu0 %v10722_v17  ;;  %v9489_v21 = vrot.slane %v31938_v51, %v32112_v37  ;;  %v10730_v24 = vand.u32 4294901760, %v10729_v49  ;;  %v10044_v51 = vrot.slane %v10043_v29, 4  ;;  %v32163_v49 = vand.u32 4294901760, %v32142_v8 }
 0xde6   : > { %10685 = vmatprep.subr.mxu1 %v31989_v2  ;;  %10943 = vmatprep.subr.mxu0 %v31989_v2  ;;  %v10035_v12 = vadd.f32 %v10034_v7, %v10033_v11  ;;  %v11265_v7 = vsub.f32 %v32102_v40, %v32125_v38  ;;  %v32154_v4 = vand.u32 4294901760, %v32133_v16 }
 0xde7   : > { %v32148_v17 = vadd.f32 %v9989_v14, %v9489_v21  ;;  %v32157_v37 = vadd.f32 %v32031_v3, %v9489_v21  ;;  %v11271_v14 = vsub.f32 %v32117_v39, %v32139_v27  ;;  %v10045_v21 = vadd.f32 %v10044_v51, %v10043_v29 }
 0xde8   : > { %10945 = vmatpush1.xpose.msra.mxu0 %v31996_v6  ;;  %10687 = vmatpush1.xpose.msra.mxu1 %v31996_v6  ;;  %v32151_v11 = vand.u32 4294901760, %v10035_v12 }
 0xde9   : > { %11103 = vmatprep.subr.mxu0 %v31974_v55  ;;  %34294 = vst [vmem:[#allocation154_spill] sm:$0xff] %v32148_v17  ;;  %10858 = vmatprep.subr.mxu1 %v31984_v53  ;;  %34295 = vst [vmem:[#allocation155_spill] sm:$0xff] %v32157_v37  ;;  %v10028_v53 = vadd.f32 %v10027_v10, %v10026_v9  ;;  %v10036_v3 = vadd.f32 %v32148_v17, %v32157_v37  ;;  %v10137_v10 = vld [vmem:[#allocation49 + $0x78] sm:$0xff]  ;;  %v10046_v51 = vrot.slane %v10045_v21, 2 }
 0xdea   : > { %v11283_v9 = vsub.f32 %v32142_v8, %v32163_v49 }
 0xdeb   : > { %10985 = vmatmul.mubr.f32.vlgmr.msra.gmra.mxu0 %v10728_v13  ;;  %10731 = vmatmul.mubr.f32.vlgmr.msra.gmra.mxu1 %v10730_v24  ;;  %v32167_v13 = vand.u32 4294901760, %v11265_v7  ;;  %v11277_v24 = vsub.f32 %v32133_v16, %v32154_v4  ;;  %v10037_v29 = vrot.slane %v10036_v3, 4  ;;  %v32187_v7 = vand.u32 4294901760, %v10028_v53 }
 0xdec   : > { %11105 = vmatpush1.xpose.msra.mxu0 %v31981_v47  ;;  %10861 = vmatpush1.xpose.msra.mxu1 %v31994_v5  ;;  %v32177_v5 = vsub.f32 %v10035_v12, %v32151_v11 }
 0xded   : > { %10902 = vmatprep.mubr.f32.mxu1 %v32058_v44  ;;  %34296 = vst [vmem:[#allocation156_spill] sm:$0xff] %v32167_v13  ;;  %11143 = vmatprep.mubr.f32.mxu0 %v32029_v54  ;;  %v32180_v44 = vand.u32 4294901760, %v11271_v14  ;;  %v32190_v12 = vand.u32 4294901760, %v11277_v24  ;;  %v32204_v24 = vsub.f32 %v10028_v53, %v32187_v7 }
 0xdee   : > { %10864 = vmatprep.subr.mxu1 %v32007_v18  ;;  %11107 = vmatprep.subr.mxu0 %v31989_v2  ;;  %v11220_v14 = vand.u32 4294901760, %v32177_v5  ;;  %v10038_v18 = vadd.f32 %v10037_v29, %v10036_v3  ;;  %v10128_v29 = vld [vmem:[#allocation49 + $0x30] sm:$0xff] }
 0xdef   : > { %34297 = vst [vmem:[#allocation157_spill] sm:$0xff] %v32180_v44  ;;  %34298 = vst [vmem:[#allocation158_spill] sm:$0xff] %v32190_v12 }
 0xdf0   : > { %11109 = vmatpush1.xpose.msra.mxu0 %v31996_v6  ;;  %10867 = vmatpush1.xpose.msra.mxu1 %v32017_v28  ;;  %v32195_v28 = vand.u32 4294901760, %v11283_v9  ;;  %v11221_v9 = vsub.f32 %v32177_v5, %v11220_v14  ;;  %v10039_v53 = vrot.slane %v10038_v18, 2 }
 0xdf1   : > { %11267 = vmatprep.subr.mxu0 %v32167_v13  ;;  %11021 = vmatprep.subr.mxu1 %v32003_v15  ;;  %v32199_v15 = vand.u32 4294901760, %v10137_v10  ;;  %v10136_v13 = vld [vmem:[#allocation49 + $0x70] sm:$0xff] }
 0xdf2   : > { %34299 = vst [vmem:[#allocation159_spill] sm:$0xff] %v32195_v28 }
 0xdf3   : > { %11145 = vmatmul.mubr.f32.vlgmr.msra.gmra.mxu0 %v32070_v20  ;;  %10905 = vmatmul.mubr.f32.vlgmr.msra.gmra.mxu1 %v32090_v41  ;;  %v10047_v41 = vadd.f32 %v10046_v51, %v10045_v21  ;;  %v32214_v3 = vsub.f32 %v10137_v10, %v32199_v15  ;;  %v11226_v21 = vand.u32 4294901760, %v32204_v24  ;;  %v10059_v51 = vmul.f32 %v31958_v60, %v31958_v60 }
 0xdf4   : > { %11273 = vmatpush1.xpose.msra.mxu0 %v32180_v44  ;;  %11025 = vmatpush1.xpose.msra.mxu1 %v32014_v23  ;;  %v32209_v23 = vand.u32 4294901760, %v10136_v13  ;;  %v10051_v44 = vmul.f32 %v31954_v58, %v31954_v58  ;;  %v10040_v60 = vadd.f32 %v10039_v53, %v10038_v18  ;;  %v10050_v53 = vmul.f32 %v31946_v48, %v31946_v48 }
 0xdf5   : > { %11067 = vmatprep.mubr.f32.mxu1 %v32029_v54  ;;  %11319 = vmatprep.mubr.f32.mxu0 %v32151_v11  ;;  %v10129_v54 = vld [vmem:[#allocation49 + $0x38] sm:$0xff] }
 0xdf6   : > { %11029 = vmatprep.subr.mxu1 %v32025_v1  ;;  %11279 = vmatprep.subr.mxu0 %v32190_v12  ;;  %v10048_v12 = vrot.slane %v10047_v41, 1  ;;  %v32221_v1 = vand.u32 4294901760, %v10129_v54  ;;  %v32226_v10 = vsub.f32 %v10136_v13, %v32209_v23  ;;  %v10073_v37 = vadd.f32 %v10059_v51, %v10051_v44 }
 0xdf7   : > { %v10058_v44 = vmul.f32 %v31948_v52, %v31948_v52 }
 0xdf8   : > { %11285 = vmatpush1.xpose.msra.mxu0 %v32195_v28  ;;  %11033 = vmatpush1.xpose.msra.mxu1 %v32037_v33  ;;  %v11222_v28 = vand.u32 4294901760, %v11221_v9  ;;  %v32228_v33 = vand.u32 4294901760, %v10128_v29  ;;  %v32234_v9 = vand.u32 4294901760, %v32214_v3  ;;  %v10049_v13 = vadd.f32 %v10048_v12, %v10047_v41 }
 0xdf9   : > { %11437 = vmatprep.subr.mxu0 %v32085_v32  ;;  %11179 = vmatprep.subr.mxu1 %v32085_v32  ;;  %v32240_v17 = vsub.f32 %v10129_v54, %v32221_v1  ;;  %v10041_v12 = vrot.slane %v10040_v60, 1  ;;  %v10074_v41 = vrot.slane %v10073_v37, 4  ;;  %v10066_v52 = vadd.f32 %v10058_v44, %v10050_v53 }
 0xdfa   : > { %v32247_v58 = vsub.f32 %v10128_v29, %v32228_v33  ;;  %v11763_v18 = vsub.f32 %v32214_v3, %v32234_v9  ;;  %v32256_v54 = vand.u32 4294901760, %v10049_v13 }
 0xdfb   : > { %11321 = vmatmul.mubr.f32.vlgmr.msra.gmra.mxu0 %v32187_v7  ;;  %11069 = vmatmul.mubr.f32.vlgmr.msra.gmra.mxu1 %v32070_v20  ;;  %v11227_v20 = vsub.f32 %v32204_v24, %v11226_v21  ;;  %v32259_v29 = vand.u32 4294901760, %v32240_v17 }
 0xdfc   : > { %11439 = vmatpush1.xpose.msra.mxu0 %v32095_v42  ;;  %11181 = vmatpush1.xpose.msra.mxu1 %v32095_v42 }
 0xdfd   : > { %11223 = vmatprep.mubr.f32.mxu1 %v11222_v28  ;;  %11479 = vmatprep.mubr.f32.mxu0 %v11220_v14  ;;  %v32244_v28 = vand.u32 4294901760, %v32226_v10  ;;  %v11228_v14 = vand.u32 4294901760, %v11227_v20  ;;  %v32267_v20 = vand.u32 4294901760, %v32247_v58  ;;  %v11775_v48 = vsub.f32 %v32240_v17, %v32259_v29 }
 0xdfe   : > { %11183 = vmatprep.subr.mxu1 %v32109_v26  ;;  %11441 = vmatprep.subr.mxu0 %v32109_v26 }
 0xdff   : > { %v11769_v51 = vsub.f32 %v32226_v10, %v32244_v28 }
 0xe00   : > { %11443 = vmatpush1.xpose.msra.mxu0 %v32119_v36  ;;  %11185 = vmatpush1.xpose.msra.mxu1 %v32119_v36 }
 0xe01   : > { %11601 = vmatprep.subr.mxu0 %v32085_v32  ;;  %11356 = vmatprep.subr.mxu1 %v32102_v40  ;;  %v10042_v40 = vadd.f32 %v10041_v12, %v10040_v60  ;;  %v10067_v60 = vrot.slane %v10066_v52, 4 }
 0xe03   : > { %11483 = vmatmul.mubr.f32.vlgmr.msra.gmra.mxu0 %v11226_v21  ;;  %11229 = vmatmul.mubr.f32.vlgmr.msra.gmra.mxu1 %v11228_v14  ;;  %v32271_v21 = vand.u32 4294901760, %v11763_v18  ;;  %v10075_v14 = vadd.f32 %v10074_v41, %v10073_v37  ;;  %v32287_v37 = vand.u32 4294901760, %v10042_v40  ;;  %v10068_v41 = vadd.f32 %v10067_v60, %v10066_v52 }
 0xe04   : > { %11603 = vmatpush1.xpose.msra.mxu0 %v32095_v42  ;;  %11359 = vmatpush1.xpose.msra.mxu1 %v32117_v39  ;;  %v11717_v42 = vsub.f32 %v10049_v13, %v32256_v54  ;;  %v32280_v39 = vand.u32 4294901760, %v11769_v51  ;;  %v32290_v13 = vand.u32 4294901760, %v11775_v48 }
 0xe05   : > { %11400 = vmatprep.mubr.f32.mxu1 %v32177_v5  ;;  %11641 = vmatprep.mubr.f32.mxu0 %v32151_v11  ;;  %v11781_v5 = vsub.f32 %v32247_v58, %v32267_v20  ;;  %v10076_v18 = vrot.slane %v10075_v14, 2  ;;  %v11723_v53 = vsub.f32 %v10042_v40, %v32287_v37 }
 0xe06   : > { %11362 = vmatprep.subr.mxu1 %v32133_v16  ;;  %11605 = vmatprep.subr.mxu0 %v32109_v26  ;;  %v11718_v44 = vand.u32 4294901760, %v11717_v42 }
 0xe07   : > { %v32294_v12 = vand.u32 4294901760, %v11781_v5  ;;  %v10077_v51 = vadd.f32 %v10076_v18, %v10075_v14  ;;  %v11724_v52 = vand.u32 4294901760, %v11723_v53  ;;  %v10053_v14 = vmul.f32 %v31956_v59, %v31956_v59 }
 0xe08   : > { %11607 = vmatpush1.xpose.msra.mxu0 %v32119_v36  ;;  %11365 = vmatpush1.xpose.msra.mxu1 %v32142_v8  ;;  %v11719_v48 = vsub.f32 %v11717_v42, %v11718_v44  ;;  %v10060_v59 = vmul.f32 %v31962_v0, %v31962_v0 }
 0xe09   : > { %11765 = vmatprep.subr.mxu0 %v32271_v21  ;;  %11519 = vmatprep.subr.mxu1 %v32125_v38  ;;  %v10078_v5 = vrot.slane %v10077_v51, 1  ;;  %v11725_v18 = vsub.f32 %v11723_v53, %v11724_v52 }
 0xe0a   : > { %v11720_v40 = vand.u32 4294901760, %v11719_v48 }
 0xe0b   : > { %11643 = vmatmul.mubr.f32.vlgmr.msra.gmra.mxu0 %v32187_v7  ;;  %11403 = vmatmul.mubr.f32.vlgmr.msra.gmra.mxu1 %v32204_v24  ;;  %v10069_v24 = vrot.slane %v10068_v41, 2  ;;  %v10079_v48 = vadd.f32 %v10078_v5, %v10077_v51  ;;  %v10052_v51 = vmul.f32 %v31968_v63, %v31968_v63  ;;  %v10152_v63 = vld [vmem:[#allocation50 + $0x70] sm:$0xff] }
 0xe0c   : > { %11771 = vmatpush1.xpose.msra.mxu0 %v32280_v39  ;;  %11523 = vmatpush1.xpose.msra.mxu1 %v32139_v27 }
 0xe0d   : > { %11565 = vmatprep.mubr.f32.mxu1 %v32151_v11  ;;  %11817 = vmatprep.mubr.f32.mxu0 %v32256_v54  ;;  %v10061_v11 = vmul.f32 %v31960_v61, %v31960_v61  ;;  %v10070_v60 = vadd.f32 %v10069_v24, %v10068_v41  ;;  %v32322_v41 = vand.u32 4294901760, %v10079_v48 }
 0xe0e   : > { %11527 = vmatprep.subr.mxu1 %v32154_v4  ;;  %11777 = vmatprep.subr.mxu0 %v32290_v13 }
 0xe0f   : > { %v10087_v61 = vadd.f32 %v10061_v11, %v10053_v14  ;;  %v10080_v11 = vadd.f32 %v10060_v59, %v10052_v51 }
 0xe10   : > { %11783 = vmatpush1.xpose.msra.mxu0 %v32294_v12  ;;  %11531 = vmatpush1.xpose.msra.mxu1 %v32163_v49 }
 0xe11   : > { %11935 = vmatprep.subr.mxu0 %v32199_v15  ;;  %11677 = vmatprep.subr.mxu1 %v32199_v15  ;;  %v10081_v14 = vrot.slane %v10080_v11, 4 }
 0xe13   : > { %11819 = vmatmul.mubr.f32.vlgmr.msra.gmra.mxu0 %v32287_v37  ;;  %11567 = vmatmul.mubr.f32.vlgmr.msra.gmra.mxu1 %v32187_v7  ;;  %v10071_v7 = vrot.slane %v10070_v60, 1 }
 0xe14   : > { %11937 = vmatpush1.xpose.msra.mxu0 %v32209_v23  ;;  %11679 = vmatpush1.xpose.msra.mxu1 %v32209_v23 }
 0xe15   : > { %11721 = vmatprep.mubr.f32.mxu1 %v11720_v40  ;;  %11977 = vmatprep.mubr.f32.mxu0 %v11718_v44  ;;  %v11726_v40 = vand.u32 4294901760, %v11725_v18  ;;  %v10088_v44 = vrot.slane %v10087_v61, 4  ;;  %v10072_v24 = vadd.f32 %v10071_v7, %v10070_v60 }
 0xe16   : > { %11681 = vmatprep.subr.mxu1 %v32221_v1  ;;  %11939 = vmatprep.subr.mxu0 %v32221_v1 }
 0xe17   : > { %v10089_v5 = vadd.f32 %v10088_v44, %v10087_v61  ;;  %v10082_v61 = vadd.f32 %v10081_v14, %v10080_v11  ;;  %v10062_v11 = vmul.f32 %v32043_v62, %v32043_v62 }
 0xe18   : > { %11941 = vmatpush1.xpose.msra.mxu0 %v32228_v33  ;;  %11683 = vmatpush1.xpose.msra.mxu1 %v32228_v33 }
 0xe19   : > { %12099 = vmatprep.subr.mxu0 %v32199_v15  ;;  %11854 = vmatprep.subr.mxu1 %v32214_v3  ;;  %v10090_v59 = vrot.slane %v10089_v5, 2 }
 0xe1b   : > { %11981 = vmatmul.mubr.f32.vlgmr.msra.gmra.mxu0 %v11724_v52  ;;  %11727 = vmatmul.mubr.f32.vlgmr.msra.gmra.mxu1 %v11726_v40  ;;  %v12215_v52 = vsub.f32 %v10079_v48, %v32322_v41  ;;  %v10091_v48 = vadd.f32 %v10090_v59, %v10089_v5 }
 0xe1c   : > { %12101 = vmatpush1.xpose.msra.mxu0 %v32209_v23  ;;  %11857 = vmatpush1.xpose.msra.mxu1 %v32226_v10 }
 0xe1d   : > { %11898 = vmatprep.mubr.f32.mxu1 %v11717_v42  ;;  %12139 = vmatprep.mubr.f32.mxu0 %v32256_v54  ;;  %v32336_v42 = vand.u32 4294901760, %v10072_v24  ;;  %v12216_v60 = vand.u32 4294901760, %v12215_v52  ;;  %v10092_v40 = vrot.slane %v10091_v48, 1 }
 0xe1e   : > { %11860 = vmatprep.subr.mxu1 %v32240_v17  ;;  %12103 = vmatprep.subr.mxu0 %v32221_v1 }
 0xe1f   : > { %v12217_v18 = vsub.f32 %v12215_v52, %v12216_v60 }
 0xe20   : > { %12105 = vmatpush1.xpose.msra.mxu0 %v32228_v33  ;;  %11863 = vmatpush1.xpose.msra.mxu1 %v32247_v58 }
 0xe21   : > { %12263 = vmatprep.subr.mxu0 %v31914_v34  ;;  %12017 = vmatprep.subr.mxu1 %v32234_v9  ;;  %v12221_v34 = vsub.f32 %v10072_v24, %v32336_v42  ;;  %v12218_v7 = vand.u32 4294901760, %v12217_v18  ;;  %v10093_v24 = vadd.f32 %v10092_v40, %v10091_v48  ;;  %v34301_v18 = vld [vmem:[#allocation114_spill] sm:$0xff]  ;;  %v34305_v40 = vld [vmem:[#allocation115_spill] sm:$0xff] }
 0xe23   : > { %12141 = vmatmul.mubr.f32.vlgmr.msra.gmra.mxu0 %v32287_v37  ;;  %11901 = vmatmul.mubr.f32.vlgmr.msra.gmra.mxu1 %v11723_v53  ;;  %v10063_v53 = vmul.f32 %v32054_v19, %v32054_v19  ;;  %v32366_v59 = vand.u32 4294901760, %v10093_v24 }
 0xe24   : > { %12269 = vmatpush1.xpose.msra.mxu0 %v31920_v35  ;;  %12021 = vmatpush1.xpose.msra.mxu1 %v32244_v28  ;;  %v10083_v35 = vrot.slane %v10082_v61, 2 }
 0xe25   : > { %12063 = vmatprep.mubr.f32.mxu1 %v32256_v54  ;;  %12315 = vmatprep.mubr.f32.mxu0 %v32322_v41  ;;  %v12222_v54 = vand.u32 4294901760, %v12221_v34 }
 0xe26   : > { %12025 = vmatprep.subr.mxu1 %v32259_v29  ;;  %12275 = vmatprep.subr.mxu0 %v31931_v46  ;;  %v10055_v46 = vmul.f32 %v32050_v25, %v32050_v25  ;;  %v10153_v25 = vld [vmem:[#allocation50 + $0x78] sm:$0xff] }
 0xe27   : > { %v12223_v44 = vsub.f32 %v12221_v34, %v12222_v54 }
 0xe28   : > { %12281 = vmatpush1.xpose.msra.mxu0 %v31933_v50  ;;  %12029 = vmatpush1.xpose.msra.mxu1 %v32267_v20  ;;  %v10084_v50 = vadd.f32 %v10083_v35, %v10082_v61  ;;  %v10101_v51 = vadd.f32 %v10063_v53, %v10055_v46  ;;  %v34302_v35 = vld [vmem:[#allocation117_spill] sm:$0xff]  ;;  %v34303_v53 = vld [vmem:[#allocation118_spill] sm:$0xff] }
 0xe29   : > { %12433 = vmatprep.subr.mxu0 %v31880_v30  ;;  %12175 = vmatprep.subr.mxu1 %v31880_v30  ;;  %v12224_v5 = vand.u32 4294901760, %v12223_v44  ;;  %v34306_v44 = vld [vmem:[#allocation144_spill] sm:$0xff] }
 0xe2a   : > { %v10102_v14 = vrot.slane %v10101_v51, 4 }
 0xe2b   : > { %12317 = vmatmul.mubr.f32.vlgmr.msra.gmra.mxu0 %v32336_v42  ;;  %12065 = vmatmul.mubr.f32.vlgmr.msra.gmra.mxu1 %v32287_v37  ;;  %v10085_v37 = vrot.slane %v10084_v50, 1 }
 0xe2c   : > { %12435 = vmatpush1.xpose.msra.mxu0 %v31882_v31  ;;  %12177 = vmatpush1.xpose.msra.mxu1 %v31882_v31 }
 0xe2d   : > { %12219 = vmatprep.mubr.f32.mxu1 %v12218_v7  ;;  %12475 = vmatprep.mubr.f32.mxu0 %v12216_v60  ;;  %v34300_v60 = vld [vmem:[#allocation139_spill] sm:$0xff]  ;;  %v34304_v7 = vld [vmem:[#allocation141_spill] sm:$0xff] }
 0xe2e   : > { %12179 = vmatprep.subr.mxu1 %v31895_v45  ;;  %12437 = vmatprep.subr.mxu0 %v31895_v45  ;;  %v10054_v61 = vmul.f32 %v34300_v60, %v34300_v60 }
 0xe30   : > { %12439 = vmatpush1.xpose.msra.mxu0 %v31900_v22  ;;  %12181 = vmatpush1.xpose.msra.mxu1 %v31900_v22  ;;  %v10094_v48 = vadd.f32 %v10062_v11, %v10054_v61 }
 0xe31   : > { %12597 = vmatprep.subr.mxu0 %v31880_v30  ;;  %12352 = vmatprep.subr.mxu1 %v31885_v43  ;;  %v10086_v30 = vadd.f32 %v10085_v37, %v10084_v50  ;;  %v10103_v43 = vadd.f32 %v10102_v14, %v10101_v51  ;;  %v34308_v51 = vld [vmem:[#allocation119_spill] sm:$0xff]  ;;  %v34309_v37 = vld [vmem:[#allocation145_spill] sm:$0xff]  ;;  %v34310_v14 = vld [vmem:[#allocation146_spill] sm:$0xff] }
 0xe33   : > { %12479 = vmatmul.mubr.f32.vlgmr.msra.gmra.mxu0 %v12222_v54  ;;  %12225 = vmatmul.mubr.f32.vlgmr.msra.gmra.mxu1 %v12224_v5  ;;  %v12713_v54 = vsub.f32 %v10093_v24, %v32366_v59  ;;  %v10104_v46 = vrot.slane %v10103_v43, 2 }
 0xe34   : > { %12599 = vmatpush1.xpose.msra.mxu0 %v31882_v31  ;;  %12355 = vmatpush1.xpose.msra.mxu1 %v34301_v18  ;;  %v10095_v31 = vrot.slane %v10094_v48, 4  ;;  %v10065_v18 = vmul.f32 %v32106_v57, %v32106_v57 }
 0xe35   : > { %12396 = vmatprep.mubr.f32.mxu1 %v12215_v52  ;;  %12637 = vmatprep.mubr.f32.mxu0 %v32322_v41  ;;  %v32380_v52 = vand.u32 4294901760, %v10086_v30  ;;  %v12714_v50 = vand.u32 4294901760, %v12713_v54  ;;  %v10105_v5 = vadd.f32 %v10104_v46, %v10103_v43 }
 0xe36   : > { %12358 = vmatprep.subr.mxu1 %v34302_v35  ;;  %12601 = vmatprep.subr.mxu0 %v31895_v45  ;;  %v34307_v45 = vld [vmem:[#allocation116_spill] sm:$0xff]  ;;  %v10057_v35 = vmul.f32 %v32121_v56, %v32121_v56 }
 0xe37   : > { %v12719_v24 = vsub.f32 %v10086_v30, %v32380_v52  ;;  %v12715_v11 = vsub.f32 %v12713_v54, %v12714_v50 }
 0xe38   : > { %12603 = vmatpush1.xpose.msra.mxu0 %v31900_v22  ;;  %12361 = vmatpush1.xpose.msra.mxu1 %v34303_v53  ;;  %v10096_v22 = vadd.f32 %v10095_v31, %v10094_v48  ;;  %v10106_v48 = vrot.slane %v10105_v5, 1 }
 0xe39   : > { %12761 = vmatprep.subr.mxu0 %v34304_v7  ;;  %12515 = vmatprep.subr.mxu1 %v34305_v40  ;;  %v12716_v30 = vand.u32 4294901760, %v12715_v11  ;;  %v10115_v7 = vadd.f32 %v10065_v18, %v10057_v35  ;;  %v34312_v40 = vld [vmem:[#allocation154_spill] sm:$0xff]  ;;  %v34318_v18 = vld [vmem:[#allocation156_spill] sm:$0xff] }
 0xe3a   : > { %v10097_v61 = vrot.slane %v10096_v22, 2  ;;  %v10107_v31 = vadd.f32 %v10106_v48, %v10105_v5  ;;  %v10064_v46 = vmul.f32 %v34312_v40, %v34312_v40  ;;  %v34315_v11 = vld [vmem:[#allocation130_spill] sm:$0xff] }
 0xe3b   : > { %12639 = vmatmul.mubr.f32.vlgmr.msra.gmra.mxu0 %v32336_v42  ;;  %12399 = vmatmul.mubr.f32.vlgmr.msra.gmra.mxu1 %v12221_v34  ;;  %v34311_v34 = vld [vmem:[#allocation120_spill] sm:$0xff] }
 0xe3c   : > { %12767 = vmatpush1.xpose.msra.mxu0 %v34306_v44  ;;  %12519 = vmatpush1.xpose.msra.mxu1 %v34307_v45  ;;  %v10098_v43 = vadd.f32 %v10097_v61, %v10096_v22  ;;  %v34313_v45 = vld [vmem:[#allocation129_spill] sm:$0xff]  ;;  %v32410_v22 = vand.u32 4294901760, %v10107_v31 }
 0xe3d   : > { %12561 = vmatprep.mubr.f32.mxu1 %v32322_v41  ;;  %12813 = vmatprep.mubr.f32.mxu0 %v32366_v59  ;;  %v12720_v41 = vand.u32 4294901760, %v12719_v24 }
 0xe3e   : > { %12523 = vmatprep.subr.mxu1 %v34308_v51  ;;  %12773 = vmatprep.subr.mxu0 %v34309_v37  ;;  %v34314_v51 = vld [vmem:[#allocation155_spill] sm:$0xff]  ;;  %v13211_v61 = vsub.f32 %v10107_v31, %v32410_v22  ;;  %v34323_v31 = vld [vmem:[#allocation158_spill] sm:$0xff] }
 0xe3f   : > { %v12721_v53 = vsub.f32 %v12719_v24, %v12720_v41  ;;  %v10056_v37 = vmul.f32 %v34314_v51, %v34314_v51 }
 0xe40   : > { %12779 = vmatpush1.xpose.msra.mxu0 %v34310_v14  ;;  %12527 = vmatpush1.xpose.msra.mxu1 %v34311_v34  ;;  %v34316_v14 = vld [vmem:[#allocation133_spill] sm:$0xff]  ;;  %v13212_v35 = vand.u32 4294901760, %v13211_v61 }
 0xe41   : > { %12931 = vmatprep.subr.mxu0 %v31974_v55  ;;  %12673 = vmatprep.subr.mxu1 %v31974_v55  ;;  %v12722_v44 = vand.u32 4294901760, %v12721_v53  ;;  %v10108_v5 = vadd.f32 %v10064_v46, %v10056_v37  ;;  %v34322_v53 = vld [vmem:[#allocation137_spill] sm:$0xff] }
 0xe43   : > { %12815 = vmatmul.mubr.f32.vlgmr.msra.gmra.mxu0 %v32380_v52  ;;  %12563 = vmatmul.mubr.f32.vlgmr.msra.gmra.mxu1 %v32336_v42  ;;  %v10099_v42 = vrot.slane %v10098_v43, 1 }
 0xe44   : > { %12933 = vmatpush1.xpose.msra.mxu0 %v31981_v47  ;;  %12675 = vmatpush1.xpose.msra.mxu1 %v31981_v47 }
 0xe45   : > { %12717 = vmatprep.mubr.f32.mxu1 %v12716_v30  ;;  %12973 = vmatprep.mubr.f32.mxu0 %v12714_v50  ;;  %v10116_v50 = vrot.slane %v10115_v7, 4  ;;  %v34319_v30 = vld [vmem:[#allocation132_spill] sm:$0xff] }
 0xe46   : > { %12677 = vmatprep.subr.mxu1 %v31989_v2  ;;  %12935 = vmatprep.subr.mxu0 %v31989_v2 }
 0xe47   : > { %v10117_v34 = vadd.f32 %v10116_v50, %v10115_v7 }
 0xe48   : > { %12937 = vmatpush1.xpose.msra.mxu0 %v31996_v6  ;;  %12679 = vmatpush1.xpose.msra.mxu1 %v31996_v6 }
 0xe49   : > { %13095 = vmatprep.subr.mxu0 %v31974_v55  ;;  %12850 = vmatprep.subr.mxu1 %v34313_v45  ;;  %v10100_v55 = vadd.f32 %v10099_v42, %v10098_v43  ;;  %v10118_v48 = vrot.slane %v10117_v34, 2  ;;  %v34320_v43 = vld [vmem:[#allocation157_spill] sm:$0xff]  ;;  %v13213_v42 = vsub.f32 %v13211_v61, %v13212_v35 }
 0xe4b   : > { %12977 = vmatmul.mubr.f32.vlgmr.msra.gmra.mxu0 %v12720_v41  ;;  %12723 = vmatmul.mubr.f32.vlgmr.msra.gmra.mxu1 %v12722_v44  ;;  %v34317_v41 = vld [vmem:[#allocation136_spill] sm:$0xff]  ;;  %v10119_v46 = vadd.f32 %v10118_v48, %v10117_v34  ;;  %v34324_v44 = vld [vmem:[#allocation159_spill] sm:$0xff]  ;;  %v13214_v50 = vand.u32 4294901760, %v13213_v42 }
 0xe4c   : > { %13097 = vmatpush1.xpose.msra.mxu0 %v31981_v47  ;;  %12853 = vmatpush1.xpose.msra.mxu1 %v34315_v11  ;;  %v10109_v47 = vrot.slane %v10108_v5, 4  ;;  %v34326_v11 = vld [vmem:[#allocation148_spill] sm:$0xff] }
 0xe4d   : > { %12894 = vmatprep.mubr.f32.mxu1 %v12713_v54  ;;  %13135 = vmatprep.mubr.f32.mxu0 %v32366_v59  ;;  %v32424_v54 = vand.u32 4294901760, %v10100_v55  ;;  %v10120_v37 = vrot.slane %v10119_v46, 1 }
 0xe4e   : > { %12856 = vmatprep.subr.mxu1 %v34316_v14  ;;  %13099 = vmatprep.subr.mxu0 %v31989_v2  ;;  %v34321_v2 = vld [vmem:[#allocation135_spill] sm:$0xff] }
 0xe4f   : > { %v13217_v7 = vsub.f32 %v10100_v55, %v32424_v54  ;;  %v10121_v14 = vadd.f32 %v10120_v37, %v10119_v46 }
 0xe50   : > { %13101 = vmatpush1.xpose.msra.mxu0 %v31996_v6  ;;  %12859 = vmatpush1.xpose.msra.mxu1 %v34317_v41  ;;  %v10110_v6 = vadd.f32 %v10109_v47, %v10108_v5  ;;  %v34327_v41 = vld [vmem:[#allocation149_spill] sm:$0xff]  ;;  %v34328_v47 = vld [vmem:[#allocation152_spill] sm:$0xff] }
 0xe51   : > { %13259 = vmatprep.subr.mxu0 %v34318_v18  ;;  %13013 = vmatprep.subr.mxu1 %v34319_v30  ;;  %v32448_v18 = vand.u32 4294901760, %v10121_v14 }
 0xe52   : > { %v10111_v45 = vrot.slane %v10110_v6, 2 }
 0xe53   : > { %13137 = vmatmul.mubr.f32.vlgmr.msra.gmra.mxu0 %v32380_v52  ;;  %12897 = vmatmul.mubr.f32.vlgmr.msra.gmra.mxu1 %v12719_v24  ;;  %v34325_v24 = vld [vmem:[#allocation138_spill] sm:$0xff] }
 0xe54   : > { %13265 = vmatpush1.xpose.msra.mxu0 %v34320_v43  ;;  %13017 = vmatpush1.xpose.msra.mxu1 %v34321_v2  ;;  %v10112_v55 = vadd.f32 %v10111_v45, %v10110_v6 }
 0xe55   : > { %13059 = vmatprep.mubr.f32.mxu1 %v32366_v59  ;;  %13311 = vmatprep.mubr.f32.mxu0 %v32410_v22  ;;  %v13218_v59 = vand.u32 4294901760, %v13217_v7 }
 0xe56   : > { %13021 = vmatprep.subr.mxu1 %v34322_v53  ;;  %13271 = vmatprep.subr.mxu0 %v34323_v31 }
 0xe57   : > { %v13219_v5 = vsub.f32 %v13217_v7, %v13218_v59 }
 0xe58   : > { %13277 = vmatpush1.xpose.msra.mxu0 %v34324_v44  ;;  %13025 = vmatpush1.xpose.msra.mxu1 %v34325_v24 }
 0xe59   : > { %13429 = vmatprep.subr.mxu0 %v32085_v32  ;;  %13171 = vmatprep.subr.mxu1 %v32085_v32  ;;  %v13220_v34 = vand.u32 4294901760, %v13219_v5 }
 0xe5b   : > { %13313 = vmatmul.mubr.f32.vlgmr.msra.gmra.mxu0 %v32424_v54  ;;  %13061 = vmatmul.mubr.f32.vlgmr.msra.gmra.mxu1 %v32380_v52  ;;  %v10113_v52 = vrot.slane %v10112_v55, 1 }
 0xe5c   : > { %13431 = vmatpush1.xpose.msra.mxu0 %v34326_v11  ;;  %13173 = vmatpush1.xpose.msra.mxu1 %v34326_v11 }
 0xe5d   : > { %13215 = vmatprep.mubr.f32.mxu1 %v13214_v50  ;;  %13471 = vmatprep.mubr.f32.mxu0 %v13212_v35  ;;  %v10114_v30 = vadd.f32 %v10113_v52, %v10112_v55 }
 0xe5e   : > { %13175 = vmatprep.subr.mxu1 %v32109_v26  ;;  %13433 = vmatprep.subr.mxu0 %v32109_v26 }
 0xe5f   : > { %v32460_v48 = vand.u32 4294901760, %v10114_v30 }
 0xe60   : > { %13435 = vmatpush1.xpose.msra.mxu0 %v32119_v36  ;;  %13177 = vmatpush1.xpose.msra.mxu1 %v32119_v36 }
 0xe61   : > { %13593 = vmatprep.subr.mxu0 %v32085_v32  ;;  %13348 = vmatprep.subr.mxu1 %v34327_v41  ;;  %v13709_v32 = vsub.f32 %v10121_v14, %v32448_v18 }
 0xe63   : > { %13475 = vmatmul.mubr.f32.vlgmr.msra.gmra.mxu0 %v13218_v59  ;;  %13221 = vmatmul.mubr.f32.vlgmr.msra.gmra.mxu1 %v13220_v34  ;;  %v13710_v35 = vand.u32 4294901760, %v13709_v32 }
 0xe64   : > { %13595 = vmatpush1.xpose.msra.mxu0 %v34326_v11  ;;  %13351 = vmatpush1.xpose.msra.mxu1 %v34328_v47 }
 0xe65   : > { %13392 = vmatprep.mubr.f32.mxu1 %v13211_v61  ;;  %13633 = vmatprep.mubr.f32.mxu0 %v32410_v22  ;;  %v10147_v61 = vld [vmem:[#allocation50 + $0x48] sm:$0xff] }
 0xe66   : > { %13354 = vmatprep.subr.mxu1 %v32133_v16  ;;  %13597 = vmatprep.subr.mxu0 %v32109_v26  ;;  %v10146_v26 = vld [vmem:[#allocation50 + $0x40] sm:$0xff]  ;;  %v13711_v16 = vsub.f32 %v13709_v32, %v13710_v35 }
 0xe68   : > { %13599 = vmatpush1.xpose.msra.mxu0 %v32119_v36  ;;  %13357 = vmatpush1.xpose.msra.mxu1 %v32142_v8  ;;  %v32466_v36 = vand.u32 4294901760, %v10147_v61  ;;  %v10139_v8 = vld [vmem:[#allocation50 + $0x8] sm:$0xff] }
 0xe69   : > { %13757 = vmatprep.subr.mxu0 %v32271_v21  ;;  %13511 = vmatprep.subr.mxu1 %v32125_v38  ;;  %v13715_v38 = vsub.f32 %v10114_v30, %v32460_v48 }
 0xe6a   : > { %v32478_v21 = vsub.f32 %v10147_v61, %v32466_v36 }
 0xe6b   : > { %13635 = vmatmul.mubr.f32.vlgmr.msra.gmra.mxu0 %v32424_v54  ;;  %13395 = vmatmul.mubr.f32.vlgmr.msra.gmra.mxu1 %v13217_v7 }
 0xe6c   : > { %13763 = vmatpush1.xpose.msra.mxu0 %v32280_v39  ;;  %13515 = vmatpush1.xpose.msra.mxu1 %v32139_v27  ;;  %v32473_v39 = vand.u32 4294901760, %v10146_v26  ;;  %v10138_v27 = vld [vmem:[#allocation50] sm:$0xff] }
 0xe6d   : > { %13557 = vmatprep.mubr.f32.mxu1 %v32410_v22  ;;  %13809 = vmatprep.mubr.f32.mxu0 %v32448_v18  ;;  %v32481_v22 = vand.u32 4294901760, %v10139_v8  ;;  %v32484_v43 = vand.u32 4294901760, %v10138_v27 }
 0xe6e   : > { %13519 = vmatprep.subr.mxu1 %v32154_v4  ;;  %13769 = vmatprep.subr.mxu0 %v32290_v13  ;;  %v13716_v4 = vand.u32 4294901760, %v13715_v38  ;;  %v13712_v13 = vand.u32 4294901760, %v13711_v16 }
 0xe6f   : > { %v32497_v6 = vsub.f32 %v10139_v8, %v32481_v22 }
 0xe70   : > { %13775 = vmatpush1.xpose.msra.mxu0 %v32294_v12  ;;  %13523 = vmatpush1.xpose.msra.mxu1 %v32163_v49  ;;  %v32489_v49 = vsub.f32 %v10146_v26, %v32473_v39  ;;  %v32493_v12 = vand.u32 4294901760, %v32478_v21  ;;  %v13717_v2 = vsub.f32 %v13715_v38, %v13716_v4 }
 0xe71   : > { %13927 = vmatprep.subr.mxu0 %v32199_v15  ;;  %13669 = vmatprep.subr.mxu1 %v32199_v15  ;;  %v32513_v42 = vand.u32 4294901760, %v32497_v6 }
 0xe72   : > { %34329 = vst [vmem:[#allocation114_spill] sm:$0xff] %v32493_v12  ;;  %v32505_v53 = vand.u32 4294901760, %v32489_v49  ;;  %v14253_v7 = vsub.f32 %v32478_v21, %v32493_v12  ;;  %v13718_v31 = vand.u32 4294901760, %v13717_v2 }
 0xe73   : > { %13811 = vmatmul.mubr.f32.vlgmr.msra.gmra.mxu0 %v32460_v48  ;;  %13559 = vmatmul.mubr.f32.vlgmr.msra.gmra.mxu1 %v32424_v54  ;;  %v32501_v54 = vsub.f32 %v10138_v27, %v32484_v43  ;;  %34331 = vst [vmem:[#allocation118_spill] sm:$0xff] %v32513_v42 }
 0xe74   : > { %13929 = vmatpush1.xpose.msra.mxu0 %v32209_v23  ;;  %13671 = vmatpush1.xpose.msra.mxu1 %v32209_v23  ;;  %34330 = vst [vmem:[#allocation117_spill] sm:$0xff] %v32505_v53  ;;  %v14259_v44 = vsub.f32 %v32489_v49, %v32505_v53 }
 0xe75   : > { %13713 = vmatprep.mubr.f32.mxu1 %v13712_v13  ;;  %13969 = vmatprep.mubr.f32.mxu0 %v13710_v35  ;;  %v32516_v46 = vand.u32 4294901760, %v32501_v54 }
 0xe76   : > { %13673 = vmatprep.subr.mxu1 %v32221_v1  ;;  %13931 = vmatprep.subr.mxu0 %v32221_v1  ;;  %v32532_v24 = vand.u32 4294901760, %v14259_v44 }
 0xe77   : > { %34332 = vst [vmem:[#allocation141_spill] sm:$0xff] %v32516_v46 }
 0xe78   : > { %13933 = vmatpush1.xpose.msra.mxu0 %v32228_v33  ;;  %13675 = vmatpush1.xpose.msra.mxu1 %v32228_v33 }
 0xe79   : > { %14091 = vmatprep.subr.mxu0 %v32199_v15  ;;  %13846 = vmatprep.subr.mxu1 %v32214_v3  ;;  %v32522_v15 = vand.u32 4294901760, %v14253_v7  ;;  %v14265_v3 = vsub.f32 %v32497_v6, %v32513_v42 }
 0xe7b   : > { %13973 = vmatmul.mubr.f32.vlgmr.msra.gmra.mxu0 %v13716_v4  ;;  %13719 = vmatmul.mubr.f32.vlgmr.msra.gmra.mxu1 %v13718_v31 }
 0xe7c   : > { %14093 = vmatpush1.xpose.msra.mxu0 %v32209_v23  ;;  %13849 = vmatpush1.xpose.msra.mxu1 %v32226_v10  ;;  %v14271_v23 = vsub.f32 %v32501_v54, %v32516_v46  ;;  %v32537_v10 = vand.u32 4294901760, %v14265_v3 }
 0xe7d   : > { %13890 = vmatprep.mubr.f32.mxu1 %v13709_v32  ;;  %14131 = vmatprep.mubr.f32.mxu0 %v32448_v18 }
 0xe7e   : > { %13852 = vmatprep.subr.mxu1 %v32240_v17  ;;  %14095 = vmatprep.subr.mxu0 %v32221_v1  ;;  %v32540_v17 = vand.u32 4294901760, %v14271_v23 }
 0xe80   : > { %14097 = vmatpush1.xpose.msra.mxu0 %v32228_v33  ;;  %13855 = vmatpush1.xpose.msra.mxu1 %v32247_v58  ;;  %v34333_v58 = vmov 0.0  }
 0xe81   : > { %14255 = vmatprep.subr.mxu0 %v32522_v15  ;;  %14009 = vmatprep.subr.mxu1 %v32234_v9 }
 0xe83   : > { %14133 = vmatmul.mubr.f32.vlgmr.msra.gmra.mxu0 %v32460_v48  ;;  %13893 = vmatmul.mubr.f32.vlgmr.msra.gmra.mxu1 %v13715_v38 }
 0xe84   : > { %14261 = vmatpush1.msra.mxu0 %v32532_v24  ;;  %14013 = vmatpush1.xpose.msra.mxu1 %v32244_v28 }
 0xe85   : > { %14055 = vmatprep.mubr.f32.mxu1 %v32448_v18  ;;  %14017 = vmatprep.subr.mxu1 %v32259_v29 }
 0xe86   : > { %14267 = vmatprep.subr.mxu0 %v32537_v10  ;;  %14306 = vmatprep.mubr.f32.mxu0 %v34333_v58 }
 0xe87   : > { %14273 = vmatpush1.msra.mxu0 %v32540_v17 }
 0xe88   : > { %14424 = vmatprep.subr.mxu0 %v32466_v36  ;;  %14021 = vmatpush1.xpose.msra.mxu1 %v32267_v20 }
 0xe89   : > { %14171 = vmatprep.subr.mxu1 %v32466_v36 }
 0xe8b   : > { %v10326_v1 = vpop.f32.mrf.mxu0  ;;  %14057 = vmatmul.mubr.f32.vlgmr.msra.gmra.mxu1 %v32460_v48 }
 0xe8c   : > { %14173 = vmatpush1.msra.mxu1 %v32473_v39  ;;  %14210 = vmatprep.mubr.f32.mxu1 %v34333_v58 }
 0xe8d   : > { %v10328_v33 = vpop.f32.mrf.mxu0  ;;  %14175 = vmatprep.subr.mxu1 %v32481_v22 }
 0xe8e   : > { %14177 = vmatpush1.msra.mxu1 %v32484_v43 }
 0xe8f   : > { %14344 = vmatprep.subr.mxu1 %v32478_v21 }
 0xe93   : > { %v10488_v9 = vpop.f32.mrf.mxu0  ;;  %v10234_v28 = vpop.f32.mrf.mxu1 }
 0xe94   : > { %v10327_v47 = vadd.f32 %v10326_v1, %v10234_v28 }
 0xe95   : > { %v10490_v29 = vpop.f32.mrf.mxu0  ;;  %v10236_v20 = vpop.f32.mrf.mxu1 }
 0xe9b   : > { %v10648_v45 = vpop.f32.mrf.mxu0  ;;  %v10408_v59 = vpop.f32.mrf.mxu1 }
 0xe9c   : > { %v10409_v30 = vadd.f32 %v10408_v59, %v10327_v47 }
 0xe9d   : > { %v10650_v50 = vpop.f32.mrf.mxu0  ;;  %v10410_v37 = vpop.f32.mrf.mxu1 }
 0xe9e   : > { %v10489_v61 = vadd.f32 %v10488_v9, %v10409_v30 }
 0xea3   : > { %v10824_v11 = vpop.f32.mrf.mxu0  ;;  %v10572_v55 = vpop.f32.mrf.mxu1 }
 0xea4   : > { %v10573_v38 = vadd.f32 %v10572_v55, %v10489_v61 }
 0xea5   : > { %v10826_v5 = vpop.f32.mrf.mxu0  ;;  %v10574_v14 = vpop.f32.mrf.mxu1 }
 0xea6   : > { %v10649_v16 = vadd.f32 %v10648_v45, %v10573_v38 }
 0xeab   : > { %v10986_v52 = vpop.f32.mrf.mxu0  ;;  %v10732_v34 = vpop.f32.mrf.mxu1 }
 0xeac   : > { %v10733_v4 = vadd.f32 %v10732_v34, %v10649_v16 }
 0xead   : > { %v10988_v41 = vpop.f32.mrf.mxu0  ;;  %v10734_v18 = vpop.f32.mrf.mxu1 }
 0xeae   : > { %v10825_v7 = vadd.f32 %v10824_v11, %v10733_v4  ;;  %v10149_v4 = vld [vmem:[#allocation50 + $0x58] sm:$0xff] }
 0xeb3   : > { %v11146_v32 = vpop.f32.mrf.mxu0  ;;  %v10906_v48 = vpop.f32.mrf.mxu1 }
 0xeb4   : > { %v10907_v31 = vadd.f32 %v10906_v48, %v10825_v7  ;;  %v32558_v7 = vand.u32 4294901760, %v10149_v4 }
 0xeb5   : > { %v11148_v35 = vpop.f32.mrf.mxu0  ;;  %v10908_v26 = vpop.f32.mrf.mxu1 }
 0xeb6   : > { %v10987_v1 = vadd.f32 %v10986_v52, %v10907_v31  ;;  %34334 = vst [vmem:[#allocation115_spill] sm:$0xff] %v32558_v7  ;;  %v10140_v31 = vld [vmem:[#allocation50 + $0x10] sm:$0xff] }
 0xebb   : > { %v11322_v8 = vpop.f32.mrf.mxu0  ;;  %v11070_v27 = vpop.f32.mrf.mxu1 }
 0xebc   : > { %v11071_v28 = vadd.f32 %v11070_v27, %v10987_v1 }
 0xebd   : > { %v11324_v13 = vpop.f32.mrf.mxu0  ;;  %v11072_v2 = vpop.f32.mrf.mxu1 }
 0xebe   : > { %v11147_v9 = vadd.f32 %v11146_v32, %v11071_v28  ;;  %v10148_v13 = vld [vmem:[#allocation50 + $0x50] sm:$0xff]  ;;  %v10141_v2 = vld [vmem:[#allocation50 + $0x18] sm:$0xff]  ;;  %v32566_v28 = vand.u32 4294901760, %v10140_v31 }
 0xec0   : > { %34337 = vst [vmem:[#allocation119_spill] sm:$0xff] %v32566_v28 }
 0xec3   : > { %v11484_v44 = vpop.f32.mrf.mxu0  ;;  %v11230_v3 = vpop.f32.mrf.mxu1 }
 0xec4   : > { %v11231_v37 = vadd.f32 %v11230_v3, %v11147_v9  ;;  %v32569_v9 = vsub.f32 %v10149_v4, %v32558_v7  ;;  %v10151_v4 = vld [vmem:[#allocation50 + $0x68] sm:$0xff] }
 0xec5   : > { %v11486_v23 = vpop.f32.mrf.mxu0  ;;  %v11232_v33 = vpop.f32.mrf.mxu1 }
 0xec6   : > { %v11323_v45 = vadd.f32 %v11322_v8, %v11231_v37  ;;  %v32564_v33 = vand.u32 4294901760, %v10141_v2 }
 0xec8   : > { %34336 = vst [vmem:[#allocation116_spill] sm:$0xff] %v32564_v33 }
 0xecb   : > { %v11644_v29 = vpop.f32.mrf.mxu0  ;;  %v11404_v20 = vpop.f32.mrf.mxu1 }
 0xecc   : > { %v11405_v14 = vadd.f32 %v11404_v20, %v11323_v45  ;;  %v32575_v45 = vsub.f32 %v10141_v2, %v32564_v33 }
 0xecd   : > { %v11646_v59 = vpop.f32.mrf.mxu0  ;;  %v11406_v50 = vpop.f32.mrf.mxu1 }
 0xece   : > { %v11485_v11 = vadd.f32 %v11484_v44, %v11405_v14  ;;  %v32560_v44 = vand.u32 4294901760, %v10148_v13  ;;  %v32582_v14 = vand.u32 4294901760, %v32569_v9 }
 0xed0   : > { %34335 = vst [vmem:[#allocation144_spill] sm:$0xff] %v32560_v44  ;;  %v32572_v50 = vsub.f32 %v10148_v13, %v32560_v44  ;;  %34339 = vst [vmem:[#allocation146_spill] sm:$0xff] %v32582_v14  ;;  %v10150_v13 = vld [vmem:[#allocation50 + $0x60] sm:$0xff] }
 0xed3   : > { %v11820_v55 = vpop.f32.mrf.mxu0  ;;  %v11568_v5 = vpop.f32.mrf.mxu1 }
 0xed4   : > { %v11569_v18 = vadd.f32 %v11568_v5, %v11485_v11 }
 0xed5   : > { %v11822_v34 = vpop.f32.mrf.mxu0  ;;  %v11570_v41 = vpop.f32.mrf.mxu1 }
 0xed6   : > { %v11645_v52 = vadd.f32 %v11644_v29, %v11569_v18  ;;  %v32587_v41 = vand.u32 4294901760, %v32572_v50  ;;  %v32592_v18 = vand.u32 4294901760, %v32575_v45 }
 0xed8   : > { %34340 = vst [vmem:[#allocation120_spill] sm:$0xff] %v32587_v41  ;;  %34341 = vst [vmem:[#allocation129_spill] sm:$0xff] %v32592_v18 }
 0xedb   : > { %v11982_v47 = vpop.f32.mrf.mxu0  ;;  %v11728_v30 = vpop.f32.mrf.mxu1 }
 0xedc   : > { %v11729_v35 = vadd.f32 %v11728_v30, %v11645_v52  ;;  %v14744_v52 = vsub.f32 %v32569_v9, %v32582_v14 }
 0xedd   : > { %v11984_v48 = vpop.f32.mrf.mxu0  ;;  %v11730_v61 = vpop.f32.mrf.mxu1 }
 0xede   : > { %v11821_v32 = vadd.f32 %v11820_v55, %v11729_v35  ;;  %v32578_v55 = vsub.f32 %v10140_v31, %v32566_v28 }
 0xee0   : > { %34338 = vst [vmem:[#allocation145_spill] sm:$0xff] %v32578_v55  ;;  %v32601_v48 = vand.u32 4294901760, %v32578_v55 }
 0xee2   : > { %34342 = vst [vmem:[#allocation130_spill] sm:$0xff] %v32601_v48 }
 0xee3   : > { %v12142_v26 = vpop.f32.mrf.mxu0  ;;  %v11902_v38 = vpop.f32.mrf.mxu1 }
 0xee4   : > { %v11903_v8 = vadd.f32 %v11902_v38, %v11821_v32  ;;  %v14750_v38 = vsub.f32 %v32572_v50, %v32587_v41  ;;  %v14756_v32 = vsub.f32 %v32575_v45, %v32592_v18 }
 0xee5   : > { %v12144_v16 = vpop.f32.mrf.mxu0  ;;  %v11904_v27 = vpop.f32.mrf.mxu1 }
 0xee6   : > { %v11983_v3 = vadd.f32 %v11982_v47, %v11903_v8  ;;  %v14762_v27 = vsub.f32 %v32578_v55, %v32601_v48  ;;  %v32624_v8 = vand.u32 4294901760, %v14744_v52  ;;  %v32629_v31 = vand.u32 4294901760, %v14750_v38 }
 0xeeb   : > { %v32562_v23 = vpop.f32.mrf.mxu0  ;;  %v12066_v1 = vpop.f32.mrf.mxu1 }
 0xeec   : > { %v12067_v29 = vadd.f32 %v12066_v1, %v11983_v3  ;;  %v10143_v3 = vld [vmem:[#allocation50 + $0x28] sm:$0xff] }
 0xeed   : > { %v12320_v20 = vpop.f32.mrf.mxu0  ;;  %v12068_v59 = vpop.f32.mrf.mxu1 }
 0xeee   : > { %v12143_v37 = vadd.f32 %v12142_v26, %v12067_v29  ;;  %v32634_v29 = vand.u32 4294901760, %v14756_v32  ;;  %v32636_v20 = vand.u32 4294901760, %v10151_v4  ;;  %v10142_v59 = vld [vmem:[#allocation50 + $0x20] sm:$0xff] }
 0xeef   : > { %v32652_v32 = vand.u32 4294901760, %v10142_v59 }
 0xef0   : > { %v14140_v5 = vsel %vm14138_vm3, %v12143_v37, 0  ;;  %34343 = vst [vmem:[#allocation133_spill] sm:$0xff] %v32636_v20 }
 0xef1   : > { %v32584_v34 = vand.u32 4294901760, %v14140_v5 }
 0xef3   : > { %v32589_v11 = vpop.f32.mrf.mxu0  ;;  %v32595_v47 = vsub.f32 %v14140_v5, %v32584_v34  ;;  %v32597_v30 = vpop.f32.mrf.mxu1  ;;  %14308 = vmatmul.mubr.f32.vlgmr.msra.gmra.mxu0 %v32584_v34  ;;  %v32642_v5 = vand.u32 4294901760, %v14762_v27 }
 0xef4   : > { %14426 = vmatpush1.msra.mxu0 %v32473_v39  ;;  %14463 = vmatprep.mubr.f32.mxu0 %v34333_v58 }
 0xef5   : > { %v12482_v61 = vpop.f32.mrf.mxu0  ;;  %v12228_v35 = vpop.f32.mrf.mxu1  ;;  %14428 = vmatprep.subr.mxu0 %v32481_v22  ;;  %v32609_v26 = vand.u32 4294901760, %v32595_v47  ;;  %34344 = vst [vmem:[#allocation136_spill] sm:$0xff] %v32642_v5 }
 0xef6   : > { %14430 = vmatpush1.msra.mxu0 %v32484_v43  ;;  %v32644_v61 = vand.u32 4294901760, %v10150_v13  ;;  %v32648_v35 = vand.u32 4294901760, %v10143_v3 }
 0xef7   : > { %14467 = vmatmul.mubr.f32.vlgmr.msra.gmra.mxu0 %v32609_v26  ;;  %14586 = vmatprep.subr.mxu0 %v32466_v36  ;;  %v14214_v16 = vsub.f32 %v32595_v47, %v32609_v26 }
 0xef8   : > { %14588 = vmatpush1.msra.mxu0 %v32473_v39  ;;  %14625 = vmatprep.mubr.f32.mxu0 %v34333_v58  ;;  %34345 = vst [vmem:[#allocation156_spill] sm:$0xff] %v32644_v61  ;;  %v32662_v27 = vsub.f32 %v10150_v13, %v32644_v61 }
 0xef9   : > { %14590 = vmatprep.subr.mxu0 %v32481_v22  ;;  %v32627_v2 = vand.u32 4294901760, %v14214_v16  ;;  %v32657_v16 = vsub.f32 %v10151_v4, %v32636_v20  ;;  %v32672_v4 = vsub.f32 %v10142_v59, %v32652_v32 }
 0xefa   : > { %14592 = vmatpush1.msra.mxu0 %v32484_v43  ;;  %v32686_v40 = vand.u32 4294901760, %v32662_v27 }
 0xefb   : > { %v32632_v1 = vpop.f32.mrf.mxu0  ;;  %v32638_v37 = vpop.f32.mrf.mxu1  ;;  %14216 = vmatmul.mubr.f32.vlgmr.msra.gmra.mxu1 %v32627_v2  ;;  %14627 = vmatmul.mubr.f32.vlgmr.msra.gmra.mxu0 %v32584_v34  ;;  %v32696_v56 = vand.u32 4294901760, %v32672_v4 }
 0xefc   : > { %14746 = vmatprep.subr.mxu0 %v32624_v8  ;;  %14347 = vmatpush1.msra.mxu1 %v32489_v49 }
 0xefd   : > { %v12642_v52 = vpop.f32.mrf.mxu0  ;;  %14752 = vmatpush1.msra.mxu0 %v32629_v31  ;;  %v12402_v38 = vpop.f32.mrf.mxu1  ;;  %14350 = vmatprep.subr.mxu1 %v32497_v6  ;;  %v15253_v19 = vsub.f32 %v32672_v4, %v32696_v56 }
 0xefe   : > { %14758 = vmatprep.subr.mxu0 %v32634_v29  ;;  %14353 = vmatpush1.msra.mxu1 %v32501_v54  ;;  %v32667_v52 = vsub.f32 %v10143_v3, %v32648_v35  ;;  %v32679_v38 = vand.u32 4294901760, %v32657_v16 }
 0xeff   : > { %14386 = vmatprep.mubr.f32.mxu1 %v34333_v58  ;;  %14764 = vmatpush1.msra.mxu0 %v32642_v5  ;;  %v32736_v5 = vand.u32 4294901760, %v10152_v63 }
 0xf00   : > { %14797 = vmatprep.mubr.f32.mxu0 %v34333_v58  ;;  %14389 = vmatmul.mubr.f32.vlgmr.msra.gmra.mxu1 %v32595_v47  ;;  %v32691_v51 = vand.u32 4294901760, %v32667_v52  ;;  %v15235_v62 = vsub.f32 %v32657_v16, %v32679_v38 }
 0xf01   : > { %14504 = vmatprep.subr.mxu1 %v32493_v12  ;;  %14799 = vmatmul.mubr.f32.vlgmr.msra.gmra.mxu0 %v32584_v34  ;;  %v12319_v12 = vadd.f32 %v32562_v23, %v32597_v30  ;;  %v32757_v30 = vsub.f32 %v10152_v63, %v32736_v5 }
 0xf02   : > { %14915 = vmatprep.subr.mxu0 %v32558_v7  ;;  %14508 = vmatpush1.msra.mxu1 %v32505_v53  ;;  %v32716_v60 = vand.u32 4294901760, %v15235_v62  ;;  %v10144_v53 = vld [vmem:[#allocation50 + $0x30] sm:$0xff] }
 0xf03   : > { %v32676_v13 = vpop.f32.mrf.mxu0  ;;  %14917 = vmatpush1.msra.mxu0 %v32560_v44  ;;  %14512 = vmatprep.subr.mxu1 %v32513_v42  ;;  %v32683_v3 = vpop.f32.mrf.mxu1  ;;  %v10145_v42 = vld [vmem:[#allocation50 + $0x38] sm:$0xff] }
 0xf04   : > { %14919 = vmatprep.subr.mxu0 %v32564_v33  ;;  %14516 = vmatpush1.msra.mxu1 %v32516_v46 }
 0xf05   : > { %v12818_v59 = vpop.f32.mrf.mxu0  ;;  %14549 = vmatprep.mubr.f32.mxu1 %v34333_v58  ;;  %14921 = vmatpush1.msra.mxu0 %v32566_v28  ;;  %v12566_v57 = vpop.f32.mrf.mxu1 }
 0xf06   : > { %14954 = vmatprep.mubr.f32.mxu0 %v34333_v58  ;;  %14551 = vmatmul.mubr.f32.vlgmr.msra.gmra.mxu1 %v32584_v34  ;;  %v15241_v59 = vsub.f32 %v32662_v27, %v32686_v40  ;;  %v15247_v57 = vsub.f32 %v32667_v52, %v32691_v51 }
 0xf07   : > { %14662 = vmatprep.subr.mxu1 %v32558_v7  ;;  %14958 = vmatmul.mubr.f32.vlgmr.msra.gmra.mxu0 %v32609_v26 }
 0xf08   : > { %15077 = vmatprep.subr.mxu0 %v32558_v7  ;;  %14664 = vmatpush1.msra.mxu1 %v32560_v44  ;;  %v32722_v46 = vand.u32 4294901760, %v15241_v59  ;;  %v32730_v7 = vand.u32 4294901760, %v10153_v25 }
 0xf09   : > { %15079 = vmatpush1.msra.mxu0 %v32560_v44  ;;  %14666 = vmatprep.subr.mxu1 %v32564_v33 }
 0xf0a   : > { %15081 = vmatprep.subr.mxu0 %v32564_v33  ;;  %14668 = vmatpush1.msra.mxu1 %v32566_v28  ;;  %34346 = vst [vmem:[#allocation132_spill] sm:$0xff] %v32722_v46  ;;  %v32728_v33 = vand.u32 4294901760, %v15247_v57  ;;  %v32742_v57 = vand.u32 4294901760, %v10145_v42  ;;  %v32752_v23 = vsub.f32 %v10153_v25, %v32730_v7 }
 0xf0b   : > { %v32718_v0 = vpop.f32.mrf.mxu0  ;;  %14701 = vmatprep.mubr.f32.mxu1 %v34333_v58  ;;  %15083 = vmatpush1.msra.mxu0 %v32566_v28  ;;  %v32724_v44 = vpop.f32.mrf.mxu1  ;;  %v32734_v28 = vand.u32 4294901760, %v15253_v19  ;;  %v12401_v19 = vadd.f32 %v32638_v37, %v12319_v12 }
 0xf0c   : > { %15116 = vmatprep.mubr.f32.mxu0 %v34333_v58  ;;  %14707 = vmatmul.mubr.f32.vlgmr.msra.gmra.mxu1 %v32627_v2  ;;  %34347 = vst [vmem:[#allocation157_spill] sm:$0xff] %v32728_v33  ;;  %v32764_v12 = vsub.f32 %v10145_v42, %v32742_v57  ;;  %v32780_v42 = vand.u32 4294901760, %v32757_v30 }
 0xf0d   : > { %v12980_v62 = vpop.f32.mrf.mxu0  ;;  %14835 = vmatprep.subr.mxu1 %v32569_v9  ;;  %15118 = vmatmul.mubr.f32.vlgmr.msra.gmra.mxu0 %v32584_v34  ;;  %34348 = vst [vmem:[#allocation135_spill] sm:$0xff] %v32734_v28  ;;  %v12726_v59 = vpop.f32.mrf.mxu1  ;;  %v12481_v63 = vadd.f32 %v32589_v11, %v12401_v19 }
 0xf0e   : > { %15237 = vmatprep.subr.mxu0 %v32716_v60  ;;  %14838 = vmatpush1.msra.mxu1 %v32572_v50  ;;  %v32746_v62 = vand.u32 4294901760, %v10144_v53  ;;  %v32786_v11 = vand.u32 4294901760, %v32764_v12 }
 0xf0f   : > { %15243 = vmatpush1.msra.mxu0 %v32722_v46  ;;  %14841 = vmatprep.subr.mxu1 %v32575_v45 }
 0xf10   : > { %15249 = vmatprep.subr.mxu0 %v32728_v33  ;;  %14844 = vmatpush1.msra.mxu1 %v32578_v55  ;;  %v32769_v37 = vsub.f32 %v10144_v53, %v32746_v62  ;;  %v12565_v53 = vadd.f32 %v32683_v3, %v12481_v63  ;;  %v15732_v3 = vsub.f32 %v32757_v30, %v32780_v42 }
 0xf11   : > { %14877 = vmatprep.mubr.f32.mxu1 %v34333_v58  ;;  %15255 = vmatpush1.msra.mxu0 %v32734_v28  ;;  %v32775_v28 = vand.u32 4294901760, %v32752_v23  ;;  %v15738_v63 = vsub.f32 %v32764_v12, %v32786_v11 }
 0xf12   : > { %15288 = vmatprep.mubr.f32.mxu0 %v34333_v58  ;;  %14880 = vmatmul.mubr.f32.vlgmr.msra.gmra.mxu1 %v32595_v47  ;;  %v12641_v19 = vadd.f32 %v32632_v1, %v12565_v53 }
 0xf13   : > { %v32761_v59 = vpop.f32.mrf.mxu0  ;;  %14995 = vmatprep.subr.mxu1 %v32582_v14  ;;  %15290 = vmatmul.mubr.f32.vlgmr.msra.gmra.mxu0 %v32584_v34  ;;  %v12898_v25 = vpop.f32.mrf.mxu1  ;;  %v32823_v46 = vand.u32 4294901760, %v15738_v63 }
 0xf14   : > { %15406 = vmatprep.subr.mxu0 %v32636_v20  ;;  %14999 = vmatpush1.msra.mxu1 %v32587_v41  ;;  %v12725_v55 = vadd.f32 %v32724_v44, %v12641_v19 }
 0xf15   : > { %v13140_v33 = vpop.f32.mrf.mxu0  ;;  %15408 = vmatpush1.msra.mxu0 %v32644_v61  ;;  %15003 = vmatprep.subr.mxu1 %v32592_v18  ;;  %v12900_v14 = vpop.f32.mrf.mxu1 }
 0xf16   : > { %15410 = vmatprep.subr.mxu0 %v32648_v35  ;;  %15007 = vmatpush1.msra.mxu1 %v32601_v48  ;;  %v32791_v33 = vand.u32 4294901760, %v32769_v37  ;;  %v15726_v14 = vsub.f32 %v32752_v23, %v32775_v28 }
 0xf17   : > { %15040 = vmatprep.mubr.f32.mxu1 %v34333_v58  ;;  %15412 = vmatpush1.msra.mxu0 %v32652_v32 }
 0xf18   : > { %15445 = vmatprep.mubr.f32.mxu0 %v34333_v58  ;;  %15042 = vmatmul.mubr.f32.vlgmr.msra.gmra.mxu1 %v32584_v34  ;;  %v15744_v18 = vsub.f32 %v32769_v37, %v32791_v33  ;;  %v32815_v1 = vand.u32 4294901760, %v15726_v14  ;;  %v12817_v14 = vadd.f32 %v32676_v13, %v12725_v55 }
 0xf19   : > { %15153 = vmatprep.subr.mxu1 %v32636_v20  ;;  %15449 = vmatmul.mubr.f32.vlgmr.msra.gmra.mxu0 %v32609_v26 }
 0xf1a   : > { %15568 = vmatprep.subr.mxu0 %v32636_v20  ;;  %15155 = vmatpush1.msra.mxu1 %v32644_v61  ;;  %v32827_v44 = vand.u32 4294901760, %v15744_v18 }
 0xf1b   : > { %v32806_v48 = vpop.f32.mrf.mxu0  ;;  %15570 = vmatpush1.msra.mxu0 %v32644_v61  ;;  %15157 = vmatprep.subr.mxu1 %v32648_v35  ;;  %v13062_v41 = vpop.f32.mrf.mxu1  ;;  %v32819_v61 = vand.u32 4294901760, %v15732_v3 }
 0xf1c   : > { %15572 = vmatprep.subr.mxu0 %v32648_v35  ;;  %15159 = vmatpush1.msra.mxu1 %v32652_v32 }
 0xf1d   : > { %v13316_v53 = vpop.f32.mrf.mxu0  ;;  %15192 = vmatprep.mubr.f32.mxu1 %v34333_v58  ;;  %15574 = vmatpush1.msra.mxu0 %v32652_v32  ;;  %v13064_v20 = vpop.f32.mrf.mxu1 }
 0xf1e   : > { %15607 = vmatprep.mubr.f32.mxu0 %v34333_v58  ;;  %15198 = vmatmul.mubr.f32.vlgmr.msra.gmra.mxu1 %v32627_v2  ;;  %v12899_v20 = vadd.f32 %v12898_v25, %v12817_v14 }
 0xf1f   : > { %15326 = vmatprep.subr.mxu1 %v32657_v16  ;;  %15609 = vmatmul.mubr.f32.vlgmr.msra.gmra.mxu0 %v32584_v34 }
 0xf20   : > { %15728 = vmatprep.subr.mxu0 %v32815_v1  ;;  %15329 = vmatpush1.msra.mxu1 %v32662_v27  ;;  %v12979_v25 = vadd.f32 %v32718_v0, %v12899_v20 }
 0xf21   : > { %15734 = vmatpush1.msra.mxu0 %v32819_v61  ;;  %15332 = vmatprep.subr.mxu1 %v32667_v52 }
 0xf22   : > { %15740 = vmatprep.subr.mxu0 %v32823_v46  ;;  %15335 = vmatpush1.msra.mxu1 %v32672_v4  ;;  %v13063_v19 = vadd.f32 %v13062_v41, %v12979_v25 }
 0xf23   : > { %v13476_v3 = vpop.f32.mrf.mxu0  ;;  %15368 = vmatprep.mubr.f32.mxu1 %v34333_v58  ;;  %15746 = vmatpush1.msra.mxu0 %v32827_v44  ;;  %v13222_v18 = vpop.f32.mrf.mxu1 }
 0xf24   : > { %15779 = vmatprep.mubr.f32.mxu0 %v34333_v58  ;;  %15371 = vmatmul.mubr.f32.vlgmr.msra.gmra.mxu1 %v32595_v47  ;;  %v13139_v41 = vadd.f32 %v32761_v59, %v13063_v19 }
 0xf25   : > { %v13478_v55 = vpop.f32.mrf.mxu0  ;;  %15486 = vmatprep.subr.mxu1 %v32679_v38  ;;  %15781 = vmatmul.mubr.f32.vlgmr.msra.gmra.mxu0 %v32584_v34  ;;  %v13224_v13 = vpop.f32.mrf.mxu1 }
 0xf26   : > { %15897 = vmatprep.subr.mxu0 %v32730_v7  ;;  %15490 = vmatpush1.msra.mxu1 %v32686_v40  ;;  %v13223_v20 = vadd.f32 %v13222_v18, %v13139_v41 }
 0xf27   : > { %15899 = vmatpush1.msra.mxu0 %v32736_v5  ;;  %15494 = vmatprep.subr.mxu1 %v32691_v51 }
 0xf28   : > { %15901 = vmatprep.subr.mxu0 %v32742_v57  ;;  %15498 = vmatpush1.msra.mxu1 %v32696_v56 }
 0xf29   : > { %15531 = vmatprep.mubr.f32.mxu1 %v34333_v58  ;;  %15903 = vmatpush1.msra.mxu0 %v32746_v62 }
 0xf2a   : > { %15936 = vmatprep.mubr.f32.mxu0 %v34333_v58  ;;  %15533 = vmatmul.mubr.f32.vlgmr.msra.gmra.mxu1 %v32584_v34 }
 0xf2b   : > { %v13636_v63 = vpop.f32.mrf.mxu0  ;;  %15644 = vmatprep.subr.mxu1 %v32730_v7  ;;  %15940 = vmatmul.mubr.f32.vlgmr.msra.gmra.mxu0 %v32609_v26  ;;  %v13396_v0 = vpop.f32.mrf.mxu1  ;;  %v13315_v26 = vadd.f32 %v32806_v48, %v13223_v20 }
 0xf2c   : > { %16059 = vmatprep.subr.mxu0 %v32730_v7  ;;  %15646 = vmatpush1.msra.mxu1 %v32736_v5 }
 0xf2d   : > { %v13638_v53 = vpop.f32.mrf.mxu0  ;;  %16061 = vmatpush1.msra.mxu0 %v32736_v5  ;;  %15648 = vmatprep.subr.mxu1 %v32742_v57  ;;  %v13398_v14 = vpop.f32.mrf.mxu1  ;;  %v13397_v55 = vadd.f32 %v13396_v0, %v13315_v26 }
 0xf2e   : > { %16063 = vmatprep.subr.mxu0 %v32742_v57  ;;  %15650 = vmatpush1.msra.mxu1 %v32746_v62 }
 0xf2f   : > { %15683 = vmatprep.mubr.f32.mxu1 %v34333_v58  ;;  %16065 = vmatpush1.msra.mxu0 %v32746_v62 }
 0xf30   : > { %16098 = vmatprep.mubr.f32.mxu0 %v34333_v58  ;;  %15689 = vmatmul.mubr.f32.vlgmr.msra.gmra.mxu1 %v32627_v2 }
 0xf31   : > { %15817 = vmatprep.subr.mxu1 %v32752_v23  ;;  %16100 = vmatmul.mubr.f32.vlgmr.msra.gmra.mxu0 %v32584_v34 }
 0xf32   : > { %15820 = vmatpush1.msra.mxu1 %v32757_v30  ;;  %15859 = vmatprep.mubr.f32.mxu1 %v34333_v58 }
 0xf33   : > { %v13812_v59 = vpop.f32.mrf.mxu0  ;;  %15823 = vmatprep.subr.mxu1 %v32764_v12  ;;  %v13560_v18 = vpop.f32.mrf.mxu1  ;;  %16222 = vmatprep.subr.mxu0 %v32522_v15  ;;  %v13477_v15 = vadd.f32 %v13476_v3, %v13397_v55 }
 0xf34   : > { %15826 = vmatpush1.msra.mxu1 %v32769_v37  ;;  %16228 = vmatpush1.msra.mxu0 %v32532_v24 }
 0xf35   : > { %v13814_v2 = vpop.f32.mrf.mxu0  ;;  %15862 = vmatmul.mubr.f32.vlgmr.msra.gmra.mxu1 %v32595_v47  ;;  %15977 = vmatprep.subr.mxu1 %v32775_v28  ;;  %v13562_v13 = vpop.f32.mrf.mxu1  ;;  %v13561_v24 = vadd.f32 %v13560_v18, %v13477_v15 }
 0xf36   : > { %15981 = vmatpush1.msra.mxu1 %v32780_v42  ;;  %16022 = vmatprep.mubr.f32.mxu1 %v34333_v58 }
 0xf37   : > { %15985 = vmatprep.subr.mxu1 %v32786_v11  ;;  %16234 = vmatprep.subr.mxu0 %v32537_v10 }
 0xf38   : > { %15989 = vmatpush1.msra.mxu1 %v32791_v33  ;;  %16240 = vmatpush1.msra.mxu0 %v32540_v17  ;;  %v13637_v17 = vadd.f32 %v13636_v63, %v13561_v24 }
 0xf39   : > { %16024 = vmatmul.mubr.f32.vlgmr.msra.gmra.mxu1 %v32584_v34  ;;  %16273 = vmatprep.mubr.f32.mxu0 %v34333_v58 }
 0xf3a   : > { %16391 = vmatprep.subr.mxu0 %v32466_v36  ;;  %16138 = vmatprep.subr.mxu1 %v32466_v36 }
 0xf3b   : > { %v13974_v47 = vpop.f32.mrf.mxu0  ;;  %v13720_v48 = vpop.f32.mrf.mxu1  ;;  %16140 = vmatpush1.msra.mxu1 %v32473_v39  ;;  %16177 = vmatprep.mubr.f32.mxu1 %v34333_v58 }
 0xf3c   : > { %16142 = vmatprep.subr.mxu1 %v32481_v22  ;;  %v13721_v34 = vadd.f32 %v13720_v48, %v13637_v17  ;;  %v34360_v48 = vld [vmem:[#allocation157_spill] sm:$0xff]  ;;  %v34367_v17 = vld [vmem:[#allocation130_spill] sm:$0xff] }
 0xf3d   : > { %v13976_v10 = vpop.f32.mrf.mxu0  ;;  %v13722_v3 = vpop.f32.mrf.mxu1  ;;  %16144 = vmatpush1.msra.mxu1 %v32484_v43 }
 0xf3e   : > { %16311 = vmatprep.subr.mxu1 %v32478_v21  ;;  %v13813_v0 = vadd.f32 %v13812_v59, %v13721_v34  ;;  %v34362_v10 = vld [vmem:[#allocation135_spill] sm:$0xff]  ;;  %v34366_v3 = vld [vmem:[#allocation156_spill] sm:$0xff] }
 0xf43   : > { %v14134_v25 = vpop.f32.mrf.mxu0  ;;  %v13894_v19 = vpop.f32.mrf.mxu1 }
 0xf44   : > { %v13895_v14 = vadd.f32 %v13894_v19, %v13813_v0 }
 0xf45   : > { %v14136_v41 = vpop.f32.mrf.mxu0  ;;  %v13896_v53 = vpop.f32.mrf.mxu1 }
 0xf46   : > { %v13975_v20 = vadd.f32 %v13974_v47, %v13895_v14  ;;  %v34359_v47 = vld [vmem:[#allocation145_spill] sm:$0xff] }
 0xf47   : > { %v29157_v53 = vld [vmem:[#allocation29 + $0xe4] ss:$16 sps:$4 sm:$0xff]  }
 0xf48   : > { %v29160_v14 = vld [vmem:[#allocation29 + $0x2e4] ss:$16 sps:$4 sm:$0xff]  }
 0xf4b   : > { %v14058_v26 = vpop.f32.mrf.mxu1 }
 0xf4c   : > { %v14059_v18 = vadd.f32 %v14058_v26, %v13975_v20  ;;  %v29155_v26 = vld [vmem:[#allocation29 + $0xe0] ss:$16 sps:$4 sm:$0xff]  }
 0xf4d   : > { %v14060_v55 = vpop.f32.mrf.mxu1 }
 0xf4e   : > { %v14135_v2 = vadd.f32 %v14134_v25, %v14059_v18  ;;  %v29158_v18 = vld [vmem:[#allocation29 + $0x2e0] ss:$16 sps:$4 sm:$0xff]  }
 0xf50   : > { %v16107_v13 = vsel %vm14138_vm3, %v14135_v2, 0  ;;  %v29163_v2 = vld [vmem:[#allocation29 + $0xc4] ss:$16 sps:$4 sm:$0xff]  }
 0xf51   : > { %v32893_v15 = vand.u32 4294901760, %v16107_v13 }
 0xf53   : > { %v32896_v63 = vsub.f32 %v16107_v13, %v32893_v15  ;;  %16275 = vmatmul.mubr.f32.vlgmr.msra.gmra.mxu0 %v32893_v15  ;;  %v29166_v13 = vld [vmem:[#allocation29 + $0x2c4] ss:$16 sps:$4 sm:$0xff]  }
 0xf54   : > { %16393 = vmatpush1.msra.mxu0 %v32473_v39  ;;  %16430 = vmatprep.mubr.f32.mxu0 %v34333_v58 }
 0xf55   : > { %16395 = vmatprep.subr.mxu0 %v32481_v22  ;;  %v32903_v21 = vand.u32 4294901760, %v32896_v63 }
 0xf56   : > { %16397 = vmatpush1.msra.mxu0 %v32484_v43 }
 0xf57   : > { %16434 = vmatmul.mubr.f32.vlgmr.msra.gmra.mxu0 %v32903_v21  ;;  %16553 = vmatprep.subr.mxu0 %v32466_v36  ;;  %v16181_v59 = vsub.f32 %v32896_v63, %v32903_v21  ;;  %v34349_v36 = vld [vmem:[#allocation114_spill] sm:$0xff] }
 0xf58   : > { %16555 = vmatpush1.msra.mxu0 %v32473_v39  ;;  %16592 = vmatprep.mubr.f32.mxu0 %v34333_v58  ;;  %v34350_v39 = vld [vmem:[#allocation136_spill] sm:$0xff] }
 0xf59   : > { %16557 = vmatprep.subr.mxu0 %v32481_v22  ;;  %v32913_v24 = vand.u32 4294901760, %v16181_v59  ;;  %v34351_v22 = vld [vmem:[#allocation117_spill] sm:$0xff] }
 0xf5a   : > { %16559 = vmatpush1.msra.mxu0 %v32484_v43  ;;  %v34352_v43 = vld [vmem:[#allocation115_spill] sm:$0xff] }
 0xf5b   : > { %16183 = vmatmul.mubr.f32.vlgmr.msra.gmra.mxu1 %v32913_v24  ;;  %16594 = vmatmul.mubr.f32.vlgmr.msra.gmra.mxu0 %v32893_v15  ;;  %v29169_v59 = vld [vmem:[#allocation29 + $0xa4] ss:$16 sps:$4 sm:$0xff]  }
 0xf5c   : > { %16314 = vmatpush1.msra.mxu1 %v32489_v49  ;;  %16713 = vmatprep.subr.mxu0 %v32624_v8  ;;  %v34353_v49 = vld [vmem:[#allocation118_spill] sm:$0xff]  ;;  %v34356_v8 = vld [vmem:[#allocation116_spill] sm:$0xff] }
 0xf5d   : > { %16317 = vmatprep.subr.mxu1 %v32497_v6  ;;  %16719 = vmatpush1.msra.mxu0 %v32629_v31  ;;  %v34354_v6 = vld [vmem:[#allocation144_spill] sm:$0xff]  ;;  %v34357_v31 = vld [vmem:[#allocation119_spill] sm:$0xff] }
 0xf5e   : > { %16320 = vmatpush1.msra.mxu1 %v32501_v54  ;;  %16725 = vmatprep.subr.mxu0 %v32634_v29  ;;  %v34355_v54 = vld [vmem:[#allocation141_spill] sm:$0xff]  ;;  %v34358_v29 = vld [vmem:[#allocation132_spill] sm:$0xff] }
 0xf5f   : > { %16353 = vmatprep.mubr.f32.mxu1 %v34333_v58  ;;  %16471 = vmatprep.subr.mxu1 %v34349_v36  ;;  %v29167_v36 = vld [vmem:[#allocation29 + $0xa0] ss:$16 sps:$4 sm:$0xff]  }
 0xf60   : > { %16731 = vmatpush1.msra.mxu0 %v34350_v39  ;;  %16764 = vmatprep.mubr.f32.mxu0 %v34333_v58  ;;  %v29170_v39 = vld [vmem:[#allocation29 + $0x2a0] ss:$16 sps:$4 sm:$0xff]  }
 0xf61   : > { %16356 = vmatmul.mubr.f32.vlgmr.msra.gmra.mxu1 %v32896_v63  ;;  %16766 = vmatmul.mubr.f32.vlgmr.msra.gmra.mxu0 %v32893_v15 }
 0xf62   : > { %16475 = vmatpush1.msra.mxu1 %v34351_v22  ;;  %16882 = vmatprep.subr.mxu0 %v34352_v43 }
 0xf63   : > { %16479 = vmatprep.subr.mxu1 %v34353_v49  ;;  %16884 = vmatpush1.msra.mxu0 %v34354_v6  ;;  %v29178_v49 = vld [vmem:[#allocation29 + $0x284] ss:$16 sps:$4 sm:$0xff]  }
 0xf64   : > { %16483 = vmatpush1.msra.mxu1 %v34355_v54  ;;  %16886 = vmatprep.subr.mxu0 %v34356_v8  ;;  %v29176_v54 = vld [vmem:[#allocation29 + $0x280] ss:$16 sps:$4 sm:$0xff]  }
 0xf65   : > { %16516 = vmatprep.mubr.f32.mxu1 %v34333_v58  ;;  %16629 = vmatprep.subr.mxu1 %v34352_v43 }
 0xf66   : > { %16888 = vmatpush1.msra.mxu0 %v34357_v31  ;;  %16921 = vmatprep.mubr.f32.mxu0 %v34333_v58 }
 0xf67   : > { %16518 = vmatmul.mubr.f32.vlgmr.msra.gmra.mxu1 %v32893_v15  ;;  %16925 = vmatmul.mubr.f32.vlgmr.msra.gmra.mxu0 %v32903_v21 }
 0xf68   : > { %16631 = vmatpush1.msra.mxu1 %v34354_v6  ;;  %17044 = vmatprep.subr.mxu0 %v34352_v43  ;;  %v29175_v43 = vld [vmem:[#allocation29 + $0x84] ss:$16 sps:$4 sm:$0xff]  }
 0xf69   : > { %16633 = vmatprep.subr.mxu1 %v34356_v8  ;;  %17046 = vmatpush1.msra.mxu0 %v34354_v6  ;;  %v29173_v6 = vld [vmem:[#allocation29 + $0x80] ss:$16 sps:$4 sm:$0xff]  }
 0xf6a   : > { %16635 = vmatpush1.msra.mxu1 %v34357_v31  ;;  %17048 = vmatprep.subr.mxu0 %v34356_v8 }
 0xf6b   : > { %16668 = vmatprep.mubr.f32.mxu1 %v34333_v58  ;;  %16802 = vmatprep.subr.mxu1 %v32569_v9  ;;  %v34361_v9 = vld [vmem:[#allocation146_spill] sm:$0xff] }
 0xf6c   : > { %17050 = vmatpush1.msra.mxu0 %v34357_v31  ;;  %17083 = vmatprep.mubr.f32.mxu0 %v34333_v58 }
 0xf6d   : > { %16674 = vmatmul.mubr.f32.vlgmr.msra.gmra.mxu1 %v32913_v24  ;;  %17085 = vmatmul.mubr.f32.vlgmr.msra.gmra.mxu0 %v32893_v15 }
 0xf6e   : > { %16805 = vmatpush1.msra.mxu1 %v32572_v50  ;;  %17204 = vmatprep.subr.mxu0 %v32716_v60  ;;  %v34363_v60 = vld [vmem:[#allocation120_spill] sm:$0xff]  ;;  %v34364_v50 = vld [vmem:[#allocation133_spill] sm:$0xff] }
 0xf6f   : > { %16808 = vmatprep.subr.mxu1 %v32575_v45  ;;  %17210 = vmatpush1.msra.mxu0 %v34358_v29  ;;  %v34365_v45 = vld [vmem:[#allocation129_spill] sm:$0xff] }
 0xf70   : > { %16811 = vmatpush1.msra.mxu1 %v34359_v47  ;;  %17216 = vmatprep.subr.mxu0 %v34360_v48  ;;  %v29181_v29 = vld [vmem:[#allocation29 + $0x64] ss:$16 sps:$4 sm:$0xff]   ;;  %v29179_v48 = vld [vmem:[#allocation29 + $0x60] ss:$16 sps:$4 sm:$0xff]  }
 0xf71   : > { %16844 = vmatprep.mubr.f32.mxu1 %v34333_v58  ;;  %16962 = vmatprep.subr.mxu1 %v34361_v9  ;;  %v29184_v47 = vld [vmem:[#allocation29 + $0x264] ss:$16 sps:$4 sm:$0xff]   ;;  %v29182_v9 = vld [vmem:[#allocation29 + $0x260] ss:$16 sps:$4 sm:$0xff]  }
 0xf72   : > { %17222 = vmatpush1.msra.mxu0 %v34362_v10  ;;  %17255 = vmatprep.mubr.f32.mxu0 %v34333_v58 }
 0xf73   : > { %16847 = vmatmul.mubr.f32.vlgmr.msra.gmra.mxu1 %v32896_v63  ;;  %17257 = vmatmul.mubr.f32.vlgmr.msra.gmra.mxu0 %v32893_v15 }
 0xf74   : > { %16966 = vmatpush1.msra.mxu1 %v34363_v60  ;;  %17373 = vmatprep.subr.mxu0 %v34364_v50 }
 0xf75   : > { %16970 = vmatprep.subr.mxu1 %v34365_v45  ;;  %17375 = vmatpush1.msra.mxu0 %v34366_v3  ;;  %v29190_v45 = vld [vmem:[#allocation29 + $0x244] ss:$16 sps:$4 sm:$0xff]  }
 0xf76   : > { %16974 = vmatpush1.msra.mxu1 %v34367_v17  ;;  %17377 = vmatprep.subr.mxu0 %v32648_v35  ;;  %v29188_v17 = vld [vmem:[#allocation29 + $0x240] ss:$16 sps:$4 sm:$0xff]  }
 0xf77   : > { %17007 = vmatprep.mubr.f32.mxu1 %v34333_v58  ;;  %17120 = vmatprep.subr.mxu1 %v34364_v50 }
 0xf78   : > { %17379 = vmatpush1.msra.mxu0 %v32652_v32  ;;  %17412 = vmatprep.mubr.f32.mxu0 %v34333_v58 }
 0xf79   : > { %17009 = vmatmul.mubr.f32.vlgmr.msra.gmra.mxu1 %v32893_v15  ;;  %17416 = vmatmul.mubr.f32.vlgmr.msra.gmra.mxu0 %v32903_v21 }
 0xf7a   : > { %17122 = vmatpush1.msra.mxu1 %v34366_v3  ;;  %17535 = vmatprep.subr.mxu0 %v34364_v50  ;;  %v29187_v50 = vld [vmem:[#allocation29 + $0x44] ss:$16 sps:$4 sm:$0xff]  }
 0xf7b   : > { %17124 = vmatprep.subr.mxu1 %v32648_v35  ;;  %17537 = vmatpush1.msra.mxu0 %v34366_v3  ;;  %v29185_v3 = vld [vmem:[#allocation29 + $0x40] ss:$16 sps:$4 sm:$0xff]  }
 0xf7c   : > { %17126 = vmatpush1.msra.mxu1 %v32652_v32  ;;  %17539 = vmatprep.subr.mxu0 %v32648_v35 }
 0xf7d   : > { %17159 = vmatprep.mubr.f32.mxu1 %v34333_v58  ;;  %17293 = vmatprep.subr.mxu1 %v32657_v16 }
 0xf7e   : > { %17541 = vmatpush1.msra.mxu0 %v32652_v32  ;;  %17574 = vmatprep.mubr.f32.mxu0 %v34333_v58 }
 0xf7f   : > { %17165 = vmatmul.mubr.f32.vlgmr.msra.gmra.mxu1 %v32913_v24  ;;  %17576 = vmatmul.mubr.f32.vlgmr.msra.gmra.mxu0 %v32893_v15 }
 0xf80   : > { %17296 = vmatpush1.msra.mxu1 %v32662_v27  ;;  %17695 = vmatprep.subr.mxu0 %v32815_v1 }
 0xf81   : > { %17299 = vmatprep.subr.mxu1 %v32667_v52  ;;  %17701 = vmatpush1.msra.mxu0 %v32819_v61 }
 0xf82   : > { %17302 = vmatpush1.msra.mxu1 %v32672_v4  ;;  %17707 = vmatprep.subr.mxu0 %v32823_v46 }
 0xf83   : > { %17335 = vmatprep.mubr.f32.mxu1 %v34333_v58  ;;  %17453 = vmatprep.subr.mxu1 %v32679_v38 }
 0xf84   : > { %17713 = vmatpush1.msra.mxu0 %v32827_v44  ;;  %17746 = vmatprep.mubr.f32.mxu0 %v34333_v58 }
 0xf85   : > { %17338 = vmatmul.mubr.f32.vlgmr.msra.gmra.mxu1 %v32896_v63  ;;  %17748 = vmatmul.mubr.f32.vlgmr.msra.gmra.mxu0 %v32893_v15 }
 0xf86   : > { %17457 = vmatpush1.msra.mxu1 %v32686_v40  ;;  %17864 = vmatprep.subr.mxu0 %v32730_v7 }
 0xf87   : > { %17461 = vmatprep.subr.mxu1 %v32691_v51  ;;  %17866 = vmatpush1.msra.mxu0 %v32736_v5 }
 0xf88   : > { %17465 = vmatpush1.msra.mxu1 %v32696_v56  ;;  %17868 = vmatprep.subr.mxu0 %v32742_v57 }
 0xf89   : > { %17498 = vmatprep.mubr.f32.mxu1 %v34333_v58  ;;  %17611 = vmatprep.subr.mxu1 %v32730_v7 }
 0xf8a   : > { %17870 = vmatpush1.msra.mxu0 %v32746_v62  ;;  %17903 = vmatprep.mubr.f32.mxu0 %v34333_v58 }
 0xf8b   : > { %17500 = vmatmul.mubr.f32.vlgmr.msra.gmra.mxu1 %v32893_v15  ;;  %17907 = vmatmul.mubr.f32.vlgmr.msra.gmra.mxu0 %v32903_v21 }
 0xf8c   : > { %17613 = vmatpush1.msra.mxu1 %v32736_v5  ;;  %18026 = vmatprep.subr.mxu0 %v32730_v7 }
 0xf8d   : > { %17615 = vmatprep.subr.mxu1 %v32742_v57  ;;  %18028 = vmatpush1.msra.mxu0 %v32736_v5 }
 0xf8e   : > { %17617 = vmatpush1.msra.mxu1 %v32746_v62  ;;  %18030 = vmatprep.subr.mxu0 %v32742_v57 }
 0xf8f   : > { %17650 = vmatprep.mubr.f32.mxu1 %v34333_v58  ;;  %17784 = vmatprep.subr.mxu1 %v32752_v23 }
 0xf90   : > { %18032 = vmatpush1.msra.mxu0 %v32746_v62  ;;  %18065 = vmatprep.mubr.f32.mxu0 %v34333_v58 }
 0xf91   : > { %17656 = vmatmul.mubr.f32.vlgmr.msra.gmra.mxu1 %v32913_v24  ;;  %18067 = vmatmul.mubr.f32.vlgmr.msra.gmra.mxu0 %v32893_v15  ;;  %v29172_v24 = vld [vmem:[#allocation29 + $0x2a4] ss:$16 sps:$4 sm:$0xff]  }
 0xf92   : > { %17787 = vmatpush1.msra.mxu1 %v32757_v30  ;;  %17826 = vmatprep.mubr.f32.mxu1 %v34333_v58 }
 0xf93   : > { %17790 = vmatprep.subr.mxu1 %v32764_v12  ;;  %20015 = vmatprep.subr.bf16.mxu0 %v29160_v14  ;;  %v29209_v14 = vld [vmem:[#allocation29 + $0x1c0] ss:$16 sps:$4 sm:$0xff]  }
 0xf94   : > { %17793 = vmatpush1.msra.mxu1 %v32769_v37  ;;  %20016 = vmatpush1.bf16.msra.mxu0 %v29158_v18  ;;  %v29220_v18 = vld [vmem:[#allocation29 + $0x3a4] ss:$16 sps:$4 sm:$0xff]  }
 0xf95   : > { %17944 = vmatprep.subr.mxu1 %v32775_v28  ;;  %17829 = vmatmul.mubr.f32.vlgmr.msra.gmra.mxu1 %v32896_v63  ;;  %v29164_v63 = vld [vmem:[#allocation29 + $0x2c0] ss:$16 sps:$4 sm:$0xff]  }
 0xf96   : > { %17948 = vmatpush1.msra.mxu1 %v32780_v42  ;;  %17989 = vmatprep.mubr.f32.mxu1 %v34333_v58 }
 0xf97   : > { %17952 = vmatprep.subr.mxu1 %v32786_v11  ;;  %20017 = vmatprep.subr.bf16.mxu0 %v29166_v13  ;;  %v29218_v13 = vld [vmem:[#allocation29 + $0x3a0] ss:$16 sps:$4 sm:$0xff]  }
 0xf98   : > { %17956 = vmatpush1.msra.mxu1 %v32791_v33  ;;  %20018 = vmatpush1.bf16.msra.mxu0 %v29164_v63 }
 0xf99   : > { %17991 = vmatmul.mubr.f32.vlgmr.msra.gmra.mxu1 %v32893_v15  ;;  %19974 = vmatprep.subr.bf16.mxu1 %v29157_v53  ;;  %v29161_v15 = vld [vmem:[#allocation29 + $0xc0] ss:$16 sps:$4 sm:$0xff]   ;;  %v29214_v53 = vld [vmem:[#allocation29 + $0x3c4] ss:$16 sps:$4 sm:$0xff]  }
 0xf9a   : > { %19975 = vmatpush1.bf16.msra.mxu1 %v29155_v26  ;;  %20019 = vmatprep.subr.bf16.mxu0 %v29172_v24  ;;  %v29217_v26 = vld [vmem:[#allocation29 + $0x1a4] ss:$16 sps:$4 sm:$0xff]  }
 0xf9b   : > { %19976 = vmatprep.subr.bf16.mxu1 %v29163_v2  ;;  %v29215_v2 = vld [vmem:[#allocation29 + $0x1a0] ss:$16 sps:$4 sm:$0xff]   ;;  %v29226_v24 = vld [vmem:[#allocation29 + $0x384] ss:$16 sps:$4 sm:$0xff]  }
 0xf9c   : > { %20020 = vmatpush1.bf16.msra.mxu0 %v29170_v39  ;;  %v29224_v39 = vld [vmem:[#allocation29 + $0x380] ss:$16 sps:$4 sm:$0xff]  }
 0xf9d   : > { %20021 = vmatprep.subr.bf16.mxu0 %v29178_v49 }
 0xf9e   : > { %19977 = vmatpush1.bf16.msra.mxu1 %v29161_v15 }
 0xf9f   : > { %19978 = vmatprep.subr.bf16.mxu1 %v29169_v59  ;;  %v29223_v59 = vld [vmem:[#allocation29 + $0x184] ss:$16 sps:$4 sm:$0xff]  }
 0xfa0   : > { %20022 = vmatpush1.bf16.msra.mxu0 %v29176_v54  ;;  %v29232_v54 = vld [vmem:[#allocation29 + $0x364] ss:$16 sps:$4 sm:$0xff]  }
 0xfa1   : > { %20023 = vmatprep.subr.bf16.mxu0 %v29184_v47  ;;  %v29230_v47 = vld [vmem:[#allocation29 + $0x360] ss:$16 sps:$4 sm:$0xff]  }
 0xfa2   : > { %19979 = vmatpush1.bf16.msra.mxu1 %v29167_v36  ;;  %v29221_v36 = vld [vmem:[#allocation29 + $0x180] ss:$16 sps:$4 sm:$0xff]  }
 0xfa3   : > { %19980 = vmatprep.subr.bf16.mxu1 %v29175_v43 }
 0xfa4   : > { %20024 = vmatpush1.bf16.msra.mxu0 %v29182_v9 }
 0xfa5   : > { %20025 = vmatprep.subr.bf16.mxu0 %v29190_v45  ;;  %v29238_v45 = vld [vmem:[#allocation29 + $0x344] ss:$16 sps:$4 sm:$0xff]  }
 0xfa6   : > { %19981 = vmatpush1.bf16.msra.mxu1 %v29173_v6  ;;  %v29229_v6 = vld [vmem:[#allocation29 + $0x164] ss:$16 sps:$4 sm:$0xff]  }
 0xfa7   : > { %19982 = vmatprep.subr.bf16.mxu1 %v29181_v29  ;;  %v29227_v29 = vld [vmem:[#allocation29 + $0x160] ss:$16 sps:$4 sm:$0xff]  }
 0xfa8   : > { %20026 = vmatpush1.bf16.msra.mxu0 %v29188_v17  ;;  %v29236_v17 = vld [vmem:[#allocation29 + $0x340] ss:$16 sps:$4 sm:$0xff]  }
 0xfaa   : > { %19983 = vmatpush1.bf16.msra.mxu1 %v29179_v48 }
 0xfab   : > { %19984 = vmatprep.subr.bf16.mxu1 %v29187_v50  ;;  %v29235_v50 = vld [vmem:[#allocation29 + $0x144] ss:$16 sps:$4 sm:$0xff]  }
 0xfae   : > { %19985 = vmatpush1.bf16.msra.mxu1 %v29185_v3  ;;  %v29233_v3 = vld [vmem:[#allocation29 + $0x140] ss:$16 sps:$4 sm:$0xff]  }
 0xfb3   : > { %v14309_v56 = vpop.f32.mrf.mxu0 }
 0xfb5   : > { %v14311_v40 = vpop.f32.mrf.mxu0 }
 0xfb7   : > { %v14468_v51 = vpop.f32.mrf.mxu0 }
 0xfb9   : > { %v33037_v61 = vpop.f32.mrf.mxu0 }
 0xfbb   : > { %v14217_v46 = vpop.f32.mrf.mxu1  ;;  %v14628_v16 = vpop.f32.mrf.mxu0 }
 0xfbc   : > { %v14310_v7 = vadd.f32 %v14309_v56, %v14217_v46  ;;  %v29196_v46 = vld [vmem:[#allocation29 + $0x224] ss:$16 sps:$4 sm:$0xff]  }
 0xfbd   : > { %v14219_v5 = vpop.f32.mrf.mxu1  ;;  %v33043_v4 = vpop.f32.mrf.mxu0  ;;  %20027 = vmatprep.subr.bf16.mxu0 %v29196_v46 }
 0xfbe   : > { %v33039_v28 = vadd.f32 %v14311_v40, %v14219_v5  ;;  %v29194_v5 = vld [vmem:[#allocation29 + $0x220] ss:$16 sps:$4 sm:$0xff]  }
 0xfbf   : > { %20028 = vmatpush1.bf16.msra.mxu0 %v29194_v5  ;;  %v29244_v5 = vld [vmem:[#allocation29 + $0x324] ss:$16 sps:$4 sm:$0xff]  }
 0xfc0   : > { %v14390_v35 = vpop.f32.mrf.mxu1 }
 0xfc1   : > { %v14391_v32 = vadd.f32 %v14390_v35, %v14310_v7  ;;  %v14800_v30 = vpop.f32.mrf.mxu0  ;;  %v29191_v7 = vld [vmem:[#allocation29 + $0x20] ss:$16 sps:$4 sm:$0xff]  }
 0xfc2   : > { %v33041_v27 = vpop.f32.mrf.mxu1 }
 0xfc3   : > { %v14469_v52 = vadd.f32 %v14468_v51, %v14391_v32  ;;  %v33049_v42 = vpop.f32.mrf.mxu0  ;;  %v29193_v51 = vld [vmem:[#allocation29 + $0x24] ss:$16 sps:$4 sm:$0xff]  }
 0xfc4   : > { %19986 = vmatprep.subr.bf16.mxu1 %v29193_v51 }
 0xfc5   : > { %19987 = vmatpush1.bf16.msra.mxu1 %v29191_v7  ;;  %v29241_v7 = vld [vmem:[#allocation29 + $0x124] ss:$16 sps:$4 sm:$0xff]  }
 0xfc6   : > { %v14552_v38 = vpop.f32.mrf.mxu1 }
 0xfc7   : > { %v14553_v57 = vadd.f32 %v14552_v38, %v14469_v52  ;;  %v14959_v33 = vpop.f32.mrf.mxu0  ;;  %v29202_v52 = vld [vmem:[#allocation29 + $0x204] ss:$16 sps:$4 sm:$0xff]   ;;  %v29197_v38 = vld [vmem:[#allocation29] ss:$16 sps:$4 sm:$0xff]  }
 0xfc8   : > { %v33045_v62 = vpop.f32.mrf.mxu1  ;;  %20029 = vmatprep.subr.bf16.mxu0 %v29202_v52  ;;  %v29242_v52 = vld [vmem:[#allocation29 + $0x320] ss:$16 sps:$4 sm:$0xff]  }
 0xfc9   : > { %v33047_v23 = vadd.f32 %v14628_v16, %v14553_v57  ;;  %v33055_v19 = vpop.f32.mrf.mxu0  ;;  %v29199_v16 = vld [vmem:[#allocation29 + $0x4] ss:$16 sps:$4 sm:$0xff]   ;;  %v29200_v57 = vld [vmem:[#allocation29 + $0x200] ss:$16 sps:$4 sm:$0xff]  }
 0xfca   : > { %19988 = vmatprep.subr.bf16.mxu1 %v29199_v16  ;;  %20030 = vmatpush1.bf16.msra.mxu0 %v29200_v57  ;;  %v29239_v16 = vld [vmem:[#allocation29 + $0x120] ss:$16 sps:$4 sm:$0xff]  }
 0xfcb   : > { %19989 = vmatpush1.bf16.msra.mxu1 %v29197_v38 }
 0xfcc   : > { %v14708_v12 = vpop.f32.mrf.mxu1 }
 0xfcd   : > { %v14801_v37 = vadd.f32 %v14800_v30, %v14708_v12  ;;  %v15119_v20 = vpop.f32.mrf.mxu0 }
 0xfce   : > { %v33051_v11 = vpop.f32.mrf.mxu1 }
 0xfcf   : > { %v33059_v21 = vpop.f32.mrf.mxu0 }
 0xfd2   : > { %v14881_v1 = vpop.f32.mrf.mxu1 }
 0xfd3   : > { %v14882_v44 = vadd.f32 %v14881_v1, %v14801_v37  ;;  %v33061_v22 = vpop.f32.mrf.mxu0  ;;  %v29205_v37 = vld [vmem:[#allocation29 + $0x1e4] ss:$16 sps:$4 sm:$0xff]   ;;  %v29203_v1 = vld [vmem:[#allocation29 + $0x1e0] ss:$16 sps:$4 sm:$0xff]  }
 0xfd4   : > { %v33053_v34 = vpop.f32.mrf.mxu1  ;;  %19990 = vmatprep.subr.bf16.mxu1 %v29205_v37  ;;  %v29247_v37 = vld [vmem:[#allocation29 + $0x104] ss:$16 sps:$4 sm:$0xff]  }
 0xfd5   : > { %v14960_v25 = vadd.f32 %v14959_v33, %v14882_v44  ;;  %v33063_v8 = vpop.f32.mrf.mxu0  ;;  %v29208_v33 = vld [vmem:[#allocation29 + $0x3e4] ss:$16 sps:$4 sm:$0xff]   ;;  %v29206_v44 = vld [vmem:[#allocation29 + $0x3e0] ss:$16 sps:$4 sm:$0xff]   ;;  %19991 = vmatpush2.bf16.msra.mxu1 %v29203_v1 }
 0xfd6   : > { %20031 = vmatprep.subr.bf16.mxu0 %v29208_v33  ;;  %v29250_v33 = vld [vmem:[#allocation29 + $0x304] ss:$16 sps:$4 sm:$0xff]  }
 0xfd7   : > { %20032 = vmatpush2.bf16.msra.mxu0 %v29206_v44  ;;  %v29245_v44 = vld [vmem:[#allocation29 + $0x100] ss:$16 sps:$4 sm:$0xff]  }
 0xfd8   : > { %v15043_v0 = vpop.f32.mrf.mxu1  ;;  %20033 = vmatprep.subr.bf16.mxu0 %v29214_v53 }
 0xfd9   : > { %v15044_v41 = vadd.f32 %v15043_v0, %v14960_v25  ;;  %v33067_v10 = vpop.f32.mrf.mxu0 }
 0xfda   : > { %v33065_v31 = vpop.f32.mrf.mxu1 }
 0xfdb   : > { %v33057_v55 = vadd.f32 %v15119_v20, %v15044_v41  ;;  %v33071_v56 = vpop.f32.mrf.mxu0  ;;  %v29211_v41 = vld [vmem:[#allocation29 + $0x1c4] ss:$16 sps:$4 sm:$0xff]   ;;  %v29212_v20 = vld [vmem:[#allocation29 + $0x3c0] ss:$16 sps:$4 sm:$0xff]  }
 0xfdc   : > { %19992 = vmatprep.subr.bf16.mxu1 %v29211_v41  ;;  %20034 = vmatpush2.bf16.msra.mxu0 %v29212_v20  ;;  %v29248_v41 = vld [vmem:[#allocation29 + $0x300] ss:$16 sps:$4 sm:$0xff]  }
 0xfdd   : > { %19993 = vmatpush2.bf16.msra.mxu1 %v29209_v14  ;;  %20035 = vmatprep.subr.bf16.mxu0 %v29220_v18 }
 0xfde   : > { %v33069_v60 = vpop.f32.mrf.mxu1  ;;  %19994 = vmatprep.subr.bf16.mxu1 %v29217_v26 }
 0xfdf   : > { %v33075_v35 = vpop.f32.mrf.mxu0 }
 0xfe0   : > { %v33073_v40 = vpop.f32.mrf.mxu1  ;;  %20036 = vmatpush2.bf16.msra.mxu0 %v29218_v13  ;;  %v29256_v13 = vld [vmem:[#allocation29 + $0x6e4] ss:$16 sps:$4 sm:$0xff]  }
 0xfe1   : > { %v33079_v30 = vpop.f32.mrf.mxu0  ;;  %19995 = vmatpush2.bf16.msra.mxu1 %v29215_v2  ;;  %20037 = vmatprep.subr.bf16.mxu0 %v29226_v24  ;;  %v29253_v2 = vld [vmem:[#allocation29 + $0x4e4] ss:$16 sps:$4 sm:$0xff]  }
 0xfe2   : > { %19996 = vmatprep.subr.bf16.mxu1 %v29223_v59 }
 0xfe4   : > { %v33077_v32 = vpop.f32.mrf.mxu1  ;;  %20038 = vmatpush2.bf16.msra.mxu0 %v29224_v39 }
 0xfe5   : > { %v33083_v25 = vpop.f32.mrf.mxu0  ;;  %19997 = vmatpush2.bf16.msra.mxu1 %v29221_v36  ;;  %20039 = vmatprep.subr.bf16.mxu0 %v29232_v54  ;;  %v14393_v36 = vadd.f32 %v33041_v27, %v33039_v28 }
 0xfe6   : > { %v33081_v12 = vpop.f32.mrf.mxu1  ;;  %19998 = vmatprep.subr.bf16.mxu1 %v29229_v6 }
 0xfe7   : > { %v33087_v15 = vpop.f32.mrf.mxu0  ;;  %v14471_v54 = vadd.f32 %v33037_v61, %v14393_v36 }
 0xfe8   : > { %20040 = vmatpush2.bf16.msra.mxu0 %v29230_v47 }
 0xfe9   : > { %19999 = vmatpush2.bf16.msra.mxu1 %v29227_v29  ;;  %20041 = vmatprep.subr.bf16.mxu0 %v29238_v45 }
 0xfea   : > { %v33085_v0 = vpop.f32.mrf.mxu1  ;;  %20000 = vmatprep.subr.bf16.mxu1 %v29235_v50 }
 0xfeb   : > { %v33091_v43 = vpop.f32.mrf.mxu0 }
 0xfec   : > { %v33089_v63 = vpop.f32.mrf.mxu1  ;;  %20042 = vmatpush2.bf16.msra.mxu0 %v29236_v17 }
 0xfed   : > { %v33095_v48 = vpop.f32.mrf.mxu0  ;;  %20001 = vmatpush2.bf16.msra.mxu1 %v29233_v3  ;;  %20043 = vmatprep.subr.bf16.mxu0 %v29244_v5  ;;  %v14555_v5 = vadd.f32 %v33045_v62, %v14471_v54  ;;  %v14803_v62 = vadd.f32 %v33049_v42, %v33051_v11 }
 0xfee   : > { %20002 = vmatprep.subr.bf16.mxu1 %v29241_v7 }
 0xfef   : > { %v33116_v28 = vadd.f32 %v33043_v4, %v14555_v5  ;;  %v14884_v4 = vadd.f32 %v33053_v34, %v14803_v62 }
 0xff0   : > { %v33093_v49 = vpop.f32.mrf.mxu1  ;;  %20044 = vmatpush2.bf16.msra.mxu0 %v29242_v52 }
 0xff1   : > { %v33099_v51 = vpop.f32.mrf.mxu0  ;;  %20003 = vmatpush2.bf16.msra.mxu1 %v29239_v16  ;;  %20045 = vmatprep.subr.bf16.mxu0 %v29250_v33 }
 0xff2   : > { %v33097_v9 = vpop.f32.mrf.mxu1  ;;  %20004 = vmatprep.subr.bf16.mxu1 %v29247_v37 }
 0xff3   : > { %v33103_v38 = vpop.f32.mrf.mxu0 }
 0xff4   : > { %20046 = vmatpush2.bf16.msra.mxu0 %v29248_v41 }
 0xff5   : > { %v33101_v46 = vpop.f32.mrf.mxu1  ;;  %20005 = vmatpush2.bf16.msra.mxu1 %v29245_v44  ;;  %20097 = vmatprep.subr.bf16.mxu0 %v29256_v13  ;;  %v18074_v13 = vmul.f32 %v33116_v28, %v33116_v28 }
 0xff6   : > { %20056 = vmatprep.subr.bf16.mxu1 %v29253_v2 }
 0xff7   : > { %v33105_v57 = vpop.f32.mrf.mxu1 }
 0xff9   : > { %v33107_v53 = vpop.f32.mrf.mxu1 }
 0xffb   : > { %v33109_v26 = vpop.f32.mrf.mxu1 }
0x1013   : > { %v16276_v1 = vpop.f32.mrf.mxu0 }
0x1015   : > { %v16278_v14 = vpop.f32.mrf.mxu0 }
0x1017   : > { %v16435_v20 = vpop.f32.mrf.mxu0 }
0x1019   : > { %v16437_v18 = vpop.f32.mrf.mxu0 }
0x101b   : > { %v16184_v59 = vpop.f32.mrf.mxu1  ;;  %v16595_v24 = vpop.f32.mrf.mxu0 }
0x101c   : > { %v16277_v29 = vadd.f32 %v16276_v1, %v16184_v59  ;;  %v18073_v1 = vmul.f32 %v33047_v23, %v33047_v23 }
0x101d   : > { %v16186_v39 = vpop.f32.mrf.mxu1  ;;  %v16597_v6 = vpop.f32.mrf.mxu0 }
0x101e   : > { %v16279_v45 = vadd.f32 %v16278_v14, %v16186_v39 }
0x1021   : > { %v16357_v47 = vpop.f32.mrf.mxu1  ;;  %v16767_v50 = vpop.f32.mrf.mxu0 }
0x1022   : > { %v16358_v3 = vadd.f32 %v16357_v47, %v16277_v29 }
0x1023   : > { %v16359_v17 = vpop.f32.mrf.mxu1  ;;  %v16769_v7 = vpop.f32.mrf.mxu0 }
0x1024   : > { %v16360_v16 = vadd.f32 %v16359_v17, %v16279_v45  ;;  %v16436_v52 = vadd.f32 %v16435_v20, %v16358_v3 }
0x1026   : > { %v16438_v37 = vadd.f32 %v16437_v18, %v16360_v16 }
0x1027   : > { %v16519_v33 = vpop.f32.mrf.mxu1  ;;  %v16926_v44 = vpop.f32.mrf.mxu0 }
0x1028   : > { %v16520_v27 = vadd.f32 %v16519_v33, %v16436_v52 }
0x1029   : > { %v16521_v41 = vpop.f32.mrf.mxu1  ;;  %v16928_v61 = vpop.f32.mrf.mxu0 }
0x102a   : > { %v16596_v14 = vadd.f32 %v16595_v24, %v16520_v27  ;;  %v16522_v2 = vadd.f32 %v16521_v41, %v16438_v37  ;;  %v14962_v24 = vadd.f32 %v33055_v19, %v14884_v4 }
0x102c   : > { %v18081_v20 = vsub.f32 %v16596_v14, %v18073_v1  ;;  %v16598_v18 = vadd.f32 %v16597_v6, %v16522_v2  ;;  %v15046_v34 = vadd.f32 %v33065_v31, %v14962_v24  ;;  %v33127_v2 = vld [vmem:[#allocation26] sm:$0xff] }
0x102d   : > { %v16675_v59 = vpop.f32.mrf.mxu1  ;;  %v17086_v36 = vpop.f32.mrf.mxu0 }
0x102e   : > { %v18089_v39 = vmax.f32 %v18081_v20, 0.0  ;;  %v18082_v54 = vsub.f32 %v16598_v18, %v18074_v13  ;;  %v16768_v5 = vadd.f32 %v16767_v50, %v16675_v59  ;;  %v33130_v19 = vadd.f32 %v33059_v21, %v15046_v34  ;;  %v34368_v18 = vld [vmem:[#allocation110_spill] sm:$0xff] }
0x102f   : > { %v16677_v29 = vpop.f32.mrf.mxu1  ;;  %v17088_v47 = vpop.f32.mrf.mxu0  ;;  %v18118_v31 = vrot.slane %v33127_v2, %v34368_v18 }
0x1030   : > { %v18097_v45 = vadd.f32 1e-05, %v18089_v39  ;;  %v18090_v3 = vmax.f32 %v18082_v54, 0.0  ;;  %v16770_v42 = vadd.f32 %v16769_v7, %v16677_v29  ;;  %v18075_v7 = vmul.f32 %v33057_v55, %v33057_v55  ;;  %v34369_v29 = vld [vmem:[#allocation111_spill] sm:$0xff] }
0x1032   : > { %29659 = vrsqrt.f32 %v18097_v45  ;;  %v18098_v17 = vadd.f32 1e-05, %v18090_v3  ;;  %v18122_v45 = vrot.slane %v33127_v2, %v34369_v29 }
0x1033   : > { %v16848_v16 = vpop.f32.mrf.mxu1  ;;  %v17258_v52 = vpop.f32.mrf.mxu0 }
0x1034   : > { %29661 = vrsqrt.f32 %v18098_v17  ;;  %v16849_v11 = vadd.f32 %v16848_v16, %v16768_v5 }
0x1035   : > { %v16850_v6 = vpop.f32.mrf.mxu1  ;;  %v17260_v37 = vpop.f32.mrf.mxu0 }
0x1036   : > { %v16851_v33 = vadd.f32 %v16850_v6, %v16770_v42  ;;  %v16927_v27 = vadd.f32 %v16926_v44, %v16849_v11  ;;  %v18076_v44 = vmul.f32 %v33130_v19, %v33130_v19 }
0x1038   : > { %v16929_v41 = vadd.f32 %v16928_v61, %v16851_v33  ;;  %v15294_v61 = vadd.f32 %v33063_v8, %v33073_v40 }
0x1039   : > { %v17010_v1 = vpop.f32.mrf.mxu1  ;;  %v17417_v14 = vpop.f32.mrf.mxu0 }
0x103a   : > { %v17011_v50 = vadd.f32 %v17010_v1, %v16927_v27  ;;  %v15375_v3 = vadd.f32 %v33081_v12, %v15294_v61 }
0x103b   : > { %v17012_v13 = vpop.f32.mrf.mxu1  ;;  %v17419_v59 = vpop.f32.mrf.mxu0 }
0x103c   : > { %v17087_v62 = vadd.f32 %v17086_v36, %v17011_v50  ;;  %v17013_v20 = vadd.f32 %v17012_v13, %v16929_v41  ;;  %v15292_v36 = vadd.f32 %v33061_v22, %v33069_v60  ;;  %v15453_v34 = vadd.f32 %v33071_v56, %v15375_v3 }
0x103e   : > { %v18083_v4 = vsub.f32 %v17087_v62, %v18075_v7  ;;  %v17089_v21 = vadd.f32 %v17088_v47, %v17013_v20  ;;  %v15373_v8 = vadd.f32 %v33077_v32, %v15292_v36  ;;  %v15783_v62 = vadd.f32 %v33083_v25, %v33093_v49 }
0x103f   : > { %v29660_v39 = vpop.eup %29659  ;;  %v17166_v54 = vpop.f32.mrf.mxu1 }
0x1040   : > { %v18091_v24 = vmax.f32 %v18083_v4, 0.0  ;;  %v18084_v17 = vsub.f32 %v17089_v21, %v18076_v44  ;;  %v33145_v16 = vmul.f32 %v29660_v39, %v18118_v31  ;;  %v17577_v42 = vpop.f32.mrf.mxu0  ;;  %v17259_v22 = vadd.f32 %v17258_v52, %v17166_v54 }
0x1041   : > { %v29662_v5 = vpop.eup %29661  ;;  %v17168_v11 = vpop.f32.mrf.mxu1  ;;  %v15451_v32 = vadd.f32 %v33067_v10, %v15373_v8  ;;  %v15537_v52 = vadd.f32 %v33089_v63, %v15453_v34  ;;  %v15785_v10 = vadd.f32 %v33087_v15, %v33097_v9 }
0x1042   : > { %v18099_v40 = vadd.f32 1e-05, %v18091_v24  ;;  %v18092_v47 = vmax.f32 %v18084_v17, 0.0  ;;  %v33148_v6 = vmul.f32 %v29662_v5, %v18122_v45  ;;  %v33153_v60 = vmul.f32 %v33145_v16, %v33047_v23  ;;  %v17579_v12 = vpop.f32.mrf.mxu0 }
0x1043   : > { %v17261_v1 = vadd.f32 %v17260_v37, %v17168_v11  ;;  %v15864_v37 = vadd.f32 %v33101_v46, %v15783_v62  ;;  %v33170_v61 = vadd.f32 %v33079_v30, %v15537_v52  ;;  %v15866_v63 = vadd.f32 %v33105_v57, %v15785_v10  ;;  %v34371_v46 = vld [vmem:[#allocation113_spill] sm:$0xff] }
0x1044   : > { %29663 = vrsqrt.f32 %v18099_v40  ;;  %v18100_v33 = vadd.f32 1e-05, %v18092_v47  ;;  %v33157_v41 = vmul.f32 %v33148_v6, %v33116_v28  ;;  %v15535_v28 = vadd.f32 %v33085_v0, %v15451_v32  ;;  %v34370_v0 = vld [vmem:[#allocation112_spill] sm:$0xff] }
0x1045   : > { %v17339_v27 = vpop.f32.mrf.mxu1  ;;  %v17749_v20 = vpop.f32.mrf.mxu0  ;;  %v15942_v9 = vadd.f32 %v33091_v43, %v15864_v37  ;;  %v18078_v30 = vmul.f32 %v33170_v61, %v33170_v61  ;;  %v18130_v54 = vrot.slane %v33127_v2, %v34371_v46  ;;  %v15944_v3 = vadd.f32 %v33095_v48, %v15866_v63 }
0x1046   : > { %29665 = vrsqrt.f32 %v18100_v33  ;;  %v17340_v50 = vadd.f32 %v17339_v27, %v17259_v22  ;;  %v18180_v56 = vcombine.low %v33153_v60, %v33157_v41  ;;  %v33174_v49 = vadd.f32 %v33075_v35, %v15535_v28  ;;  %v34372_v60 = vld [vmem:[#allocation109_spill] sm:$0xff] }
0x1047   : > { %v17341_v13 = vpop.f32.mrf.mxu1  ;;  %v17751_v39 = vpop.f32.mrf.mxu0  ;;  %v16026_v40 = vadd.f32 %v33107_v53, %v15942_v9  ;;  %v16028_v22 = vadd.f32 %v33109_v26, %v15944_v3 }
0x1048   : > { %v17342_v7 = vadd.f32 %v17341_v13, %v17261_v1  ;;  %v17418_v23 = vadd.f32 %v17417_v14, %v17340_v50  ;;  %v30752_v14 = vmov 1966171168   ;;  %v18077_v5 = vmul.f32 %v33174_v49, %v33174_v49 }
0x1049   : > { %v18185_v21 = vunpack.c.l.s4 %v30752_v14  ;;  %v16102_v13 = vadd.f32 %v33099_v51, %v16026_v40  ;;  %v34376_v40 = vld [vmem:[#allocation147_spill] sm:$0xff] }
0x104a   : > { %v17420_v31 = vadd.f32 %v17419_v59, %v17342_v7  ;;  %v18126_v59 = vrot.slane %v33127_v2, %v34370_v0 }
0x104b   : > { %v17501_v44 = vpop.f32.mrf.mxu1  ;;  %v18186_v24 = vunpack.c.0.s8 %v18185_v21  ;;  %v17908_v35 = vpop.f32.mrf.mxu0 }
0x104c   : > { %v17502_v4 = vadd.f32 %v17501_v44, %v17418_v23 }
0x104d   : > { %v17503_v25 = vpop.f32.mrf.mxu1  ;;  %v17910_v27 = vpop.f32.mrf.mxu0 }
0x104e   : > { %v17504_v15 = vadd.f32 %v17503_v25, %v17420_v31  ;;  %v17578_v57 = vadd.f32 %v17577_v42, %v17502_v4  ;;  %v18079_v4 = vmul.f32 %v16102_v13, %v16102_v13 }
0x1050   : > { %v17580_v45 = vadd.f32 %v17579_v12, %v17504_v15  ;;  %v18085_v42 = vsub.f32 %v17578_v57, %v18077_v5  ;;  %v33195_v12 = vsub.s32 %v18186_v24, %v34372_v60  ;;  %v34374_v24 = vld [vmem:[#allocation131_spill] sm:$0xff] }
0x1051   : > { %v29664_v36 = vpop.eup %29663  ;;  %v17657_v17 = vpop.f32.mrf.mxu1  ;;  %v34375_v5 = vld [vmem:[#allocation151_spill] sm:$0xff] }
0x1052   : > { %v33186_v11 = vmul.f32 %v29664_v36, %v18126_v59  ;;  %v18086_v43 = vsub.f32 %v17580_v45, %v18078_v30  ;;  %v17750_v33 = vadd.f32 %v17749_v20, %v17657_v17  ;;  %v18093_v23 = vmax.f32 %v18085_v42, 0.0  ;;  %v18068_v20 = vpop.f32.mrf.mxu0  ;;  %v34373_v45 = vld [vmem:[#allocation134_spill] sm:$0xff] }
0x1053   : > { %v29666_v8 = vpop.eup %29665  ;;  %v17659_v47 = vpop.f32.mrf.mxu1  ;;  %v18190_v31 = vrot.slane %v18180_v56, %v33195_v12  ;;  %v18138_v36 = vrot.slane %v33127_v2, %v34373_v45 }
0x1054   : > { %v33189_v34 = vmul.f32 %v29666_v8, %v18130_v54  ;;  %v18166_v48 = vmul.f32 %v33186_v11, %v33057_v55  ;;  %v18094_v1 = vmax.f32 %v18086_v43, 0.0  ;;  %v17752_v53 = vadd.f32 %v17751_v39, %v17659_v47  ;;  %v18070_v25 = vpop.f32.mrf.mxu0 }
0x1055   : > { %v17830_v41 = vpop.f32.mrf.mxu1  ;;  %v16104_v55 = vadd.f32 %v33103_v38, %v16028_v22  ;;  %v18101_v14 = vadd.f32 1e-05, %v18093_v23  ;;  %v18142_v43 = vrot.slane %v33127_v2, %v34375_v5  ;;  %v18146_v47 = vrot.slane %v33127_v2, %v34376_v40 }
0x1056   : > { %v18167_v32 = vmul.f32 %v33189_v34, %v33130_v19  ;;  %v17831_v50 = vadd.f32 %v17830_v41, %v17750_v33  ;;  %v18102_v37 = vadd.f32 1e-05, %v18094_v1  ;;  %v18242_v23 = vrot.slane %v33186_v11, %v34368_v18 }
0x1057   : > { %v17832_v52 = vpop.f32.mrf.mxu1  ;;  %v18080_v59 = vmul.f32 %v16104_v55, %v16104_v55 }
0x1058   : > { %v18181_v7 = vcombine.low %v18166_v48, %v18167_v32  ;;  %v17833_v26 = vadd.f32 %v17832_v52, %v17752_v53  ;;  %v17909_v62 = vadd.f32 %v17908_v35, %v17831_v50  ;;  %29667 = vrsqrt.f32 %v18102_v37 }
0x1059   : > { %v17992_v28 = vpop.f32.mrf.mxu1  ;;  %29669 = vrsqrt.f32 %v18101_v14  ;;  %v18134_v35 = vrot.slane %v33127_v2, %v34374_v24  ;;  %v18234_v2 = vrot.slane %v33145_v16, %v34368_v18  ;;  %v34381_v14 = vld [vmem:[#allocation128_spill] sm:$0xff] }
0x105a   : > { %v18197_v10 = vrot.slane %v18181_v7, %v33195_v12  ;;  %v17993_v19 = vadd.f32 %v17992_v28, %v17909_v62  ;;  %v17911_v44 = vadd.f32 %v17910_v27, %v17833_v26  ;;  %v18238_v26 = vrot.slane %v33148_v6, %v34368_v18  ;;  %v18163_v28 = vld [vmem:[#allocation28] sm:$0xff] }
0x105b   : > { %v17994_v63 = vpop.f32.mrf.mxu1 }
0x105c   : > { %v18069_v51 = vadd.f32 %v18068_v20, %v17993_v19  ;;  %v17995_v21 = vadd.f32 %v17994_v63, %v17911_v44  ;;  %v18212_v39 = vcombine.low %v18190_v31, %v18197_v10  ;;  %v34377_v31 = vld [vmem:[#allocation121_spill] sm:$0xff]  ;;  %v34378_v10 = vld [vmem:[#allocation122_spill] sm:$0xff]  ;;  %v34379_v44 = vld [vmem:[#allocation123_spill] sm:$0xff] }
0x105d   : > { %v18263_v11 = vmul.f32 %v18234_v2, %v34377_v31  ;;  %v18271_v37 = vmul.f32 %v18234_v2, %v34378_v10  ;;  %v34380_v63 = vld [vmem:[#allocation125_spill] sm:$0xff] }
0x105e   : > { %v18087_v15 = vsub.f32 %v18069_v51, %v18079_v4  ;;  %v18071_v38 = vadd.f32 %v18070_v25, %v17995_v21  ;;  %v18264_v4 = vmul.f32 %v18238_v26, %v34379_v44  ;;  %v18265_v51 = vmul.f32 %v18242_v23, %v34381_v14  ;;  %v34382_v21 = vld [vmem:[#allocation124_spill] sm:$0xff]  ;;  %v34383_v25 = vld [vmem:[#allocation126_spill] sm:$0xff] }
0x1060   : > { %v18095_v9 = vmax.f32 %v18087_v15, 0.0  ;;  %v18088_v30 = vsub.f32 %v18071_v38, %v18080_v59  ;;  %v34384_v15 = vld [vmem:[#allocation127_spill] sm:$0xff] }
0x1061   : > { %v18273_v38 = vmul.f32 %v18242_v23, %v34384_v15 }
0x1062   : > { %v18103_v56 = vadd.f32 1e-05, %v18095_v9  ;;  %v18096_v54 = vmax.f32 %v18088_v30, 0.0  ;;  %v34385_v9 = vld [vmem:[#allocation139_spill] sm:$0xff] }
0x1064   : > { %29671 = vrsqrt.f32 %v18103_v56  ;;  %v18104_v57 = vadd.f32 1e-05, %v18096_v54  ;;  %v34386_v54 = vld [vmem:[#allocation142_spill] sm:$0xff] }
0x1065   : > { %v29668_v3 = vpop.eup %29667 }
0x1066   : > { %29673 = vrsqrt.f32 %v18104_v57  ;;  %v29670_v17 = vpop.eup %29669  ;;  %v18160_v8 = vmul.f32 %v29668_v3, %v18138_v36  ;;  %v34387_v36 = vld [vmem:[#allocation143_spill] sm:$0xff] }
0x1067   : > { %v18159_v42 = vmul.f32 %v29670_v17, %v18134_v35  ;;  %v34388_v35 = vld [vmem:[#allocation140_spill] sm:$0xff] }
0x1068   : > { %v18169_v22 = vmul.f32 %v18160_v8, %v33170_v61  ;;  %v18254_v20 = vrot.slane %v18160_v8, %v34368_v18 }
0x1069   : > { %v18168_v27 = vmul.f32 %v18159_v42, %v33174_v49  ;;  %v18250_v49 = vrot.slane %v18159_v42, %v34368_v18 }
0x106a   : > { %v18268_v57 = vmul.f32 %v18254_v20, %v34386_v54  ;;  %v18276_v3 = vmul.f32 %v18254_v20, %v34387_v36 }
0x106b   : > { %v18182_v32 = vcombine.low %v18168_v27, %v18169_v22  ;;  %v18267_v30 = vmul.f32 %v18250_v49, %v34385_v9  ;;  %v18275_v17 = vmul.f32 %v18250_v49, %v34388_v35 }
0x106d   : > { %v18204_v52 = vrot.slane %v18182_v32, %v33195_v12 }
0x1071   : > { %v29672_v33 = vpop.eup %29671 }
0x1072   : > { %v18161_v48 = vmul.f32 %v29672_v33, %v18142_v43  ;;  %v34389_v43 = vld [vmem:[#allocation153_spill] sm:$0xff]  ;;  %v34391_v33 = vld [vmem:[#allocation155_spill] sm:$0xff] }
0x1073   : > { %v29674_v60 = vpop.eup %29673 }
0x1074   : > { %v18162_v41 = vmul.f32 %v29674_v60, %v18146_v47  ;;  %v18170_v1 = vmul.f32 %v18161_v48, %v16102_v13  ;;  %v18246_v13 = vrot.slane %v33189_v34, %v34368_v18  ;;  %v18258_v16 = vrot.slane %v18161_v48, %v34368_v18  ;;  %v34390_v47 = vld [vmem:[#allocation150_spill] sm:$0xff] }
0x1075   : > { %v18272_v34 = vmul.f32 %v18238_v26, %v34380_v63  ;;  %v34392_v48 = vld [vmem:[#allocation154_spill] sm:$0xff] }
0x1076   : > { %v18171_v53 = vmul.f32 %v18162_v41, %v16104_v55  ;;  %v18220_v55 = vrot.slane %v18212_v39, %v33195_v12  ;;  %v18262_v6 = vrot.slane %v18162_v41, %v34368_v18  ;;  %v18266_v39 = vmul.f32 %v18246_v13, %v34382_v21 }
0x1077   : > { %v18274_v59 = vmul.f32 %v18246_v13, %v34383_v25  ;;  %v18269_v22 = vmul.f32 %v18258_v16, %v34391_v33  ;;  %v33245_v60 = vmul.f32 %v18258_v16, %v34392_v48 }
0x1078   : > { %v18183_v50 = vcombine.low %v18170_v1, %v18171_v53  ;;  %v18270_v8 = vmul.f32 %v18262_v6, %v34389_v43  ;;  %v18278_v42 = vmul.f32 %v18262_v6, %v34390_v47 }
0x107a   : > { %v18211_v7 = vrot.slane %v18183_v50, %v33195_v12 }
0x107c   : > { %v18213_v61 = vcombine.low %v18204_v52, %v18211_v7 }
0x107e   : > { %v18227_v62 = vrot.slane %v18213_v61, %v33195_v12 }
0x1080   : > { %v18228_v19 = vcombine.low %v18220_v55, %v18227_v62 }
0x1082   : > { %v18230_v56 = vsub.f32 %v18163_v28, %v18228_v19 }
0x1084   : > { %v18287_v27 = vrot.slane %v18230_v56, %v34369_v29  ;;  %v18295_v41 = vrot.slane %v18230_v56, %v34371_v46  ;;  %v18283_v32 = vrot.slane %v18230_v56, %v34368_v18  ;;  %v18291_v1 = vrot.slane %v18230_v56, %v34370_v0 }
0x1085   : > { %v18303_v53 = vrot.slane %v18230_v56, %v34373_v45  ;;  %v18311_v50 = vrot.slane %v18230_v56, %v34376_v40  ;;  %v18299_v52 = vrot.slane %v18230_v56, %v34374_v24  ;;  %v18307_v7 = vrot.slane %v18230_v56, %v34375_v5 }
0x1086   : > { %v18321_v2 = vadd.f32 %v18287_v27, %v18264_v4  ;;  %v18329_v23 = vadd.f32 %v18287_v27, %v18272_v34  ;;  %v18323_v61 = vadd.f32 %v18295_v41, %v18266_v39  ;;  %v18331_v26 = vadd.f32 %v18295_v41, %v18274_v59 }
0x1087   : > { %v18320_v49 = vadd.f32 %v18283_v32, %v18263_v11  ;;  %v18328_v13 = vadd.f32 %v18283_v32, %v18271_v37  ;;  %v18322_v62 = vadd.f32 %v18291_v1, %v18265_v51  ;;  %v18330_v55 = vadd.f32 %v18291_v1, %v18273_v38 }
0x1088   : > { %v18337_v20 = vmax.f32 %v18321_v2, 0.0  ;;  %v18345_v16 = vmax.f32 %v18329_v23, 0.0  ;;  %v18339_v28 = vmax.f32 %v18323_v61, 0.0  ;;  %v18347_v31 = vmax.f32 %v18331_v26, 0.0 }
0x1089   : > { %v18336_v10 = vmax.f32 %v18320_v49, 0.0  ;;  %v18344_v45 = vmax.f32 %v18328_v13, 0.0  ;;  %v18338_v6 = vmax.f32 %v18322_v62, 0.0  ;;  %v18346_v40 = vmax.f32 %v18330_v55, 0.0 }
0x108a   : > { %v18359_v19 = vmax.f32 %v18337_v20, %v18345_v16  ;;  %v18373_v24 = vmax.f32 %v18339_v28, %v18347_v31  ;;  %v18325_v44 = vadd.f32 %v18303_v53, %v18268_v57  ;;  %v18333_v5 = vadd.f32 %v18303_v53, %v18276_v3 }
0x108b   : > { %v18352_v4 = vmax.f32 %v18336_v10, %v18344_v45  ;;  %v18366_v63 = vmax.f32 %v18338_v6, %v18346_v40  ;;  %v18327_v34 = vadd.f32 %v18311_v50, %v18270_v8  ;;  %v18335_v14 = vadd.f32 %v18311_v50, %v18278_v42 }
0x108c   : > { %v18360_v11 = vrot.slane %v18359_v19, 4  ;;  %v18374_v37 = vrot.slane %v18373_v24, 4  ;;  %v18341_v51 = vmax.f32 %v18325_v44, 0.0  ;;  %v18349_v21 = vmax.f32 %v18333_v5, 0.0 }
0x108d   : > { %v18353_v39 = vrot.slane %v18352_v4, 4  ;;  %v18367_v25 = vrot.slane %v18366_v63, 4  ;;  %v18343_v59 = vmax.f32 %v18327_v34, 0.0  ;;  %v18351_v15 = vmax.f32 %v18335_v14, 0.0  ;;  %v29262_v34 = vld [vmem:[#allocation29 + $0x6c4] ss:$16 sps:$4 sm:$0xff]  }
0x108e   : > { %v18361_v38 = vmax.f32 %v18359_v19, %v18360_v11  ;;  %v18375_v9 = vmax.f32 %v18373_v24, %v18374_v37  ;;  %v18387_v56 = vmax.f32 %v18341_v51, %v18349_v21  ;;  %v18324_v54 = vadd.f32 %v18299_v52, %v18267_v30  ;;  %v29251_v19 = vld [vmem:[#allocation29 + $0x4e0] ss:$16 sps:$4 sm:$0xff]  }
0x108f   : > { %v18354_v36 = vmax.f32 %v18352_v4, %v18353_v39  ;;  %v18368_v35 = vmax.f32 %v18366_v63, %v18367_v25  ;;  %v18401_v57 = vmax.f32 %v18343_v59, %v18351_v15  ;;  %v18332_v3 = vadd.f32 %v18299_v52, %v18275_v17  ;;  %v29254_v24 = vld [vmem:[#allocation29 + $0x6e0] ss:$16 sps:$4 sm:$0xff]   ;;  %v29259_v63 = vld [vmem:[#allocation29 + $0x4c4] ss:$16 sps:$4 sm:$0xff]  }
0x1090   : > { %v18362_v43 = vrot.slane %v18361_v38, 2  ;;  %v18376_v47 = vrot.slane %v18375_v9, 2  ;;  %v18388_v8 = vrot.slane %v18387_v56, 4  ;;  %v18340_v42 = vmax.f32 %v18324_v54, 0.0  ;;  %v29257_v21 = vld [vmem:[#allocation29 + $0x4c0] ss:$16 sps:$4 sm:$0xff]  }
0x1091   : > { %v18355_v33 = vrot.slane %v18354_v36, 2  ;;  %v18369_v48 = vrot.slane %v18368_v35, 2  ;;  %v18402_v27 = vrot.slane %v18401_v57, 4  ;;  %v18348_v41 = vmax.f32 %v18332_v3, 0.0  ;;  %v29260_v39 = vld [vmem:[#allocation29 + $0x6c0] ss:$16 sps:$4 sm:$0xff]  }
0x1092   : > { %v18363_v32 = vmax.f32 %v18361_v38, %v18362_v43  ;;  %v18377_v1 = vmax.f32 %v18375_v9, %v18376_v47  ;;  %v18389_v53 = vmax.f32 %v18387_v56, %v18388_v8  ;;  %v18326_v50 = vadd.f32 %v18307_v7, %v18269_v22  ;;  %v29265_v59 = vld [vmem:[#allocation29 + $0x4a4] ss:$16 sps:$4 sm:$0xff]   ;;  %v29263_v38 = vld [vmem:[#allocation29 + $0x4a0] ss:$16 sps:$4 sm:$0xff]  }
0x1093   : > { %v18356_v2 = vmax.f32 %v18354_v36, %v18355_v33  ;;  %v18370_v23 = vmax.f32 %v18368_v35, %v18369_v48  ;;  %v18403_v61 = vmax.f32 %v18401_v57, %v18402_v27  ;;  %v33255_v30 = vmax.f32 %v18340_v42, %v18348_v41  ;;  %v29268_v15 = vld [vmem:[#allocation29 + $0x6a4] ss:$16 sps:$4 sm:$0xff]   ;;  %v29266_v9 = vld [vmem:[#allocation29 + $0x6a0] ss:$16 sps:$4 sm:$0xff]  }
0x1094   : > { %v18364_v26 = vrot.slane %v18363_v32, 1  ;;  %v18378_v49 = vrot.slane %v18377_v1, 1  ;;  %v18390_v17 = vrot.slane %v18389_v53, 2  ;;  %v18334_v52 = vadd.f32 %v18307_v7, %v33245_v60  ;;  %v29271_v56 = vld [vmem:[#allocation29 + $0x484] ss:$16 sps:$4 sm:$0xff]  }
0x1095   : > { %v18357_v13 = vrot.slane %v18356_v2, 1  ;;  %v18371_v62 = vrot.slane %v18370_v23, 1  ;;  %v18404_v55 = vrot.slane %v18403_v61, 2  ;;  %v18342_v31 = vmax.f32 %v18326_v50, 0.0  ;;  %v29274_v54 = vld [vmem:[#allocation29 + $0x684] ss:$16 sps:$4 sm:$0xff]  }
0x1096   : > { %v18365_v20 = vmax.f32 %v18363_v32, %v18364_v26  ;;  %v18379_v16 = vmax.f32 %v18377_v1, %v18378_v49  ;;  %v18391_v28 = vmax.f32 %v18389_v53, %v18390_v17  ;;  %v18350_v5 = vmax.f32 %v18334_v52, 0.0  ;;  %v29269_v36 = vld [vmem:[#allocation29 + $0x480] ss:$16 sps:$4 sm:$0xff]   ;;  %v29277_v57 = vld [vmem:[#allocation29 + $0x464] ss:$16 sps:$4 sm:$0xff]  }
0x1097   : > { %v18358_v10 = vmax.f32 %v18356_v2, %v18357_v13  ;;  %v18372_v45 = vmax.f32 %v18370_v23, %v18371_v62  ;;  %v18405_v22 = vmax.f32 %v18403_v61, %v18404_v55  ;;  %v29272_v35 = vld [vmem:[#allocation29 + $0x680] ss:$16 sps:$4 sm:$0xff]   ;;  %v29280_v3 = vld [vmem:[#allocation29 + $0x664] ss:$16 sps:$4 sm:$0xff]  }
0x1098   : > { %v33258_v6 = vpack.c.bf16 %v18365_v20, %v18365_v20  ;;  %v33260_v40 = vpack.c.bf16 %v18379_v16, %v18379_v16  ;;  %v18392_v44 = vrot.slane %v18391_v28, 1  ;;  %v33268_v11 = vmax.f32 %v18342_v31, %v18350_v5  ;;  %v29275_v43 = vld [vmem:[#allocation29 + $0x460] ss:$16 sps:$4 sm:$0xff]   ;;  %v29283_v8 = vld [vmem:[#allocation29 + $0x444] ss:$16 sps:$4 sm:$0xff]  }
0x1099   : > { %v33262_v4 = vpack.c.bf16 %v18358_v10, %v18358_v10  ;;  %v33264_v60 = vpack.c.bf16 %v18372_v45, %v18372_v45  ;;  %v18406_v7 = vrot.slane %v18405_v22, 1  ;;  %v29278_v47 = vld [vmem:[#allocation29 + $0x660] ss:$16 sps:$4 sm:$0xff]   ;;  %v29286_v42 = vld [vmem:[#allocation29 + $0x644] ss:$16 sps:$4 sm:$0xff]  }
0x109a   : > { %20006 = vmatprep.mubr.bf16.mxu1 %v33258_v6  ;;  %20047 = vmatprep.mubr.bf16.mxu0 %v33260_v40  ;;  %v18393_v14 = vmax.f32 %v18391_v28, %v18392_v44  ;;  %v29281_v33 = vld [vmem:[#allocation29 + $0x440] ss:$16 sps:$4 sm:$0xff]   ;;  %v29289_v27 = vld [vmem:[#allocation29 + $0x424] ss:$16 sps:$4 sm:$0xff]  }
0x109b   : > { %20007 = vmatmul.mubr.bf16.vlgmr.msra.gmra.mxu1 %v33262_v4  ;;  %20048 = vmatmul.mubr.bf16.vlgmr.msra.gmra.mxu0 %v33264_v60  ;;  %v18407_v37 = vmax.f32 %v18405_v22, %v18406_v7  ;;  %v29284_v48 = vld [vmem:[#allocation29 + $0x640] ss:$16 sps:$4 sm:$0xff]   ;;  %v29292_v41 = vld [vmem:[#allocation29 + $0x624] ss:$16 sps:$4 sm:$0xff]   ;;  %v18381_v22 = vrot.slane %v33255_v30, 4 }
0x109c   : > { %20057 = vmatpush1.bf16.msra.mxu1 %v29251_v19  ;;  %20098 = vmatpush1.bf16.msra.mxu0 %v29254_v24  ;;  %v33272_v51 = vpack.c.bf16 %v18393_v14, %v18393_v14  ;;  %v29287_v32 = vld [vmem:[#allocation29 + $0x420] ss:$16 sps:$4 sm:$0xff]   ;;  %v29295_v53 = vld [vmem:[#allocation29 + $0x404] ss:$16 sps:$4 sm:$0xff]   ;;  %v18395_v19 = vrot.slane %v33268_v11, 4 }
0x109d   : > { %v33274_v25 = vpack.c.bf16 %v18407_v37, %v18407_v37  ;;  %20058 = vmatprep.subr.bf16.mxu1 %v29259_v63  ;;  %20099 = vmatprep.subr.bf16.mxu0 %v29262_v34  ;;  %v29290_v1 = vld [vmem:[#allocation29 + $0x620] ss:$16 sps:$4 sm:$0xff]   ;;  %v29298_v50 = vld [vmem:[#allocation29 + $0x604] ss:$16 sps:$4 sm:$0xff]   ;;  %v18382_v63 = vmax.f32 %v33255_v30, %v18381_v22  ;;  %v29377_v22 = vld [vmem:[#allocation29 + $0x48] ss:$16 sps:$4 sm:$0xff]  }
0x109e   : > { %20088 = vmatprep.mubr.bf16.mxu1 %v33272_v51  ;;  %v29293_v2 = vld [vmem:[#allocation29 + $0x400] ss:$16 sps:$4 sm:$0xff]   ;;  %v29301_v61 = vld [vmem:[#allocation29 + $0x5e4] ss:$16 sps:$4 sm:$0xff]   ;;  %v18396_v34 = vmax.f32 %v33268_v11, %v18395_v19  ;;  %v29380_v19 = vld [vmem:[#allocation29 + $0x248] ss:$16 sps:$4 sm:$0xff]  }
0x109f   : > { %20129 = vmatprep.mubr.bf16.mxu0 %v33274_v25  ;;  %v29296_v23 = vld [vmem:[#allocation29 + $0x600] ss:$16 sps:$4 sm:$0xff]   ;;  %v29304_v26 = vld [vmem:[#allocation29 + $0x7e4] ss:$16 sps:$4 sm:$0xff]  }
0x10a0   : > { %20059 = vmatpush1.bf16.msra.mxu1 %v29257_v21  ;;  %20100 = vmatpush1.bf16.msra.mxu0 %v29260_v39  ;;  %v29299_v49 = vld [vmem:[#allocation29 + $0x5e0] ss:$16 sps:$4 sm:$0xff]   ;;  %v29307_v52 = vld [vmem:[#allocation29 + $0x5c4] ss:$16 sps:$4 sm:$0xff]  }
0x10a1   : > { %20060 = vmatprep.subr.bf16.mxu1 %v29265_v59  ;;  %20101 = vmatprep.subr.bf16.mxu0 %v29268_v15  ;;  %v29302_v17 = vld [vmem:[#allocation29 + $0x7e0] ss:$16 sps:$4 sm:$0xff]   ;;  %v29310_v13 = vld [vmem:[#allocation29 + $0x7c4] ss:$16 sps:$4 sm:$0xff]   ;;  %v18383_v59 = vrot.slane %v18382_v63, 2  ;;  %v18397_v15 = vrot.slane %v18396_v34, 2 }
0x10a2   : > { %v29305_v62 = vld [vmem:[#allocation29 + $0x5c0] ss:$16 sps:$4 sm:$0xff]   ;;  %v29313_v20 = vld [vmem:[#allocation29 + $0x5a4] ss:$16 sps:$4 sm:$0xff]  }
0x10a3   : > { %v29308_v55 = vld [vmem:[#allocation29 + $0x7c0] ss:$16 sps:$4 sm:$0xff]   ;;  %v29316_v16 = vld [vmem:[#allocation29 + $0x7a4] ss:$16 sps:$4 sm:$0xff]   ;;  %v18398_v11 = vmax.f32 %v18396_v34, %v18397_v15  ;;  %v29394_v34 = vld [vmem:[#allocation29 + $0x20c] ss:$16 sps:$4 sm:$0xff]  }
0x10a4   : > { %20061 = vmatpush1.bf16.msra.mxu1 %v29263_v38  ;;  %20102 = vmatpush1.bf16.msra.mxu0 %v29266_v9  ;;  %v29311_v28 = vld [vmem:[#allocation29 + $0x5a0] ss:$16 sps:$4 sm:$0xff]   ;;  %v29319_v10 = vld [vmem:[#allocation29 + $0x584] ss:$16 sps:$4 sm:$0xff]   ;;  %v29398_v15 = vld [vmem:[#allocation29 + $0x3e8] ss:$16 sps:$4 sm:$0xff]  }
0x10a5   : > { %20062 = vmatprep.subr.bf16.mxu1 %v29271_v56  ;;  %20103 = vmatprep.subr.bf16.mxu0 %v29274_v54  ;;  %v29314_v31 = vld [vmem:[#allocation29 + $0x7a0] ss:$16 sps:$4 sm:$0xff]   ;;  %v29322_v45 = vld [vmem:[#allocation29 + $0x784] ss:$16 sps:$4 sm:$0xff]   ;;  %v18384_v54 = vmax.f32 %v18382_v63, %v18383_v59  ;;  %v29391_v63 = vld [vmem:[#allocation29 + $0xc] ss:$16 sps:$4 sm:$0xff]  }
0x10a6   : > { %v29317_v24 = vld [vmem:[#allocation29 + $0x580] ss:$16 sps:$4 sm:$0xff]   ;;  %v29325_v5 = vld [vmem:[#allocation29 + $0x564] ss:$16 sps:$4 sm:$0xff]   ;;  %v29395_v59 = vld [vmem:[#allocation29 + $0x1e8] ss:$16 sps:$4 sm:$0xff]  }
0x10a7   : > { %v29320_v44 = vld [vmem:[#allocation29 + $0x780] ss:$16 sps:$4 sm:$0xff]   ;;  %v29328_v7 = vld [vmem:[#allocation29 + $0x764] ss:$16 sps:$4 sm:$0xff]  }
0x10a8   : > { %20063 = vmatpush1.bf16.msra.mxu1 %v29269_v36  ;;  %20104 = vmatpush1.bf16.msra.mxu0 %v29272_v35  ;;  %v29323_v14 = vld [vmem:[#allocation29 + $0x560] ss:$16 sps:$4 sm:$0xff]   ;;  %v29331_v21 = vld [vmem:[#allocation29 + $0x544] ss:$16 sps:$4 sm:$0xff]  }
0x10a9   : > { %20064 = vmatprep.subr.bf16.mxu1 %v29277_v57  ;;  %20105 = vmatprep.subr.bf16.mxu0 %v29280_v3  ;;  %v29326_v37 = vld [vmem:[#allocation29 + $0x760] ss:$16 sps:$4 sm:$0xff]   ;;  %v29334_v39 = vld [vmem:[#allocation29 + $0x744] ss:$16 sps:$4 sm:$0xff]  }
0x10aa   : > { %v29329_v38 = vld [vmem:[#allocation29 + $0x540] ss:$16 sps:$4 sm:$0xff]   ;;  %v29337_v56 = vld [vmem:[#allocation29 + $0x524] ss:$16 sps:$4 sm:$0xff]  }
0x10ab   : > { %v29332_v9 = vld [vmem:[#allocation29 + $0x740] ss:$16 sps:$4 sm:$0xff]   ;;  %v29340_v30 = vld [vmem:[#allocation29 + $0x724] ss:$16 sps:$4 sm:$0xff]  }
0x10ac   : > { %20065 = vmatpush1.bf16.msra.mxu1 %v29275_v43  ;;  %20106 = vmatpush1.bf16.msra.mxu0 %v29278_v47  ;;  %v29335_v36 = vld [vmem:[#allocation29 + $0x520] ss:$16 sps:$4 sm:$0xff]   ;;  %v29343_v57 = vld [vmem:[#allocation29 + $0x504] ss:$16 sps:$4 sm:$0xff]   ;;  %v18385_v43 = vrot.slane %v18384_v54, 1  ;;  %v18399_v47 = vrot.slane %v18398_v11, 1 }
0x10ad   : > { %20066 = vmatprep.subr.bf16.mxu1 %v29283_v8  ;;  %20107 = vmatprep.subr.bf16.mxu0 %v29286_v42  ;;  %v29338_v35 = vld [vmem:[#allocation29 + $0x720] ss:$16 sps:$4 sm:$0xff]   ;;  %v29346_v3 = vld [vmem:[#allocation29 + $0x704] ss:$16 sps:$4 sm:$0xff]  }
0x10ae   : > { %v29341_v8 = vld [vmem:[#allocation29 + $0x500] ss:$16 sps:$4 sm:$0xff]  }
0x10af   : > { %v29344_v42 = vld [vmem:[#allocation29 + $0x700] ss:$16 sps:$4 sm:$0xff]  }
0x10b0   : > { %20067 = vmatpush1.bf16.msra.mxu1 %v29281_v33  ;;  %20108 = vmatpush1.bf16.msra.mxu0 %v29284_v48  ;;  %v18386_v33 = vmax.f32 %v18384_v54, %v18385_v43  ;;  %v18400_v48 = vmax.f32 %v18398_v11, %v18399_v47  ;;  %v29409_v54 = vld [vmem:[#allocation29 + $0x1ac] ss:$16 sps:$4 sm:$0xff]   ;;  %v29413_v43 = vld [vmem:[#allocation29 + $0x188] ss:$16 sps:$4 sm:$0xff]  }
0x10b1   : > { %20068 = vmatprep.subr.bf16.mxu1 %v29289_v27  ;;  %20109 = vmatprep.subr.bf16.mxu0 %v29292_v41  ;;  %v29349_v27 = vld [vmem:[#allocation29 + $0xec] ss:$16 sps:$4 sm:$0xff]   ;;  %v29416_v47 = vld [vmem:[#allocation29 + $0x388] ss:$16 sps:$4 sm:$0xff]  }
0x10b2   : > { %v29352_v41 = vld [vmem:[#allocation29 + $0x2ec] ss:$16 sps:$4 sm:$0xff]  }
0x10b3   : > { %v29412_v11 = vld [vmem:[#allocation29 + $0x3ac] ss:$16 sps:$4 sm:$0xff]  }
0x10b4   : > { %20069 = vmatpush1.bf16.msra.mxu1 %v29287_v32  ;;  %20110 = vmatpush1.bf16.msra.mxu0 %v29290_v1  ;;  %v29347_v32 = vld [vmem:[#allocation29 + $0xe8] ss:$16 sps:$4 sm:$0xff]   ;;  %v33282_v1 = vpack.c.bf16 %v18386_v33, %v18386_v33 }
0x10b5   : > { %20070 = vmatprep.subr.bf16.mxu1 %v29295_v53  ;;  %20111 = vmatprep.subr.bf16.mxu0 %v29298_v50  ;;  %v33284_v53 = vpack.c.bf16 %v18400_v48, %v18400_v48  ;;  %v29350_v50 = vld [vmem:[#allocation29 + $0x2e8] ss:$16 sps:$4 sm:$0xff]  }
0x10b6   : > { %v29419_v33 = vld [vmem:[#allocation29 + $0x168] ss:$16 sps:$4 sm:$0xff]  }
0x10b7   : > { %v29422_v48 = vld [vmem:[#allocation29 + $0x368] ss:$16 sps:$4 sm:$0xff]  }
0x10b8   : > { %20071 = vmatpush1.bf16.msra.mxu1 %v29293_v2  ;;  %20112 = vmatpush1.bf16.msra.mxu0 %v29296_v23  ;;  %v29355_v2 = vld [vmem:[#allocation29 + $0xcc] ss:$16 sps:$4 sm:$0xff]  }
0x10b9   : > { %20072 = vmatprep.subr.bf16.mxu1 %v29301_v61  ;;  %20113 = vmatprep.subr.bf16.mxu0 %v29304_v26  ;;  %v29358_v23 = vld [vmem:[#allocation29 + $0x2cc] ss:$16 sps:$4 sm:$0xff]   ;;  %v29353_v61 = vld [vmem:[#allocation29 + $0xc8] ss:$16 sps:$4 sm:$0xff]  }
0x10ba   : > { %v29356_v26 = vld [vmem:[#allocation29 + $0x2c8] ss:$16 sps:$4 sm:$0xff]  }
0x10bc   : > { %20073 = vmatpush2.bf16.msra.mxu1 %v29299_v49  ;;  %20114 = vmatpush2.bf16.msra.mxu0 %v29302_v17  ;;  %v29361_v49 = vld [vmem:[#allocation29 + $0xac] ss:$16 sps:$4 sm:$0xff]  }
0x10bd   : > { %20074 = vmatprep.subr.bf16.mxu1 %v29307_v52  ;;  %20115 = vmatprep.subr.bf16.mxu0 %v29310_v13  ;;  %v29364_v17 = vld [vmem:[#allocation29 + $0x2ac] ss:$16 sps:$4 sm:$0xff]   ;;  %v29359_v52 = vld [vmem:[#allocation29 + $0xa8] ss:$16 sps:$4 sm:$0xff]  }
0x10be   : > { %v29362_v13 = vld [vmem:[#allocation29 + $0x2a8] ss:$16 sps:$4 sm:$0xff]  }
0x10c0   : > { %20075 = vmatpush2.bf16.msra.mxu1 %v29305_v62  ;;  %20116 = vmatpush2.bf16.msra.mxu0 %v29308_v55  ;;  %v29367_v62 = vld [vmem:[#allocation29 + $0x8c] ss:$16 sps:$4 sm:$0xff]  }
0x10c1   : > { %20076 = vmatprep.subr.bf16.mxu1 %v29313_v20  ;;  %20117 = vmatprep.subr.bf16.mxu0 %v29316_v16  ;;  %v29370_v55 = vld [vmem:[#allocation29 + $0x28c] ss:$16 sps:$4 sm:$0xff]   ;;  %v29365_v20 = vld [vmem:[#allocation29 + $0x88] ss:$16 sps:$4 sm:$0xff]  }
0x10c2   : > { %v29373_v16 = vld [vmem:[#allocation29 + $0x6c] ss:$16 sps:$4 sm:$0xff]  }
0x10c4   : > { %20077 = vmatpush2.bf16.msra.mxu1 %v29311_v28  ;;  %20118 = vmatpush2.bf16.msra.mxu0 %v29314_v31  ;;  %v29371_v28 = vld [vmem:[#allocation29 + $0x68] ss:$16 sps:$4 sm:$0xff]  }
0x10c5   : > { %20078 = vmatprep.subr.bf16.mxu1 %v29319_v10  ;;  %20119 = vmatprep.subr.bf16.mxu0 %v29322_v45  ;;  %v29374_v31 = vld [vmem:[#allocation29 + $0x268] ss:$16 sps:$4 sm:$0xff]   ;;  %v29379_v10 = vld [vmem:[#allocation29 + $0x4c] ss:$16 sps:$4 sm:$0xff]  }
0x10c6   : > { %v29382_v45 = vld [vmem:[#allocation29 + $0x24c] ss:$16 sps:$4 sm:$0xff]  }
0x10c8   : > { %20079 = vmatpush2.bf16.msra.mxu1 %v29317_v24  ;;  %20120 = vmatpush2.bf16.msra.mxu0 %v29320_v44  ;;  %v29385_v24 = vld [vmem:[#allocation29 + $0x2c] ss:$16 sps:$4 sm:$0xff]  }
0x10c9   : > { %20080 = vmatprep.subr.bf16.mxu1 %v29325_v5  ;;  %20121 = vmatprep.subr.bf16.mxu0 %v29328_v7  ;;  %v29388_v44 = vld [vmem:[#allocation29 + $0x22c] ss:$16 sps:$4 sm:$0xff]   ;;  %v29383_v5 = vld [vmem:[#allocation29 + $0x28] ss:$16 sps:$4 sm:$0xff]  }
0x10ca   : > { %v29386_v7 = vld [vmem:[#allocation29 + $0x228] ss:$16 sps:$4 sm:$0xff]  }
0x10cc   : > { %20081 = vmatpush2.bf16.msra.mxu1 %v29323_v14  ;;  %20122 = vmatpush2.bf16.msra.mxu0 %v29326_v37  ;;  %v29389_v14 = vld [vmem:[#allocation29 + $0x8] ss:$16 sps:$4 sm:$0xff]  }
0x10cd   : > { %20082 = vmatprep.subr.bf16.mxu1 %v29331_v21  ;;  %20123 = vmatprep.subr.bf16.mxu0 %v29334_v39  ;;  %v29392_v37 = vld [vmem:[#allocation29 + $0x208] ss:$16 sps:$4 sm:$0xff]   ;;  %v29397_v21 = vld [vmem:[#allocation29 + $0x1ec] ss:$16 sps:$4 sm:$0xff]  }
0x10ce   : > { %v29400_v39 = vld [vmem:[#allocation29 + $0x3ec] ss:$16 sps:$4 sm:$0xff]  }
0x10d0   : > { %20083 = vmatpush2.bf16.msra.mxu1 %v29329_v38  ;;  %20124 = vmatpush2.bf16.msra.mxu0 %v29332_v9  ;;  %v29403_v38 = vld [vmem:[#allocation29 + $0x1cc] ss:$16 sps:$4 sm:$0xff]  }
0x10d1   : > { %20084 = vmatprep.subr.bf16.mxu1 %v29337_v56  ;;  %20125 = vmatprep.subr.bf16.mxu0 %v29340_v30  ;;  %v29406_v9 = vld [vmem:[#allocation29 + $0x3cc] ss:$16 sps:$4 sm:$0xff]   ;;  %v29401_v56 = vld [vmem:[#allocation29 + $0x1c8] ss:$16 sps:$4 sm:$0xff]  }
0x10d2   : > { %v29404_v30 = vld [vmem:[#allocation29 + $0x3c8] ss:$16 sps:$4 sm:$0xff]  }
0x10d4   : > { %20085 = vmatpush2.bf16.msra.mxu1 %v29335_v36  ;;  %20126 = vmatpush2.bf16.msra.mxu0 %v29338_v35  ;;  %v29407_v36 = vld [vmem:[#allocation29 + $0x1a8] ss:$16 sps:$4 sm:$0xff]  }
0x10d5   : > { %20086 = vmatprep.subr.bf16.mxu1 %v29343_v57  ;;  %20127 = vmatprep.subr.bf16.mxu0 %v29346_v3  ;;  %v29410_v35 = vld [vmem:[#allocation29 + $0x3a8] ss:$16 sps:$4 sm:$0xff]   ;;  %v29415_v57 = vld [vmem:[#allocation29 + $0x18c] ss:$16 sps:$4 sm:$0xff]  }
0x10d6   : > { %v29418_v3 = vld [vmem:[#allocation29 + $0x38c] ss:$16 sps:$4 sm:$0xff]  }
0x10d8   : > { %20087 = vmatpush2.bf16.msra.mxu1 %v29341_v8  ;;  %20128 = vmatpush2.bf16.msra.mxu0 %v29344_v42  ;;  %v29421_v8 = vld [vmem:[#allocation29 + $0x16c] ss:$16 sps:$4 sm:$0xff]  }
0x10d9   : > { %20138 = vmatprep.subr.bf16.mxu1 %v29349_v27  ;;  %20179 = vmatprep.subr.bf16.mxu0 %v29352_v41  ;;  %v29424_v42 = vld [vmem:[#allocation29 + $0x36c] ss:$16 sps:$4 sm:$0xff]  }
0x10da   : > { %v29427_v27 = vld [vmem:[#allocation29 + $0x14c] ss:$16 sps:$4 sm:$0xff]  }
0x10db   : > { %20089 = vmatmul.mubr.bf16.vlgmr.msra.gmra.mxu1 %v33282_v1  ;;  %20130 = vmatmul.mubr.bf16.vlgmr.msra.gmra.mxu0 %v33284_v53  ;;  %v29430_v41 = vld [vmem:[#allocation29 + $0x34c] ss:$16 sps:$4 sm:$0xff]  }
0x10dc   : > { %20139 = vmatpush1.bf16.msra.mxu1 %v29347_v32  ;;  %20170 = vmatprep.mubr.bf16.mxu1 %v33258_v6  ;;  %v29368_v6 = vld [vmem:[#allocation29 + $0x288] ss:$16 sps:$4 sm:$0xff]  }
0x10dd   : > { %20180 = vmatpush1.bf16.msra.mxu0 %v29350_v50  ;;  %20211 = vmatprep.mubr.bf16.mxu0 %v33260_v40  ;;  %v29376_v40 = vld [vmem:[#allocation29 + $0x26c] ss:$16 sps:$4 sm:$0xff]   ;;  %v29425_v32 = vld [vmem:[#allocation29 + $0x148] ss:$16 sps:$4 sm:$0xff]  }
0x10de   : > { %20140 = vmatprep.subr.bf16.mxu1 %v29355_v2  ;;  %20181 = vmatprep.subr.bf16.mxu0 %v29358_v23  ;;  %v29428_v50 = vld [vmem:[#allocation29 + $0x348] ss:$16 sps:$4 sm:$0xff]   ;;  %v29433_v2 = vld [vmem:[#allocation29 + $0x12c] ss:$16 sps:$4 sm:$0xff]  }
0x10df   : > { %v29436_v23 = vld [vmem:[#allocation29 + $0x32c] ss:$16 sps:$4 sm:$0xff]  }
0x10e0   : > { %20141 = vmatpush1.bf16.msra.mxu1 %v29353_v61  ;;  %v29431_v61 = vld [vmem:[#allocation29 + $0x128] ss:$16 sps:$4 sm:$0xff]  }
0x10e1   : > { %20182 = vmatpush1.bf16.msra.mxu0 %v29356_v26  ;;  %20142 = vmatprep.subr.bf16.mxu1 %v29361_v49  ;;  %v29434_v26 = vld [vmem:[#allocation29 + $0x328] ss:$16 sps:$4 sm:$0xff]   ;;  %v29439_v49 = vld [vmem:[#allocation29 + $0x10c] ss:$16 sps:$4 sm:$0xff]  }
0x10e2   : > { %20183 = vmatprep.subr.bf16.mxu0 %v29364_v17  ;;  %v29442_v17 = vld [vmem:[#allocation29 + $0x30c] ss:$16 sps:$4 sm:$0xff]  }
0x10e4   : > { %20143 = vmatpush1.bf16.msra.mxu1 %v29359_v52  ;;  %v29437_v52 = vld [vmem:[#allocation29 + $0x108] ss:$16 sps:$4 sm:$0xff]  }
0x10e5   : > { %20184 = vmatpush1.bf16.msra.mxu0 %v29362_v13  ;;  %20144 = vmatprep.subr.bf16.mxu1 %v29367_v62  ;;  %v29440_v13 = vld [vmem:[#allocation29 + $0x308] ss:$16 sps:$4 sm:$0xff]   ;;  %v29445_v62 = vld [vmem:[#allocation29 + $0x4ec] ss:$16 sps:$4 sm:$0xff]  }
0x10e6   : > { %20185 = vmatprep.subr.bf16.mxu0 %v29370_v55  ;;  %v29448_v55 = vld [vmem:[#allocation29 + $0x6ec] ss:$16 sps:$4 sm:$0xff]  }
0x10e8   : > { %20145 = vmatpush1.bf16.msra.mxu1 %v29365_v20  ;;  %v29443_v20 = vld [vmem:[#allocation29 + $0x4e8] ss:$16 sps:$4 sm:$0xff]  }
0x10e9   : > { %20186 = vmatpush1.bf16.msra.mxu0 %v29368_v6  ;;  %20146 = vmatprep.subr.bf16.mxu1 %v29373_v16  ;;  %v29446_v6 = vld [vmem:[#allocation29 + $0x6e8] ss:$16 sps:$4 sm:$0xff]   ;;  %v29451_v16 = vld [vmem:[#allocation29 + $0x4cc] ss:$16 sps:$4 sm:$0xff]  }
0x10ea   : > { %20187 = vmatprep.subr.bf16.mxu0 %v29376_v40  ;;  %v29454_v40 = vld [vmem:[#allocation29 + $0x6cc] ss:$16 sps:$4 sm:$0xff]  }
0x10ec   : > { %20147 = vmatpush1.bf16.msra.mxu1 %v29371_v28  ;;  %v29449_v28 = vld [vmem:[#allocation29 + $0x4c8] ss:$16 sps:$4 sm:$0xff]  }
0x10ed   : > { %20188 = vmatpush1.bf16.msra.mxu0 %v29374_v31  ;;  %20148 = vmatprep.subr.bf16.mxu1 %v29379_v10  ;;  %v29452_v31 = vld [vmem:[#allocation29 + $0x6c8] ss:$16 sps:$4 sm:$0xff]   ;;  %v29457_v10 = vld [vmem:[#allocation29 + $0x4ac] ss:$16 sps:$4 sm:$0xff]  }
0x10ee   : > { %20189 = vmatprep.subr.bf16.mxu0 %v29382_v45  ;;  %v29460_v45 = vld [vmem:[#allocation29 + $0x6ac] ss:$16 sps:$4 sm:$0xff]  }
0x10f0   : > { %20149 = vmatpush1.bf16.msra.mxu1 %v29377_v22  ;;  %v29455_v22 = vld [vmem:[#allocation29 + $0x4a8] ss:$16 sps:$4 sm:$0xff]  }
0x10f1   : > { %20190 = vmatpush1.bf16.msra.mxu0 %v29380_v19  ;;  %20150 = vmatprep.subr.bf16.mxu1 %v29385_v24  ;;  %v29463_v19 = vld [vmem:[#allocation29 + $0x48c] ss:$16 sps:$4 sm:$0xff]   ;;  %v29461_v24 = vld [vmem:[#allocation29 + $0x488] ss:$16 sps:$4 sm:$0xff]  }
0x10f2   : > { %20191 = vmatprep.subr.bf16.mxu0 %v29388_v44  ;;  %v29469_v44 = vld [vmem:[#allocation29 + $0x46c] ss:$16 sps:$4 sm:$0xff]  }
0x10f4   : > { %20151 = vmatpush1.bf16.msra.mxu1 %v29383_v5  ;;  %v29472_v5 = vld [vmem:[#allocation29 + $0x66c] ss:$16 sps:$4 sm:$0xff]  }
0x10f5   : > { %20192 = vmatpush1.bf16.msra.mxu0 %v29386_v7  ;;  %20152 = vmatprep.subr.bf16.mxu1 %v29391_v63  ;;  %v29470_v7 = vld [vmem:[#allocation29 + $0x668] ss:$16 sps:$4 sm:$0xff]   ;;  %v29475_v63 = vld [vmem:[#allocation29 + $0x44c] ss:$16 sps:$4 sm:$0xff]  }
0x10f6   : > { %20193 = vmatprep.subr.bf16.mxu0 %v29394_v34  ;;  %v29478_v34 = vld [vmem:[#allocation29 + $0x64c] ss:$16 sps:$4 sm:$0xff]  }
0x10f8   : > { %20153 = vmatpush1.bf16.msra.mxu1 %v29389_v14  ;;  %v29473_v14 = vld [vmem:[#allocation29 + $0x448] ss:$16 sps:$4 sm:$0xff]  }
0x10f9   : > { %20194 = vmatpush1.bf16.msra.mxu0 %v29392_v37  ;;  %20154 = vmatprep.subr.bf16.mxu1 %v29397_v21  ;;  %v29476_v37 = vld [vmem:[#allocation29 + $0x648] ss:$16 sps:$4 sm:$0xff]   ;;  %v29481_v21 = vld [vmem:[#allocation29 + $0x42c] ss:$16 sps:$4 sm:$0xff]  }
0x10fa   : > { %20195 = vmatprep.subr.bf16.mxu0 %v29400_v39  ;;  %v29484_v39 = vld [vmem:[#allocation29 + $0x62c] ss:$16 sps:$4 sm:$0xff]  }
0x10fc   : > { %20155 = vmatpush2.bf16.msra.mxu1 %v29395_v59  ;;  %v29479_v59 = vld [vmem:[#allocation29 + $0x428] ss:$16 sps:$4 sm:$0xff]  }
0x10fd   : > { %20196 = vmatpush2.bf16.msra.mxu0 %v29398_v15  ;;  %20156 = vmatprep.subr.bf16.mxu1 %v29403_v38  ;;  %v29482_v15 = vld [vmem:[#allocation29 + $0x628] ss:$16 sps:$4 sm:$0xff]   ;;  %v29487_v38 = vld [vmem:[#allocation29 + $0x40c] ss:$16 sps:$4 sm:$0xff]  }
0x10fe   : > { %20197 = vmatprep.subr.bf16.mxu0 %v29406_v9  ;;  %v29490_v9 = vld [vmem:[#allocation29 + $0x60c] ss:$16 sps:$4 sm:$0xff]  }
0x1100   : > { %20157 = vmatpush2.bf16.msra.mxu1 %v29401_v56  ;;  %v29485_v56 = vld [vmem:[#allocation29 + $0x408] ss:$16 sps:$4 sm:$0xff]  }
0x1101   : > { %20198 = vmatpush2.bf16.msra.mxu0 %v29404_v30  ;;  %20158 = vmatprep.subr.bf16.mxu1 %v29409_v54  ;;  %v29488_v30 = vld [vmem:[#allocation29 + $0x608] ss:$16 sps:$4 sm:$0xff]   ;;  %v29493_v54 = vld [vmem:[#allocation29 + $0x5ec] ss:$16 sps:$4 sm:$0xff]  }
0x1102   : > { %20199 = vmatprep.subr.bf16.mxu0 %v29412_v11  ;;  %v29496_v11 = vld [vmem:[#allocation29 + $0x7ec] ss:$16 sps:$4 sm:$0xff]  }
0x1104   : > { %20159 = vmatpush2.bf16.msra.mxu1 %v29407_v36  ;;  %v29491_v36 = vld [vmem:[#allocation29 + $0x5e8] ss:$16 sps:$4 sm:$0xff]  }
0x1105   : > { %20200 = vmatpush2.bf16.msra.mxu0 %v29410_v35  ;;  %20160 = vmatprep.subr.bf16.mxu1 %v29415_v57  ;;  %v29494_v35 = vld [vmem:[#allocation29 + $0x7e8] ss:$16 sps:$4 sm:$0xff]   ;;  %v29499_v57 = vld [vmem:[#allocation29 + $0x5cc] ss:$16 sps:$4 sm:$0xff]  }
0x1106   : > { %20201 = vmatprep.subr.bf16.mxu0 %v29418_v3  ;;  %v29502_v3 = vld [vmem:[#allocation29 + $0x7cc] ss:$16 sps:$4 sm:$0xff]  }
0x1108   : > { %20161 = vmatpush2.bf16.msra.mxu1 %v29413_v43  ;;  %v29497_v43 = vld [vmem:[#allocation29 + $0x5c8] ss:$16 sps:$4 sm:$0xff]  }
0x1109   : > { %20202 = vmatpush2.bf16.msra.mxu0 %v29416_v47  ;;  %20162 = vmatprep.subr.bf16.mxu1 %v29421_v8  ;;  %v29500_v47 = vld [vmem:[#allocation29 + $0x7c8] ss:$16 sps:$4 sm:$0xff]   ;;  %v29505_v8 = vld [vmem:[#allocation29 + $0x5ac] ss:$16 sps:$4 sm:$0xff]  }
0x110a   : > { %20203 = vmatprep.subr.bf16.mxu0 %v29424_v42  ;;  %v29508_v42 = vld [vmem:[#allocation29 + $0x7ac] ss:$16 sps:$4 sm:$0xff]  }
0x110c   : > { %20163 = vmatpush2.bf16.msra.mxu1 %v29419_v33  ;;  %v29503_v33 = vld [vmem:[#allocation29 + $0x5a8] ss:$16 sps:$4 sm:$0xff]  }
0x110d   : > { %20204 = vmatpush2.bf16.msra.mxu0 %v29422_v48  ;;  %20164 = vmatprep.subr.bf16.mxu1 %v29427_v27  ;;  %v29506_v48 = vld [vmem:[#allocation29 + $0x7a8] ss:$16 sps:$4 sm:$0xff]   ;;  %v29511_v27 = vld [vmem:[#allocation29 + $0x58c] ss:$16 sps:$4 sm:$0xff]  }
0x110e   : > { %20205 = vmatprep.subr.bf16.mxu0 %v29430_v41  ;;  %v29514_v41 = vld [vmem:[#allocation29 + $0x78c] ss:$16 sps:$4 sm:$0xff]  }
0x1110   : > { %20165 = vmatpush2.bf16.msra.mxu1 %v29425_v32  ;;  %v20311_v32 = vld [vmem:[%s34393_s18 + $0x28] sm:$0xff] }
0x1111   : > { %20206 = vmatpush2.bf16.msra.mxu0 %v29428_v50  ;;  %20166 = vmatprep.subr.bf16.mxu1 %v29433_v2  ;;  %v29509_v50 = vld [vmem:[#allocation29 + $0x588] ss:$16 sps:$4 sm:$0xff]  }
0x1112   : > { %20207 = vmatprep.subr.bf16.mxu0 %v29436_v23  ;;  %v29512_v2 = vld [vmem:[#allocation29 + $0x788] ss:$16 sps:$4 sm:$0xff]   ;;  %v29517_v23 = vld [vmem:[#allocation29 + $0x56c] ss:$16 sps:$4 sm:$0xff]  }
0x1114   : > { %20167 = vmatpush2.bf16.msra.mxu1 %v29431_v61  ;;  %v29520_v61 = vld [vmem:[#allocation29 + $0x76c] ss:$16 sps:$4 sm:$0xff]  }
0x1115   : > { %20208 = vmatpush2.bf16.msra.mxu0 %v29434_v26  ;;  %20168 = vmatprep.subr.bf16.mxu1 %v29439_v49  ;;  %v33295_v26 = vand.u32 4294901760, %v20311_v32  ;;  %v20310_v49 = vld [vmem:[%s34393_s18 + $0x20] sm:$0xff] }
0x1116   : > { %20209 = vmatprep.subr.bf16.mxu0 %v29442_v17  ;;  %v20307_v17 = vld [vmem:[%s34393_s18 + $0x8] sm:$0xff] }
0x1118   : > { %20169 = vmatpush2.bf16.msra.mxu1 %v29437_v52  ;;  %v29515_v52 = vld [vmem:[#allocation29 + $0x568] ss:$16 sps:$4 sm:$0xff]  }
0x1119   : > { %20210 = vmatpush2.bf16.msra.mxu0 %v29440_v13  ;;  %20220 = vmatprep.subr.bf16.mxu1 %v29445_v62  ;;  %v29518_v13 = vld [vmem:[#allocation29 + $0x768] ss:$16 sps:$4 sm:$0xff]   ;;  %v29523_v62 = vld [vmem:[#allocation29 + $0x54c] ss:$16 sps:$4 sm:$0xff]  }
0x111a   : > { %20261 = vmatprep.subr.bf16.mxu0 %v29448_v55  ;;  %v33299_v55 = vand.u32 4294901760, %v20310_v49 }
0x111b   : > { %20171 = vmatmul.mubr.bf16.vlgmr.msra.gmra.mxu1 %v33262_v4  ;;  %v29458_v4 = vld [vmem:[#allocation29 + $0x6a8] ss:$16 sps:$4 sm:$0xff]  }
0x111c   : > { %20212 = vmatmul.mubr.bf16.vlgmr.msra.gmra.mxu0 %v33264_v60  ;;  %20221 = vmatpush1.bf16.msra.mxu1 %v29443_v20  ;;  %v29466_v60 = vld [vmem:[#allocation29 + $0x68c] ss:$16 sps:$4 sm:$0xff]  }
0x111d   : > { %20252 = vmatprep.mubr.bf16.mxu1 %v33272_v51  ;;  %20262 = vmatpush1.bf16.msra.mxu0 %v29446_v6  ;;  %v29464_v51 = vld [vmem:[#allocation29 + $0x688] ss:$16 sps:$4 sm:$0xff]   ;;  %v29526_v20 = vld [vmem:[#allocation29 + $0x74c] ss:$16 sps:$4 sm:$0xff]   ;;  %v33302_v6 = vsub.f32 %v20311_v32, %v33295_v26 }
0x111e   : > { %20293 = vmatprep.mubr.bf16.mxu0 %v33274_v25  ;;  %20222 = vmatprep.subr.bf16.mxu1 %v29451_v16  ;;  %v29467_v25 = vld [vmem:[#allocation29 + $0x468] ss:$16 sps:$4 sm:$0xff]   ;;  %v33304_v16 = vand.u32 4294901760, %v20307_v17 }
0x111f   : > { %20263 = vmatprep.subr.bf16.mxu0 %v29454_v40  ;;  %v20306_v40 = vld [vmem:[%s34393_s18] sm:$0xff] }
0x1120   : > { %20223 = vmatpush1.bf16.msra.mxu1 %v29449_v28  ;;  %v29521_v28 = vld [vmem:[#allocation29 + $0x548] ss:$16 sps:$4 sm:$0xff]  }
0x1121   : > { %20264 = vmatpush1.bf16.msra.mxu0 %v29452_v31  ;;  %20224 = vmatprep.subr.bf16.mxu1 %v29457_v10  ;;  %v29524_v31 = vld [vmem:[#allocation29 + $0x748] ss:$16 sps:$4 sm:$0xff]   ;;  %v29529_v10 = vld [vmem:[#allocation29 + $0x52c] ss:$16 sps:$4 sm:$0xff]  }
0x1122   : > { %20265 = vmatprep.subr.bf16.mxu0 %v29460_v45  ;;  %v33308_v45 = vsub.f32 %v20310_v49, %v33299_v55 }
0x1124   : > { %20225 = vmatpush1.bf16.msra.mxu1 %v29455_v22  ;;  %v33310_v22 = vand.u32 4294901760, %v20306_v40 }
0x1125   : > { %20266 = vmatpush1.bf16.msra.mxu0 %v29458_v4  ;;  %20226 = vmatprep.subr.bf16.mxu1 %v29463_v19  ;;  %v29532_v4 = vld [vmem:[#allocation29 + $0x72c] ss:$16 sps:$4 sm:$0xff]   ;;  %v33313_v19 = vand.u32 4294901760, %v33302_v6 }
0x1126   : > { %20267 = vmatprep.subr.bf16.mxu0 %v29466_v60  ;;  %v33316_v60 = vsub.f32 %v20307_v17, %v33304_v16 }
0x1128   : > { %20227 = vmatpush1.bf16.msra.mxu1 %v29461_v24  ;;  %v29527_v24 = vld [vmem:[#allocation29 + $0x528] ss:$16 sps:$4 sm:$0xff]  }
0x1129   : > { %20268 = vmatpush1.bf16.msra.mxu0 %v29464_v51  ;;  %20228 = vmatprep.subr.bf16.mxu1 %v29469_v44  ;;  %v29530_v51 = vld [vmem:[#allocation29 + $0x728] ss:$16 sps:$4 sm:$0xff]   ;;  %v29535_v44 = vld [vmem:[#allocation29 + $0x50c] ss:$16 sps:$4 sm:$0xff]  }
0x112a   : > { %20269 = vmatprep.subr.bf16.mxu0 %v29472_v5  ;;  %v33319_v5 = vand.u32 4294901760, %v33308_v45 }
0x112c   : > { %20229 = vmatpush1.bf16.msra.mxu1 %v29467_v25  ;;  %v33322_v25 = vsub.f32 %v20306_v40, %v33310_v22 }
0x112d   : > { %20270 = vmatpush1.bf16.msra.mxu0 %v29470_v7  ;;  %20230 = vmatprep.subr.bf16.mxu1 %v29475_v63  ;;  %v29538_v7 = vld [vmem:[#allocation29 + $0x70c] ss:$16 sps:$4 sm:$0xff]   ;;  %v20437_v63 = vsub.f32 %v33302_v6, %v33313_v19 }
0x112e   : > { %20271 = vmatprep.subr.bf16.mxu0 %v29478_v34  ;;  %v33327_v34 = vand.u32 4294901760, %v33316_v60 }
0x1130   : > { %20231 = vmatpush1.bf16.msra.mxu1 %v29473_v14  ;;  %v29533_v14 = vld [vmem:[#allocation29 + $0x508] ss:$16 sps:$4 sm:$0xff]  }
0x1131   : > { %20272 = vmatpush1.bf16.msra.mxu0 %v29476_v37  ;;  %20232 = vmatprep.subr.bf16.mxu1 %v29481_v21  ;;  %v29536_v37 = vld [vmem:[#allocation29 + $0x708] ss:$16 sps:$4 sm:$0xff]   ;;  %v20443_v21 = vsub.f32 %v33308_v45, %v33319_v5 }
0x1132   : > { %20273 = vmatprep.subr.bf16.mxu0 %v29484_v39  ;;  %v33332_v39 = vand.u32 4294901760, %v33322_v25 }
0x1134   : > { %20233 = vmatpush1.bf16.msra.mxu1 %v29479_v59  ;;  %v33334_v59 = vand.u32 4294901760, %v20437_v63 }
0x1135   : > { %20274 = vmatpush1.bf16.msra.mxu0 %v29482_v15  ;;  %20234 = vmatprep.subr.bf16.mxu1 %v29487_v38  ;;  %v20449_v15 = vsub.f32 %v33316_v60, %v33327_v34  ;;  %v33338_v38 = vand.u32 4294901760, %v20443_v21 }
0x1136   : > { %20275 = vmatprep.subr.bf16.mxu0 %v29490_v9  ;;  %v20455_v9 = vsub.f32 %v33322_v25, %v33332_v39 }
0x1138   : > { %20235 = vmatpush1.bf16.msra.mxu1 %v29485_v56  ;;  %v33344_v56 = vand.u32 4294901760, %v20449_v15 }
0x1139   : > { %20276 = vmatpush1.bf16.msra.mxu0 %v29488_v30  ;;  %20236 = vmatprep.subr.bf16.mxu1 %v29493_v54 }
0x113a   : > { %20277 = vmatprep.subr.bf16.mxu0 %v29496_v11 }
0x113c   : > { %20237 = vmatpush2.bf16.msra.mxu1 %v29491_v36 }
0x113d   : > { %20278 = vmatpush2.bf16.msra.mxu0 %v29494_v35  ;;  %20238 = vmatprep.subr.bf16.mxu1 %v29499_v57  ;;  %v33350_v35 = vand.u32 4294901760, %v20455_v9 }
0x113e   : > { %20279 = vmatprep.subr.bf16.mxu0 %v29502_v3 }
0x1140   : > { %20239 = vmatpush2.bf16.msra.mxu1 %v29497_v43 }
0x1141   : > { %20280 = vmatpush2.bf16.msra.mxu0 %v29500_v47  ;;  %20240 = vmatprep.subr.bf16.mxu1 %v29505_v8 }
0x1142   : > { %20281 = vmatprep.subr.bf16.mxu0 %v29508_v42 }
0x1144   : > { %20241 = vmatpush2.bf16.msra.mxu1 %v29503_v33 }
0x1145   : > { %20282 = vmatpush2.bf16.msra.mxu0 %v29506_v48  ;;  %20242 = vmatprep.subr.bf16.mxu1 %v29511_v27 }
0x1146   : > { %20283 = vmatprep.subr.bf16.mxu0 %v29514_v41 }
0x1148   : > { %20243 = vmatpush2.bf16.msra.mxu1 %v29509_v50 }
0x1149   : > { %20284 = vmatpush2.bf16.msra.mxu0 %v29512_v2  ;;  %20244 = vmatprep.subr.bf16.mxu1 %v29517_v23 }
0x114a   : > { %20285 = vmatprep.subr.bf16.mxu0 %v29520_v61 }
0x114c   : > { %20245 = vmatpush2.bf16.msra.mxu1 %v29515_v52 }
0x114d   : > { %20286 = vmatpush2.bf16.msra.mxu0 %v29518_v13  ;;  %20246 = vmatprep.subr.bf16.mxu1 %v29523_v62 }
0x114e   : > { %20287 = vmatprep.subr.bf16.mxu0 %v29526_v20  ;;  %v20313_v20 = vld [vmem:[%s34393_s18 + $0x38] sm:$0xff] }
0x1150   : > { %20247 = vmatpush2.bf16.msra.mxu1 %v29521_v28 }
0x1151   : > { %20288 = vmatpush2.bf16.msra.mxu0 %v29524_v31  ;;  %20248 = vmatprep.subr.bf16.mxu1 %v29529_v10  ;;  %v33373_v31 = vand.u32 4294901760, %v20313_v20  ;;  %v20312_v10 = vld [vmem:[%s34393_s18 + $0x30] sm:$0xff] }
0x1152   : > { %20289 = vmatprep.subr.bf16.mxu0 %v29532_v4 }
0x1154   : > { %20249 = vmatpush2.bf16.msra.mxu1 %v29527_v24 }
0x1155   : > { %20290 = vmatpush2.bf16.msra.mxu0 %v29530_v51  ;;  %20250 = vmatprep.subr.bf16.mxu1 %v29535_v44  ;;  %v33380_v51 = vsub.f32 %v20313_v20, %v33373_v31  ;;  %v33382_v44 = vand.u32 4294901760, %v20312_v10 }
0x1156   : > { %20291 = vmatprep.subr.bf16.mxu0 %v29538_v7 }
0x1158   : > { %20251 = vmatpush2.bf16.msra.mxu1 %v29533_v14  ;;  %v20309_v14 = vld [vmem:[%s34393_s18 + $0x18] sm:$0xff] }
0x1159   : > { %20292 = vmatpush2.bf16.msra.mxu0 %v29536_v37  ;;  %20351 = vmatprep.subr.mxu1 %v33295_v26  ;;  %v20308_v37 = vld [vmem:[%s34393_s18 + $0x10] sm:$0xff]  ;;  %v33388_v21 = vand.u32 4294901760, %v20309_v14 }
0x115a   : > { %20439 = vmatprep.subr.mxu0 %v33334_v59 }
0x115b   : > { %20253 = vmatmul.mubr.bf16.vlgmr.msra.gmra.mxu1 %v33282_v1  ;;  %v20008_v30 = vpop.f32.mrf.mxu1  ;;  %v20049_v54 = vpop.f32.mrf.mxu0 }
0x115c   : > { %20294 = vmatmul.mubr.bf16.vlgmr.msra.gmra.mxu0 %v33284_v53  ;;  %20353 = vmatpush1.xpose.msra.mxu1 %v33299_v55  ;;  %v33359_v53 = vld [vmem:[%s34394_s6] sm:$0xf] }
0x115d   : > { %v20010_v11 = vpop.f32.mrf.mxu1  ;;  %v20051_v36 = vpop.f32.mrf.mxu0  ;;  %20445 = vmatpush1.xpose.msra.mxu0 %v33338_v38  ;;  %20355 = vmatprep.subr.mxu1 %v33304_v16  ;;  %v19957_v47 = vrot.slane %v33359_v53, %v34368_v18  ;;  %v19961_v8 = vrot.slane %v33359_v53, %v34369_v29 }
0x115e   : > { %20451 = vmatprep.subr.mxu0 %v33344_v56 }
0x115f   : > { %v20012_v57 = vpop.f32.mrf.mxu1  ;;  %v20053_v3 = vpop.f32.mrf.mxu0  ;;  %v20009_v42 = vadd.f32 %v20008_v30, %v19957_v47  ;;  %v20011_v33 = vadd.f32 %v20010_v11, %v19961_v8  ;;  %v33393_v30 = vand.u32 4294901760, %v33380_v51  ;;  %v33398_v11 = vand.u32 4294901760, %v20308_v37 }
0x1160   : > { %20357 = vmatpush1.xpose.msra.mxu1 %v33310_v22  ;;  %v33401_v57 = vsub.f32 %v20309_v14, %v33388_v21 }
0x1161   : > { %v20013_v1 = vpop.f32.mrf.mxu1  ;;  %v20054_v43 = vpop.f32.mrf.mxu0  ;;  %20457 = vmatpush1.xpose.msra.mxu0 %v33350_v35  ;;  %20528 = vmatprep.subr.mxu1 %v33302_v6  ;;  %v20050_v48 = vadd.f32 %v20049_v54, %v20009_v42  ;;  %v20052_v32 = vadd.f32 %v20051_v36, %v20011_v33  ;;  %v33396_v54 = vsub.f32 %v20312_v10, %v33382_v44 }
0x1162   : > { %20609 = vmatprep.subr.mxu0 %v33295_v26  ;;  %v20935_v43 = vsub.f32 %v33380_v51, %v33393_v30  ;;  %v33411_v8 = vsub.f32 %v20308_v37, %v33398_v11  ;;  %v33414_v42 = vand.u32 4294901760, %v33401_v57 }
0x1163   : > { %v33408_v47 = vand.u32 4294901760, %v33396_v54 }
0x1164   : > { %v33418_v33 = vand.u32 4294901760, %v20935_v43 }
0x119b   : > { %v20090_v27 = vpop.f32.mrf.mxu1  ;;  %v20131_v41 = vpop.f32.mrf.mxu0 }
0x119c   : > { %v20091_v50 = vadd.f32 %v20090_v27, %v20050_v48  ;;  %v20941_v48 = vsub.f32 %v33396_v54, %v33408_v47  ;;  %v33423_v27 = vand.u32 4294901760, %v33411_v8 }
0x119d   : > { %v20092_v2 = vpop.f32.mrf.mxu1  ;;  %v20133_v23 = vpop.f32.mrf.mxu0 }
0x119e   : > { %v33365_v61 = vadd.f32 %v20131_v41, %v20091_v50  ;;  %v20093_v49 = vadd.f32 %v20092_v2, %v20052_v32  ;;  %v20947_v41 = vsub.f32 %v33401_v57, %v33414_v42  ;;  %v33433_v32 = vand.u32 4294901760, %v20941_v48 }
0x119f   : > { %v20094_v17 = vpop.f32.mrf.mxu1  ;;  %v20135_v52 = vpop.f32.mrf.mxu0  ;;  %v20953_v50 = vsub.f32 %v33411_v8, %v33423_v27 }
0x11a0   : > { %v33368_v13 = vand.u32 4294901760, %v33365_v61  ;;  %v33370_v62 = vadd.f32 %v20133_v23, %v20093_v49  ;;  %v33437_v2 = vand.u32 4294901760, %v20947_v41 }
0x11a1   : > { %v20095_v40 = vpop.f32.mrf.mxu1  ;;  %v20136_v28 = vpop.f32.mrf.mxu0  ;;  %v33443_v23 = vand.u32 4294901760, %v20953_v50 }
0x11a2   : > { %v20397_v4 = vsub.f32 %v33365_v61, %v33368_v13  ;;  %v20390_v24 = vand.u32 4294901760, %v33370_v62 }
0x11a4   : > { %20491 = vmatprep.mubr.f32.mxu0 %v20390_v24  ;;  %v20391_v7 = vsub.f32 %v33370_v62, %v20390_v24  ;;  %v20398_v63 = vand.u32 4294901760, %v20397_v4 }
0x11a5   : > { %20493 = vmatmul.mubr.f32.vlgmr.msra.gmra.mxu0 %v33368_v13 }
0x11a6   : > { %20611 = vmatpush1.xpose.msra.mxu0 %v33299_v55  ;;  %v20392_v15 = vand.u32 4294901760, %v20391_v7  ;;  %v20399_v9 = vsub.f32 %v20397_v4, %v20398_v63 }
0x11a7   : > { %20613 = vmatprep.subr.mxu0 %v33304_v16 }
0x11a8   : > { %20651 = vmatprep.mubr.f32.mxu0 %v20392_v15  ;;  %v20393_v36 = vsub.f32 %v20391_v7, %v20392_v15  ;;  %v20400_v1 = vand.u32 4294901760, %v20399_v9 }
0x11aa   : > { %20615 = vmatpush1.xpose.msra.mxu0 %v33310_v22  ;;  %v20394_v3 = vand.u32 4294901760, %v20393_v36 }
0x11ab   : > { %20773 = vmatprep.subr.mxu0 %v33295_v26 }
0x11ac   : > { %20395 = vmatprep.mubr.f32.mxu1 %v20394_v3 }
0x11ad   : > { %20655 = vmatmul.mubr.f32.vlgmr.msra.gmra.mxu0 %v20398_v63  ;;  %20401 = vmatmul.mubr.f32.vlgmr.msra.gmra.mxu1 %v20400_v1 }
0x11ae   : > { %20531 = vmatpush1.xpose.msra.mxu1 %v33308_v45  ;;  %20775 = vmatpush1.xpose.msra.mxu0 %v33299_v55 }
0x11af   : > { %20813 = vmatprep.mubr.f32.mxu0 %v20390_v24  ;;  %20572 = vmatprep.mubr.f32.mxu1 %v20391_v7 }
0x11b0   : > { %20534 = vmatprep.subr.mxu1 %v33316_v60  ;;  %20777 = vmatprep.subr.mxu0 %v33304_v16 }
0x11b2   : > { %20537 = vmatpush1.xpose.msra.mxu1 %v33322_v25  ;;  %20779 = vmatpush1.xpose.msra.mxu0 %v33310_v22 }
0x11b3   : > { %20691 = vmatprep.subr.mxu1 %v33313_v19  ;;  %20937 = vmatprep.subr.mxu0 %v33418_v33 }
0x11b5   : > { %20575 = vmatmul.mubr.f32.vlgmr.msra.gmra.mxu1 %v20397_v4  ;;  %20815 = vmatmul.mubr.f32.vlgmr.msra.gmra.mxu0 %v33368_v13 }
0x11b6   : > { %20695 = vmatpush1.xpose.msra.mxu1 %v33319_v5  ;;  %20737 = vmatprep.mubr.f32.mxu1 %v20390_v24  ;;  %v19965_v24 = vrot.slane %v33359_v53, %v34370_v0 }
0x11b7   : > { %20699 = vmatprep.subr.mxu1 %v33327_v34  ;;  %20943 = vmatpush1.xpose.msra.mxu0 %v33433_v32 }
0x11b8   : > { %20949 = vmatprep.subr.mxu0 %v33437_v2 }
0x11ba   : > { %20703 = vmatpush1.xpose.msra.mxu1 %v33332_v39 }
0x11bb   : > { %20955 = vmatpush1.xpose.msra.mxu0 %v33443_v23  ;;  %20849 = vmatprep.subr.mxu1 %v33373_v31 }
0x11bc   : > { %21107 = vmatprep.subr.mxu0 %v33373_v31 }
0x11bd   : > { %20739 = vmatmul.mubr.f32.vlgmr.msra.gmra.mxu1 %v33368_v13  ;;  %v19969_v13 = vrot.slane %v33359_v53, %v34371_v46 }
0x11be   : > { %20851 = vmatpush1.xpose.msra.mxu1 %v33382_v44 }
0x11bf   : > { %20853 = vmatprep.subr.mxu1 %v33388_v21 }
0x11c2   : > { %20855 = vmatpush1.xpose.msra.mxu1 %v33398_v11 }
0x11c3   : > { %21026 = vmatprep.subr.mxu1 %v33380_v51 }
0x11db   : > { %v20172_v49 = vpop.f32.mrf.mxu1 }
0x11dc   : > { %v20213_v17 = vpop.f32.mrf.mxu0  ;;  %v20173_v7 = vadd.f32 %v20172_v49, %v19965_v24 }
0x11dd   : > { %v20174_v52 = vpop.f32.mrf.mxu1 }
0x11de   : > { %v20215_v20 = vpop.f32.mrf.mxu0  ;;  %v20175_v63 = vadd.f32 %v20174_v52, %v19969_v13  ;;  %v20214_v14 = vadd.f32 %v20213_v17, %v20173_v7  ;;  %v20303_v7 = vmul.f32 %v33370_v62, %v33370_v62 }
0x11df   : > { %v20176_v40 = vpop.f32.mrf.mxu1 }
0x11e0   : > { %v20217_v28 = vpop.f32.mrf.mxu0  ;;  %v20216_v15 = vadd.f32 %v20215_v20, %v20175_v63 }
0x11e1   : > { %v20177_v10 = vpop.f32.mrf.mxu1 }
0x11e2   : > { %v20218_v4 = vpop.f32.mrf.mxu0 }
0x121b   : > { %v20254_v37 = vpop.f32.mrf.mxu1 }
0x121c   : > { %v20255_v9 = vadd.f32 %v20254_v37, %v20214_v14  ;;  %v20295_v36 = vpop.f32.mrf.mxu0  ;;  %v33473_v37 = vand.u32 4294901760, %v20303_v7 }
0x121d   : > { %v20256_v3 = vpop.f32.mrf.mxu1 }
0x121e   : > { %v33459_v1 = vadd.f32 %v20295_v36, %v20255_v9  ;;  %v20257_v43 = vadd.f32 %v20256_v3, %v20216_v15  ;;  %v20297_v48 = vpop.f32.mrf.mxu0  ;;  %v20302_v15 = vmul.f32 %v33365_v61, %v33365_v61  ;;  %v21387_v9 = vsub.f32 %v20303_v7, %v33473_v37 }
0x121f   : > { %v20258_v41 = vpop.f32.mrf.mxu1 }
0x1220   : > { %v20894_v50 = vand.u32 4294901760, %v33459_v1  ;;  %v33462_v40 = vadd.f32 %v20297_v48, %v20257_v43  ;;  %v20299_v28 = vpop.f32.mrf.mxu0  ;;  %v33484_v36 = vand.u32 4294901760, %v20302_v15  ;;  %v21388_v3 = vand.u32 4294901760, %v21387_v9 }
0x1221   : > { %v20259_v10 = vpop.f32.mrf.mxu1  ;;  %v20304_v28 = vmul.f32 %v33459_v1, %v33459_v1 }
0x1222   : > { %v20895_v53 = vsub.f32 %v33459_v1, %v20894_v50  ;;  %v20300_v49 = vpop.f32.mrf.mxu0  ;;  %v20888_v17 = vand.u32 4294901760, %v33462_v40  ;;  %v21393_v43 = vsub.f32 %v20302_v15, %v33484_v36  ;;  %v21389_v48 = vsub.f32 %v21387_v9, %v21388_v3  ;;  %v20318_v10 = vld [vmem:[#allocation52 + $0x20] sm:$0xff] }
0x1223   : > { %v20314_v49 = vld [vmem:[#allocation52] sm:$0xff] }
0x1224   : > { %20989 = vmatprep.mubr.f32.mxu0 %v20888_v17  ;;  %v20889_v52 = vsub.f32 %v33462_v40, %v20888_v17  ;;  %v20896_v20 = vand.u32 4294901760, %v20895_v53  ;;  %v21390_v41 = vand.u32 4294901760, %v21389_v48 }
0x1225   : > { %20991 = vmatmul.mubr.f32.vlgmr.msra.gmra.mxu0 %v20894_v50 }
0x1226   : > { %21109 = vmatpush1.xpose.msra.mxu0 %v33382_v44  ;;  %v20890_v4 = vand.u32 4294901760, %v20889_v52  ;;  %v20897_v24 = vsub.f32 %v20895_v53, %v20896_v20 }
0x1227   : > { %21111 = vmatprep.subr.mxu0 %v33388_v21 }
0x1228   : > { %21149 = vmatprep.mubr.f32.mxu0 %v20890_v4  ;;  %v20891_v13 = vsub.f32 %v20889_v52, %v20890_v4  ;;  %v20898_v14 = vand.u32 4294901760, %v20897_v24 }
0x122a   : > { %21113 = vmatpush1.xpose.msra.mxu0 %v33398_v11  ;;  %v20892_v63 = vand.u32 4294901760, %v20891_v13 }
0x122b   : > { %21271 = vmatprep.subr.mxu0 %v33373_v31 }
0x122c   : > { %20893 = vmatprep.mubr.f32.mxu1 %v20892_v63 }
0x122d   : > { %21153 = vmatmul.mubr.f32.vlgmr.msra.gmra.mxu0 %v20896_v20  ;;  %20899 = vmatmul.mubr.f32.vlgmr.msra.gmra.mxu1 %v20898_v14  ;;  %v33557_v20 = vand.u32 4294901760, %v20314_v49 }
0x122e   : > { %21029 = vmatpush1.xpose.msra.mxu1 %v33396_v54  ;;  %21273 = vmatpush1.xpose.msra.mxu0 %v33382_v44 }
0x122f   : > { %21311 = vmatprep.mubr.f32.mxu0 %v20888_v17  ;;  %21070 = vmatprep.mubr.f32.mxu1 %v20889_v52  ;;  %v33570_v7 = vsub.f32 %v20314_v49, %v33557_v20 }
0x1230   : > { %21032 = vmatprep.subr.mxu1 %v33401_v57  ;;  %21275 = vmatprep.subr.mxu0 %v33388_v21 }
0x1231   : > { %v33584_v15 = vand.u32 4294901760, %v33570_v7 }
0x1232   : > { %21035 = vmatpush1.xpose.msra.mxu1 %v33411_v8  ;;  %21277 = vmatpush1.xpose.msra.mxu0 %v33398_v11 }
0x1233   : > { %21189 = vmatprep.subr.mxu1 %v33393_v30  ;;  %21435 = vmatprep.subr.mxu0 %v33334_v59  ;;  %v21394_v59 = vand.u32 4294901760, %v21393_v43 }
0x1235   : > { %21073 = vmatmul.mubr.f32.vlgmr.msra.gmra.mxu1 %v20895_v53  ;;  %21313 = vmatmul.mubr.f32.vlgmr.msra.gmra.mxu0 %v20894_v50  ;;  %v20315_v53 = vld [vmem:[#allocation52 + $0x8] sm:$0xff] }
0x1236   : > { %21193 = vmatpush1.xpose.msra.mxu1 %v33408_v47  ;;  %21235 = vmatprep.mubr.f32.mxu1 %v20888_v17  ;;  %v33553_v17 = vand.u32 4294901760, %v20318_v10  ;;  %v33555_v52 = vand.u32 4294901760, %v20315_v53 }
0x1237   : > { %21441 = vmatpush1.xpose.msra.mxu0 %v33338_v38  ;;  %21487 = vmatprep.mubr.f32.mxu0 %v33473_v37  ;;  %v21395_v38 = vsub.f32 %v21393_v43, %v21394_v59 }
0x1238   : > { %21197 = vmatprep.subr.mxu1 %v33414_v42  ;;  %21447 = vmatprep.subr.mxu0 %v33344_v56  ;;  %v20305_v56 = vmul.f32 %v33462_v40, %v33462_v40  ;;  %v33564_v24 = vsub.f32 %v20318_v10, %v33553_v17  ;;  %v33567_v13 = vsub.f32 %v20315_v53, %v33555_v52 }
0x123a   : > { %21201 = vmatpush1.xpose.msra.mxu1 %v33423_v27  ;;  %v33578_v14 = vand.u32 4294901760, %v33564_v24 }
0x123b   : > { %21453 = vmatpush1.xpose.msra.mxu0 %v33350_v35  ;;  %21347 = vmatprep.subr.mxu1 %v33295_v26  ;;  %v21396_v35 = vand.u32 4294901760, %v21395_v38 }
0x123c   : > { %21605 = vmatprep.subr.mxu0 %v33295_v26 }
0x123d   : > { %21237 = vmatmul.mubr.f32.vlgmr.msra.gmra.mxu1 %v20894_v50  ;;  %v21884_v50 = vand.u32 4294901760, %v20305_v56 }
0x123e   : > { %21489 = vmatmul.mubr.f32.vlgmr.msra.gmra.mxu0 %v33484_v36  ;;  %21349 = vmatpush1.xpose.msra.mxu1 %v33299_v55 }
0x123f   : > { %21391 = vmatprep.mubr.f32.mxu1 %v21390_v41  ;;  %21607 = vmatpush1.xpose.msra.mxu0 %v33299_v55 }
0x1240   : > { %21647 = vmatprep.mubr.f32.mxu0 %v21388_v3  ;;  %21351 = vmatprep.subr.mxu1 %v33304_v16 }
0x1241   : > { %21609 = vmatprep.subr.mxu0 %v33304_v16 }
0x1242   : > { %21353 = vmatpush1.xpose.msra.mxu1 %v33310_v22 }
0x1243   : > { %21611 = vmatpush1.xpose.msra.mxu0 %v33310_v22  ;;  %21524 = vmatprep.subr.mxu1 %v33302_v6  ;;  %v21885_v6 = vsub.f32 %v20305_v56, %v21884_v50 }
0x1244   : > { %21769 = vmatprep.subr.mxu0 %v33295_v26  ;;  %v21890_v26 = vand.u32 4294901760, %v20304_v28 }
0x1245   : > { %21397 = vmatmul.mubr.f32.vlgmr.msra.gmra.mxu1 %v21396_v35 }
0x1246   : > { %21651 = vmatmul.mubr.f32.vlgmr.msra.gmra.mxu0 %v21394_v59  ;;  %21527 = vmatpush1.xpose.msra.mxu1 %v33308_v45  ;;  %v21886_v45 = vand.u32 4294901760, %v21885_v6 }
0x1247   : > { %21568 = vmatprep.mubr.f32.mxu1 %v21387_v9  ;;  %21771 = vmatpush1.xpose.msra.mxu0 %v33299_v55  ;;  %v21891_v55 = vsub.f32 %v20304_v28, %v21890_v26 }
0x1248   : > { %21809 = vmatprep.mubr.f32.mxu0 %v33473_v37  ;;  %21530 = vmatprep.subr.mxu1 %v33316_v60 }
0x1249   : > { %21773 = vmatprep.subr.mxu0 %v33304_v16  ;;  %v21887_v16 = vsub.f32 %v21885_v6, %v21886_v45 }
0x124a   : > { %21533 = vmatpush1.xpose.msra.mxu1 %v33322_v25 }
0x124b   : > { %21775 = vmatpush1.xpose.msra.mxu0 %v33310_v22  ;;  %21687 = vmatprep.subr.mxu1 %v33313_v19  ;;  %v21892_v22 = vand.u32 4294901760, %v21891_v55  ;;  %v21888_v19 = vand.u32 4294901760, %v21887_v16 }
0x124c   : > { %21933 = vmatprep.subr.mxu0 %v33418_v33 }
0x124d   : > { %21571 = vmatmul.mubr.f32.vlgmr.msra.gmra.mxu1 %v21393_v43  ;;  %v21893_v60 = vsub.f32 %v21891_v55, %v21892_v22  ;;  %v22446_v43 = vsub.f32 %v33570_v7, %v33584_v15 }
0x124e   : > { %21811 = vmatmul.mubr.f32.vlgmr.msra.gmra.mxu0 %v33484_v36  ;;  %21691 = vmatpush1.xpose.msra.mxu1 %v33319_v5 }
0x124f   : > { %21733 = vmatprep.mubr.f32.mxu1 %v33473_v37  ;;  %21939 = vmatpush1.xpose.msra.mxu0 %v33433_v32  ;;  %v21894_v5 = vand.u32 4294901760, %v21893_v60  ;;  %v33581_v37 = vand.u32 4294901760, %v33567_v13  ;;  %v33602_v38 = vand.u32 4294901760, %v22446_v43 }
0x1250   : > { %21985 = vmatprep.mubr.f32.mxu0 %v21884_v50  ;;  %21695 = vmatprep.subr.mxu1 %v33327_v34 }
0x1251   : > { %21945 = vmatprep.subr.mxu0 %v33437_v2  ;;  %v22440_v3 = vsub.f32 %v33567_v13, %v33581_v37 }
0x1252   : > { %21699 = vmatpush1.xpose.msra.mxu1 %v33332_v39 }
0x1253   : > { %21951 = vmatpush1.xpose.msra.mxu0 %v33443_v23  ;;  %21845 = vmatprep.subr.mxu1 %v33373_v31  ;;  %v20319_v23 = vld [vmem:[#allocation52 + $0x28] sm:$0xff]  ;;  %v33600_v41 = vand.u32 4294901760, %v22440_v3 }
0x1254   : > { %22103 = vmatprep.subr.mxu0 %v33373_v31 }
0x1255   : > { %21735 = vmatmul.mubr.f32.vlgmr.msra.gmra.mxu1 %v33484_v36  ;;  %v22434_v36 = vsub.f32 %v33564_v24, %v33578_v14 }
0x1256   : > { %21987 = vmatmul.mubr.f32.vlgmr.msra.gmra.mxu0 %v21890_v26  ;;  %21847 = vmatpush1.xpose.msra.mxu1 %v33382_v44 }
0x1257   : > { %21889 = vmatprep.mubr.f32.mxu1 %v21888_v19  ;;  %22105 = vmatpush1.xpose.msra.mxu0 %v33382_v44  ;;  %v33598_v59 = vand.u32 4294901760, %v22434_v36 }
0x1258   : > { %22145 = vmatprep.mubr.f32.mxu0 %v21886_v45  ;;  %21849 = vmatprep.subr.mxu1 %v33388_v21 }
0x1259   : > { %22107 = vmatprep.subr.mxu0 %v33388_v21 }
0x125a   : > { %21851 = vmatpush1.xpose.msra.mxu1 %v33398_v11 }
0x125b   : > { %22109 = vmatpush1.xpose.msra.mxu0 %v33398_v11  ;;  %22022 = vmatprep.subr.mxu1 %v33380_v51 }
0x125c   : > { %22267 = vmatprep.subr.mxu0 %v33373_v31 }
0x125d   : > { %21895 = vmatmul.mubr.f32.vlgmr.msra.gmra.mxu1 %v21894_v5  ;;  %v20321_v5 = vld [vmem:[#allocation52 + $0x38] sm:$0xff] }
0x125e   : > { %22149 = vmatmul.mubr.f32.vlgmr.msra.gmra.mxu0 %v21892_v22  ;;  %22025 = vmatpush1.xpose.msra.mxu1 %v33396_v54 }
0x125f   : > { %22066 = vmatprep.mubr.f32.mxu1 %v21885_v6  ;;  %22269 = vmatpush1.xpose.msra.mxu0 %v33382_v44 }
0x1260   : > { %22307 = vmatprep.mubr.f32.mxu0 %v21884_v50  ;;  %22028 = vmatprep.subr.mxu1 %v33401_v57 }
0x1261   : > { %22271 = vmatprep.subr.mxu0 %v33388_v21 }
0x1262   : > { %22031 = vmatpush1.xpose.msra.mxu1 %v33411_v8 }
0x1263   : > { %22273 = vmatpush1.xpose.msra.mxu0 %v33398_v11  ;;  %22185 = vmatprep.subr.mxu1 %v33393_v30 }
0x1265   : > { %22069 = vmatmul.mubr.f32.vlgmr.msra.gmra.mxu1 %v21891_v55  ;;  %v20494_v25 = vpop.f32.mrf.mxu0 }
0x1266   : > { %22309 = vmatmul.mubr.f32.vlgmr.msra.gmra.mxu0 %v21890_v26  ;;  %22189 = vmatpush1.xpose.msra.mxu1 %v33408_v47 }
0x1267   : > { %22231 = vmatprep.mubr.f32.mxu1 %v21884_v50  ;;  %v20496_v34 = vpop.f32.mrf.mxu0  ;;  %22193 = vmatprep.subr.mxu1 %v33414_v42 }
0x1268   : > { %22481 = vmatprep.mubr.f32.mxu0 %v34333_v58  ;;  %v20320_v34 = vld [vmem:[#allocation52 + $0x30] sm:$0xff] }
0x126a   : > { %22197 = vmatpush1.xpose.msra.mxu1 %v33423_v27  ;;  %v33551_v27 = vand.u32 4294901760, %v20319_v23 }
0x126c   : > { %v33560_v4 = vsub.f32 %v20319_v23, %v33551_v27  ;;  %22346 = vmatprep.subr.mxu1 %v33551_v27 }
0x126d   : > { %v20656_v39 = vpop.f32.mrf.mxu0  ;;  %22233 = vmatmul.mubr.f32.vlgmr.msra.gmra.mxu1 %v21890_v26  ;;  %v20402_v31 = vpop.f32.mrf.mxu1 }
0x126e   : > { %v20495_v51 = vadd.f32 %v20494_v25, %v20402_v31  ;;  %22385 = vmatprep.mubr.f32.mxu1 %v34333_v58  ;;  %22348 = vmatpush1.msra.mxu1 %v33553_v17  ;;  %v33574_v63 = vand.u32 4294901760, %v33560_v4  ;;  %v33609_v31 = vand.u32 4294901760, %v20321_v5 }
0x126f   : > { %v20658_v44 = vpop.f32.mrf.mxu0  ;;  %v20404_v21 = vpop.f32.mrf.mxu1  ;;  %22350 = vmatprep.subr.mxu1 %v33555_v52 }
0x1270   : > { %22352 = vmatpush1.msra.mxu1 %v33557_v20  ;;  %v22428_v9 = vsub.f32 %v33560_v4, %v33574_v63  ;;  %v33611_v44 = vand.u32 4294901760, %v20320_v34 }
0x1271   : > { %22519 = vmatprep.subr.mxu1 %v33560_v4 }
0x1272   : > { %v33596_v48 = vand.u32 4294901760, %v22428_v9 }
0x1274   : > { %22430 = vmatprep.subr.mxu0 %v33596_v48 }
0x1275   : > { %v20576_v30 = vpop.f32.mrf.mxu1  ;;  %v20816_v54 = vpop.f32.mrf.mxu0  ;;  %22436 = vmatpush1.msra.mxu0 %v33598_v59 }
0x1276   : > { %v20577_v11 = vadd.f32 %v20576_v30, %v20495_v51  ;;  %22442 = vmatprep.subr.mxu0 %v33600_v41  ;;  %v20316_v51 = vld [vmem:[#allocation52 + $0x10] sm:$0xff] }
0x1277   : > { %v20578_v57 = vpop.f32.mrf.mxu1  ;;  %v20818_v47 = vpop.f32.mrf.mxu0  ;;  %22448 = vmatpush1.msra.mxu0 %v33602_v38 }
0x1278   : > { %v20657_v8 = vadd.f32 %v20656_v39, %v20577_v11  ;;  %22599 = vmatprep.subr.mxu0 %v33551_v27  ;;  %v20317_v39 = vld [vmem:[#allocation52 + $0x18] sm:$0xff]  ;;  %v33615_v11 = vand.u32 4294901760, %v20316_v51 }
0x1279   : > { %v33613_v30 = vand.u32 4294901760, %v20317_v39 }
0x127a   : > { %v33627_v10 = vsub.f32 %v20316_v51, %v33615_v11 }
0x127b   : > { %v33624_v23 = vsub.f32 %v20317_v39, %v33613_v30 }
0x127d   : > { %v20740_v33 = vpop.f32.mrf.mxu1  ;;  %v33639_v3 = vand.u32 4294901760, %v33624_v23 }
0x127e   : > { %v20741_v42 = vadd.f32 %v20740_v33, %v20657_v8  ;;  %v33618_v8 = vsub.f32 %v20321_v5, %v33609_v31 }
0x127f   : > { %v20742_v32 = vpop.f32.mrf.mxu1 }
0x1280   : > { %v20817_v2 = vadd.f32 %v20816_v54, %v20741_v42  ;;  %v33621_v42 = vsub.f32 %v20320_v34, %v33611_v44  ;;  %v33631_v49 = vand.u32 4294901760, %v33618_v8 }
0x1282   : > { %v33636_v36 = vand.u32 4294901760, %v33621_v42 }
0x12e5   : > { %v20992_v56 = vpop.f32.mrf.mxu0 }
0x12e7   : > { %v20994_v35 = vpop.f32.mrf.mxu0 }
0x12e8   : > { %v33646_v35 = vand.u32 4294901760, %v33627_v10 }
0x12ed   : > { %v21154_v50 = vpop.f32.mrf.mxu0  ;;  %v20900_v28 = vpop.f32.mrf.mxu1 }
0x12ee   : > { %v20901_v45 = vadd.f32 %v20900_v28, %v20817_v2  ;;  %v22919_v28 = vsub.f32 %v33618_v8, %v33631_v49 }
0x12ef   : > { %v21156_v6 = vpop.f32.mrf.mxu0  ;;  %v20902_v26 = vpop.f32.mrf.mxu1 }
0x12f0   : > { %v20993_v22 = vadd.f32 %v20992_v56, %v20901_v45  ;;  %v22925_v45 = vsub.f32 %v33621_v42, %v33636_v36 }
0x12f5   : > { %v21074_v55 = vpop.f32.mrf.mxu1  ;;  %v21314_v16 = vpop.f32.mrf.mxu0 }
0x12f6   : > { %v21075_v25 = vadd.f32 %v21074_v55, %v20993_v22 }
0x12f7   : > { %v21076_v19 = vpop.f32.mrf.mxu1  ;;  %v21316_v60 = vpop.f32.mrf.mxu0 }
0x12f8   : > { %v21155_v21 = vadd.f32 %v21154_v50, %v21075_v25  ;;  %v22937_v19 = vsub.f32 %v33627_v10, %v33646_v35  ;;  %v33665_v60 = vand.u32 4294901760, %v22919_v28  ;;  %v33668_v25 = vand.u32 4294901760, %v22925_v45 }
0x12fa   : > { %v33674_v51 = vand.u32 4294901760, %v22937_v19 }
0x12fd   : > { %v21238_v54 = vpop.f32.mrf.mxu1 }
0x12fe   : > { %v21239_v57 = vadd.f32 %v21238_v54, %v21155_v21  ;;  %v21490_v47 = vpop.f32.mrf.mxu0 }
0x12ff   : > { %v21240_v33 = vpop.f32.mrf.mxu1 }
0x1300   : > { %v21315_v32 = vadd.f32 %v21314_v16, %v21239_v57  ;;  %v21492_v2 = vpop.f32.mrf.mxu0  ;;  %v22931_v16 = vsub.f32 %v33624_v23, %v33639_v3 }
0x1302   : > { %v22315_v53 = vsel %vm14138_vm3, %v21315_v32, 0  ;;  %v33671_v34 = vand.u32 4294901760, %v22931_v16 }
0x1303   : > { %v33633_v9 = vand.u32 4294901760, %v22315_v53 }
0x1305   : > { %v33642_v43 = vsub.f32 %v22315_v53, %v33633_v9  ;;  %v21398_v56 = vpop.f32.mrf.mxu1  ;;  %22483 = vmatmul.mubr.f32.vlgmr.msra.gmra.mxu0 %v33633_v9 }
0x1306   : > { %v21652_v50 = vpop.f32.mrf.mxu0  ;;  %22601 = vmatpush1.msra.mxu0 %v33553_v17  ;;  %22638 = vmatprep.mubr.f32.mxu0 %v34333_v58  ;;  %v21491_v33 = vadd.f32 %v21490_v47, %v21398_v56 }
0x1307   : > { %v21400_v6 = vpop.f32.mrf.mxu1  ;;  %22603 = vmatprep.subr.mxu0 %v33555_v52  ;;  %v22388_v26 = vand.u32 4294901760, %v33642_v43 }
0x1308   : > { %v21654_v55 = vpop.f32.mrf.mxu0  ;;  %22605 = vmatpush1.msra.mxu0 %v33557_v20 }
0x1309   : > { %22642 = vmatmul.mubr.f32.vlgmr.msra.gmra.mxu0 %v22388_v26  ;;  %22761 = vmatprep.subr.mxu0 %v33551_v27  ;;  %v22389_v22 = vsub.f32 %v33642_v43, %v22388_v26 }
0x130a   : > { %22763 = vmatpush1.msra.mxu0 %v33553_v17  ;;  %22800 = vmatprep.mubr.f32.mxu0 %v34333_v58 }
0x130b   : > { %22765 = vmatprep.subr.mxu0 %v33555_v52  ;;  %v22390_v5 = vand.u32 4294901760, %v22389_v22 }
0x130c   : > { %22767 = vmatpush1.msra.mxu0 %v33557_v20 }
0x130d   : > { %v21572_v39 = vpop.f32.mrf.mxu1  ;;  %22391 = vmatmul.mubr.f32.vlgmr.msra.gmra.mxu1 %v22390_v5  ;;  %22802 = vmatmul.mubr.f32.vlgmr.msra.gmra.mxu0 %v33633_v9 }
0x130e   : > { %v21812_v21 = vpop.f32.mrf.mxu0  ;;  %22921 = vmatprep.subr.mxu0 %v33665_v60  ;;  %22522 = vmatpush1.msra.mxu1 %v33564_v24  ;;  %v21573_v2 = vadd.f32 %v21572_v39, %v21491_v33 }
0x130f   : > { %22927 = vmatpush1.msra.mxu0 %v33668_v25  ;;  %v21574_v54 = vpop.f32.mrf.mxu1  ;;  %22525 = vmatprep.subr.mxu1 %v33567_v13 }
0x1310   : > { %v21814_v57 = vpop.f32.mrf.mxu0  ;;  %22933 = vmatprep.subr.mxu0 %v33671_v34  ;;  %22528 = vmatpush1.msra.mxu1 %v33570_v7  ;;  %v21653_v28 = vadd.f32 %v21652_v50, %v21573_v2 }
0x1311   : > { %22561 = vmatprep.mubr.f32.mxu1 %v34333_v58  ;;  %22939 = vmatpush1.msra.mxu0 %v33674_v51 }
0x1312   : > { %22972 = vmatprep.mubr.f32.mxu0 %v34333_v58  ;;  %22564 = vmatmul.mubr.f32.vlgmr.msra.gmra.mxu1 %v33642_v43 }
0x1313   : > { %22679 = vmatprep.subr.mxu1 %v33574_v63  ;;  %22974 = vmatmul.mubr.f32.vlgmr.msra.gmra.mxu0 %v33633_v9 }
0x1314   : > { %23090 = vmatprep.subr.mxu0 %v33609_v31  ;;  %22683 = vmatpush1.msra.mxu1 %v33578_v14 }
0x1315   : > { %23092 = vmatpush1.msra.mxu0 %v33611_v44  ;;  %22687 = vmatprep.subr.mxu1 %v33581_v37  ;;  %v21736_v32 = vpop.f32.mrf.mxu1 }
0x1316   : > { %23094 = vmatprep.subr.mxu0 %v33613_v30  ;;  %22691 = vmatpush1.msra.mxu1 %v33584_v15  ;;  %v21988_v53 = vpop.f32.mrf.mxu0  ;;  %v21737_v6 = vadd.f32 %v21736_v32, %v21653_v28  ;;  %v29586_v28 = vld [vmem:[#allocation34 + $0x104] ss:$8 sps:$4 sm:$0xff]  }
0x1317   : > { %22724 = vmatprep.mubr.f32.mxu1 %v34333_v58  ;;  %23096 = vmatpush1.msra.mxu0 %v33615_v11  ;;  %v21738_v47 = vpop.f32.mrf.mxu1 }
0x1318   : > { %23129 = vmatprep.mubr.f32.mxu0 %v34333_v58  ;;  %22726 = vmatmul.mubr.f32.vlgmr.msra.gmra.mxu1 %v33633_v9  ;;  %v21990_v56 = vpop.f32.mrf.mxu0  ;;  %v21813_v55 = vadd.f32 %v21812_v21, %v21737_v6  ;;  %v29578_v47 = vld [vmem:[#allocation34 + $0x110] ss:$8 sps:$4 sm:$0xff]   ;;  %v29581_v6 = vld [vmem:[#allocation34] ss:$8 sps:$4 sm:$0xff]  }
0x1319   : > { %22837 = vmatprep.subr.mxu1 %v33609_v31  ;;  %23133 = vmatmul.mubr.f32.vlgmr.msra.gmra.mxu0 %v22388_v26  ;;  %v29583_v56 = vld [vmem:[#allocation34 + $0x4] ss:$8 sps:$4 sm:$0xff]  }
0x131a   : > { %23252 = vmatprep.subr.mxu0 %v33609_v31  ;;  %22839 = vmatpush1.msra.mxu1 %v33611_v44 }
0x131b   : > { %23254 = vmatpush1.msra.mxu0 %v33611_v44  ;;  %22841 = vmatprep.subr.mxu1 %v33613_v30 }
0x131c   : > { %23256 = vmatprep.subr.mxu0 %v33613_v30  ;;  %22843 = vmatpush1.msra.mxu1 %v33615_v11 }
0x131d   : > { %22876 = vmatprep.mubr.f32.mxu1 %v34333_v58  ;;  %23258 = vmatpush1.msra.mxu0 %v33615_v11  ;;  %v21896_v45 = vpop.f32.mrf.mxu1 }
0x131e   : > { %23291 = vmatprep.mubr.f32.mxu0 %v34333_v58  ;;  %22882 = vmatmul.mubr.f32.vlgmr.msra.gmra.mxu1 %v22390_v5  ;;  %v22150_v50 = vpop.f32.mrf.mxu0  ;;  %v21897_v22 = vadd.f32 %v21896_v45, %v21813_v55  ;;  %v29584_v45 = vld [vmem:[#allocation34 + $0x100] ss:$8 sps:$4 sm:$0xff]   ;;  %v29587_v55 = vld [vmem:[#allocation34 + $0xf0] ss:$8 sps:$4 sm:$0xff]  }
0x131f   : > { %23010 = vmatprep.subr.mxu1 %v33618_v8  ;;  %23293 = vmatmul.mubr.f32.vlgmr.msra.gmra.mxu0 %v33633_v9  ;;  %v21898_v26 = vpop.f32.mrf.mxu1 }
0x1320   : > { %23013 = vmatpush1.msra.mxu1 %v33621_v42  ;;  %23052 = vmatprep.mubr.f32.mxu1 %v34333_v58  ;;  %v22152_v16 = vpop.f32.mrf.mxu0  ;;  %v29592_v26 = vld [vmem:[#allocation34 + $0x1f4] ss:$8 sps:$4 sm:$0xff]  }
0x1321   : > { %23016 = vmatprep.subr.mxu1 %v33624_v23  ;;  %23415 = vmatprep.subr.mxu0 %v33596_v48  ;;  %v21989_v48 = vadd.f32 %v21988_v53, %v21897_v22  ;;  %v29590_v16 = vld [vmem:[#allocation34 + $0x1f0] ss:$8 sps:$4 sm:$0xff]   ;;  %v29595_v22 = vld [vmem:[#allocation34 + $0xe4] ss:$8 sps:$4 sm:$0xff]  }
0x1322   : > { %23019 = vmatpush1.msra.mxu1 %v33627_v10  ;;  %23421 = vmatpush1.msra.mxu0 %v33598_v59 }
0x1323   : > { %23055 = vmatmul.mubr.f32.vlgmr.msra.gmra.mxu1 %v33642_v43  ;;  %23170 = vmatprep.subr.mxu1 %v33631_v49 }
0x1324   : > { %23174 = vmatpush1.msra.mxu1 %v33636_v36  ;;  %23215 = vmatprep.mubr.f32.mxu1 %v34333_v58 }
0x1325   : > { %23178 = vmatprep.subr.mxu1 %v33639_v3  ;;  %v22070_v19 = vpop.f32.mrf.mxu1  ;;  %23427 = vmatprep.subr.mxu0 %v33600_v41 }
0x1326   : > { %23182 = vmatpush1.msra.mxu1 %v33646_v35  ;;  %v22310_v5 = vpop.f32.mrf.mxu0  ;;  %23433 = vmatpush1.msra.mxu0 %v33602_v38  ;;  %v22071_v43 = vadd.f32 %v22070_v19, %v21989_v48  ;;  %v29598_v19 = vld [vmem:[#allocation34 + $0x1e4] ss:$8 sps:$4 sm:$0xff]   ;;  %v29593_v48 = vld [vmem:[#allocation34 + $0xe0] ss:$8 sps:$4 sm:$0xff]  }
0x1327   : > { %23217 = vmatmul.mubr.f32.vlgmr.msra.gmra.mxu1 %v33633_v9  ;;  %v22072_v59 = vpop.f32.mrf.mxu1  ;;  %23466 = vmatprep.mubr.f32.mxu0 %v34333_v58 }
0x1328   : > { %v22312_v39 = vpop.f32.mrf.mxu0  ;;  %23584 = vmatprep.subr.mxu0 %v33551_v27  ;;  %23331 = vmatprep.subr.mxu1 %v33551_v27  ;;  %v22151_v41 = vadd.f32 %v22150_v50, %v22071_v43  ;;  %v29589_v50 = vld [vmem:[#allocation34 + $0xf4] ss:$8 sps:$4 sm:$0xff]  }
0x1329   : > { %23333 = vmatpush1.msra.mxu1 %v33553_v17  ;;  %23370 = vmatprep.mubr.f32.mxu1 %v34333_v58  ;;  %v29601_v59 = vld [vmem:[#allocation34 + $0xd4] ss:$8 sps:$4 sm:$0xff]   ;;  %v29599_v39 = vld [vmem:[#allocation34 + $0xd0] ss:$8 sps:$4 sm:$0xff]  }
0x132a   : > { %23335 = vmatprep.subr.mxu1 %v33555_v52  ;;  %v29604_v43 = vld [vmem:[#allocation34 + $0x1d4] ss:$8 sps:$4 sm:$0xff]  }
0x132b   : > { %23337 = vmatpush1.msra.mxu1 %v33557_v20 }
0x132c   : > { %23504 = vmatprep.subr.mxu1 %v33560_v4 }
0x132d   : > { %v22234_v38 = vpop.f32.mrf.mxu1 }
0x132e   : > { %v22235_v9 = vadd.f32 %v22234_v38, %v22151_v41  ;;  %v29602_v41 = vld [vmem:[#allocation34 + $0x1d0] ss:$8 sps:$4 sm:$0xff]   ;;  %v29607_v38 = vld [vmem:[#allocation34 + $0xc4] ss:$8 sps:$4 sm:$0xff]  }
0x132f   : > { %v22236_v21 = vpop.f32.mrf.mxu1 }
0x1330   : > { %v22311_v54 = vadd.f32 %v22310_v5, %v22235_v9  ;;  %v29596_v5 = vld [vmem:[#allocation34 + $0x1e0] ss:$8 sps:$4 sm:$0xff]   ;;  %v29610_v9 = vld [vmem:[#allocation34 + $0x1c4] ss:$8 sps:$4 sm:$0xff]  }
0x1331   : > { %v29605_v21 = vld [vmem:[#allocation34 + $0xc0] ss:$8 sps:$4 sm:$0xff]  }
0x1332   : > { %v23300_v57 = vsel %vm14138_vm3, %v22311_v54, 0  ;;  %v29608_v54 = vld [vmem:[#allocation34 + $0x1c0] ss:$8 sps:$4 sm:$0xff]  }
0x1333   : > { %v33734_v33 = vand.u32 4294901760, %v23300_v57 }
0x1335   : > { %v23372_v32 = vsub.f32 %v23300_v57, %v33734_v33  ;;  %23468 = vmatmul.mubr.f32.vlgmr.msra.gmra.mxu0 %v33734_v33  ;;  %v29613_v57 = vld [vmem:[#allocation34 + $0xb4] ss:$8 sps:$4 sm:$0xff]  }
0x1336   : > { %23586 = vmatpush1.msra.mxu0 %v33553_v17  ;;  %23623 = vmatprep.mubr.f32.mxu0 %v34333_v58 }
0x1337   : > { %23588 = vmatprep.subr.mxu0 %v33555_v52  ;;  %v23373_v2 = vand.u32 4294901760, %v23372_v32 }
0x1338   : > { %23590 = vmatpush1.msra.mxu0 %v33557_v20 }
0x1339   : > { %23627 = vmatmul.mubr.f32.vlgmr.msra.gmra.mxu0 %v23373_v2  ;;  %23746 = vmatprep.subr.mxu0 %v33551_v27  ;;  %v23374_v4 = vsub.f32 %v23372_v32, %v23373_v2  ;;  %v29539_v27 = vld [vmem:[#allocation34 + $0x70] ss:$8 sps:$4 sm:$0xff]  }
0x133a   : > { %23748 = vmatpush1.msra.mxu0 %v33553_v17  ;;  %23785 = vmatprep.mubr.f32.mxu0 %v34333_v58  ;;  %v29541_v17 = vld [vmem:[#allocation34 + $0x74] ss:$8 sps:$4 sm:$0xff]  }
0x133b   : > { %23750 = vmatprep.subr.mxu0 %v33555_v52  ;;  %v23375_v53 = vand.u32 4294901760, %v23374_v4  ;;  %v29542_v52 = vld [vmem:[#allocation34 + $0x170] ss:$8 sps:$4 sm:$0xff]   ;;  %v29619_v4 = vld [vmem:[#allocation34 + $0xa4] ss:$8 sps:$4 sm:$0xff]  }
0x133c   : > { %23752 = vmatpush1.msra.mxu0 %v33557_v20  ;;  %v29544_v20 = vld [vmem:[#allocation34 + $0x174] ss:$8 sps:$4 sm:$0xff]  }
0x133d   : > { %23376 = vmatmul.mubr.f32.vlgmr.msra.gmra.mxu1 %v23375_v53  ;;  %23787 = vmatmul.mubr.f32.vlgmr.msra.gmra.mxu0 %v33734_v33 }
0x133e   : > { %23507 = vmatpush1.msra.mxu1 %v33564_v24  ;;  %23906 = vmatprep.subr.mxu0 %v33665_v60  ;;  %v29547_v24 = vld [vmem:[#allocation34 + $0x64] ss:$8 sps:$4 sm:$0xff]   ;;  %v29572_v60 = vld [vmem:[#allocation34 + $0x120] ss:$8 sps:$4 sm:$0xff]  }
0x133f   : > { %23510 = vmatprep.subr.mxu1 %v33567_v13  ;;  %23912 = vmatpush1.msra.mxu0 %v33668_v25  ;;  %v29550_v13 = vld [vmem:[#allocation34 + $0x164] ss:$8 sps:$4 sm:$0xff]   ;;  %v29577_v25 = vld [vmem:[#allocation34 + $0x14] ss:$8 sps:$4 sm:$0xff]  }
0x1340   : > { %23513 = vmatpush1.msra.mxu1 %v33570_v7  ;;  %23918 = vmatprep.subr.mxu0 %v33671_v34  ;;  %v29545_v7 = vld [vmem:[#allocation34 + $0x60] ss:$8 sps:$4 sm:$0xff]   ;;  %v29580_v34 = vld [vmem:[#allocation34 + $0x114] ss:$8 sps:$4 sm:$0xff]  }
0x1341   : > { %23546 = vmatprep.mubr.f32.mxu1 %v34333_v58  ;;  %23664 = vmatprep.subr.mxu1 %v33574_v63  ;;  %v29548_v63 = vld [vmem:[#allocation34 + $0x160] ss:$8 sps:$4 sm:$0xff]  }
0x1342   : > { %23924 = vmatpush1.msra.mxu0 %v33674_v51  ;;  %23957 = vmatprep.mubr.f32.mxu0 %v34333_v58  ;;  %v29575_v51 = vld [vmem:[#allocation34 + $0x10] ss:$8 sps:$4 sm:$0xff]  }
0x1343   : > { %23549 = vmatmul.mubr.f32.vlgmr.msra.gmra.mxu1 %v23372_v32  ;;  %23959 = vmatmul.mubr.f32.vlgmr.msra.gmra.mxu0 %v33734_v33 }
0x1344   : > { %23668 = vmatpush1.msra.mxu1 %v33578_v14  ;;  %24075 = vmatprep.subr.mxu0 %v33609_v31  ;;  %v29551_v14 = vld [vmem:[#allocation34 + $0x50] ss:$8 sps:$4 sm:$0xff]  }
0x1345   : > { %23672 = vmatprep.subr.mxu1 %v33581_v37  ;;  %24077 = vmatpush1.msra.mxu0 %v33611_v44  ;;  %v29553_v37 = vld [vmem:[#allocation34 + $0x54] ss:$8 sps:$4 sm:$0xff]  }
0x1346   : > { %23676 = vmatpush1.msra.mxu1 %v33584_v15  ;;  %24079 = vmatprep.subr.mxu0 %v33613_v30  ;;  %v29554_v15 = vld [vmem:[#allocation34 + $0x150] ss:$8 sps:$4 sm:$0xff]  }
0x1347   : > { %23709 = vmatprep.mubr.f32.mxu1 %v34333_v58  ;;  %23822 = vmatprep.subr.mxu1 %v33609_v31 }
0x1348   : > { %24081 = vmatpush1.msra.mxu0 %v33615_v11  ;;  %24114 = vmatprep.mubr.f32.mxu0 %v34333_v58 }
0x1349   : > { %23711 = vmatmul.mubr.f32.vlgmr.msra.gmra.mxu1 %v33734_v33  ;;  %24118 = vmatmul.mubr.f32.vlgmr.msra.gmra.mxu0 %v23373_v2  ;;  %v29614_v2 = vld [vmem:[#allocation34 + $0x1b0] ss:$8 sps:$4 sm:$0xff]  }
0x134a   : > { %23824 = vmatpush1.msra.mxu1 %v33611_v44  ;;  %24237 = vmatprep.subr.mxu0 %v33609_v31  ;;  %v29556_v31 = vld [vmem:[#allocation34 + $0x154] ss:$8 sps:$4 sm:$0xff]  }
0x134b   : > { %23826 = vmatprep.subr.mxu1 %v33613_v30  ;;  %24239 = vmatpush1.msra.mxu0 %v33611_v44  ;;  %v29559_v44 = vld [vmem:[#allocation34 + $0x44] ss:$8 sps:$4 sm:$0xff]  }
0x134c   : > { %23828 = vmatpush1.msra.mxu1 %v33615_v11  ;;  %24241 = vmatprep.subr.mxu0 %v33613_v30  ;;  %v29562_v30 = vld [vmem:[#allocation34 + $0x144] ss:$8 sps:$4 sm:$0xff]  }
0x134d   : > { %23861 = vmatprep.mubr.f32.mxu1 %v34333_v58  ;;  %23995 = vmatprep.subr.mxu1 %v33618_v8  ;;  %v29560_v8 = vld [vmem:[#allocation34 + $0x140] ss:$8 sps:$4 sm:$0xff]  }
0x134e   : > { %24243 = vmatpush1.msra.mxu0 %v33615_v11  ;;  %24276 = vmatprep.mubr.f32.mxu0 %v34333_v58  ;;  %v29557_v11 = vld [vmem:[#allocation34 + $0x40] ss:$8 sps:$4 sm:$0xff]  }
0x134f   : > { %23867 = vmatmul.mubr.f32.vlgmr.msra.gmra.mxu1 %v23375_v53  ;;  %24278 = vmatmul.mubr.f32.vlgmr.msra.gmra.mxu0 %v33734_v33  ;;  %v29622_v53 = vld [vmem:[#allocation34 + $0x1a4] ss:$8 sps:$4 sm:$0xff]  }
0x1350   : > { %23998 = vmatpush1.msra.mxu1 %v33621_v42  ;;  %24037 = vmatprep.mubr.f32.mxu1 %v34333_v58  ;;  %v29565_v42 = vld [vmem:[#allocation34 + $0x34] ss:$8 sps:$4 sm:$0xff]  }
0x1351   : > { %24001 = vmatprep.subr.mxu1 %v33624_v23  ;;  %24839 = vmatprep.subr.bf16.mxu0 %v29544_v20  ;;  %v29568_v23 = vld [vmem:[#allocation34 + $0x134] ss:$8 sps:$4 sm:$0xff]  }
0x1352   : > { %24004 = vmatpush1.msra.mxu1 %v33627_v10  ;;  %24840 = vmatpush1.bf16.msra.mxu0 %v29542_v52  ;;  %v29563_v10 = vld [vmem:[#allocation34 + $0x30] ss:$8 sps:$4 sm:$0xff]   ;;  %v29625_v52 = vld [vmem:[#allocation34 + $0x94] ss:$8 sps:$4 sm:$0xff]  }
0x1353   : > { %24155 = vmatprep.subr.mxu1 %v33631_v49  ;;  %24040 = vmatmul.mubr.f32.vlgmr.msra.gmra.mxu1 %v23372_v32  ;;  %v29566_v49 = vld [vmem:[#allocation34 + $0x130] ss:$8 sps:$4 sm:$0xff]   ;;  %v29628_v20 = vld [vmem:[#allocation34 + $0x194] ss:$8 sps:$4 sm:$0xff]  }
0x1354   : > { %24159 = vmatpush1.msra.mxu1 %v33636_v36  ;;  %24200 = vmatprep.mubr.f32.mxu1 %v34333_v58  ;;  %v29571_v36 = vld [vmem:[#allocation34 + $0x24] ss:$8 sps:$4 sm:$0xff]   ;;  %v29611_v32 = vld [vmem:[#allocation34 + $0xb0] ss:$8 sps:$4 sm:$0xff]  }
0x1355   : > { %24163 = vmatprep.subr.mxu1 %v33639_v3  ;;  %24841 = vmatprep.subr.bf16.mxu0 %v29550_v13  ;;  %v29574_v3 = vld [vmem:[#allocation34 + $0x124] ss:$8 sps:$4 sm:$0xff]   ;;  %v29626_v13 = vld [vmem:[#allocation34 + $0x190] ss:$8 sps:$4 sm:$0xff]  }
0x1356   : > { %24167 = vmatpush1.msra.mxu1 %v33646_v35  ;;  %24842 = vmatpush1.bf16.msra.mxu0 %v29548_v63  ;;  %v29569_v35 = vld [vmem:[#allocation34 + $0x20] ss:$8 sps:$4 sm:$0xff]   ;;  %v29631_v63 = vld [vmem:[#allocation34 + $0x84] ss:$8 sps:$4 sm:$0xff]  }
0x1357   : > { %24202 = vmatmul.mubr.f32.vlgmr.msra.gmra.mxu1 %v33734_v33  ;;  %24798 = vmatprep.subr.bf16.mxu1 %v29541_v17  ;;  %v29616_v33 = vld [vmem:[#allocation34 + $0x1b4] ss:$8 sps:$4 sm:$0xff]   ;;  %v29620_v17 = vld [vmem:[#allocation34 + $0x1a0] ss:$8 sps:$4 sm:$0xff]  }
0x1358   : > { %24799 = vmatpush1.bf16.msra.mxu1 %v29539_v27  ;;  %24843 = vmatprep.subr.bf16.mxu0 %v29556_v31  ;;  %v29617_v27 = vld [vmem:[#allocation34 + $0xa0] ss:$8 sps:$4 sm:$0xff]  }
0x1359   : > { %24800 = vmatprep.subr.bf16.mxu1 %v29547_v24  ;;  %v29623_v24 = vld [vmem:[#allocation34 + $0x90] ss:$8 sps:$4 sm:$0xff]  }
0x135a   : > { %24844 = vmatpush1.bf16.msra.mxu0 %v29554_v15  ;;  %v29632_v15 = vld [vmem:[#allocation34 + $0x180] ss:$8 sps:$4 sm:$0xff]  }
0x135b   : > { %24845 = vmatprep.subr.bf16.mxu0 %v29562_v30 }
0x135c   : > { %24801 = vmatpush1.bf16.msra.mxu1 %v29545_v7 }
0x135d   : > { %24802 = vmatprep.subr.bf16.mxu1 %v29553_v37  ;;  %v29629_v37 = vld [vmem:[#allocation34 + $0x80] ss:$8 sps:$4 sm:$0xff]  }
0x135e   : > { %24846 = vmatpush1.bf16.msra.mxu0 %v29560_v8 }
0x135f   : > { %24847 = vmatprep.subr.bf16.mxu0 %v29568_v23 }
0x1360   : > { %24803 = vmatpush1.bf16.msra.mxu1 %v29551_v14  ;;  %v29634_v14 = vld [vmem:[#allocation34 + $0x184] ss:$8 sps:$4 sm:$0xff]  }
0x1361   : > { %24804 = vmatprep.subr.bf16.mxu1 %v29559_v44 }
0x1362   : > { %24848 = vmatpush1.bf16.msra.mxu0 %v29566_v49 }
0x1363   : > { %24849 = vmatprep.subr.bf16.mxu0 %v29574_v3 }
0x1364   : > { %24805 = vmatpush1.bf16.msra.mxu1 %v29557_v11 }
0x1365   : > { %24806 = vmatprep.subr.bf16.mxu1 %v29565_v42 }
0x1366   : > { %24850 = vmatpush1.bf16.msra.mxu0 %v29572_v60 }
0x1367   : > { %24851 = vmatprep.subr.bf16.mxu0 %v29580_v34 }
0x1368   : > { %24807 = vmatpush1.bf16.msra.mxu1 %v29563_v10 }
0x1369   : > { %24808 = vmatprep.subr.bf16.mxu1 %v29571_v36 }
0x136a   : > { %24852 = vmatpush1.bf16.msra.mxu0 %v29578_v47 }
0x136b   : > { %24853 = vmatprep.subr.bf16.mxu0 %v29586_v28 }
0x136c   : > { %24809 = vmatpush1.bf16.msra.mxu1 %v29569_v35 }
0x136d   : > { %24810 = vmatprep.subr.bf16.mxu1 %v29577_v25 }
0x136e   : > { %24854 = vmatpush1.bf16.msra.mxu0 %v29584_v45 }
0x136f   : > { %24855 = vmatprep.subr.bf16.mxu0 %v29592_v26 }
0x1370   : > { %24811 = vmatpush1.bf16.msra.mxu1 %v29575_v51 }
0x1371   : > { %24812 = vmatprep.subr.bf16.mxu1 %v29583_v56 }
0x1372   : > { %24856 = vmatpush2.bf16.msra.mxu0 %v29590_v16 }
0x1373   : > { %24857 = vmatprep.subr.bf16.mxu0 %v29598_v19 }
0x1374   : > { %24813 = vmatpush1.bf16.msra.mxu1 %v29581_v6 }
0x1375   : > { %24814 = vmatprep.subr.bf16.mxu1 %v29589_v50 }
0x1376   : > { %24858 = vmatpush2.bf16.msra.mxu0 %v29596_v5 }
0x1377   : > { %24859 = vmatprep.subr.bf16.mxu0 %v29604_v43 }
0x1378   : > { %24815 = vmatpush2.bf16.msra.mxu1 %v29587_v55 }
0x1379   : > { %24816 = vmatprep.subr.bf16.mxu1 %v29595_v22 }
0x137a   : > { %24860 = vmatpush2.bf16.msra.mxu0 %v29602_v41 }
0x137b   : > { %24861 = vmatprep.subr.bf16.mxu0 %v29610_v9 }
0x137c   : > { %24817 = vmatpush2.bf16.msra.mxu1 %v29593_v48 }
0x137d   : > { %24818 = vmatprep.subr.bf16.mxu1 %v29601_v59 }
0x137e   : > { %24862 = vmatpush2.bf16.msra.mxu0 %v29608_v54 }
0x137f   : > { %24863 = vmatprep.subr.bf16.mxu0 %v29616_v33 }
0x1380   : > { %24819 = vmatpush2.bf16.msra.mxu1 %v29599_v39 }
0x1381   : > { %24820 = vmatprep.subr.bf16.mxu1 %v29607_v38 }
0x1382   : > { %24864 = vmatpush2.bf16.msra.mxu0 %v29614_v2 }
0x1383   : > { %24865 = vmatprep.subr.bf16.mxu0 %v29622_v53 }
0x1384   : > { %24821 = vmatpush2.bf16.msra.mxu1 %v29605_v21 }
0x1385   : > { %24822 = vmatprep.subr.bf16.mxu1 %v29613_v57 }
0x1386   : > { %24866 = vmatpush2.bf16.msra.mxu0 %v29620_v17 }
0x1387   : > { %24867 = vmatprep.subr.bf16.mxu0 %v29628_v20 }
0x1388   : > { %24823 = vmatpush2.bf16.msra.mxu1 %v29611_v32 }
0x1389   : > { %24824 = vmatprep.subr.bf16.mxu1 %v29619_v4 }
0x138a   : > { %24868 = vmatpush2.bf16.msra.mxu0 %v29626_v13 }
0x138b   : > { %24869 = vmatprep.subr.bf16.mxu0 %v29634_v14 }
0x138c   : > { %24825 = vmatpush2.bf16.msra.mxu1 %v29617_v27 }
0x138d   : > { %24826 = vmatprep.subr.bf16.mxu1 %v29625_v52 }
0x138e   : > { %24870 = vmatpush2.bf16.msra.mxu0 %v29632_v15 }
0x1390   : > { %24827 = vmatpush2.bf16.msra.mxu1 %v29623_v24 }
0x1391   : > { %24828 = vmatprep.subr.bf16.mxu1 %v29631_v63 }
0x1394   : > { %24829 = vmatpush2.bf16.msra.mxu1 %v29629_v37 }
0x13c5   : > { %v22484_v7 = vpop.f32.mrf.mxu0 }
0x13c7   : > { %v22486_v31 = vpop.f32.mrf.mxu0 }
0x13c9   : > { %v22643_v44 = vpop.f32.mrf.mxu0 }
0x13cb   : > { %v22645_v11 = vpop.f32.mrf.mxu0 }
0x13cd   : > { %v22392_v30 = vpop.f32.mrf.mxu1  ;;  %v22803_v42 = vpop.f32.mrf.mxu0 }
0x13ce   : > { %v22485_v59 = vadd.f32 %v22484_v7, %v22392_v30 }
0x13cf   : > { %v22394_v8 = vpop.f32.mrf.mxu1  ;;  %v22805_v10 = vpop.f32.mrf.mxu0 }
0x13d0   : > { %v22487_v48 = vadd.f32 %v22486_v31, %v22394_v8 }
0x13d2   : > { %v22565_v23 = vpop.f32.mrf.mxu1 }
0x13d3   : > { %v22975_v36 = vpop.f32.mrf.mxu0  ;;  %v22566_v38 = vadd.f32 %v22565_v23, %v22485_v59 }
0x13d4   : > { %v22567_v49 = vpop.f32.mrf.mxu1 }
0x13d5   : > { %v22977_v35 = vpop.f32.mrf.mxu0  ;;  %v22568_v43 = vadd.f32 %v22567_v49, %v22487_v48  ;;  %v22644_v33 = vadd.f32 %v22643_v44, %v22566_v38 }
0x13d7   : > { %v22646_v9 = vadd.f32 %v22645_v11, %v22568_v43 }
0x13d8   : > { %v22727_v3 = vpop.f32.mrf.mxu1 }
0x13d9   : > { %v23134_v25 = vpop.f32.mrf.mxu0  ;;  %v22728_v20 = vadd.f32 %v22727_v3, %v22644_v33 }
0x13da   : > { %v22729_v60 = vpop.f32.mrf.mxu1 }
0x13db   : > { %v23136_v51 = vpop.f32.mrf.mxu0  ;;  %v22730_v53 = vadd.f32 %v22729_v60, %v22646_v9  ;;  %v33795_v11 = vadd.f32 %v22803_v42, %v22728_v20 }
0x13dd   : > { %v33793_v63 = vadd.f32 %v22805_v10, %v22730_v53  ;;  %v24284_v10 = vmul.f32 %v33795_v11, %v33795_v11 }
0x13de   : > { %v22883_v34 = vpop.f32.mrf.mxu1 }
0x13df   : > { %v23294_v56 = vpop.f32.mrf.mxu0  ;;  %v22976_v24 = vadd.f32 %v22975_v36, %v22883_v34  ;;  %v24285_v23 = vmul.f32 %v33793_v63, %v33793_v63 }
0x13e0   : > { %v22885_v47 = vpop.f32.mrf.mxu1 }
0x13e1   : > { %v33791_v6 = vpop.f32.mrf.mxu0  ;;  %v22978_v14 = vadd.f32 %v22977_v35, %v22885_v47 }
0x13e3   : > { %v23056_v28 = vpop.f32.mrf.mxu1 }
0x13e4   : > { %v23057_v37 = vadd.f32 %v23056_v28, %v22976_v24 }
0x13e5   : > { %v23058_v45 = vpop.f32.mrf.mxu1 }
0x13e6   : > { %v23059_v44 = vadd.f32 %v23058_v45, %v22978_v14  ;;  %v23135_v49 = vadd.f32 %v23134_v25, %v23057_v37 }
0x13e7   : > { %v23218_v26 = vpop.f32.mrf.mxu1 }
0x13e8   : > { %v23137_v35 = vadd.f32 %v23136_v51, %v23059_v44 }
0x13e9   : > { %v23220_v22 = vpop.f32.mrf.mxu1 }
0x13f5   : > { %v23469_v50 = vpop.f32.mrf.mxu0 }
0x13f7   : > { %v23471_v55 = vpop.f32.mrf.mxu0 }
0x13f9   : > { %v23628_v16 = vpop.f32.mrf.mxu0 }
0x13fb   : > { %v23630_v19 = vpop.f32.mrf.mxu0 }
0x13fd   : > { %v23377_v5 = vpop.f32.mrf.mxu1  ;;  %v23788_v39 = vpop.f32.mrf.mxu0 }
0x13fe   : > { %v23470_v21 = vadd.f32 %v23469_v50, %v23377_v5  ;;  %v23219_v50 = vadd.f32 %v23218_v26, %v23135_v49 }
0x13ff   : > { %v23379_v41 = vpop.f32.mrf.mxu1  ;;  %v23790_v54 = vpop.f32.mrf.mxu0 }
0x1400   : > { %v23472_v32 = vadd.f32 %v23471_v55, %v23379_v41  ;;  %v23295_v43 = vadd.f32 %v23294_v56, %v23219_v50 }
0x1403   : > { %v23550_v57 = vpop.f32.mrf.mxu1  ;;  %v23960_v52 = vpop.f32.mrf.mxu0 }
0x1404   : > { %v23551_v2 = vadd.f32 %v23550_v57, %v23470_v21 }
0x1405   : > { %v23552_v4 = vpop.f32.mrf.mxu1  ;;  %v23962_v31 = vpop.f32.mrf.mxu0 }
0x1406   : > { %v23553_v27 = vadd.f32 %v23552_v4, %v23472_v32  ;;  %v23629_v17 = vadd.f32 %v23628_v16, %v23551_v2  ;;  %v24286_v32 = vmul.f32 %v23295_v43, %v23295_v43 }
0x1408   : > { %v23631_v13 = vadd.f32 %v23630_v19, %v23553_v27  ;;  %v23221_v19 = vadd.f32 %v23220_v22, %v23137_v35 }
0x1409   : > { %v23712_v7 = vpop.f32.mrf.mxu1  ;;  %v24119_v36 = vpop.f32.mrf.mxu0 }
0x140a   : > { %v23713_v15 = vadd.f32 %v23712_v7, %v23629_v17  ;;  %v23297_v51 = vadd.f32 %v33791_v6, %v23221_v19  ;;  %v24304_v7 = vld [vmem:[#allocation31] sm:$0xf] }
0x140b   : > { %v23714_v30 = vpop.f32.mrf.mxu1  ;;  %v24121_v16 = vpop.f32.mrf.mxu0  ;;  %v24313_v14 = vrot.slane %v24304_v7, %v34369_v29 }
0x140c   : > { %v23715_v8 = vadd.f32 %v23714_v30, %v23631_v13  ;;  %v23789_v60 = vadd.f32 %v23788_v39, %v23713_v15  ;;  %v24287_v27 = vmul.f32 %v23297_v51, %v23297_v51  ;;  %v24309_v15 = vrot.slane %v24304_v7, %v34368_v18 }
0x140d   : > { %v24317_v30 = vrot.slane %v24304_v7, %v34370_v0 }
0x140e   : > { %v23791_v3 = vadd.f32 %v23790_v54, %v23715_v8  ;;  %v24288_v55 = vsub.f32 %v23789_v60, %v24284_v10  ;;  %v24321_v8 = vrot.slane %v24304_v7, %v34371_v46 }
0x140f   : > { %v23868_v34 = vpop.f32.mrf.mxu1  ;;  %v24279_v9 = vpop.f32.mrf.mxu0 }
0x1410   : > { %v24289_v47 = vsub.f32 %v23791_v3, %v24285_v23  ;;  %v23961_v42 = vadd.f32 %v23960_v52, %v23868_v34  ;;  %v24292_v39 = vmax.f32 %v24288_v55, 0.0 }
0x1411   : > { %v23870_v28 = vpop.f32.mrf.mxu1  ;;  %v24281_v53 = vpop.f32.mrf.mxu0 }
0x1412   : > { %v24293_v48 = vmax.f32 %v24289_v47, 0.0  ;;  %v23963_v5 = vadd.f32 %v23962_v31, %v23870_v28  ;;  %v24296_v2 = vadd.f32 1e-05, %v24292_v39 }
0x1413   : > { %v24041_v45 = vpop.f32.mrf.mxu1 }
0x1414   : > { %v24042_v59 = vadd.f32 %v24041_v45, %v23961_v42  ;;  %v24297_v54 = vadd.f32 1e-05, %v24293_v48  ;;  %v24330_v45 = vld [vmem:[#allocation32] sm:$0xf] }
0x1415   : > { %v24043_v25 = vpop.f32.mrf.mxu1 }
0x1416   : > { %v24044_v41 = vadd.f32 %v24043_v25, %v23963_v5  ;;  %v24120_v38 = vadd.f32 %v24119_v36, %v24042_v59  ;;  %29675 = vrsqrt.f32 %v24297_v54 }
0x1417   : > { %v24203_v21 = vpop.f32.mrf.mxu1  ;;  %29677 = vrsqrt.f32 %v24296_v2 }
0x1418   : > { %v24204_v57 = vadd.f32 %v24203_v21, %v24120_v38  ;;  %v24122_v26 = vadd.f32 %v24121_v16, %v24044_v41 }
0x1419   : > { %v24205_v33 = vpop.f32.mrf.mxu1 }
0x141a   : > { %v24280_v4 = vadd.f32 %v24279_v9, %v24204_v57  ;;  %v24206_v22 = vadd.f32 %v24205_v33, %v24122_v26 }
0x141c   : > { %v24290_v17 = vsub.f32 %v24280_v4, %v24286_v32  ;;  %v24282_v56 = vadd.f32 %v24281_v53, %v24206_v22  ;;  %v24883_v53 = vld [vmem:[#allocation53 + $0x8] sm:$0xff] }
0x141e   : > { %v24294_v52 = vmax.f32 %v24290_v17, 0.0  ;;  %v24291_v20 = vsub.f32 %v24282_v56, %v24287_v27  ;;  %v33834_v17 = vand.u32 4294901760, %v24883_v53  ;;  %v24882_v56 = vld [vmem:[#allocation53] sm:$0xff] }
0x1420   : > { %v24298_v24 = vadd.f32 1e-05, %v24294_v52  ;;  %v24295_v13 = vmax.f32 %v24291_v20, 0.0  ;;  %v33839_v20 = vand.u32 4294901760, %v24882_v56 }
0x1422   : > { %29679 = vrsqrt.f32 %v24298_v24  ;;  %v24299_v6 = vadd.f32 1e-05, %v24295_v13  ;;  %v33844_v13 = vsub.f32 %v24883_v53, %v33834_v17  ;;  %v33850_v7 = vsub.f32 %v24882_v56, %v33839_v20 }
0x1423   : > { %v29676_v37 = vpop.eup %29675 }
0x1424   : > { %29681 = vrsqrt.f32 %v24299_v6  ;;  %v29678_v31 = vpop.eup %29677  ;;  %v24327_v44 = vmul.f32 %v29676_v37, %v24313_v14  ;;  %v33854_v37 = vand.u32 4294901760, %v33844_v13 }
0x1425   : > { %v24326_v23 = vmul.f32 %v29678_v31, %v24309_v15  ;;  %v33860_v31 = vand.u32 4294901760, %v33850_v7 }
0x1426   : > { %v24332_v3 = vmul.f32 %v24327_v44, %v33793_v63  ;;  %v24366_v5 = vmul.f32 %v24327_v44, %v33370_v62 }
0x1427   : > { %v24331_v10 = vmul.f32 %v24326_v23, %v33795_v11  ;;  %v24365_v59 = vmul.f32 %v24326_v23, %v33365_v61  ;;  %v25023_v44 = vsub.f32 %v33850_v7, %v33860_v31 }
0x1429   : > { %v24339_v28 = vcombine.low %v24331_v10, %v24332_v3  ;;  %v33869_v23 = vand.u32 4294901760, %v25023_v44 }
0x142b   : > { %v24347_v55 = vrot.slane %v24339_v28, %v33195_v12 }
0x142f   : > { %v29680_v49 = vpop.eup %29679 }
0x1430   : > { %v24328_v60 = vmul.f32 %v29680_v49, %v24317_v30  ;;  %v25017_v30 = vsub.f32 %v33844_v13, %v33854_v37  ;;  %v24466_v49 = vld [vmem:[#allocation35] sm:$0x3] }
0x1431   : > { %v29682_v36 = vpop.eup %29681  ;;  %v24795_v3 = vrot.slane %v24466_v49, %v34369_v29 }
0x1432   : > { %v24329_v34 = vmul.f32 %v29682_v36, %v24321_v8  ;;  %v24333_v35 = vmul.f32 %v24328_v60, %v23295_v43  ;;  %v24367_v11 = vmul.f32 %v24328_v60, %v33459_v1  ;;  %v33867_v8 = vand.u32 4294901760, %v25017_v30 }
0x1433   : > { %v24791_v60 = vrot.slane %v24466_v49, %v34368_v18 }
0x1434   : > { %v24334_v47 = vmul.f32 %v24329_v34, %v23297_v51  ;;  %v24368_v63 = vmul.f32 %v24329_v34, %v33462_v40 }
0x1436   : > { %v24340_v50 = vcombine.low %v24333_v35, %v24334_v47 }
0x1438   : > { %v24354_v42 = vrot.slane %v24340_v50, %v33195_v12 }
0x143a   : > { %v24355_v16 = vcombine.low %v24347_v55, %v24354_v42 }
0x143c   : > { %v24362_v19 = vrot.slane %v24355_v16, %v33195_v12 }
0x143e   : > { %v24364_v48 = vsub.f32 %v24330_v45, %v24362_v19 }
0x1440   : > { %v24377_v25 = vrot.slane %v24364_v48, %v34369_v29  ;;  %v24385_v43 = vrot.slane %v24364_v48, %v34371_v46  ;;  %v24373_v39 = vrot.slane %v24364_v48, %v34368_v18  ;;  %v24381_v41 = vrot.slane %v24364_v48, %v34370_v0  ;;  %v24885_v46 = vld [vmem:[#allocation53 + $0x18] sm:$0xff]  ;;  %v24884_v0 = vld [vmem:[#allocation53 + $0x10] sm:$0xff] }
0x1441   : > { %v33819_v32 = vand.u32 4294901760, %v24885_v46  ;;  %v33821_v2 = vand.u32 4294901760, %v24884_v0 }
0x1442   : > { %v24391_v38 = vadd.f32 %v24377_v25, %v24366_v5  ;;  %v24393_v9 = vadd.f32 %v24385_v43, %v24368_v63  ;;  %v24390_v21 = vadd.f32 %v24373_v39, %v24365_v59  ;;  %v24392_v51 = vadd.f32 %v24381_v41, %v24367_v11 }
0x1443   : > { %v33824_v4 = vsub.f32 %v24885_v46, %v33819_v32  ;;  %24919 = vmatprep.subr.mxu1 %v33819_v32  ;;  %v33828_v22 = vsub.f32 %v24884_v0, %v33821_v2 }
0x1444   : > { %v24395_v54 = vmax.f32 %v24391_v38, 0.0  ;;  %v24397_v62 = vmax.f32 %v24393_v9, 0.0  ;;  %v24394_v57 = vmax.f32 %v24390_v21, 0.0  ;;  %v24396_v40 = vmax.f32 %v24392_v51, 0.0 }
0x1445   : > { %v33832_v27 = vand.u32 4294901760, %v33824_v4  ;;  %v33837_v52 = vand.u32 4294901760, %v33828_v22 }
0x1446   : > { %v24399_v26 = vpack.c.bf16 %v24395_v54, %v24395_v54  ;;  %v24401_v61 = vpack.c.bf16 %v24397_v62, %v24397_v62  ;;  %v24398_v33 = vpack.c.bf16 %v24394_v57, %v24394_v57  ;;  %v24400_v1 = vpack.c.bf16 %v24396_v40, %v24396_v40 }
0x1447   : > { %v25005_v24 = vsub.f32 %v33824_v4, %v33832_v27  ;;  %v25011_v6 = vsub.f32 %v33828_v22, %v33837_v52 }
0x1448   : > { %24830 = vmatprep.mubr.bf16.mxu1 %v24399_v26  ;;  %24871 = vmatprep.mubr.bf16.mxu0 %v24401_v61 }
0x1449   : > { %24831 = vmatmul.mubr.bf16.vlgmr.msra.gmra.mxu1 %v24398_v33  ;;  %24872 = vmatmul.mubr.bf16.vlgmr.msra.gmra.mxu0 %v24400_v1  ;;  %v25006_v14 = vand.u32 4294901760, %v25005_v24  ;;  %v33857_v15 = vand.u32 4294901760, %v25011_v6 }
0x144a   : > { %24921 = vmatpush1.xpose.msra.mxu1 %v33821_v2 }
0x144b   : > { %24923 = vmatprep.subr.mxu1 %v33834_v17  ;;  %25007 = vmatprep.subr.mxu0 %v25006_v14 }
0x144c   : > { %25013 = vmatpush1.xpose.msra.mxu0 %v33857_v15 }
0x144d   : > { %25019 = vmatprep.subr.mxu0 %v33867_v8 }
0x144e   : > { %24925 = vmatpush1.xpose.msra.mxu1 %v33839_v20 }
0x144f   : > { %25096 = vmatprep.subr.mxu1 %v33824_v4 }
0x1450   : > { %25025 = vmatpush1.xpose.msra.mxu0 %v33869_v23 }
0x1451   : > { %25177 = vmatprep.subr.mxu0 %v33819_v32 }
0x1509   : > { %v24832_v36 = vpop.f32.mrf.mxu1  ;;  %v24873_v34 = vpop.f32.mrf.mxu0 }
0x150a   : > { %v24833_v10 = vadd.f32 %v24832_v36, %v24791_v60 }
0x150b   : > { %v24834_v35 = vpop.f32.mrf.mxu1  ;;  %v24875_v47 = vpop.f32.mrf.mxu0 }
0x150c   : > { %v33876_v28 = vadd.f32 %v24873_v34, %v24833_v10  ;;  %v24835_v50 = vadd.f32 %v24834_v35, %v24795_v3 }
0x150d   : > { %v24836_v55 = vpop.f32.mrf.mxu1  ;;  %v24877_v42 = vpop.f32.mrf.mxu0 }
0x150e   : > { %v24964_v16 = vand.u32 4294901760, %v33876_v28  ;;  %v33879_v45 = vadd.f32 %v24875_v47, %v24835_v50  ;;  %v24880_v51 = vmul.f32 %v33876_v28, %v33876_v28 }
0x150f   : > { %v24837_v19 = vpop.f32.mrf.mxu1  ;;  %v24878_v48 = vpop.f32.mrf.mxu0 }
0x1510   : > { %v24965_v5 = vsub.f32 %v33876_v28, %v24964_v16  ;;  %v24958_v63 = vand.u32 4294901760, %v33879_v45  ;;  %v24881_v41 = vmul.f32 %v33879_v45, %v33879_v45  ;;  %v25462_v62 = vand.u32 4294901760, %v24880_v51 }
0x1512   : > { %25059 = vmatprep.mubr.f32.mxu0 %v24958_v63  ;;  %v24959_v59 = vsub.f32 %v33879_v45, %v24958_v63  ;;  %v24966_v11 = vand.u32 4294901760, %v24965_v5  ;;  %v25456_v21 = vand.u32 4294901760, %v24881_v41  ;;  %v25463_v40 = vsub.f32 %v24880_v51, %v25462_v62 }
0x1513   : > { %25061 = vmatmul.mubr.f32.vlgmr.msra.gmra.mxu0 %v24964_v16 }
0x1514   : > { %25179 = vmatpush1.xpose.msra.mxu0 %v33821_v2  ;;  %v24960_v25 = vand.u32 4294901760, %v24959_v59  ;;  %v24967_v43 = vsub.f32 %v24965_v5, %v24966_v11  ;;  %v25457_v54 = vsub.f32 %v24881_v41, %v25456_v21  ;;  %v25464_v61 = vand.u32 4294901760, %v25463_v40 }
0x1515   : > { %25181 = vmatprep.subr.mxu0 %v33834_v17 }
0x1516   : > { %25219 = vmatprep.mubr.f32.mxu0 %v24960_v25  ;;  %v24961_v39 = vsub.f32 %v24959_v59, %v24960_v25  ;;  %v24968_v9 = vand.u32 4294901760, %v24967_v43  ;;  %v25458_v57 = vand.u32 4294901760, %v25457_v54  ;;  %v25465_v1 = vsub.f32 %v25463_v40, %v25464_v61 }
0x1518   : > { %25183 = vmatpush1.xpose.msra.mxu0 %v33839_v20  ;;  %v24962_v38 = vand.u32 4294901760, %v24961_v39  ;;  %v25459_v26 = vsub.f32 %v25457_v54, %v25458_v57  ;;  %v25466_v46 = vand.u32 4294901760, %v25465_v1 }
0x1519   : > { %25341 = vmatprep.subr.mxu0 %v33819_v32 }
0x151a   : > { %24963 = vmatprep.mubr.f32.mxu1 %v24962_v38  ;;  %v25460_v33 = vand.u32 4294901760, %v25459_v26 }
0x151b   : > { %25223 = vmatmul.mubr.f32.vlgmr.msra.gmra.mxu0 %v24966_v11  ;;  %24969 = vmatmul.mubr.f32.vlgmr.msra.gmra.mxu1 %v24968_v9 }
0x151c   : > { %25099 = vmatpush1.xpose.msra.mxu1 %v33828_v22  ;;  %25343 = vmatpush1.xpose.msra.mxu0 %v33821_v2 }
0x151d   : > { %25381 = vmatprep.mubr.f32.mxu0 %v24958_v63  ;;  %25140 = vmatprep.mubr.f32.mxu1 %v24959_v59 }
0x151e   : > { %25102 = vmatprep.subr.mxu1 %v33844_v13  ;;  %25345 = vmatprep.subr.mxu0 %v33834_v17 }
0x1520   : > { %25105 = vmatpush1.xpose.msra.mxu1 %v33850_v7  ;;  %25347 = vmatpush1.xpose.msra.mxu0 %v33839_v20 }
0x1521   : > { %25259 = vmatprep.subr.mxu1 %v33832_v27  ;;  %25505 = vmatprep.subr.mxu0 %v25006_v14 }
0x1523   : > { %25143 = vmatmul.mubr.f32.vlgmr.msra.gmra.mxu1 %v24965_v5  ;;  %25383 = vmatmul.mubr.f32.vlgmr.msra.gmra.mxu0 %v24964_v16 }
0x1524   : > { %25263 = vmatpush1.xpose.msra.mxu1 %v33837_v52  ;;  %25305 = vmatprep.mubr.f32.mxu1 %v24958_v63 }
0x1525   : > { %25511 = vmatpush1.xpose.msra.mxu0 %v33857_v15  ;;  %25557 = vmatprep.mubr.f32.mxu0 %v25456_v21 }
0x1526   : > { %25267 = vmatprep.subr.mxu1 %v33854_v37  ;;  %25517 = vmatprep.subr.mxu0 %v33867_v8 }
0x1528   : > { %25271 = vmatpush1.xpose.msra.mxu1 %v33860_v31 }
0x1529   : > { %25523 = vmatpush1.xpose.msra.mxu0 %v33869_v23  ;;  %25417 = vmatprep.subr.mxu1 %v33819_v32 }
0x152a   : > { %25675 = vmatprep.subr.mxu0 %v33819_v32 }
0x152b   : > { %25307 = vmatmul.mubr.f32.vlgmr.msra.gmra.mxu1 %v24964_v16 }
0x152c   : > { %25559 = vmatmul.mubr.f32.vlgmr.msra.gmra.mxu0 %v25462_v62  ;;  %25419 = vmatpush1.xpose.msra.mxu1 %v33821_v2 }
0x152d   : > { %25461 = vmatprep.mubr.f32.mxu1 %v25460_v33  ;;  %25677 = vmatpush1.xpose.msra.mxu0 %v33821_v2 }
0x152e   : > { %25717 = vmatprep.mubr.f32.mxu0 %v25458_v57  ;;  %25421 = vmatprep.subr.mxu1 %v33834_v17 }
0x152f   : > { %25679 = vmatprep.subr.mxu0 %v33834_v17 }
0x1530   : > { %25423 = vmatpush1.xpose.msra.mxu1 %v33839_v20 }
0x1531   : > { %25681 = vmatpush1.xpose.msra.mxu0 %v33839_v20  ;;  %25594 = vmatprep.subr.mxu1 %v33824_v4 }
0x1532   : > { %25839 = vmatprep.subr.mxu0 %v33819_v32  ;;  %v24889_v32 = vld [vmem:[#allocation55 + $0x18] sm:$0xff] }
0x1533   : > { %25467 = vmatmul.mubr.f32.vlgmr.msra.gmra.mxu1 %v25466_v46  ;;  %v33927_v0 = vand.u32 4294901760, %v24889_v32 }
0x1534   : > { %25721 = vmatmul.mubr.f32.vlgmr.msra.gmra.mxu0 %v25464_v61  ;;  %25597 = vmatpush1.xpose.msra.mxu1 %v33828_v22  ;;  %v24887_v22 = vld [vmem:[#allocation55 + $0x8] sm:$0xff] }
0x1535   : > { %25638 = vmatprep.mubr.f32.mxu1 %v25457_v54  ;;  %25841 = vmatpush1.xpose.msra.mxu0 %v33821_v2  ;;  %v24888_v2 = vld [vmem:[#allocation55 + $0x10] sm:$0xff]  ;;  %v33932_v53 = vsub.f32 %v24889_v32, %v33927_v0 }
0x1536   : > { %25879 = vmatprep.mubr.f32.mxu0 %v25456_v21  ;;  %25600 = vmatprep.subr.mxu1 %v33844_v13  ;;  %v33929_v4 = vand.u32 4294901760, %v24888_v2 }
0x1537   : > { %25843 = vmatprep.subr.mxu0 %v33834_v17  ;;  %v24886_v17 = vld [vmem:[#allocation55] sm:$0xff] }
0x1538   : > { %25603 = vmatpush1.xpose.msra.mxu1 %v33850_v7  ;;  %v33938_v56 = vsub.f32 %v24888_v2, %v33929_v4 }
0x1539   : > { %25845 = vmatpush1.xpose.msra.mxu0 %v33839_v20  ;;  %25757 = vmatprep.subr.mxu1 %v33832_v27  ;;  %v33934_v27 = vand.u32 4294901760, %v24887_v22  ;;  %v33944_v20 = vand.u32 4294901760, %v33932_v53 }
0x153a   : > { %v33951_v13 = vand.u32 4294901760, %v33938_v56 }
0x153b   : > { %25641 = vmatmul.mubr.f32.vlgmr.msra.gmra.mxu1 %v25463_v40  ;;  %v33947_v24 = vsub.f32 %v24887_v22, %v33934_v27  ;;  %v26000_v7 = vsub.f32 %v33932_v53, %v33944_v20 }
0x153c   : > { %25881 = vmatmul.mubr.f32.vlgmr.msra.gmra.mxu0 %v25462_v62  ;;  %25761 = vmatpush1.xpose.msra.mxu1 %v33837_v52  ;;  %v33940_v52 = vand.u32 4294901760, %v24886_v17 }
0x153d   : > { %25803 = vmatprep.mubr.f32.mxu1 %v25456_v21  ;;  %25765 = vmatprep.subr.mxu1 %v33854_v37  ;;  %v33960_v14 = vand.u32 4294901760, %v33947_v24  ;;  %v26006_v37 = vsub.f32 %v33938_v56, %v33951_v13 }
0x153e   : > { %26053 = vmatprep.mubr.f32.mxu0 %v34333_v58  ;;  %v33954_v6 = vsub.f32 %v24886_v17, %v33940_v52 }
0x153f   : > { %v26012_v30 = vsub.f32 %v33947_v24, %v33960_v14  ;;  %v26007_v44 = vand.u32 4294901760, %v26006_v37 }
0x1540   : > { %25769 = vmatpush1.xpose.msra.mxu1 %v33860_v31  ;;  %v33966_v15 = vand.u32 4294901760, %v33954_v6  ;;  %v26001_v31 = vand.u32 4294901760, %v26000_v7 }
0x1541   : > { %25918 = vmatprep.subr.mxu1 %v33927_v0  ;;  %v33972_v23 = vand.u32 4294901760, %v26012_v30 }
0x1542   : > { %v26018_v8 = vsub.f32 %v33954_v6, %v33966_v15  ;;  %26002 = vmatprep.subr.mxu0 %v26001_v31 }
0x1543   : > { %25805 = vmatmul.mubr.f32.vlgmr.msra.gmra.mxu1 %v25462_v62  ;;  %26008 = vmatpush1.msra.mxu0 %v26007_v44 }
0x1544   : > { %25957 = vmatprep.mubr.f32.mxu1 %v34333_v58  ;;  %25920 = vmatpush1.msra.mxu1 %v33929_v4  ;;  %v33974_v49 = vand.u32 4294901760, %v26018_v8 }
0x1545   : > { %25922 = vmatprep.subr.mxu1 %v33934_v27  ;;  %26014 = vmatprep.subr.mxu0 %v33972_v23 }
0x1546   : > { %25924 = vmatpush1.msra.mxu1 %v33940_v52  ;;  %26020 = vmatpush1.msra.mxu0 %v33974_v49 }
0x1547   : > { %26091 = vmatprep.subr.mxu1 %v33932_v53  ;;  %26171 = vmatprep.subr.mxu0 %v33927_v0 }
0x15d3   : > { %v25062_v60 = vpop.f32.mrf.mxu0 }
0x15d5   : > { %v25064_v3 = vpop.f32.mrf.mxu0 }
0x15d6   : > { %v29649_v3 = vld [vmem:[#allocation40 + $0x40] sm:$0xff]  }
0x15db   : > { %v25224_v36 = vpop.f32.mrf.mxu0  ;;  %v24970_v34 = vpop.f32.mrf.mxu1 }
0x15dc   : > { %v25063_v55 = vadd.f32 %v25062_v60, %v24970_v34  ;;  %v29648_v60 = vld [vmem:[#allocation40 + $0x8] sm:$0xff]  }
0x15dd   : > { %v25226_v10 = vpop.f32.mrf.mxu0  ;;  %v24972_v35 = vpop.f32.mrf.mxu1 }
0x15e3   : > { %v25144_v47 = vpop.f32.mrf.mxu1  ;;  %v25384_v50 = vpop.f32.mrf.mxu0 }
0x15e4   : > { %v25145_v19 = vadd.f32 %v25144_v47, %v25063_v55 }
0x15e5   : > { %v25146_v42 = vpop.f32.mrf.mxu1  ;;  %v25386_v16 = vpop.f32.mrf.mxu0 }
0x15e6   : > { %v25225_v48 = vadd.f32 %v25224_v36, %v25145_v19  ;;  %v29650_v36 = vld [vmem:[#allocation40] sm:$0xff]  }
0x15eb   : > { %v25308_v5 = vpop.f32.mrf.mxu1 }
0x15ec   : > { %v25309_v63 = vadd.f32 %v25308_v5, %v25225_v48  ;;  %v25560_v59 = vpop.f32.mrf.mxu0 }
0x15ed   : > { %v25310_v11 = vpop.f32.mrf.mxu1 }
0x15ee   : > { %v25385_v25 = vadd.f32 %v25384_v50, %v25309_v63  ;;  %v25562_v43 = vpop.f32.mrf.mxu0 }
0x15f0   : > { %v25887_v39 = vsel %vm14138_vm3, %v25385_v25, 0 }
0x15f1   : > { %v25958_v41 = vand.u32 4294901760, %v25887_v39 }
0x15f3   : > { %v25959_v38 = vsub.f32 %v25887_v39, %v25958_v41  ;;  %v25468_v9 = vpop.f32.mrf.mxu1  ;;  %26055 = vmatmul.mubr.f32.vlgmr.msra.gmra.mxu0 %v25958_v41 }
0x15f4   : > { %v25722_v21 = vpop.f32.mrf.mxu0  ;;  %26173 = vmatpush1.msra.mxu0 %v33929_v4  ;;  %26210 = vmatprep.mubr.f32.mxu0 %v34333_v58  ;;  %v25561_v61 = vadd.f32 %v25560_v59, %v25468_v9 }
0x15f5   : > { %v25960_v51 = vand.u32 4294901760, %v25959_v38  ;;  %v25470_v54 = vpop.f32.mrf.mxu1  ;;  %26175 = vmatprep.subr.mxu0 %v33934_v27 }
0x15f6   : > { %v25724_v62 = vpop.f32.mrf.mxu0  ;;  %26177 = vmatpush1.msra.mxu0 %v33940_v52 }
0x15f7   : > { %v25961_v57 = vsub.f32 %v25959_v38, %v25960_v51  ;;  %26214 = vmatmul.mubr.f32.vlgmr.msra.gmra.mxu0 %v25960_v51  ;;  %26333 = vmatprep.subr.mxu0 %v33927_v0 }
0x15f8   : > { %26335 = vmatpush1.msra.mxu0 %v33929_v4  ;;  %26372 = vmatprep.mubr.f32.mxu0 %v34333_v58 }
0x15f9   : > { %v25962_v40 = vand.u32 4294901760, %v25961_v57  ;;  %26337 = vmatprep.subr.mxu0 %v33934_v27 }
0x15fa   : > { %26339 = vmatpush1.msra.mxu0 %v33940_v52 }
0x15fb   : > { %v25642_v26 = vpop.f32.mrf.mxu1  ;;  %25963 = vmatmul.mubr.f32.vlgmr.msra.gmra.mxu1 %v25962_v40  ;;  %26374 = vmatmul.mubr.f32.vlgmr.msra.gmra.mxu0 %v25958_v41 }
0x15fc   : > { %v25882_v33 = vpop.f32.mrf.mxu0  ;;  %26094 = vmatpush1.msra.mxu1 %v33938_v56  ;;  %26133 = vmatprep.mubr.f32.mxu1 %v34333_v58  ;;  %v25643_v46 = vadd.f32 %v25642_v26, %v25561_v61 }
0x15fd   : > { %v25644_v1 = vpop.f32.mrf.mxu1  ;;  %26097 = vmatprep.subr.mxu1 %v33947_v24  ;;  %26496 = vmatprep.subr.mxu0 %v26001_v31 }
0x15fe   : > { %v25884_v32 = vpop.f32.mrf.mxu0  ;;  %26100 = vmatpush1.msra.mxu1 %v33954_v6  ;;  %26502 = vmatpush1.msra.mxu0 %v26007_v44  ;;  %v25723_v2 = vadd.f32 %v25722_v21, %v25643_v46 }
0x15ff   : > { %26136 = vmatmul.mubr.f32.vlgmr.msra.gmra.mxu1 %v25959_v38  ;;  %26251 = vmatprep.subr.mxu1 %v33944_v20 }
0x1600   : > { %26255 = vmatpush1.msra.mxu1 %v33951_v13  ;;  %26296 = vmatprep.mubr.f32.mxu1 %v34333_v58 }
0x1601   : > { %26259 = vmatprep.subr.mxu1 %v33960_v14  ;;  %26508 = vmatprep.subr.mxu0 %v33972_v23 }
0x1602   : > { %26263 = vmatpush1.msra.mxu1 %v33966_v15  ;;  %26514 = vmatpush1.msra.mxu0 %v33974_v49  ;;  %v29647_v49 = vld [vmem:[#allocation40 + $0x48] sm:$0xff]  }
0x1603   : > { %v25806_v22 = vpop.f32.mrf.mxu1  ;;  %26298 = vmatmul.mubr.f32.vlgmr.msra.gmra.mxu1 %v25958_v41  ;;  %26547 = vmatprep.mubr.f32.mxu0 %v34333_v58 }
0x1604   : > { %v25807_v17 = vadd.f32 %v25806_v22, %v25723_v2  ;;  %26665 = vmatprep.subr.mxu0 %v33927_v0  ;;  %26412 = vmatprep.subr.mxu1 %v33927_v0 }
0x1605   : > { %v25808_v7 = vpop.f32.mrf.mxu1  ;;  %26414 = vmatpush1.msra.mxu1 %v33929_v4  ;;  %26451 = vmatprep.mubr.f32.mxu1 %v34333_v58 }
0x1606   : > { %v25883_v37 = vadd.f32 %v25882_v33, %v25807_v17  ;;  %26416 = vmatprep.subr.mxu1 %v33934_v27 }
0x1607   : > { %26418 = vmatpush1.msra.mxu1 %v33940_v52 }
0x1608   : > { %v26381_v31 = vsel %vm14138_vm3, %v25883_v37, 0  ;;  %26585 = vmatprep.subr.mxu1 %v33932_v53 }
0x1609   : > { %v26452_v30 = vand.u32 4294901760, %v26381_v31 }
0x160b   : > { %v26453_v44 = vsub.f32 %v26381_v31, %v26452_v30  ;;  %26549 = vmatmul.mubr.f32.vlgmr.msra.gmra.mxu0 %v26452_v30 }
0x160c   : > { %26667 = vmatpush1.msra.mxu0 %v33929_v4  ;;  %26704 = vmatprep.mubr.f32.mxu0 %v34333_v58 }
0x160d   : > { %v26454_v8 = vand.u32 4294901760, %v26453_v44  ;;  %26669 = vmatprep.subr.mxu0 %v33934_v27 }
0x160e   : > { %26671 = vmatpush1.msra.mxu0 %v33940_v52 }
0x160f   : > { %v26455_v23 = vsub.f32 %v26453_v44, %v26454_v8  ;;  %26708 = vmatmul.mubr.f32.vlgmr.msra.gmra.mxu0 %v26454_v8  ;;  %26827 = vmatprep.subr.mxu0 %v33927_v0  ;;  %v29635_v0 = vld [vmem:[#allocation40 + $0x78] sm:$0xff]  }
0x1610   : > { %26829 = vmatpush1.msra.mxu0 %v33929_v4  ;;  %26866 = vmatprep.mubr.f32.mxu0 %v34333_v58  ;;  %v29636_v4 = vld [vmem:[#allocation40 + $0x38] sm:$0xff]  }
0x1611   : > { %v26456_v53 = vand.u32 4294901760, %v26455_v23  ;;  %26831 = vmatprep.subr.mxu0 %v33934_v27  ;;  %v29637_v27 = vld [vmem:[#allocation40 + $0x70] sm:$0xff]  }
0x1612   : > { %26833 = vmatpush1.msra.mxu0 %v33940_v52  ;;  %v29639_v52 = vld [vmem:[#allocation40 + $0x68] sm:$0xff]  }
0x1613   : > { %26457 = vmatmul.mubr.f32.vlgmr.msra.gmra.mxu1 %v26456_v53  ;;  %26868 = vmatmul.mubr.f32.vlgmr.msra.gmra.mxu0 %v26452_v30 }
0x1614   : > { %26588 = vmatpush1.msra.mxu1 %v33938_v56  ;;  %26627 = vmatprep.mubr.f32.mxu1 %v34333_v58  ;;  %v29638_v56 = vld [vmem:[#allocation40 + $0x30] sm:$0xff]  }
0x1615   : > { %26591 = vmatprep.subr.mxu1 %v33947_v24  ;;  %v29641_v24 = vld [vmem:[#allocation40 + $0x60] sm:$0xff]  }
0x1616   : > { %26594 = vmatpush1.msra.mxu1 %v33954_v6  ;;  %v29644_v6 = vld [vmem:[#allocation40 + $0x18] sm:$0xff]  }
0x1617   : > { %26745 = vmatprep.subr.mxu1 %v33944_v20  ;;  %26630 = vmatmul.mubr.f32.vlgmr.msra.gmra.mxu1 %v26453_v44  ;;  %v29640_v20 = vld [vmem:[#allocation40 + $0x28] sm:$0xff]  }
0x1618   : > { %26749 = vmatpush1.msra.mxu1 %v33951_v13  ;;  %26790 = vmatprep.mubr.f32.mxu1 %v34333_v58  ;;  %v29642_v13 = vld [vmem:[#allocation40 + $0x20] sm:$0xff]   ;;  %v29643_v58 = vld [vmem:[#allocation40 + $0x58] sm:$0xff]  }
0x1619   : > { %26753 = vmatprep.subr.mxu1 %v33960_v14  ;;  %v29645_v14 = vld [vmem:[#allocation40 + $0x50] sm:$0xff]  }
0x161a   : > { %26757 = vmatpush1.msra.mxu1 %v33966_v15  ;;  %v29646_v15 = vld [vmem:[#allocation40 + $0x10] sm:$0xff]  }
0x161b   : > { %26792 = vmatmul.mubr.f32.vlgmr.msra.gmra.mxu1 %v26452_v30  ;;  %28258 = vmatprep.subr.bf16.mxu1 %v29635_v0 }
0x161c   : > { %28259 = vmatpush3.bf16.msra.mxu1 %v29636_v4 }
0x161d   : > { %28260 = vmatprep.subr.bf16.mxu1 %v29637_v27 }
0x1620   : > { %28261 = vmatpush3.bf16.msra.mxu1 %v29638_v56 }
0x1621   : > { %28262 = vmatprep.subr.bf16.mxu1 %v29639_v52 }
0x1624   : > { %28263 = vmatpush3.bf16.msra.mxu1 %v29640_v20 }
0x1625   : > { %28264 = vmatprep.subr.bf16.mxu1 %v29641_v24 }
0x1628   : > { %28265 = vmatpush3.bf16.msra.mxu1 %v29642_v13 }
0x1629   : > { %28266 = vmatprep.subr.bf16.mxu1 %v29643_v58 }
0x162c   : > { %28267 = vmatpush3.bf16.msra.mxu1 %v29644_v6  ;;  %v26884_v6 = vld [vmem:[#allocation37] sm:$0x3] }
0x162d   : > { %28268 = vmatprep.subr.bf16.mxu1 %v29645_v14  ;;  %v26889_v14 = vrot.slane %v26884_v6, %v34368_v18 }
0x1630   : > { %28269 = vmatpush3.bf16.msra.mxu1 %v29646_v15  ;;  %v26893_v15 = vrot.slane %v26884_v6, %v34369_v29 }
0x1631   : > { %28270 = vmatprep.subr.bf16.mxu1 %v29647_v49 }
0x1634   : > { %28271 = vmatpush3.bf16.msra.mxu1 %v29648_v60 }
0x1635   : > { %28272 = vmatprep.subr.bf16.mxu1 %v29649_v3 }
0x1638   : > { %28273 = vmatpush3.bf16.msra.mxu1 %v29650_v36 }
0x16b3   : > { %v26056_v34 = vpop.f32.mrf.mxu0 }
0x16b5   : > { %v26058_v10 = vpop.f32.mrf.mxu0 }
0x16b7   : > { %v26215_v35 = vpop.f32.mrf.mxu0 }
0x16b9   : > { %v26217_v50 = vpop.f32.mrf.mxu0 }
0x16bb   : > { %v25964_v47 = vpop.f32.mrf.mxu1  ;;  %v26375_v42 = vpop.f32.mrf.mxu0 }
0x16bc   : > { %v26057_v63 = vadd.f32 %v26056_v34, %v25964_v47 }
0x16bd   : > { %v25966_v55 = vpop.f32.mrf.mxu1  ;;  %v26377_v19 = vpop.f32.mrf.mxu0 }
0x16be   : > { %v26059_v11 = vadd.f32 %v26058_v10, %v25966_v55 }
0x16bf   : > { %v26137_v16 = vpop.f32.mrf.mxu1 }
0x16c0   : > { %v26138_v25 = vadd.f32 %v26137_v16, %v26057_v63 }
0x16c1   : > { %v26139_v48 = vpop.f32.mrf.mxu1 }
0x16c2   : > { %v26140_v39 = vadd.f32 %v26139_v48, %v26059_v11  ;;  %v26216_v38 = vadd.f32 %v26215_v35, %v26138_v25 }
0x16c3   : > { %v26299_v59 = vpop.f32.mrf.mxu1 }
0x16c4   : > { %v26218_v51 = vadd.f32 %v26217_v50, %v26140_v39  ;;  %v26300_v62 = vadd.f32 %v26299_v59, %v26216_v38  ;;  %v26898_v50 = vld [vmem:[#allocation38] sm:$0x3] }
0x16c5   : > { %v26301_v41 = vpop.f32.mrf.mxu1 }
0x16c6   : > { %v26302_v61 = vadd.f32 %v26301_v41, %v26218_v51  ;;  %v26376_v32 = vadd.f32 %v26375_v42, %v26300_v62 }
0x16c8   : > { %v26378_v37 = vadd.f32 %v26377_v19, %v26302_v61  ;;  %v26874_v8 = vmul.f32 %v26376_v32, %v26376_v32 }
0x16ca   : > { %v26875_v4 = vmul.f32 %v26378_v37, %v26378_v37 }
0x16cb   : > { %v26550_v5 = vpop.f32.mrf.mxu0 }
0x16cd   : > { %v26552_v43 = vpop.f32.mrf.mxu0 }
0x16cf   : > { %v26709_v9 = vpop.f32.mrf.mxu0 }
0x16d1   : > { %v26711_v40 = vpop.f32.mrf.mxu0 }
0x16d3   : > { %v26458_v21 = vpop.f32.mrf.mxu1  ;;  %v26869_v17 = vpop.f32.mrf.mxu0 }
0x16d4   : > { %v26551_v57 = vadd.f32 %v26550_v5, %v26458_v21 }
0x16d5   : > { %v26460_v54 = vpop.f32.mrf.mxu1  ;;  %v26871_v0 = vpop.f32.mrf.mxu0 }
0x16d6   : > { %v26553_v33 = vadd.f32 %v26552_v43, %v26460_v54 }
0x16d7   : > { %v26631_v26 = vpop.f32.mrf.mxu1 }
0x16d8   : > { %v26632_v1 = vadd.f32 %v26631_v26, %v26551_v57 }
0x16d9   : > { %v26633_v46 = vpop.f32.mrf.mxu1 }
0x16da   : > { %v26634_v2 = vadd.f32 %v26633_v46, %v26553_v33  ;;  %v26710_v22 = vadd.f32 %v26709_v9, %v26632_v1 }
0x16db   : > { %v26793_v7 = vpop.f32.mrf.mxu1 }
0x16dc   : > { %v26794_v31 = vadd.f32 %v26793_v7, %v26710_v22  ;;  %v26712_v30 = vadd.f32 %v26711_v40, %v26634_v2 }
0x16dd   : > { %v26795_v44 = vpop.f32.mrf.mxu1 }
0x16de   : > { %v26870_v23 = vadd.f32 %v26869_v17, %v26794_v31  ;;  %v26796_v53 = vadd.f32 %v26795_v44, %v26712_v30 }
0x16e0   : > { %v26876_v27 = vsub.f32 %v26870_v23, %v26874_v8  ;;  %v26872_v56 = vadd.f32 %v26871_v0, %v26796_v53 }
0x16e2   : > { %v26878_v52 = vmax.f32 %v26876_v27, 0.0  ;;  %v26877_v20 = vsub.f32 %v26872_v56, %v26875_v4 }
0x16e4   : > { %v26880_v24 = vadd.f32 1e-05, %v26878_v52  ;;  %v26879_v13 = vmax.f32 %v26877_v20, 0.0 }
0x16e6   : > { %29683 = vrsqrt.f32 %v26880_v24  ;;  %v26881_v58 = vadd.f32 1e-05, %v26879_v13 }
0x16e8   : > { %29685 = vrsqrt.f32 %v26881_v58 }
0x16f3   : > { %v29684_v49 = vpop.eup %29683 }
0x16f4   : > { %v26896_v60 = vmul.f32 %v29684_v49, %v26889_v14 }
0x16f5   : > { %v29686_v3 = vpop.eup %29685 }
0x16f6   : > { %v26897_v36 = vmul.f32 %v29686_v3, %v26893_v15  ;;  %v26899_v34 = vmul.f32 %v26896_v60, %v26376_v32  ;;  %v26920_v5 = vmul.f32 %v26896_v60, %v33876_v28 }
0x16f8   : > { %v26900_v10 = vmul.f32 %v26897_v36, %v26378_v37  ;;  %v26921_v16 = vmul.f32 %v26897_v36, %v33879_v45  ;;  %v26971_v45 = vld [vmem:[#allocation41] sm:$0x1] }
0x16fa   : > { %v26903_v35 = vcombine.low %v26899_v34, %v26900_v10 }
0x16fc   : > { %v26910_v47 = vrot.slane %v26903_v35, %v33195_v12 }
0x16fe   : > { %v26917_v55 = vrot.slane %v26910_v47, %v33195_v12 }
0x1700   : > { %v26919_v42 = vsub.f32 %v26898_v50, %v26917_v55 }
0x1702   : > { %v26926_v19 = vrot.slane %v26919_v42, %v34368_v18  ;;  %v26930_v48 = vrot.slane %v26919_v42, %v34369_v29 }
0x1704   : > { %v26934_v63 = vadd.f32 %v26930_v48, %v26921_v16  ;;  %v26933_v59 = vadd.f32 %v26926_v19, %v26920_v5 }
0x1706   : > { %v26936_v11 = vmax.f32 %v26934_v63, 0.0  ;;  %v26935_v25 = vmax.f32 %v26933_v59, 0.0 }
0x1708   : > { %v26938_v43 = vpack.c.bf16 %v26936_v11, %v26936_v11  ;;  %v26937_v39 = vpack.c.bf16 %v26935_v25, %v26935_v25 }
0x170a   : > { %27100 = vmatprep.mubr.bf16.mxu1 %v26938_v43 }
0x170b   : > { %27101 = vmatmul.mubr.bf16.vlgmr.msra.gmra.mxu1 %v26937_v39 }
0x17cb   : > { %v28274_v12 = vpop.f32.mrf.mxu1 }
0x17cd   : > { %v28275_v41 = vpop.f32.mrf.mxu1 }
0x17ce   : > { %v28276_v18 = vadd.f32 %v28275_v41, %v28274_v12 }
0x17cf   : > { %v28277_v29 = vpop.f32.mrf.mxu1 }
0x17d0   : > { %v27103_v28 = vadd.f32 %v28276_v18, %v26971_v45 }
0x17d1   : > { %v28278_v38 = vpop.f32.mrf.mxu1 }
0x17d2   : > { %27108 = vst [vmem:[%s1691_s4] sm:$0x1] %v27103_v28 }
0x17d3   : > { %30540 = shalt.err (!%p30537_p6)
}
0x17d4   : > { %s30541_s23 = scalar_lea.hbm %s34038_s2, 16  ;;  %s30545_s6 = scalar_lea.hbm %s30967_s12, 32 }
0x17d5   : > { %p30542_p8 = scmp.ne.s32.totalorder %s34038_s2, %s30541_s23  ;;  %p30546_p13 = scmp.lt.s32.totalorder %s34038_s2, %s30967_s12 }
0x17d6   : > { %p30547_p9 = scmp.lt.s32.totalorder %s30545_s6, %s30541_s23 }
0x17d7   : > { %p30543_p11 = pnand %p30542_p8, %p34395_p1 }
0x17d8   : > { %p30548_p10 = por %p30547_p9, %p30546_p13 }
0x17d9   : > { %p30544_p12 = pneg %p30543_p11 }
0x17db   : > { %p30549_p0 = pnand %p30548_p10, %p30544_p12 }
0x17dd   : > { %30552 = shalt.err (!%p30549_p0)
}
0x17de   : > { %28936 = dma.vmem_to_hbm [thread:$0]  (%p34395_p1), %s27123_s5, 16, %s34038_s2, %s27110_s26  }
0x17df PF: > { %s34396_s1 = sld [smem:[#allocation108_spill]]  ;;  %p29012_p2 = scmp.ge.s32.totalorder %s30659_s11, 2 }
0x17e0   : > { %s27134_s22 = sand.u32 1, %s30647_s0  }
0x17e1   : > { %s27135_s4 = scalar_lea.sflag [#allocation4], %s27134_s22 }
0x17e5   : > { %p34397_p3 = scmp.ne.s32.totalorder %s34396_s1, 0 }
0x17e7   : > { %p28939_p4 = pnand %p29012_p2, %p34397_p3 }
0x17e9   : > { %p28940_p7 = pneg %p28939_p4 }
0x17eb   : > { %30642 = dma.done.wait (%p28940_p7), %s27135_s4, 16  }
0x17ec   : > { %30644 = vsyncadd (%p28940_p7), %s27135_s4, 4294967280  ;;  %s34398_s11 = sld [smem:[#allocation106_spill]]  ;;  %s34401_s0 = smov %s30651_s7 }
0x17ed   : > { %s34399_s3 = sld [smem:[#allocation105_spill]] }
0x17ee   : > { %s34400_s10 = sld [smem:[#allocation107_spill]] }
0x17f2   : > { %p111_p5 = scmp.ge.s32.totalorder %s34398_s11, 4  }
0x17f3   : > { %s34402_s7 = smov %s34399_s3 }
0x17f4   :  { %113 = sbr.rel (!%p111_p5) target bundleno = 95 (0x5f), region = 401 }
0x17f9   :  { %27139 = vsyncpa [#allocation3], 1 }
0x17fa   :  { %27141 = vsyncpa [#allocation3 + $0x1], 1 }
0x17fb   :  { %27142 = vsyncpa [#allocation6], 1 }
0x17fc   :  { %27143 = vsyncpa [#allocation9], 1 }
0x17fd   :  { %27144 = vsyncpa [#allocation12], 1 }
0x17fe   :  { %27145 = vsyncpa [#allocation15], 1 }
0x17ff   :  { %27146 = vsyncpa [#allocation18], 1 }
0x1800   :  { %27147 = vsyncpa [#allocation21], 1 }
0x1801   :  { %27148 = vsyncpa [#allocation24], 1 }
0x1802   :  { %27149 = vsyncpa [#allocation27], 1 }
0x1803   :  { %27150 = vsyncpa [#allocation30], 1 }
0x1804   :  { %27151 = vsyncpa [#allocation33], 1 }
0x1805   :  { %27152 = vsyncpa [#allocation36], 1 }
0x1806   :  { %27153 = vsyncpa [#allocation39], 1 }
0x1807   :  { %27154 = vsyncpa [#allocation42], 1 }
0x1808   :  { %27155 = vsyncpa [#allocation45], 1 }
0x1809   :  { %27156 = vsyncpa [#allocation48], 1 }
0x180a   :  { %27157 = vsyncpa [#allocation51], 1 }
0x180b   :  { %27158 = vsyncpa [#allocation54], 1 }
0x180c   :  { %27159 = vsyncpa [#allocation4], 1 }
0x180d   :  { %27161 = vsyncpa [#allocation4 + $0x1], 1 }

</bundles_post_ra>
